<compile_context>
chip_gen: v5e
topology: v5e:2x2
jax: 0.10.0
libtpu: 0.0.40
codegen_flags: <defaults>
</compile_context>

<pallas_src>
import functools

import jax
import jax.numpy as jnp
from jax.experimental import pallas as pl
from jax.experimental.pallas import tpu as pltpu


def _round_up(n, m):
    return ((n + m - 1) // m) * m


def _pad_axis(a, target, axis=-1):
    axis = axis % a.ndim
    pad = [(0, 0)] * a.ndim
    pad[axis] = (0, target - a.shape[axis])
    return jnp.pad(a, pad)


# ----------------------------------------------------------------------------
# Kernel 1: fused ASPP
#   branches 1..4 (+ folded BN + ReLU), merge 1x1 conv accumulation,
#   pooled-branch per-batch constant, merge BN + ReLU.
# Grid: (B, H // TH); one output-row tile of TH rows per step.
# ----------------------------------------------------------------------------
def _aspp_kernel(xp_ref, w1_ref, wd_ref, wm_ref, aff_ref, pool_ref, o_ref,
                 *, TH, W, Cin, Cp, dils, pad):
    r0 = pl.multiple_of(pl.program_id(1) * TH, TH)   # output row offset
    M = TH * W

    def bn_relu(y, s_row, t_row):
        return jnp.maximum(
            y * aff_ref[s_row:s_row + 1, :] + aff_ref[t_row:t_row + 1, :], 0.0)

    # branch 1: 1x1 conv on the interior window of the padded input
    x_in = xp_ref[:, pl.ds(r0 + pad, TH), pad:pad + W, :].reshape(M, Cin)
    z = bn_relu(jnp.dot(x_in, w1_ref[...],
                        preferred_element_type=jnp.float32), 0, 1)
    acc = jnp.dot(z.astype(jnp.bfloat16), wm_ref[0],
                  preferred_element_type=jnp.float32)

    # branches 2..4: dilated 3x3 convs as 9 shifted matmuls each
    for j, d in enumerate(dils):
        conv = jnp.zeros((M, Cp), jnp.float32)
        for ky in range(3):
            rs = r0 + pad + (ky - 1) * d          # row start in padded coords
            for kx in range(3):
                cs = pad + (kx - 1) * d           # static col start
                patch = xp_ref[:, pl.ds(rs, TH), cs:cs + W, :].reshape(M, Cin)
                conv = conv + jnp.dot(patch, wd_ref[j * 9 + ky * 3 + kx],
                                      preferred_element_type=jnp.float32)
        z = bn_relu(conv, 2 + 2 * j, 3 + 2 * j)
        acc = acc + jnp.dot(z.astype(jnp.bfloat16), wm_ref[j + 1],
                            preferred_element_type=jnp.float32)

    # pooled branch contribution: per-batch constant (already @ merge slice)
    acc = acc + pool_ref[...].reshape(1, Cp)

    # merge BN + ReLU  (Dropout2d after merge is identity at inference)
    out = jnp.maximum(acc * aff_ref[8:9, :] + aff_ref[9:10, :], 0.0)
    o_ref[...] = out.reshape(1, TH, W, Cp).astype(o_ref.dtype)


def fused_aspp(xp, w1, wd, wm_br, aff, pooled, *, H, W, TH, dils):
    B, Hp, Wp, Cin = xp.shape
    Cp = w1.shape[1]
    nH = H // TH
    kernel = functools.partial(_aspp_kernel, TH=TH, W=W, Cin=Cin, Cp=Cp,
                               dils=dils, pad=max(dils))
    return pl.pallas_call(
        kernel,
        out_shape=jax.ShapeDtypeStruct((B, H, W, Cp), jnp.bfloat16),
        grid=(B, nH),
        in_specs=[
            pl.BlockSpec((1, Hp, Wp, Cin), lambda b, i: (b, 0, 0, 0)),  # padded x
            pl.BlockSpec((Cin, Cp), lambda b, i: (0, 0)),               # w1
            pl.BlockSpec((27, Cin, Cp), lambda b, i: (0, 0, 0)),        # w2/3/4 taps
            pl.BlockSpec((4, Cp, Cp), lambda b, i: (0, 0, 0)),          # merge slices
            pl.BlockSpec((10, Cp), lambda b, i: (0, 0)),                # BN affines
            pl.BlockSpec((1, 1, Cp), lambda b, i: (b, 0, 0)),           # pooled const
        ],
        out_specs=pl.BlockSpec((1, TH, W, Cp), lambda b, i: (b, i, 0, 0)),
        compiler_params=pltpu.CompilerParams(
            dimension_semantics=("parallel", "parallel")),
    )(xp, w1, wd, wm_br, aff, pooled)


# ----------------------------------------------------------------------------
# Kernel 2: fused tail
#   3x3 conv (pad=1) + BN + ReLU + [Dropout2d identity] + 1x1 conv with bias.
# ----------------------------------------------------------------------------
def _tail_kernel(mp_ref, wt1_ref, wt2_ref, aff_ref, bias_ref, o_ref,
                 *, TH, W, Cp, Cop):
    r0 = pl.multiple_of(pl.program_id(1) * TH, TH)
    M = TH * W

    conv = jnp.zeros((M, Cp), jnp.float32)
    for ky in range(3):
        for kx in range(3):
            patch = mp_ref[:, pl.ds(r0 + ky, TH), kx:kx + W, :].reshape(M, Cp)
            conv = conv + jnp.dot(patch, wt1_ref[ky * 3 + kx],
                                  preferred_element_type=jnp.float32)
    t = jnp.maximum(conv * aff_ref[0:1, :] + aff_ref[1:2, :], 0.0)
    y = jnp.dot(t.astype(jnp.bfloat16), wt2_ref[...],
                preferred_element_type=jnp.float32) + bias_ref[...]
    o_ref[...] = y.reshape(1, TH, W, Cop)


def fused_tail(mp, wt1, wt2, aff_t, bias, *, H, W, TH):
    B, Hp, Wp, Cp = mp.shape
    Cop = wt2.shape[1]
    nH = H // TH
    kernel = functools.partial(_tail_kernel, TH=TH, W=W, Cp=Cp, Cop=Cop)
    return pl.pallas_call(
        kernel,
        out_shape=jax.ShapeDtypeStruct((B, H, W, Cop), jnp.float32),
        grid=(B, nH),
        in_specs=[
            pl.BlockSpec((1, Hp, Wp, Cp), lambda b, i: (b, 0, 0, 0)),
            pl.BlockSpec((9, Cp, Cp), lambda b, i: (0, 0, 0)),
            pl.BlockSpec((Cp, Cop), lambda b, i: (0, 0)),
            pl.BlockSpec((2, Cp), lambda b, i: (0, 0)),
            pl.BlockSpec((1, Cop), lambda b, i: (0, 0)),
        ],
        out_specs=pl.BlockSpec((1, TH, W, Cop), lambda b, i: (b, i, 0, 0)),
        compiler_params=pltpu.CompilerParams(
            dimension_semantics=("parallel", "parallel")),
    )(mp, wt1, wt2, aff_t, bias)


# ----------------------------------------------------------------------------
# Full DeepLabV3Core forward (inference)
# ----------------------------------------------------------------------------
def deeplabv3_core_forward(x_nchw, p):
    dils = (6, 12, 18)
    pad = max(dils)

    x = jnp.transpose(x_nchw, (0, 2, 3, 1)).astype(jnp.float32)  # NHWC boundary
    B, H, W, Cin = x.shape
    inter = p["w1"].shape[1]
    n_cls = p["wt2"].shape[1]
    Cp = _round_up(inter, 128)        # lane-dense intermediate channel width
    Cop = _round_up(n_cls, 128)       # lane-dense logits width
    TH = next(t for t in (8, 4, 2, 1) if H % t == 0)  # output-row tile height

    # single shared zero-padded input: pad = max dilation serves every rate
    xp = jnp.pad(x, ((0, 0), (pad, pad), (pad, pad), (0, 0))).astype(jnp.bfloat16)

    # weights: zero-pad channel dims to 128-multiples, cast matmul operands bf16
    w1 = _pad_axis(p["w1"], Cp).astype(jnp.bfloat16)                       # (Cin,Cp)
    wd = _pad_axis(jnp.concatenate([p["w2"], p["w3"], p["w4"]], 0), Cp)
    wd = wd.astype(jnp.bfloat16)                                           # (27,Cin,Cp)
    wm_nat = p["wm"].reshape(5, inter, inter)
    wm = _pad_axis(_pad_axis(wm_nat, Cp, axis=1), Cp, axis=2)              # (5,Cp,Cp)
    wm_br = wm[:4].astype(jnp.bfloat16)
    aff = jnp.concatenate(
        [_pad_axis(p[k], Cp) for k in
         ("s1", "t1", "s2", "t2", "s3", "t3", "s4", "t4", "sm", "tm")], 0)  # (10,Cp)

    # ASPPPooling: global mean -> 1x1 -> BN -> ReLU, then folded through the
    # merge conv into a per-batch constant (interpolate from 1x1 == broadcast).
    mean_x = jnp.mean(x, axis=(1, 2))                                      # (B,Cin)
    pooled = jnp.maximum((mean_x @ p["wp"]) * p["sp"] + p["tp"], 0.0)      # (B,inter)
    pool_c = _pad_axis(pooled @ wm_nat[4], Cp)[:, None, :]                 # (B,1,Cp)

    # fused ASPP (branches + merge); Dropout2d(0.1) is identity at inference
    m = fused_aspp(xp, w1, wd, wm_br, aff, pool_c, H=H, W=W, TH=TH, dils=dils)
    # TODO(synk): training-mode Dropout2d channel masking is not emulated.

    # fused tail
    mp = jnp.pad(m, ((0, 0), (1, 1), (1, 1), (0, 0)))                      # bf16
    wt1 = _pad_axis(_pad_axis(p["wt1"], Cp, axis=1), Cp, axis=2).astype(jnp.bfloat16)
    wt2 = _pad_axis(_pad_axis(p["wt2"], Cp, axis=0), Cop, axis=1).astype(jnp.bfloat16)
    aff_t = jnp.concatenate([_pad_axis(p["st1"], Cp), _pad_axis(p["tt1"], Cp)], 0)
    bias = _pad_axis(p["bt2"], Cop)
    out = fused_tail(mp, wt1, wt2, aff_t, bias, H=H, W=W, TH=TH)

    out = out[..., :n_cls]
    return jnp.transpose(out, (0, 3, 1, 2))  # back to NCHW at the boundary


# ----------------------------------------------------------------------------
# Deterministic parameter construction (folded BatchNorm -> scale/shift)
# ----------------------------------------------------------------------------
def _folded_bn(key, c, eps=1e-5):
    k1, k2, k3, k4 = jax.random.split(key, 4)
    gamma = 1.0 + 0.1 * jax.random.normal(k1, (c,), jnp.float32)
    beta = 0.1 * jax.random.normal(k2, (c,), jnp.float32)
    mean = 0.1 * jax.random.normal(k3, (c,), jnp.float32)
    var = 1.0 + 0.1 * jax.random.uniform(k4, (c,), jnp.float32)
    scale = gamma / jnp.sqrt(var + eps)
    shift = beta - mean * scale
    return scale[None, :], shift[None, :]


def make_params(key, in_channels, out_channels, os=16):
    inter = in_channels // os
    keys = jax.random.split(key, 20)

    def w1x1(k, cin, cout):
        return 0.1 * jax.random.normal(k, (cin, cout), jnp.float32)

    def w3x3(k, cin, cout):
        w = 0.1 * jax.random.normal(k, (3, 3, cin, cout), jnp.float32)
        return w.reshape(9, cin, cout)

    p = {}
    p["w1"] = w1x1(keys[0], in_channels, inter)
    p["s1"], p["t1"] = _folded_bn(keys[1], inter)
    p["w2"] = w3x3(keys[2], in_channels, inter)
    p["s2"], p["t2"] = _folded_bn(keys[3], inter)
    p["w3"] = w3x3(keys[4], in_channels, inter)
    p["s3"], p["t3"] = _folded_bn(keys[5], inter)
    p["w4"] = w3x3(keys[6], in_channels, inter)
    p["s4"], p["t4"] = _folded_bn(keys[7], inter)
    p["wp"] = w1x1(keys[8], in_channels, inter)
    p["sp"], p["tp"] = _folded_bn(keys[9], inter)
    p["wm"] = w1x1(keys[10], 5 * inter, inter)
    p["sm"], p["tm"] = _folded_bn(keys[11], inter)
    p["wt1"] = w3x3(keys[12], inter, inter)
    p["st1"], p["tt1"] = _folded_bn(keys[13], inter)
    p["wt2"] = w1x1(keys[14], inter, out_channels)
    p["bt2"] = 0.1 * jax.random.normal(keys[15], (1, out_channels), jnp.float32)
    return p


if __name__ == "__main__":
    # in_channels=64, os=16 -> inter_channels=4; out_channels=8; batch=2; 16x16.
    B, CIN, COUT, H, W = 2, 64, 8, 16, 16
    key = jax.random.PRNGKey(0)
    kx, kp = jax.random.split(key)
    x = jax.random.normal(kx, (B, CIN, H, W), jnp.float32)
    params = make_params(kp, CIN, COUT, os=16)

    fwd = jax.jit(deeplabv3_core_forward)
    out = fwd(x, params)
    jax.block_until_ready(out)
    assert out.shape == (B, COUT, H, W), out.shape
    assert jnp.all(jnp.isfinite(out))
    print("KERNEL_OK")
</pallas_src>

<mosaic_0001>
module attributes {stable_mosaic.version = 11 : i64} {
  func.func @_aspp_kernel(%arg0: i32, %arg1: i32, %arg2: memref<1x52x52x64xbf16, #tpu.memory_space<vmem>>, %arg3: memref<64x128xbf16, #tpu.memory_space<vmem>>, %arg4: memref<27x64x128xbf16, #tpu.memory_space<vmem>>, %arg5: memref<4x128x128xbf16, #tpu.memory_space<vmem>>, %arg6: memref<10x128xf32, #tpu.memory_space<vmem>>, %arg7: memref<1x1x128xf32, #tpu.memory_space<vmem>>, %arg8: memref<1x8x16x128xbf16, #tpu.memory_space<vmem>>) attributes {dimension_semantics = [#tpu.dimension_semantics<parallel>, #tpu.dimension_semantics<parallel>], iteration_bounds = array<i64: 2, 2>, scalar_prefetch = 0 : i64, scratch_operands = 0 : i64, tpu.core_type = #tpu.core_type<tc>, window_params = [{transform_indices = @transform_0, window_bounds = array<i64: 1, 52, 52, 64>}, {pipeline_mode = #tpu.pipeline_mode<synchronous>, transform_indices = @transform_1, window_bounds = array<i64: 64, 128>}, {pipeline_mode = #tpu.pipeline_mode<synchronous>, transform_indices = @transform_2, window_bounds = array<i64: 27, 64, 128>}, {pipeline_mode = #tpu.pipeline_mode<synchronous>, transform_indices = @transform_3, window_bounds = array<i64: 4, 128, 128>}, {pipeline_mode = #tpu.pipeline_mode<synchronous>, transform_indices = @transform_4, window_bounds = array<i64: 10, 128>}, {transform_indices = @transform_5, window_bounds = array<i64: 1, 1, 128>}, {transform_indices = @transform_6, window_bounds = array<i64: 1, 8, 16, 128>}]} {
    %c8_i32 = arith.constant 8 : i32
    %0 = arith.muli %arg1, %c8_i32 : i32
    %1 = tpu.assume_multiple %0, 8 : i32
    %c18_i32 = arith.constant 18 : i32
    %2 = arith.addi %1, %c18_i32 : i32
    %c0 = arith.constant 0 : index
    %3 = arith.index_cast %2 : i32 to index
    %c18 = arith.constant 18 : index
    %c0_0 = arith.constant 0 : index
    %4 = vector.load %arg2[%c0, %3, %c18, %c0_0] : memref<1x52x52x64xbf16, #tpu.memory_space<vmem>>, vector<1x8x16x64xbf16>
    %5 = vector.shape_cast %4 : vector<1x8x16x64xbf16> to vector<128x64xbf16>
    %c0_1 = arith.constant 0 : index
    %c0_2 = arith.constant 0 : index
    %6 = vector.load %arg3[%c0_1, %c0_2] : memref<64x128xbf16, #tpu.memory_space<vmem>>, vector<64x128xbf16>
    %cst = arith.constant dense<0.000000e+00> : vector<128x128xf32>
    %7 = tpu.matmul %5, %6, %cst {dimension_numbers = #tpu.dot_dimension_numbers<[1], [0], [0], [1], [0, 0, 1, 1], [], []>} : vector<128x64xbf16>, vector<64x128xbf16>, vector<128x128xf32> -> vector<128x128xf32>
    %c0_3 = arith.constant 0 : index
    %c0_4 = arith.constant 0 : index
    %8 = vector.load %arg6[%c0_3, %c0_4] : memref<10x128xf32, #tpu.memory_space<vmem>>, vector<1x128xf32>
    %9 = vector.broadcast %8 : vector<1x128xf32> to vector<128x128xf32>
    %10 = arith.mulf %7, %9 : vector<128x128xf32>
    %c1 = arith.constant 1 : index
    %c0_5 = arith.constant 0 : index
    %11 = vector.load %arg6[%c1, %c0_5] : memref<10x128xf32, #tpu.memory_space<vmem>>, vector<1x128xf32>
    %12 = vector.broadcast %11 : vector<1x128xf32> to vector<128x128xf32>
    %13 = arith.addf %10, %12 : vector<128x128xf32>
    %cst_6 = arith.constant 0.000000e+00 : f32
    %14 = vector.broadcast %cst_6 : f32 to vector<128x128xf32>
    %15 = arith.maximumf %13, %14 : vector<128x128xf32>
    %16 = arith.truncf %15 : vector<128x128xf32> to vector<128x128xbf16>
    %c0_7 = arith.constant 0 : index
    %c0_8 = arith.constant 0 : index
    %c0_9 = arith.constant 0 : index
    %17 = vector.load %arg5[%c0_7, %c0_8, %c0_9] : memref<4x128x128xbf16, #tpu.memory_space<vmem>>, vector<1x128x128xbf16>
    %18 = vector.shape_cast %17 : vector<1x128x128xbf16> to vector<128x128xbf16>
    %cst_10 = arith.constant dense<0.000000e+00> : vector<128x128xf32>
    %19 = tpu.matmul %16, %18, %cst_10 {dimension_numbers = #tpu.dot_dimension_numbers<[1], [0], [0], [1], [0, 0, 1, 1], [], []>} : vector<128x128xbf16>, vector<128x128xbf16>, vector<128x128xf32> -> vector<128x128xf32>
    %cst_11 = arith.constant 0.000000e+00 : f32
    %20 = vector.broadcast %cst_11 : f32 to vector<128x128xf32>
    %c18_i32_12 = arith.constant 18 : i32
    %21 = arith.addi %1, %c18_i32_12 : i32
    %c-6_i32 = arith.constant -6 : i32
    %22 = arith.addi %21, %c-6_i32 : i32
    %c0_13 = arith.constant 0 : index
    %23 = arith.index_cast %22 : i32 to index
    %c12 = arith.constant 12 : index
    %c0_14 = arith.constant 0 : index
    %24 = vector.load %arg2[%c0_13, %23, %c12, %c0_14] : memref<1x52x52x64xbf16, #tpu.memory_space<vmem>>, vector<1x8x16x64xbf16>
    %25 = vector.shape_cast %24 : vector<1x8x16x64xbf16> to vector<128x64xbf16>
    %c0_15 = arith.constant 0 : index
    %c0_16 = arith.constant 0 : index
    %c0_17 = arith.constant 0 : index
    %26 = vector.load %arg4[%c0_15, %c0_16, %c0_17] : memref<27x64x128xbf16, #tpu.memory_space<vmem>>, vector<1x64x128xbf16>
    %27 = vector.shape_cast %26 : vector<1x64x128xbf16> to vector<64x128xbf16>
    %cst_18 = arith.constant dense<0.000000e+00> : vector<128x128xf32>
    %28 = tpu.matmul %25, %27, %cst_18 {dimension_numbers = #tpu.dot_dimension_numbers<[1], [0], [0], [1], [0, 0, 1, 1], [], []>} : vector<128x64xbf16>, vector<64x128xbf16>, vector<128x128xf32> -> vector<128x128xf32>
    %29 = arith.addf %20, %28 : vector<128x128xf32>
    %c0_19 = arith.constant 0 : index
    %30 = arith.index_cast %22 : i32 to index
    %c18_20 = arith.constant 18 : index
    %c0_21 = arith.constant 0 : index
    %31 = vector.load %arg2[%c0_19, %30, %c18_20, %c0_21] : memref<1x52x52x64xbf16, #tpu.memory_space<vmem>>, vector<1x8x16x64xbf16>
    %32 = vector.shape_cast %31 : vector<1x8x16x64xbf16> to vector<128x64xbf16>
    %c1_22 = arith.constant 1 : index
    %c0_23 = arith.constant 0 : index
    %c0_24 = arith.constant 0 : index
    %33 = vector.load %arg4[%c1_22, %c0_23, %c0_24] : memref<27x64x128xbf16, #tpu.memory_space<vmem>>, vector<1x64x128xbf16>
    %34 = vector.shape_cast %33 : vector<1x64x128xbf16> to vector<64x128xbf16>
    %cst_25 = arith.constant dense<0.000000e+00> : vector<128x128xf32>
    %35 = tpu.matmul %32, %34, %cst_25 {dimension_numbers = #tpu.dot_dimension_numbers<[1], [0], [0], [1], [0, 0, 1, 1], [], []>} : vector<128x64xbf16>, vector<64x128xbf16>, vector<128x128xf32> -> vector<128x128xf32>
    %36 = arith.addf %29, %35 : vector<128x128xf32>
    %c0_26 = arith.constant 0 : index
    %37 = arith.index_cast %22 : i32 to index
    %c24 = arith.constant 24 : index
    %c0_27 = arith.constant 0 : index
    %38 = vector.load %arg2[%c0_26, %37, %c24, %c0_27] : memref<1x52x52x64xbf16, #tpu.memory_space<vmem>>, vector<1x8x16x64xbf16>
    %39 = vector.shape_cast %38 : vector<1x8x16x64xbf16> to vector<128x64xbf16>
    %c2 = arith.constant 2 : index
    %c0_28 = arith.constant 0 : index
    %c0_29 = arith.constant 0 : index
    %40 = vector.load %arg4[%c2, %c0_28, %c0_29] : memref<27x64x128xbf16, #tpu.memory_space<vmem>>, vector<1x64x128xbf16>
    %41 = vector.shape_cast %40 : vector<1x64x128xbf16> to vector<64x128xbf16>
    %cst_30 = arith.constant dense<0.000000e+00> : vector<128x128xf32>
    %42 = tpu.matmul %39, %41, %cst_30 {dimension_numbers = #tpu.dot_dimension_numbers<[1], [0], [0], [1], [0, 0, 1, 1], [], []>} : vector<128x64xbf16>, vector<64x128xbf16>, vector<128x128xf32> -> vector<128x128xf32>
    %43 = arith.addf %36, %42 : vector<128x128xf32>
    %c18_i32_31 = arith.constant 18 : i32
    %44 = arith.addi %1, %c18_i32_31 : i32
    %c0_i32 = arith.constant 0 : i32
    %45 = arith.addi %44, %c0_i32 : i32
    %c0_32 = arith.constant 0 : index
    %46 = arith.index_cast %45 : i32 to index
    %c12_33 = arith.constant 12 : index
    %c0_34 = arith.constant 0 : index
    %47 = vector.load %arg2[%c0_32, %46, %c12_33, %c0_34] : memref<1x52x52x64xbf16, #tpu.memory_space<vmem>>, vector<1x8x16x64xbf16>
    %48 = vector.shape_cast %47 : vector<1x8x16x64xbf16> to vector<128x64xbf16>
    %c3 = arith.constant 3 : index
    %c0_35 = arith.constant 0 : index
    %c0_36 = arith.constant 0 : index
    %49 = vector.load %arg4[%c3, %c0_35, %c0_36] : memref<27x64x128xbf16, #tpu.memory_space<vmem>>, vector<1x64x128xbf16>
    %50 = vector.shape_cast %49 : vector<1x64x128xbf16> to vector<64x128xbf16>
    %cst_37 = arith.constant dense<0.000000e+00> : vector<128x128xf32>
    %51 = tpu.matmul %48, %50, %cst_37 {dimension_numbers = #tpu.dot_dimension_numbers<[1], [0], [0], [1], [0, 0, 1, 1], [], []>} : vector<128x64xbf16>, vector<64x128xbf16>, vector<128x128xf32> -> vector<128x128xf32>
    %52 = arith.addf %43, %51 : vector<128x128xf32>
    %c0_38 = arith.constant 0 : index
    %53 = arith.index_cast %45 : i32 to index
    %c18_39 = arith.constant 18 : index
    %c0_40 = arith.constant 0 : index
    %54 = vector.load %arg2[%c0_38, %53, %c18_39, %c0_40] : memref<1x52x52x64xbf16, #tpu.memory_space<vmem>>, vector<1x8x16x64xbf16>
    %55 = vector.shape_cast %54 : vector<1x8x16x64xbf16> to vector<128x64xbf16>
    %c4 = arith.constant 4 : index
    %c0_41 = arith.constant 0 : index
    %c0_42 = arith.constant 0 : index
    %56 = vector.load %arg4[%c4, %c0_41, %c0_42] : memref<27x64x128xbf16, #tpu.memory_space<vmem>>, vector<1x64x128xbf16>
    %57 = vector.shape_cast %56 : vector<1x64x128xbf16> to vector<64x128xbf16>
    %cst_43 = arith.constant dense<0.000000e+00> : vector<128x128xf32>
    %58 = tpu.matmul %55, %57, %cst_43 {dimension_numbers = #tpu.dot_dimension_numbers<[1], [0], [0], [1], [0, 0, 1, 1], [], []>} : vector<128x64xbf16>, vector<64x128xbf16>, vector<128x128xf32> -> vector<128x128xf32>
    %59 = arith.addf %52, %58 : vector<128x128xf32>
    %c0_44 = arith.constant 0 : index
    %60 = arith.index_cast %45 : i32 to index
    %c24_45 = arith.constant 24 : index
    %c0_46 = arith.constant 0 : index
    %61 = vector.load %arg2[%c0_44, %60, %c24_45, %c0_46] : memref<1x52x52x64xbf16, #tpu.memory_space<vmem>>, vector<1x8x16x64xbf16>
    %62 = vector.shape_cast %61 : vector<1x8x16x64xbf16> to vector<128x64xbf16>
    %c5 = arith.constant 5 : index
    %c0_47 = arith.constant 0 : index
    %c0_48 = arith.constant 0 : index
    %63 = vector.load %arg4[%c5, %c0_47, %c0_48] : memref<27x64x128xbf16, #tpu.memory_space<vmem>>, vector<1x64x128xbf16>
    %64 = vector.shape_cast %63 : vector<1x64x128xbf16> to vector<64x128xbf16>
    %cst_49 = arith.constant dense<0.000000e+00> : vector<128x128xf32>
    %65 = tpu.matmul %62, %64, %cst_49 {dimension_numbers = #tpu.dot_dimension_numbers<[1], [0], [0], [1], [0, 0, 1, 1], [], []>} : vector<128x64xbf16>, vector<64x128xbf16>, vector<128x128xf32> -> vector<128x128xf32>
    %66 = arith.addf %59, %65 : vector<128x128xf32>
    %c18_i32_50 = arith.constant 18 : i32
    %67 = arith.addi %1, %c18_i32_50 : i32
    %c6_i32 = arith.constant 6 : i32
    %68 = arith.addi %67, %c6_i32 : i32
    %c0_51 = arith.constant 0 : index
    %69 = arith.index_cast %68 : i32 to index
    %c12_52 = arith.constant 12 : index
    %c0_53 = arith.constant 0 : index
    %70 = vector.load %arg2[%c0_51, %69, %c12_52, %c0_53] : memref<1x52x52x64xbf16, #tpu.memory_space<vmem>>, vector<1x8x16x64xbf16>
    %71 = vector.shape_cast %70 : vector<1x8x16x64xbf16> to vector<128x64xbf16>
    %c6 = arith.constant 6 : index
    %c0_54 = arith.constant 0 : index
    %c0_55 = arith.constant 0 : index
    %72 = vector.load %arg4[%c6, %c0_54, %c0_55] : memref<27x64x128xbf16, #tpu.memory_space<vmem>>, vector<1x64x128xbf16>
    %73 = vector.shape_cast %72 : vector<1x64x128xbf16> to vector<64x128xbf16>
    %cst_56 = arith.constant dense<0.000000e+00> : vector<128x128xf32>
    %74 = tpu.matmul %71, %73, %cst_56 {dimension_numbers = #tpu.dot_dimension_numbers<[1], [0], [0], [1], [0, 0, 1, 1], [], []>} : vector<128x64xbf16>, vector<64x128xbf16>, vector<128x128xf32> -> vector<128x128xf32>
    %75 = arith.addf %66, %74 : vector<128x128xf32>
    %c0_57 = arith.constant 0 : index
    %76 = arith.index_cast %68 : i32 to index
    %c18_58 = arith.constant 18 : index
    %c0_59 = arith.constant 0 : index
    %77 = vector.load %arg2[%c0_57, %76, %c18_58, %c0_59] : memref<1x52x52x64xbf16, #tpu.memory_space<vmem>>, vector<1x8x16x64xbf16>
    %78 = vector.shape_cast %77 : vector<1x8x16x64xbf16> to vector<128x64xbf16>
    %c7 = arith.constant 7 : index
    %c0_60 = arith.constant 0 : index
    %c0_61 = arith.constant 0 : index
    %79 = vector.load %arg4[%c7, %c0_60, %c0_61] : memref<27x64x128xbf16, #tpu.memory_space<vmem>>, vector<1x64x128xbf16>
    %80 = vector.shape_cast %79 : vector<1x64x128xbf16> to vector<64x128xbf16>
    %cst_62 = arith.constant dense<0.000000e+00> : vector<128x128xf32>
    %81 = tpu.matmul %78, %80, %cst_62 {dimension_numbers = #tpu.dot_dimension_numbers<[1], [0], [0], [1], [0, 0, 1, 1], [], []>} : vector<128x64xbf16>, vector<64x128xbf16>, vector<128x128xf32> -> vector<128x128xf32>
    %82 = arith.addf %75, %81 : vector<128x128xf32>
    %c0_63 = arith.constant 0 : index
    %83 = arith.index_cast %68 : i32 to index
    %c24_64 = arith.constant 24 : index
    %c0_65 = arith.constant 0 : index
    %84 = vector.load %arg2[%c0_63, %83, %c24_64, %c0_65] : memref<1x52x52x64xbf16, #tpu.memory_space<vmem>>, vector<1x8x16x64xbf16>
    %85 = vector.shape_cast %84 : vector<1x8x16x64xbf16> to vector<128x64xbf16>
    %c8 = arith.constant 8 : index
    %c0_66 = arith.constant 0 : index
    %c0_67 = arith.constant 0 : index
    %86 = vector.load %arg4[%c8, %c0_66, %c0_67] : memref<27x64x128xbf16, #tpu.memory_space<vmem>>, vector<1x64x128xbf16>
    %87 = vector.shape_cast %86 : vector<1x64x128xbf16> to vector<64x128xbf16>
    %cst_68 = arith.constant dense<0.000000e+00> : vector<128x128xf32>
    %88 = tpu.matmul %85, %87, %cst_68 {dimension_numbers = #tpu.dot_dimension_numbers<[1], [0], [0], [1], [0, 0, 1, 1], [], []>} : vector<128x64xbf16>, vector<64x128xbf16>, vector<128x128xf32> -> vector<128x128xf32>
    %89 = arith.addf %82, %88 : vector<128x128xf32>
    %c2_69 = arith.constant 2 : index
    %c0_70 = arith.constant 0 : index
    %90 = vector.load %arg6[%c2_69, %c0_70] : memref<10x128xf32, #tpu.memory_space<vmem>>, vector<1x128xf32>
    %91 = vector.broadcast %90 : vector<1x128xf32> to vector<128x128xf32>
    %92 = arith.mulf %89, %91 : vector<128x128xf32>
    %c3_71 = arith.constant 3 : index
    %c0_72 = arith.constant 0 : index
    %93 = vector.load %arg6[%c3_71, %c0_72] : memref<10x128xf32, #tpu.memory_space<vmem>>, vector<1x128xf32>
    %94 = vector.broadcast %93 : vector<1x128xf32> to vector<128x128xf32>
    %95 = arith.addf %92, %94 : vector<128x128xf32>
    %cst_73 = arith.constant 0.000000e+00 : f32
    %96 = vector.broadcast %cst_73 : f32 to vector<128x128xf32>
    %97 = arith.maximumf %95, %96 : vector<128x128xf32>
    %98 = arith.truncf %97 : vector<128x128xf32> to vector<128x128xbf16>
    %c1_74 = arith.constant 1 : index
    %c0_75 = arith.constant 0 : index
    %c0_76 = arith.constant 0 : index
    %99 = vector.load %arg5[%c1_74, %c0_75, %c0_76] : memref<4x128x128xbf16, #tpu.memory_space<vmem>>, vector<1x128x128xbf16>
    %100 = vector.shape_cast %99 : vector<1x128x128xbf16> to vector<128x128xbf16>
    %cst_77 = arith.constant dense<0.000000e+00> : vector<128x128xf32>
    %101 = tpu.matmul %98, %100, %cst_77 {dimension_numbers = #tpu.dot_dimension_numbers<[1], [0], [0], [1], [0, 0, 1, 1], [], []>} : vector<128x128xbf16>, vector<128x128xbf16>, vector<128x128xf32> -> vector<128x128xf32>
    %102 = arith.addf %19, %101 : vector<128x128xf32>
    %cst_78 = arith.constant 0.000000e+00 : f32
    %103 = vector.broadcast %cst_78 : f32 to vector<128x128xf32>
    %c18_i32_79 = arith.constant 18 : i32
    %104 = arith.addi %1, %c18_i32_79 : i32
    %c-12_i32 = arith.constant -12 : i32
    %105 = arith.addi %104, %c-12_i32 : i32
    %c0_80 = arith.constant 0 : index
    %106 = arith.index_cast %105 : i32 to index
    %c6_81 = arith.constant 6 : index
    %c0_82 = arith.constant 0 : index
    %107 = vector.load %arg2[%c0_80, %106, %c6_81, %c0_82] : memref<1x52x52x64xbf16, #tpu.memory_space<vmem>>, vector<1x8x16x64xbf16>
    %108 = vector.shape_cast %107 : vector<1x8x16x64xbf16> to vector<128x64xbf16>
    %c9 = arith.constant 9 : index
    %c0_83 = arith.constant 0 : index
    %c0_84 = arith.constant 0 : index
    %109 = vector.load %arg4[%c9, %c0_83, %c0_84] : memref<27x64x128xbf16, #tpu.memory_space<vmem>>, vector<1x64x128xbf16>
    %110 = vector.shape_cast %109 : vector<1x64x128xbf16> to vector<64x128xbf16>
    %cst_85 = arith.constant dense<0.000000e+00> : vector<128x128xf32>
    %111 = tpu.matmul %108, %110, %cst_85 {dimension_numbers = #tpu.dot_dimension_numbers<[1], [0], [0], [1], [0, 0, 1, 1], [], []>} : vector<128x64xbf16>, vector<64x128xbf16>, vector<128x128xf32> -> vector<128x128xf32>
    %112 = arith.addf %103, %111 : vector<128x128xf32>
    %c0_86 = arith.constant 0 : index
    %113 = arith.index_cast %105 : i32 to index
    %c18_87 = arith.constant 18 : index
    %c0_88 = arith.constant 0 : index
    %114 = vector.load %arg2[%c0_86, %113, %c18_87, %c0_88] : memref<1x52x52x64xbf16, #tpu.memory_space<vmem>>, vector<1x8x16x64xbf16>
    %115 = vector.shape_cast %114 : vector<1x8x16x64xbf16> to vector<128x64xbf16>
    %c10 = arith.constant 10 : index
    %c0_89 = arith.constant 0 : index
    %c0_90 = arith.constant 0 : index
    %116 = vector.load %arg4[%c10, %c0_89, %c0_90] : memref<27x64x128xbf16, #tpu.memory_space<vmem>>, vector<1x64x128xbf16>
    %117 = vector.shape_cast %116 : vector<1x64x128xbf16> to vector<64x128xbf16>
    %cst_91 = arith.constant dense<0.000000e+00> : vector<128x128xf32>
    %118 = tpu.matmul %115, %117, %cst_91 {dimension_numbers = #tpu.dot_dimension_numbers<[1], [0], [0], [1], [0, 0, 1, 1], [], []>} : vector<128x64xbf16>, vector<64x128xbf16>, vector<128x128xf32> -> vector<128x128xf32>
    %119 = arith.addf %112, %118 : vector<128x128xf32>
    %c0_92 = arith.constant 0 : index
    %120 = arith.index_cast %105 : i32 to index
    %c30 = arith.constant 30 : index
    %c0_93 = arith.constant 0 : index
    %121 = vector.load %arg2[%c0_92, %120, %c30, %c0_93] : memref<1x52x52x64xbf16, #tpu.memory_space<vmem>>, vector<1x8x16x64xbf16>
    %122 = vector.shape_cast %121 : vector<1x8x16x64xbf16> to vector<128x64xbf16>
    %c11 = arith.constant 11 : index
    %c0_94 = arith.constant 0 : index
    %c0_95 = arith.constant 0 : index
    %123 = vector.load %arg4[%c11, %c0_94, %c0_95] : memref<27x64x128xbf16, #tpu.memory_space<vmem>>, vector<1x64x128xbf16>
    %124 = vector.shape_cast %123 : vector<1x64x128xbf16> to vector<64x128xbf16>
    %cst_96 = arith.constant dense<0.000000e+00> : vector<128x128xf32>
    %125 = tpu.matmul %122, %124, %cst_96 {dimension_numbers = #tpu.dot_dimension_numbers<[1], [0], [0], [1], [0, 0, 1, 1], [], []>} : vector<128x64xbf16>, vector<64x128xbf16>, vector<128x128xf32> -> vector<128x128xf32>
    %126 = arith.addf %119, %125 : vector<128x128xf32>
    %c18_i32_97 = arith.constant 18 : i32
    %127 = arith.addi %1, %c18_i32_97 : i32
    %c0_i32_98 = arith.constant 0 : i32
    %128 = arith.addi %127, %c0_i32_98 : i32
    %c0_99 = arith.constant 0 : index
    %129 = arith.index_cast %128 : i32 to index
    %c6_100 = arith.constant 6 : index
    %c0_101 = arith.constant 0 : index
    %130 = vector.load %arg2[%c0_99, %129, %c6_100, %c0_101] : memref<1x52x52x64xbf16, #tpu.memory_space<vmem>>, vector<1x8x16x64xbf16>
    %131 = vector.shape_cast %130 : vector<1x8x16x64xbf16> to vector<128x64xbf16>
    %c12_102 = arith.constant 12 : index
    %c0_103 = arith.constant 0 : index
    %c0_104 = arith.constant 0 : index
    %132 = vector.load %arg4[%c12_102, %c0_103, %c0_104] : memref<27x64x128xbf16, #tpu.memory_space<vmem>>, vector<1x64x128xbf16>
    %133 = vector.shape_cast %132 : vector<1x64x128xbf16> to vector<64x128xbf16>
    %cst_105 = arith.constant dense<0.000000e+00> : vector<128x128xf32>
    %134 = tpu.matmul %131, %133, %cst_105 {dimension_numbers = #tpu.dot_dimension_numbers<[1], [0], [0], [1], [0, 0, 1, 1], [], []>} : vector<128x64xbf16>, vector<64x128xbf16>, vector<128x128xf32> -> vector<128x128xf32>
    %135 = arith.addf %126, %134 : vector<128x128xf32>
    %c0_106 = arith.constant 0 : index
    %136 = arith.index_cast %128 : i32 to index
    %c18_107 = arith.constant 18 : index
    %c0_108 = arith.constant 0 : index
    %137 = vector.load %arg2[%c0_106, %136, %c18_107, %c0_108] : memref<1x52x52x64xbf16, #tpu.memory_space<vmem>>, vector<1x8x16x64xbf16>
    %138 = vector.shape_cast %137 : vector<1x8x16x64xbf16> to vector<128x64xbf16>
    %c13 = arith.constant 13 : index
    %c0_109 = arith.constant 0 : index
    %c0_110 = arith.constant 0 : index
    %139 = vector.load %arg4[%c13, %c0_109, %c0_110] : memref<27x64x128xbf16, #tpu.memory_space<vmem>>, vector<1x64x128xbf16>
    %140 = vector.shape_cast %139 : vector<1x64x128xbf16> to vector<64x128xbf16>
    %cst_111 = arith.constant dense<0.000000e+00> : vector<128x128xf32>
    %141 = tpu.matmul %138, %140, %cst_111 {dimension_numbers = #tpu.dot_dimension_numbers<[1], [0], [0], [1], [0, 0, 1, 1], [], []>} : vector<128x64xbf16>, vector<64x128xbf16>, vector<128x128xf32> -> vector<128x128xf32>
    %142 = arith.addf %135, %141 : vector<128x128xf32>
    %c0_112 = arith.constant 0 : index
    %143 = arith.index_cast %128 : i32 to index
    %c30_113 = arith.constant 30 : index
    %c0_114 = arith.constant 0 : index
    %144 = vector.load %arg2[%c0_112, %143, %c30_113, %c0_114] : memref<1x52x52x64xbf16, #tpu.memory_space<vmem>>, vector<1x8x16x64xbf16>
    %145 = vector.shape_cast %144 : vector<1x8x16x64xbf16> to vector<128x64xbf16>
    %c14 = arith.constant 14 : index
    %c0_115 = arith.constant 0 : index
    %c0_116 = arith.constant 0 : index
    %146 = vector.load %arg4[%c14, %c0_115, %c0_116] : memref<27x64x128xbf16, #tpu.memory_space<vmem>>, vector<1x64x128xbf16>
    %147 = vector.shape_cast %146 : vector<1x64x128xbf16> to vector<64x128xbf16>
    %cst_117 = arith.constant dense<0.000000e+00> : vector<128x128xf32>
    %148 = tpu.matmul %145, %147, %cst_117 {dimension_numbers = #tpu.dot_dimension_numbers<[1], [0], [0], [1], [0, 0, 1, 1], [], []>} : vector<128x64xbf16>, vector<64x128xbf16>, vector<128x128xf32> -> vector<128x128xf32>
    %149 = arith.addf %142, %148 : vector<128x128xf32>
    %c18_i32_118 = arith.constant 18 : i32
    %150 = arith.addi %1, %c18_i32_118 : i32
    %c12_i32 = arith.constant 12 : i32
    %151 = arith.addi %150, %c12_i32 : i32
    %c0_119 = arith.constant 0 : index
    %152 = arith.index_cast %151 : i32 to index
    %c6_120 = arith.constant 6 : index
    %c0_121 = arith.constant 0 : index
    %153 = vector.load %arg2[%c0_119, %152, %c6_120, %c0_121] : memref<1x52x52x64xbf16, #tpu.memory_space<vmem>>, vector<1x8x16x64xbf16>
    %154 = vector.shape_cast %153 : vector<1x8x16x64xbf16> to vector<128x64xbf16>
    %c15 = arith.constant 15 : index
    %c0_122 = arith.constant 0 : index
    %c0_123 = arith.constant 0 : index
    %155 = vector.load %arg4[%c15, %c0_122, %c0_123] : memref<27x64x128xbf16, #tpu.memory_space<vmem>>, vector<1x64x128xbf16>
    %156 = vector.shape_cast %155 : vector<1x64x128xbf16> to vector<64x128xbf16>
    %cst_124 = arith.constant dense<0.000000e+00> : vector<128x128xf32>
    %157 = tpu.matmul %154, %156, %cst_124 {dimension_numbers = #tpu.dot_dimension_numbers<[1], [0], [0], [1], [0, 0, 1, 1], [], []>} : vector<128x64xbf16>, vector<64x128xbf16>, vector<128x128xf32> -> vector<128x128xf32>
    %158 = arith.addf %149, %157 : vector<128x128xf32>
    %c0_125 = arith.constant 0 : index
    %159 = arith.index_cast %151 : i32 to index
    %c18_126 = arith.constant 18 : index
    %c0_127 = arith.constant 0 : index
    %160 = vector.load %arg2[%c0_125, %159, %c18_126, %c0_127] : memref<1x52x52x64xbf16, #tpu.memory_space<vmem>>, vector<1x8x16x64xbf16>
    %161 = vector.shape_cast %160 : vector<1x8x16x64xbf16> to vector<128x64xbf16>
    %c16 = arith.constant 16 : index
    %c0_128 = arith.constant 0 : index
    %c0_129 = arith.constant 0 : index
    %162 = vector.load %arg4[%c16, %c0_128, %c0_129] : memref<27x64x128xbf16, #tpu.memory_space<vmem>>, vector<1x64x128xbf16>
    %163 = vector.shape_cast %162 : vector<1x64x128xbf16> to vector<64x128xbf16>
    %cst_130 = arith.constant dense<0.000000e+00> : vector<128x128xf32>
    %164 = tpu.matmul %161, %163, %cst_130 {dimension_numbers = #tpu.dot_dimension_numbers<[1], [0], [0], [1], [0, 0, 1, 1], [], []>} : vector<128x64xbf16>, vector<64x128xbf16>, vector<128x128xf32> -> vector<128x128xf32>
    %165 = arith.addf %158, %164 : vector<128x128xf32>
    %c0_131 = arith.constant 0 : index
    %166 = arith.index_cast %151 : i32 to index
    %c30_132 = arith.constant 30 : index
    %c0_133 = arith.constant 0 : index
    %167 = vector.load %arg2[%c0_131, %166, %c30_132, %c0_133] : memref<1x52x52x64xbf16, #tpu.memory_space<vmem>>, vector<1x8x16x64xbf16>
    %168 = vector.shape_cast %167 : vector<1x8x16x64xbf16> to vector<128x64xbf16>
    %c17 = arith.constant 17 : index
    %c0_134 = arith.constant 0 : index
    %c0_135 = arith.constant 0 : index
    %169 = vector.load %arg4[%c17, %c0_134, %c0_135] : memref<27x64x128xbf16, #tpu.memory_space<vmem>>, vector<1x64x128xbf16>
    %170 = vector.shape_cast %169 : vector<1x64x128xbf16> to vector<64x128xbf16>
    %cst_136 = arith.constant dense<0.000000e+00> : vector<128x128xf32>
    %171 = tpu.matmul %168, %170, %cst_136 {dimension_numbers = #tpu.dot_dimension_numbers<[1], [0], [0], [1], [0, 0, 1, 1], [], []>} : vector<128x64xbf16>, vector<64x128xbf16>, vector<128x128xf32> -> vector<128x128xf32>
    %172 = arith.addf %165, %171 : vector<128x128xf32>
    %c4_137 = arith.constant 4 : index
    %c0_138 = arith.constant 0 : index
    %173 = vector.load %arg6[%c4_137, %c0_138] : memref<10x128xf32, #tpu.memory_space<vmem>>, vector<1x128xf32>
    %174 = vector.broadcast %173 : vector<1x128xf32> to vector<128x128xf32>
    %175 = arith.mulf %172, %174 : vector<128x128xf32>
    %c5_139 = arith.constant 5 : index
    %c0_140 = arith.constant 0 : index
    %176 = vector.load %arg6[%c5_139, %c0_140] : memref<10x128xf32, #tpu.memory_space<vmem>>, vector<1x128xf32>
    %177 = vector.broadcast %176 : vector<1x128xf32> to vector<128x128xf32>
    %178 = arith.addf %175, %177 : vector<128x128xf32>
    %cst_141 = arith.constant 0.000000e+00 : f32
    %179 = vector.broadcast %cst_141 : f32 to vector<128x128xf32>
    %180 = arith.maximumf %178, %179 : vector<128x128xf32>
    %181 = arith.truncf %180 : vector<128x128xf32> to vector<128x128xbf16>
    %c2_142 = arith.constant 2 : index
    %c0_143 = arith.constant 0 : index
    %c0_144 = arith.constant 0 : index
    %182 = vector.load %arg5[%c2_142, %c0_143, %c0_144] : memref<4x128x128xbf16, #tpu.memory_space<vmem>>, vector<1x128x128xbf16>
    %183 = vector.shape_cast %182 : vector<1x128x128xbf16> to vector<128x128xbf16>
    %cst_145 = arith.constant dense<0.000000e+00> : vector<128x128xf32>
    %184 = tpu.matmul %181, %183, %cst_145 {dimension_numbers = #tpu.dot_dimension_numbers<[1], [0], [0], [1], [0, 0, 1, 1], [], []>} : vector<128x128xbf16>, vector<128x128xbf16>, vector<128x128xf32> -> vector<128x128xf32>
    %185 = arith.addf %102, %184 : vector<128x128xf32>
    %cst_146 = arith.constant 0.000000e+00 : f32
    %186 = vector.broadcast %cst_146 : f32 to vector<128x128xf32>
    %c18_i32_147 = arith.constant 18 : i32
    %187 = arith.addi %1, %c18_i32_147 : i32
    %c-18_i32 = arith.constant -18 : i32
    %188 = arith.addi %187, %c-18_i32 : i32
    %c0_148 = arith.constant 0 : index
    %189 = arith.index_cast %188 : i32 to index
    %c0_149 = arith.constant 0 : index
    %c0_150 = arith.constant 0 : index
    %190 = vector.load %arg2[%c0_148, %189, %c0_149, %c0_150] : memref<1x52x52x64xbf16, #tpu.memory_space<vmem>>, vector<1x8x16x64xbf16>
    %191 = vector.shape_cast %190 : vector<1x8x16x64xbf16> to vector<128x64xbf16>
    %c18_151 = arith.constant 18 : index
    %c0_152 = arith.constant 0 : index
    %c0_153 = arith.constant 0 : index
    %192 = vector.load %arg4[%c18_151, %c0_152, %c0_153] : memref<27x64x128xbf16, #tpu.memory_space<vmem>>, vector<1x64x128xbf16>
    %193 = vector.shape_cast %192 : vector<1x64x128xbf16> to vector<64x128xbf16>
    %cst_154 = arith.constant dense<0.000000e+00> : vector<128x128xf32>
    %194 = tpu.matmul %191, %193, %cst_154 {dimension_numbers = #tpu.dot_dimension_numbers<[1], [0], [0], [1], [0, 0, 1, 1], [], []>} : vector<128x64xbf16>, vector<64x128xbf16>, vector<128x128xf32> -> vector<128x128xf32>
    %195 = arith.addf %186, %194 : vector<128x128xf32>
    %c0_155 = arith.constant 0 : index
    %196 = arith.index_cast %188 : i32 to index
    %c18_156 = arith.constant 18 : index
    %c0_157 = arith.constant 0 : index
    %197 = vector.load %arg2[%c0_155, %196, %c18_156, %c0_157] : memref<1x52x52x64xbf16, #tpu.memory_space<vmem>>, vector<1x8x16x64xbf16>
    %198 = vector.shape_cast %197 : vector<1x8x16x64xbf16> to vector<128x64xbf16>
    %c19 = arith.constant 19 : index
    %c0_158 = arith.constant 0 : index
    %c0_159 = arith.constant 0 : index
    %199 = vector.load %arg4[%c19, %c0_158, %c0_159] : memref<27x64x128xbf16, #tpu.memory_space<vmem>>, vector<1x64x128xbf16>
    %200 = vector.shape_cast %199 : vector<1x64x128xbf16> to vector<64x128xbf16>
    %cst_160 = arith.constant dense<0.000000e+00> : vector<128x128xf32>
    %201 = tpu.matmul %198, %200, %cst_160 {dimension_numbers = #tpu.dot_dimension_numbers<[1], [0], [0], [1], [0, 0, 1, 1], [], []>} : vector<128x64xbf16>, vector<64x128xbf16>, vector<128x128xf32> -> vector<128x128xf32>
    %202 = arith.addf %195, %201 : vector<128x128xf32>
    %c0_161 = arith.constant 0 : index
    %203 = arith.index_cast %188 : i32 to index
    %c36 = arith.constant 36 : index
    %c0_162 = arith.constant 0 : index
    %204 = vector.load %arg2[%c0_161, %203, %c36, %c0_162] : memref<1x52x52x64xbf16, #tpu.memory_space<vmem>>, vector<1x8x16x64xbf16>
    %205 = vector.shape_cast %204 : vector<1x8x16x64xbf16> to vector<128x64xbf16>
    %c20 = arith.constant 20 : index
    %c0_163 = arith.constant 0 : index
    %c0_164 = arith.constant 0 : index
    %206 = vector.load %arg4[%c20, %c0_163, %c0_164] : memref<27x64x128xbf16, #tpu.memory_space<vmem>>, vector<1x64x128xbf16>
    %207 = vector.shape_cast %206 : vector<1x64x128xbf16> to vector<64x128xbf16>
    %cst_165 = arith.constant dense<0.000000e+00> : vector<128x128xf32>
    %208 = tpu.matmul %205, %207, %cst_165 {dimension_numbers = #tpu.dot_dimension_numbers<[1], [0], [0], [1], [0, 0, 1, 1], [], []>} : vector<128x64xbf16>, vector<64x128xbf16>, vector<128x128xf32> -> vector<128x128xf32>
    %209 = arith.addf %202, %208 : vector<128x128xf32>
    %c18_i32_166 = arith.constant 18 : i32
    %210 = arith.addi %1, %c18_i32_166 : i32
    %c0_i32_167 = arith.constant 0 : i32
    %211 = arith.addi %210, %c0_i32_167 : i32
    %c0_168 = arith.constant 0 : index
    %212 = arith.index_cast %211 : i32 to index
    %c0_169 = arith.constant 0 : index
    %c0_170 = arith.constant 0 : index
    %213 = vector.load %arg2[%c0_168, %212, %c0_169, %c0_170] : memref<1x52x52x64xbf16, #tpu.memory_space<vmem>>, vector<1x8x16x64xbf16>
    %214 = vector.shape_cast %213 : vector<1x8x16x64xbf16> to vector<128x64xbf16>
    %c21 = arith.constant 21 : index
    %c0_171 = arith.constant 0 : index
    %c0_172 = arith.constant 0 : index
    %215 = vector.load %arg4[%c21, %c0_171, %c0_172] : memref<27x64x128xbf16, #tpu.memory_space<vmem>>, vector<1x64x128xbf16>
    %216 = vector.shape_cast %215 : vector<1x64x128xbf16> to vector<64x128xbf16>
    %cst_173 = arith.constant dense<0.000000e+00> : vector<128x128xf32>
    %217 = tpu.matmul %214, %216, %cst_173 {dimension_numbers = #tpu.dot_dimension_numbers<[1], [0], [0], [1], [0, 0, 1, 1], [], []>} : vector<128x64xbf16>, vector<64x128xbf16>, vector<128x128xf32> -> vector<128x128xf32>
    %218 = arith.addf %209, %217 : vector<128x128xf32>
    %c0_174 = arith.constant 0 : index
    %219 = arith.index_cast %211 : i32 to index
    %c18_175 = arith.constant 18 : index
    %c0_176 = arith.constant 0 : index
    %220 = vector.load %arg2[%c0_174, %219, %c18_175, %c0_176] : memref<1x52x52x64xbf16, #tpu.memory_space<vmem>>, vector<1x8x16x64xbf16>
    %221 = vector.shape_cast %220 : vector<1x8x16x64xbf16> to vector<128x64xbf16>
    %c22 = arith.constant 22 : index
    %c0_177 = arith.constant 0 : index
    %c0_178 = arith.constant 0 : index
    %222 = vector.load %arg4[%c22, %c0_177, %c0_178] : memref<27x64x128xbf16, #tpu.memory_space<vmem>>, vector<1x64x128xbf16>
    %223 = vector.shape_cast %222 : vector<1x64x128xbf16> to vector<64x128xbf16>
    %cst_179 = arith.constant dense<0.000000e+00> : vector<128x128xf32>
    %224 = tpu.matmul %221, %223, %cst_179 {dimension_numbers = #tpu.dot_dimension_numbers<[1], [0], [0], [1], [0, 0, 1, 1], [], []>} : vector<128x64xbf16>, vector<64x128xbf16>, vector<128x128xf32> -> vector<128x128xf32>
    %225 = arith.addf %218, %224 : vector<128x128xf32>
    %c0_180 = arith.constant 0 : index
    %226 = arith.index_cast %211 : i32 to index
    %c36_181 = arith.constant 36 : index
    %c0_182 = arith.constant 0 : index
    %227 = vector.load %arg2[%c0_180, %226, %c36_181, %c0_182] : memref<1x52x52x64xbf16, #tpu.memory_space<vmem>>, vector<1x8x16x64xbf16>
    %228 = vector.shape_cast %227 : vector<1x8x16x64xbf16> to vector<128x64xbf16>
    %c23 = arith.constant 23 : index
    %c0_183 = arith.constant 0 : index
    %c0_184 = arith.constant 0 : index
    %229 = vector.load %arg4[%c23, %c0_183, %c0_184] : memref<27x64x128xbf16, #tpu.memory_space<vmem>>, vector<1x64x128xbf16>
    %230 = vector.shape_cast %229 : vector<1x64x128xbf16> to vector<64x128xbf16>
    %cst_185 = arith.constant dense<0.000000e+00> : vector<128x128xf32>
    %231 = tpu.matmul %228, %230, %cst_185 {dimension_numbers = #tpu.dot_dimension_numbers<[1], [0], [0], [1], [0, 0, 1, 1], [], []>} : vector<128x64xbf16>, vector<64x128xbf16>, vector<128x128xf32> -> vector<128x128xf32>
    %232 = arith.addf %225, %231 : vector<128x128xf32>
    %c18_i32_186 = arith.constant 18 : i32
    %233 = arith.addi %1, %c18_i32_186 : i32
    %c18_i32_187 = arith.constant 18 : i32
    %234 = arith.addi %233, %c18_i32_187 : i32
    %c0_188 = arith.constant 0 : index
    %235 = arith.index_cast %234 : i32 to index
    %c0_189 = arith.constant 0 : index
    %c0_190 = arith.constant 0 : index
    %236 = vector.load %arg2[%c0_188, %235, %c0_189, %c0_190] : memref<1x52x52x64xbf16, #tpu.memory_space<vmem>>, vector<1x8x16x64xbf16>
    %237 = vector.shape_cast %236 : vector<1x8x16x64xbf16> to vector<128x64xbf16>
    %c24_191 = arith.constant 24 : index
    %c0_192 = arith.constant 0 : index
    %c0_193 = arith.constant 0 : index
    %238 = vector.load %arg4[%c24_191, %c0_192, %c0_193] : memref<27x64x128xbf16, #tpu.memory_space<vmem>>, vector<1x64x128xbf16>
    %239 = vector.shape_cast %238 : vector<1x64x128xbf16> to vector<64x128xbf16>
    %cst_194 = arith.constant dense<0.000000e+00> : vector<128x128xf32>
    %240 = tpu.matmul %237, %239, %cst_194 {dimension_numbers = #tpu.dot_dimension_numbers<[1], [0], [0], [1], [0, 0, 1, 1], [], []>} : vector<128x64xbf16>, vector<64x128xbf16>, vector<128x128xf32> -> vector<128x128xf32>
    %241 = arith.addf %232, %240 : vector<128x128xf32>
    %c0_195 = arith.constant 0 : index
    %242 = arith.index_cast %234 : i32 to index
    %c18_196 = arith.constant 18 : index
    %c0_197 = arith.constant 0 : index
    %243 = vector.load %arg2[%c0_195, %242, %c18_196, %c0_197] : memref<1x52x52x64xbf16, #tpu.memory_space<vmem>>, vector<1x8x16x64xbf16>
    %244 = vector.shape_cast %243 : vector<1x8x16x64xbf16> to vector<128x64xbf16>
    %c25 = arith.constant 25 : index
    %c0_198 = arith.constant 0 : index
    %c0_199 = arith.constant 0 : index
    %245 = vector.load %arg4[%c25, %c0_198, %c0_199] : memref<27x64x128xbf16, #tpu.memory_space<vmem>>, vector<1x64x128xbf16>
    %246 = vector.shape_cast %245 : vector<1x64x128xbf16> to vector<64x128xbf16>
    %cst_200 = arith.constant dense<0.000000e+00> : vector<128x128xf32>
    %247 = tpu.matmul %244, %246, %cst_200 {dimension_numbers = #tpu.dot_dimension_numbers<[1], [0], [0], [1], [0, 0, 1, 1], [], []>} : vector<128x64xbf16>, vector<64x128xbf16>, vector<128x128xf32> -> vector<128x128xf32>
    %248 = arith.addf %241, %247 : vector<128x128xf32>
    %c0_201 = arith.constant 0 : index
    %249 = arith.index_cast %234 : i32 to index
    %c36_202 = arith.constant 36 : index
    %c0_203 = arith.constant 0 : index
    %250 = vector.load %arg2[%c0_201, %249, %c36_202, %c0_203] : memref<1x52x52x64xbf16, #tpu.memory_space<vmem>>, vector<1x8x16x64xbf16>
    %251 = vector.shape_cast %250 : vector<1x8x16x64xbf16> to vector<128x64xbf16>
    %c26 = arith.constant 26 : index
    %c0_204 = arith.constant 0 : index
    %c0_205 = arith.constant 0 : index
    %252 = vector.load %arg4[%c26, %c0_204, %c0_205] : memref<27x64x128xbf16, #tpu.memory_space<vmem>>, vector<1x64x128xbf16>
    %253 = vector.shape_cast %252 : vector<1x64x128xbf16> to vector<64x128xbf16>
    %cst_206 = arith.constant dense<0.000000e+00> : vector<128x128xf32>
    %254 = tpu.matmul %251, %253, %cst_206 {dimension_numbers = #tpu.dot_dimension_numbers<[1], [0], [0], [1], [0, 0, 1, 1], [], []>} : vector<128x64xbf16>, vector<64x128xbf16>, vector<128x128xf32> -> vector<128x128xf32>
    %255 = arith.addf %248, %254 : vector<128x128xf32>
    %c6_207 = arith.constant 6 : index
    %c0_208 = arith.constant 0 : index
    %256 = vector.load %arg6[%c6_207, %c0_208] : memref<10x128xf32, #tpu.memory_space<vmem>>, vector<1x128xf32>
    %257 = vector.broadcast %256 : vector<1x128xf32> to vector<128x128xf32>
    %258 = arith.mulf %255, %257 : vector<128x128xf32>
    %c7_209 = arith.constant 7 : index
    %c0_210 = arith.constant 0 : index
    %259 = vector.load %arg6[%c7_209, %c0_210] : memref<10x128xf32, #tpu.memory_space<vmem>>, vector<1x128xf32>
    %260 = vector.broadcast %259 : vector<1x128xf32> to vector<128x128xf32>
    %261 = arith.addf %258, %260 : vector<128x128xf32>
    %cst_211 = arith.constant 0.000000e+00 : f32
    %262 = vector.broadcast %cst_211 : f32 to vector<128x128xf32>
    %263 = arith.maximumf %261, %262 : vector<128x128xf32>
    %264 = arith.truncf %263 : vector<128x128xf32> to vector<128x128xbf16>
    %c3_212 = arith.constant 3 : index
    %c0_213 = arith.constant 0 : index
    %c0_214 = arith.constant 0 : index
    %265 = vector.load %arg5[%c3_212, %c0_213, %c0_214] : memref<4x128x128xbf16, #tpu.memory_space<vmem>>, vector<1x128x128xbf16>
    %266 = vector.shape_cast %265 : vector<1x128x128xbf16> to vector<128x128xbf16>
    %cst_215 = arith.constant dense<0.000000e+00> : vector<128x128xf32>
    %267 = tpu.matmul %264, %266, %cst_215 {dimension_numbers = #tpu.dot_dimension_numbers<[1], [0], [0], [1], [0, 0, 1, 1], [], []>} : vector<128x128xbf16>, vector<128x128xbf16>, vector<128x128xf32> -> vector<128x128xf32>
    %268 = arith.addf %185, %267 : vector<128x128xf32>
    %c0_216 = arith.constant 0 : index
    %c0_217 = arith.constant 0 : index
    %c0_218 = arith.constant 0 : index
    %269 = vector.load %arg7[%c0_216, %c0_217, %c0_218] : memref<1x1x128xf32, #tpu.memory_space<vmem>>, vector<1x1x128xf32>
    %270 = vector.shape_cast %269 : vector<1x1x128xf32> to vector<1x128xf32>
    %271 = vector.broadcast %270 : vector<1x128xf32> to vector<128x128xf32>
    %272 = arith.addf %268, %271 : vector<128x128xf32>
    %c8_219 = arith.constant 8 : index
    %c0_220 = arith.constant 0 : index
    %273 = vector.load %arg6[%c8_219, %c0_220] : memref<10x128xf32, #tpu.memory_space<vmem>>, vector<1x128xf32>
    %274 = vector.broadcast %273 : vector<1x128xf32> to vector<128x128xf32>
    %275 = arith.mulf %272, %274 : vector<128x128xf32>
    %c9_221 = arith.constant 9 : index
    %c0_222 = arith.constant 0 : index
    %276 = vector.load %arg6[%c9_221, %c0_222] : memref<10x128xf32, #tpu.memory_space<vmem>>, vector<1x128xf32>
    %277 = vector.broadcast %276 : vector<1x128xf32> to vector<128x128xf32>
    %278 = arith.addf %275, %277 : vector<128x128xf32>
    %cst_223 = arith.constant 0.000000e+00 : f32
    %279 = vector.broadcast %cst_223 : f32 to vector<128x128xf32>
    %280 = arith.maximumf %278, %279 : vector<128x128xf32>
    %281 = vector.shape_cast %280 : vector<128x128xf32> to vector<1x8x16x128xf32>
    %282 = arith.truncf %281 : vector<1x8x16x128xf32> to vector<1x8x16x128xbf16>
    %c0_224 = arith.constant 0 : index
    %c0_225 = arith.constant 0 : index
    %c0_226 = arith.constant 0 : index
    %c0_227 = arith.constant 0 : index
    %283 = vector.load %arg8[%c0_224, %c0_225, %c0_226, %c0_227] : memref<1x8x16x128xbf16, #tpu.memory_space<vmem>>, vector<1x8x16x128xbf16>
    tpu.vector_store %arg8[%c0_224, %c0_225, %c0_226, %c0_227], %282 {strides = array<i32>} : memref<1x8x16x128xbf16, #tpu.memory_space<vmem>>, vector<1x8x16x128xbf16>,
    return
  }
  func.func @transform_0(%arg0: i32, %arg1: i32) -> (i32, i32, i32, i32) {
    %c0_i32 = arith.constant 0 : i32
    %c0_i32_0 = arith.constant 0 : i32
    %c0_i32_1 = arith.constant 0 : i32
    %c0_i32_2 = arith.constant 0 : i32
    return %arg0, %c0_i32, %c0_i32_0, %c0_i32_1 : i32, i32, i32, i32
  }
  func.func @transform_1(%arg0: i32, %arg1: i32) -> (i32, i32) {
    %c0_i32 = arith.constant 0 : i32
    %c0_i32_0 = arith.constant 0 : i32
    %c0_i32_1 = arith.constant 0 : i32
    return %c0_i32, %c0_i32_0 : i32, i32
  }
  func.func @transform_2(%arg0: i32, %arg1: i32) -> (i32, i32, i32) {
    %c0_i32 = arith.constant 0 : i32
    %c0_i32_0 = arith.constant 0 : i32
    %c0_i32_1 = arith.constant 0 : i32
    %c0_i32_2 = arith.constant 0 : i32
    return %c0_i32, %c0_i32_0, %c0_i32_1 : i32, i32, i32
  }
  func.func @transform_3(%arg0: i32, %arg1: i32) -> (i32, i32, i32) {
    %c0_i32 = arith.constant 0 : i32
    %c0_i32_0 = arith.constant 0 : i32
    %c0_i32_1 = arith.constant 0 : i32
    %c0_i32_2 = arith.constant 0 : i32
    return %c0_i32, %c0_i32_0, %c0_i32_1 : i32, i32, i32
  }
  func.func @transform_4(%arg0: i32, %arg1: i32) -> (i32, i32) {
    %c0_i32 = arith.constant 0 : i32
    %c0_i32_0 = arith.constant 0 : i32
    %c0_i32_1 = arith.constant 0 : i32
    return %c0_i32, %c0_i32_0 : i32, i32
  }
  func.func @transform_5(%arg0: i32, %arg1: i32) -> (i32, i32, i32) {
    %c0_i32 = arith.constant 0 : i32
    %c0_i32_0 = arith.constant 0 : i32
    %c0_i32_1 = arith.constant 0 : i32
    return %arg0, %c0_i32, %c0_i32_0 : i32, i32, i32
  }
  func.func @transform_6(%arg0: i32, %arg1: i32) -> (i32, i32, i32, i32) {
    %c0_i32 = arith.constant 0 : i32
    %c0_i32_0 = arith.constant 0 : i32
    %c0_i32_1 = arith.constant 0 : i32
    return %arg0, %arg1, %c0_i32, %c0_i32_0 : i32, i32, i32, i32
  }
}

module attributes {stable_mosaic.version = 11 : i64} {
  func.func @_tail_kernel(%arg0: i32, %arg1: i32, %arg2: memref<1x18x18x128xbf16, #tpu.memory_space<vmem>>, %arg3: memref<9x128x128xbf16, #tpu.memory_space<vmem>>, %arg4: memref<128x128xbf16, #tpu.memory_space<vmem>>, %arg5: memref<2x128xf32, #tpu.memory_space<vmem>>, %arg6: memref<1x128xf32, #tpu.memory_space<vmem>>, %arg7: memref<1x8x16x128xf32, #tpu.memory_space<vmem>>) attributes {dimension_semantics = [#tpu.dimension_semantics<parallel>, #tpu.dimension_semantics<parallel>], iteration_bounds = array<i64: 2, 2>, scalar_prefetch = 0 : i64, scratch_operands = 0 : i64, tpu.core_type = #tpu.core_type<tc>, window_params = [{transform_indices = @transform_0, window_bounds = array<i64: 1, 18, 18, 128>}, {pipeline_mode = #tpu.pipeline_mode<synchronous>, transform_indices = @transform_1, window_bounds = array<i64: 9, 128, 128>}, {pipeline_mode = #tpu.pipeline_mode<synchronous>, transform_indices = @transform_2, window_bounds = array<i64: 128, 128>}, {pipeline_mode = #tpu.pipeline_mode<synchronous>, transform_indices = @transform_3, window_bounds = array<i64: 2, 128>}, {pipeline_mode = #tpu.pipeline_mode<synchronous>, transform_indices = @transform_4, window_bounds = array<i64: 1, 128>}, {transform_indices = @transform_5, window_bounds = array<i64: 1, 8, 16, 128>}]} {
    %c8_i32 = arith.constant 8 : i32
    %0 = arith.muli %arg1, %c8_i32 : i32
    %1 = tpu.assume_multiple %0, 8 : i32
    %cst = arith.constant 0.000000e+00 : f32
    %2 = vector.broadcast %cst : f32 to vector<128x128xf32>
    %c0_i32 = arith.constant 0 : i32
    %3 = arith.addi %1, %c0_i32 : i32
    %c0 = arith.constant 0 : index
    %4 = arith.index_cast %3 : i32 to index
    %c0_0 = arith.constant 0 : index
    %c0_1 = arith.constant 0 : index
    %5 = vector.load %arg2[%c0, %4, %c0_0, %c0_1] : memref<1x18x18x128xbf16, #tpu.memory_space<vmem>>, vector<1x8x16x128xbf16>
    %6 = vector.shape_cast %5 : vector<1x8x16x128xbf16> to vector<128x128xbf16>
    %c0_2 = arith.constant 0 : index
    %c0_3 = arith.constant 0 : index
    %c0_4 = arith.constant 0 : index
    %7 = vector.load %arg3[%c0_2, %c0_3, %c0_4] : memref<9x128x128xbf16, #tpu.memory_space<vmem>>, vector<1x128x128xbf16>
    %8 = vector.shape_cast %7 : vector<1x128x128xbf16> to vector<128x128xbf16>
    %cst_5 = arith.constant dense<0.000000e+00> : vector<128x128xf32>
    %9 = tpu.matmul %6, %8, %cst_5 {dimension_numbers = #tpu.dot_dimension_numbers<[1], [0], [0], [1], [0, 0, 1, 1], [], []>} : vector<128x128xbf16>, vector<128x128xbf16>, vector<128x128xf32> -> vector<128x128xf32>
    %10 = arith.addf %2, %9 : vector<128x128xf32>
    %c0_i32_6 = arith.constant 0 : i32
    %11 = arith.addi %1, %c0_i32_6 : i32
    %c0_7 = arith.constant 0 : index
    %12 = arith.index_cast %11 : i32 to index
    %c1 = arith.constant 1 : index
    %c0_8 = arith.constant 0 : index
    %13 = vector.load %arg2[%c0_7, %12, %c1, %c0_8] : memref<1x18x18x128xbf16, #tpu.memory_space<vmem>>, vector<1x8x16x128xbf16>
    %14 = vector.shape_cast %13 : vector<1x8x16x128xbf16> to vector<128x128xbf16>
    %c1_9 = arith.constant 1 : index
    %c0_10 = arith.constant 0 : index
    %c0_11 = arith.constant 0 : index
    %15 = vector.load %arg3[%c1_9, %c0_10, %c0_11] : memref<9x128x128xbf16, #tpu.memory_space<vmem>>, vector<1x128x128xbf16>
    %16 = vector.shape_cast %15 : vector<1x128x128xbf16> to vector<128x128xbf16>
    %cst_12 = arith.constant dense<0.000000e+00> : vector<128x128xf32>
    %17 = tpu.matmul %14, %16, %cst_12 {dimension_numbers = #tpu.dot_dimension_numbers<[1], [0], [0], [1], [0, 0, 1, 1], [], []>} : vector<128x128xbf16>, vector<128x128xbf16>, vector<128x128xf32> -> vector<128x128xf32>
    %18 = arith.addf %10, %17 : vector<128x128xf32>
    %c0_i32_13 = arith.constant 0 : i32
    %19 = arith.addi %1, %c0_i32_13 : i32
    %c0_14 = arith.constant 0 : index
    %20 = arith.index_cast %19 : i32 to index
    %c2 = arith.constant 2 : index
    %c0_15 = arith.constant 0 : index
    %21 = vector.load %arg2[%c0_14, %20, %c2, %c0_15] : memref<1x18x18x128xbf16, #tpu.memory_space<vmem>>, vector<1x8x16x128xbf16>
    %22 = vector.shape_cast %21 : vector<1x8x16x128xbf16> to vector<128x128xbf16>
    %c2_16 = arith.constant 2 : index
    %c0_17 = arith.constant 0 : index
    %c0_18 = arith.constant 0 : index
    %23 = vector.load %arg3[%c2_16, %c0_17, %c0_18] : memref<9x128x128xbf16, #tpu.memory_space<vmem>>, vector<1x128x128xbf16>
    %24 = vector.shape_cast %23 : vector<1x128x128xbf16> to vector<128x128xbf16>
    %cst_19 = arith.constant dense<0.000000e+00> : vector<128x128xf32>
    %25 = tpu.matmul %22, %24, %cst_19 {dimension_numbers = #tpu.dot_dimension_numbers<[1], [0], [0], [1], [0, 0, 1, 1], [], []>} : vector<128x128xbf16>, vector<128x128xbf16>, vector<128x128xf32> -> vector<128x128xf32>
    %26 = arith.addf %18, %25 : vector<128x128xf32>
    %c1_i32 = arith.constant 1 : i32
    %27 = arith.addi %1, %c1_i32 : i32
    %c0_20 = arith.constant 0 : index
    %28 = arith.index_cast %27 : i32 to index
    %c0_21 = arith.constant 0 : index
    %c0_22 = arith.constant 0 : index
    %29 = vector.load %arg2[%c0_20, %28, %c0_21, %c0_22] : memref<1x18x18x128xbf16, #tpu.memory_space<vmem>>, vector<1x8x16x128xbf16>
    %30 = vector.shape_cast %29 : vector<1x8x16x128xbf16> to vector<128x128xbf16>
    %c3 = arith.constant 3 : index
    %c0_23 = arith.constant 0 : index
    %c0_24 = arith.constant 0 : index
    %31 = vector.load %arg3[%c3, %c0_23, %c0_24] : memref<9x128x128xbf16, #tpu.memory_space<vmem>>, vector<1x128x128xbf16>
    %32 = vector.shape_cast %31 : vector<1x128x128xbf16> to vector<128x128xbf16>
    %cst_25 = arith.constant dense<0.000000e+00> : vector<128x128xf32>
    %33 = tpu.matmul %30, %32, %cst_25 {dimension_numbers = #tpu.dot_dimension_numbers<[1], [0], [0], [1], [0, 0, 1, 1], [], []>} : vector<128x128xbf16>, vector<128x128xbf16>, vector<128x128xf32> -> vector<128x128xf32>
    %34 = arith.addf %26, %33 : vector<128x128xf32>
    %c1_i32_26 = arith.constant 1 : i32
    %35 = arith.addi %1, %c1_i32_26 : i32
    %c0_27 = arith.constant 0 : index
    %36 = arith.index_cast %35 : i32 to index
    %c1_28 = arith.constant 1 : index
    %c0_29 = arith.constant 0 : index
    %37 = vector.load %arg2[%c0_27, %36, %c1_28, %c0_29] : memref<1x18x18x128xbf16, #tpu.memory_space<vmem>>, vector<1x8x16x128xbf16>
    %38 = vector.shape_cast %37 : vector<1x8x16x128xbf16> to vector<128x128xbf16>
    %c4 = arith.constant 4 : index
    %c0_30 = arith.constant 0 : index
    %c0_31 = arith.constant 0 : index
    %39 = vector.load %arg3[%c4, %c0_30, %c0_31] : memref<9x128x128xbf16, #tpu.memory_space<vmem>>, vector<1x128x128xbf16>
    %40 = vector.shape_cast %39 : vector<1x128x128xbf16> to vector<128x128xbf16>
    %cst_32 = arith.constant dense<0.000000e+00> : vector<128x128xf32>
    %41 = tpu.matmul %38, %40, %cst_32 {dimension_numbers = #tpu.dot_dimension_numbers<[1], [0], [0], [1], [0, 0, 1, 1], [], []>} : vector<128x128xbf16>, vector<128x128xbf16>, vector<128x128xf32> -> vector<128x128xf32>
    %42 = arith.addf %34, %41 : vector<128x128xf32>
    %c1_i32_33 = arith.constant 1 : i32
    %43 = arith.addi %1, %c1_i32_33 : i32
    %c0_34 = arith.constant 0 : index
    %44 = arith.index_cast %43 : i32 to index
    %c2_35 = arith.constant 2 : index
    %c0_36 = arith.constant 0 : index
    %45 = vector.load %arg2[%c0_34, %44, %c2_35, %c0_36] : memref<1x18x18x128xbf16, #tpu.memory_space<vmem>>, vector<1x8x16x128xbf16>
    %46 = vector.shape_cast %45 : vector<1x8x16x128xbf16> to vector<128x128xbf16>
    %c5 = arith.constant 5 : index
    %c0_37 = arith.constant 0 : index
    %c0_38 = arith.constant 0 : index
    %47 = vector.load %arg3[%c5, %c0_37, %c0_38] : memref<9x128x128xbf16, #tpu.memory_space<vmem>>, vector<1x128x128xbf16>
    %48 = vector.shape_cast %47 : vector<1x128x128xbf16> to vector<128x128xbf16>
    %cst_39 = arith.constant dense<0.000000e+00> : vector<128x128xf32>
    %49 = tpu.matmul %46, %48, %cst_39 {dimension_numbers = #tpu.dot_dimension_numbers<[1], [0], [0], [1], [0, 0, 1, 1], [], []>} : vector<128x128xbf16>, vector<128x128xbf16>, vector<128x128xf32> -> vector<128x128xf32>
    %50 = arith.addf %42, %49 : vector<128x128xf32>
    %c2_i32 = arith.constant 2 : i32
    %51 = arith.addi %1, %c2_i32 : i32
    %c0_40 = arith.constant 0 : index
    %52 = arith.index_cast %51 : i32 to index
    %c0_41 = arith.constant 0 : index
    %c0_42 = arith.constant 0 : index
    %53 = vector.load %arg2[%c0_40, %52, %c0_41, %c0_42] : memref<1x18x18x128xbf16, #tpu.memory_space<vmem>>, vector<1x8x16x128xbf16>
    %54 = vector.shape_cast %53 : vector<1x8x16x128xbf16> to vector<128x128xbf16>
    %c6 = arith.constant 6 : index
    %c0_43 = arith.constant 0 : index
    %c0_44 = arith.constant 0 : index
    %55 = vector.load %arg3[%c6, %c0_43, %c0_44] : memref<9x128x128xbf16, #tpu.memory_space<vmem>>, vector<1x128x128xbf16>
    %56 = vector.shape_cast %55 : vector<1x128x128xbf16> to vector<128x128xbf16>
    %cst_45 = arith.constant dense<0.000000e+00> : vector<128x128xf32>
    %57 = tpu.matmul %54, %56, %cst_45 {dimension_numbers = #tpu.dot_dimension_numbers<[1], [0], [0], [1], [0, 0, 1, 1], [], []>} : vector<128x128xbf16>, vector<128x128xbf16>, vector<128x128xf32> -> vector<128x128xf32>
    %58 = arith.addf %50, %57 : vector<128x128xf32>
    %c2_i32_46 = arith.constant 2 : i32
    %59 = arith.addi %1, %c2_i32_46 : i32
    %c0_47 = arith.constant 0 : index
    %60 = arith.index_cast %59 : i32 to index
    %c1_48 = arith.constant 1 : index
    %c0_49 = arith.constant 0 : index
    %61 = vector.load %arg2[%c0_47, %60, %c1_48, %c0_49] : memref<1x18x18x128xbf16, #tpu.memory_space<vmem>>, vector<1x8x16x128xbf16>
    %62 = vector.shape_cast %61 : vector<1x8x16x128xbf16> to vector<128x128xbf16>
    %c7 = arith.constant 7 : index
    %c0_50 = arith.constant 0 : index
    %c0_51 = arith.constant 0 : index
    %63 = vector.load %arg3[%c7, %c0_50, %c0_51] : memref<9x128x128xbf16, #tpu.memory_space<vmem>>, vector<1x128x128xbf16>
    %64 = vector.shape_cast %63 : vector<1x128x128xbf16> to vector<128x128xbf16>
    %cst_52 = arith.constant dense<0.000000e+00> : vector<128x128xf32>
    %65 = tpu.matmul %62, %64, %cst_52 {dimension_numbers = #tpu.dot_dimension_numbers<[1], [0], [0], [1], [0, 0, 1, 1], [], []>} : vector<128x128xbf16>, vector<128x128xbf16>, vector<128x128xf32> -> vector<128x128xf32>
    %66 = arith.addf %58, %65 : vector<128x128xf32>
    %c2_i32_53 = arith.constant 2 : i32
    %67 = arith.addi %1, %c2_i32_53 : i32
    %c0_54 = arith.constant 0 : index
    %68 = arith.index_cast %67 : i32 to index
    %c2_55 = arith.constant 2 : index
    %c0_56 = arith.constant 0 : index
    %69 = vector.load %arg2[%c0_54, %68, %c2_55, %c0_56] : memref<1x18x18x128xbf16, #tpu.memory_space<vmem>>, vector<1x8x16x128xbf16>
    %70 = vector.shape_cast %69 : vector<1x8x16x128xbf16> to vector<128x128xbf16>
    %c8 = arith.constant 8 : index
    %c0_57 = arith.constant 0 : index
    %c0_58 = arith.constant 0 : index
    %71 = vector.load %arg3[%c8, %c0_57, %c0_58] : memref<9x128x128xbf16, #tpu.memory_space<vmem>>, vector<1x128x128xbf16>
    %72 = vector.shape_cast %71 : vector<1x128x128xbf16> to vector<128x128xbf16>
    %cst_59 = arith.constant dense<0.000000e+00> : vector<128x128xf32>
    %73 = tpu.matmul %70, %72, %cst_59 {dimension_numbers = #tpu.dot_dimension_numbers<[1], [0], [0], [1], [0, 0, 1, 1], [], []>} : vector<128x128xbf16>, vector<128x128xbf16>, vector<128x128xf32> -> vector<128x128xf32>
    %74 = arith.addf %66, %73 : vector<128x128xf32>
    %c0_60 = arith.constant 0 : index
    %c0_61 = arith.constant 0 : index
    %75 = vector.load %arg5[%c0_60, %c0_61] : memref<2x128xf32, #tpu.memory_space<vmem>>, vector<1x128xf32>
    %76 = vector.broadcast %75 : vector<1x128xf32> to vector<128x128xf32>
    %77 = arith.mulf %74, %76 : vector<128x128xf32>
    %c1_62 = arith.constant 1 : index
    %c0_63 = arith.constant 0 : index
    %78 = vector.load %arg5[%c1_62, %c0_63] : memref<2x128xf32, #tpu.memory_space<vmem>>, vector<1x128xf32>
    %79 = vector.broadcast %78 : vector<1x128xf32> to vector<128x128xf32>
    %80 = arith.addf %77, %79 : vector<128x128xf32>
    %cst_64 = arith.constant 0.000000e+00 : f32
    %81 = vector.broadcast %cst_64 : f32 to vector<128x128xf32>
    %82 = arith.maximumf %80, %81 : vector<128x128xf32>
    %83 = arith.truncf %82 : vector<128x128xf32> to vector<128x128xbf16>
    %c0_65 = arith.constant 0 : index
    %c0_66 = arith.constant 0 : index
    %84 = vector.load %arg4[%c0_65, %c0_66] : memref<128x128xbf16, #tpu.memory_space<vmem>>, vector<128x128xbf16>
    %cst_67 = arith.constant dense<0.000000e+00> : vector<128x128xf32>
    %85 = tpu.matmul %83, %84, %cst_67 {dimension_numbers = #tpu.dot_dimension_numbers<[1], [0], [0], [1], [0, 0, 1, 1], [], []>} : vector<128x128xbf16>, vector<128x128xbf16>, vector<128x128xf32> -> vector<128x128xf32>
    %c0_68 = arith.constant 0 : index
    %c0_69 = arith.constant 0 : index
    %86 = vector.load %arg6[%c0_68, %c0_69] : memref<1x128xf32, #tpu.memory_space<vmem>>, vector<1x128xf32>
    %87 = vector.broadcast %86 : vector<1x128xf32> to vector<128x128xf32>
    %88 = arith.addf %85, %87 : vector<128x128xf32>
    %89 = vector.shape_cast %88 : vector<128x128xf32> to vector<1x8x16x128xf32>
    %c0_70 = arith.constant 0 : index
    %c0_71 = arith.constant 0 : index
    %c0_72 = arith.constant 0 : index
    %c0_73 = arith.constant 0 : index
    %90 = vector.load %arg7[%c0_70, %c0_71, %c0_72, %c0_73] : memref<1x8x16x128xf32, #tpu.memory_space<vmem>>, vector<1x8x16x128xf32>
    tpu.vector_store %arg7[%c0_70, %c0_71, %c0_72, %c0_73], %89 {strides = array<i32>} : memref<1x8x16x128xf32, #tpu.memory_space<vmem>>, vector<1x8x16x128xf32>,
    return
  }
  func.func @transform_0(%arg0: i32, %arg1: i32) -> (i32, i32, i32, i32) {
    %c0_i32 = arith.constant 0 : i32
    %c0_i32_0 = arith.constant 0 : i32
    %c0_i32_1 = arith.constant 0 : i32
    %c0_i32_2 = arith.constant 0 : i32
    return %arg0, %c0_i32, %c0_i32_0, %c0_i32_1 : i32, i32, i32, i32
  }
  func.func @transform_1(%arg0: i32, %arg1: i32) -> (i32, i32, i32) {
    %c0_i32 = arith.constant 0 : i32
    %c0_i32_0 = arith.constant 0 : i32
    %c0_i32_1 = arith.constant 0 : i32
    %c0_i32_2 = arith.constant 0 : i32
    return %c0_i32, %c0_i32_0, %c0_i32_1 : i32, i32, i32
  }
  func.func @transform_2(%arg0: i32, %arg1: i32) -> (i32, i32) {
    %c0_i32 = arith.constant 0 : i32
    %c0_i32_0 = arith.constant 0 : i32
    %c0_i32_1 = arith.constant 0 : i32
    return %c0_i32, %c0_i32_0 : i32, i32
  }
  func.func @transform_3(%arg0: i32, %arg1: i32) -> (i32, i32) {
    %c0_i32 = arith.constant 0 : i32
    %c0_i32_0 = arith.constant 0 : i32
    %c0_i32_1 = arith.constant 0 : i32
    return %c0_i32, %c0_i32_0 : i32, i32
  }
  func.func @transform_4(%arg0: i32, %arg1: i32) -> (i32, i32) {
    %c0_i32 = arith.constant 0 : i32
    %c0_i32_0 = arith.constant 0 : i32
    %c0_i32_1 = arith.constant 0 : i32
    return %c0_i32, %c0_i32_0 : i32, i32
  }
  func.func @transform_5(%arg0: i32, %arg1: i32) -> (i32, i32, i32, i32) {
    %c0_i32 = arith.constant 0 : i32
    %c0_i32_0 = arith.constant 0 : i32
    %c0_i32_1 = arith.constant 0 : i32
    return %arg0, %arg1, %c0_i32, %c0_i32_0 : i32, i32, i32, i32
  }
}

</mosaic_0001>

<bundles_post_ra>
// kernel: deeplabv3_core_forward.3
= control target key start
LH: loop header
LB: loop body
LE: loop exit
PB: predicated region body
PF: predicated region fallthrough
CT: control target
= control target key end

     0   :  { %s3892_s18 = smov 0   ;;  %s3894_s19 = smov 0   ;;  %s4836_s0 = inlined_call_operand.vmem [shape: bf16[2,18,18,128], index: 0, kind: input, shape index: {}]   ;;  %s4837_s1 = inlined_call_operand.vmem [shape: bf16[9,128,128], index: 1, kind: input, shape index: {}]   ;;  %s4838_s2 = inlined_call_operand.vmem [shape: bf16[128,128], index: 2, kind: input, shape index: {}]   ;;  %s4839_s3 = inlined_call_operand.vmem [shape: f32[2,128], index: 3, kind: input, shape index: {}]   ;;  %s4840_s4 = inlined_call_operand.vmem [shape: f32[1,128], index: 4, kind: input, shape index: {}]   ;;  %s4841_s5 = inlined_call_operand.vmem [shape: f32[2,16,16,128], index: 5, kind: output, shape index: {}]  }
   0x1   :  { %s3896_s20 = smov 0   ;;  %s3898_s21 = smov 0  }
   0x2   :  { %s3900_s22 = smov 0  }
   0x3 LB: > { %s24_s23 = sadd.s32 1, %s3852_s20  ;;  %s27_s24 = sadd.s32 1, %s3856_s21  ;;  %s3860_s22 = sphi %s3900_s22, %s15_s22   ;;  %s3856_s21 = sphi %s3898_s21, %s4849_s21   ;;  %s3852_s20 = sphi %s3896_s20, %s4848_s20   ;;  %s3848_s19 = sphi %s3894_s19, %s4847_s19   ;;  %s3844_s18 = sphi %s3892_s18, %s4846_s18  }
   0x4   : > { %p25_p0 = scmp.ge.s32.totalorder %s24_s23, 2  ;;  %p2974_p1 = scmp.ge.s32.totalorder %s3860_s22, 1 }
   0x5   : > { %p201_p2 = scmp.lt.s32.totalorder %s3860_s22, 5 }
   0x6   : > { %s4851_s23 = smov (%p25_p0, %s24_s23), 0  ;;  %s4853_s24 = smov (!%p25_p0, %s27_s24), %s3856_s21 }
   0x7   : > { %p202_p3 = pnand %p2974_p1, %p201_p2  ;;  %p29_p4 = scmp.ge.s32.totalorder %s4853_s24, 2 }
   0x8   : > { %p234_p5 = scmp.lt.s32.totalorder (!%p202_p3), %s3848_s19, 1  ;;  %s3653_s8 = smul.u32 (!%p202_p3), 96, %s3844_s18 }
   0x9   : > { %s4855_s24 = smov (%p29_p4, %s4853_s24), 0  ;;  %205 = sbr.rel (%p202_p3) target bundleno = 641 (0x281), region = 40 }
   0xa   : > { %s2976_s15 = sshll.u32 (!%p202_p3), %s3844_s18, 3 }
   0xb   : > { %p242_p6 = scmp.lt.s32.totalorder (!%p202_p3), %s2976_s15, 15 }
   0xe   : > { %v3677_v0 = vld [vmem:[%s4837_s1 + $0x78] sm:$0xff]  ;;  %v3676_v2 = vld [vmem:[%s4837_s1 + $0x70] sm:$0xff]  ;;  %s4857_s19 = smov (!%p234_p5, %s3848_s19), 1  ;;  %v3675_v4 = vld [vmem:[%s4837_s1 + $0x68] sm:$0xff]  ;;  %vm294_vm0 = vsmask.f32 3328 }
   0xf   : > { %v3669_v1 = vld [vmem:[%s4837_s1 + $0x38] sm:$0xff]  ;;  %3758 = vmatpush.bf16.msra.mxu2 %v3677_v0  ;;  %v3668_v3 = vld [vmem:[%s4837_s1 + $0x30] sm:$0xff]  ;;  %586 = vmatpush.bf16.msra.mxu0 %v3677_v0  ;;  %s3774_s9 = smul.u32 216, %s4857_s19  ;;  %v3667_v5 = vld [vmem:[%s4837_s1 + $0x28] sm:$0xff]  ;;  %vm295_vm1 = vsmask.f32 7440 }
  0x10   : > { %3766 = vmatpush.bf16.msra.mxu3 %v3669_v1  ;;  %731 = vmatpush.bf16.msra.mxu1 %v3669_v1  ;;  %v3674_v8 = vld [vmem:[%s4837_s1 + $0x60] sm:$0xff]  ;;  %v3673_v28 = vld [vmem:[%s4837_s1 + $0x58] sm:$0xff]  ;;  %v3672_v37 = vld [vmem:[%s4837_s1 + $0x50] sm:$0xff]  ;;  %vm804_vm3 = vcmask 1042432   ;;  %vm805_vm4 = vcmask 1046532   ;;  %s4859_s15 = smov (!%p242_p6, %s2976_s15), 15 }
  0x11   : > { %s238_s16 = scalar_lea.vmem %s4836_s0, %s3774_s9  ;;  %v3666_v9 = vld [vmem:[%s4837_s1 + $0x20] sm:$0xff]  ;;  %v3665_v29 = vld [vmem:[%s4837_s1 + $0x18] sm:$0xff]  ;;  %v3664_v40 = vld [vmem:[%s4837_s1 + $0x10] sm:$0xff]  ;;  %s2978_s25 = sshll.u32 %s4857_s19, 5 }
  0x12   : > { %s3949_s17 = scalar_lea.vmem %s238_s16, %s3653_s8  ;;  %vm3985_vm2 = vmor %vm294_vm0, %vm295_vm1  ;;  %v3671_v55 = vld [vmem:[%s4837_s1 + $0x48] sm:$0xff]  ;;  %s2977_s16 = sshll.u32 %s4859_s15, 1 }
  0x13   : > { %3759 = vmatpush.bf16.msra.mxu2 %v3676_v2  ;;  %587 = vmatpush.bf16.msra.mxu0 %v3676_v2  ;;  %v262_v6 = vld [vmem:[%s3949_s17 + $0x30] sm:$0xf]  ;;  %v263_v7 = vld [vmem:[%s3949_s17 + $0x34] sm:$0xf]  ;;  %v290_v14 = vld [vmem:[%s3949_s17 + $0x38] sm:$0x1]  ;;  %s246_s26 = sadd.s32 %s2978_s25, %s2977_s16 }
  0x14   : > { %3767 = vmatpush.bf16.msra.mxu3 %v3668_v3  ;;  %732 = vmatpush.bf16.msra.mxu1 %v3668_v3  ;;  %v394_v10 = vshrl.u32 %v262_v6, 16  ;;  %v397_v11 = vshll.u32 %v262_v6, 16  ;;  %v403_v12 = vshll.u32 %v263_v7, 16  ;;  %v407_v13 = vshrl.u32 %v263_v7, 16  ;;  %v254_v15 = vld [vmem:[%s3949_s17] sm:$0xf]  ;;  %vm4152_vm5 = vmor %vm804_vm3, %vm805_vm4 }
  0x15   : > { %v3962_v16 = vld [vmem:[%s3949_s17 + $0x4] sm:$0xf]  ;;  %v3965_v21 = vld [vmem:[%s3949_s17 + $0x8] sm:$0x1]  ;;  %v298_v22 = vshrl.u32 %v254_v15, 16  ;;  %v301_v23 = vshll.u32 %v254_v15, 16 }
  0x16   : > { %v396_v17 = vrot.slane %v394_v10, 4  ;;  %v399_v18 = vrot.slane %v397_v11, 5  ;;  %v405_v19 = vrot.slane %v403_v12, 5  ;;  %v409_v20 = vrot.slane %v407_v13, 4  ;;  %v264_v39 = vld [vmem:[%s3949_s17 + $0x3c] sm:$0xf] }
  0x17   : > { %3760 = vmatpush.bf16.msra.mxu2 %v3675_v4  ;;  %588 = vmatpush.bf16.msra.mxu0 %v3675_v4  ;;  %v307_v24 = vshll.u32 %v3962_v16, 16  ;;  %v413_v26 = vshll.u32 %v290_v14, 16  ;;  %v311_v27 = vshrl.u32 %v3962_v16, 16  ;;  %v300_v31 = vrot.slane %v298_v22, 4  ;;  %v265_v44 = vld [vmem:[%s3949_s17 + $0x40] sm:$0xf] }
  0x18   : > { %3768 = vmatpush.bf16.msra.mxu3 %v3667_v5  ;;  %733 = vmatpush.bf16.msra.mxu1 %v3667_v5  ;;  %v400_v25 = vor.u32 %v399_v18, %v396_v17  ;;  %v410_v30 = vor.u32 %v409_v20, %v405_v19  ;;  %v303_v32 = vrot.slane %v301_v23, 5  ;;  %v317_v35 = vshll.u32 %v3965_v21, 16  ;;  %v256_v49 = vld [vmem:[%s3949_s17 + $0xc] sm:$0xf]  ;;  %v3991_v52 = vld [vmem:[%s3949_s17 + $0x10] sm:$0xf] }
  0x19   : > { %v309_v33 = vrot.slane %v307_v24, 5  ;;  %v313_v34 = vrot.slane %v311_v27, 4  ;;  %v415_v43 = vrot.slane %v413_v26, 5  ;;  %v418_v50 = vshrl.u32 %v264_v39, 16  ;;  %v3663_v56 = vld [vmem:[%s4837_s1 + $0x8] sm:$0xff]  ;;  %v3670_v7 = vld [vmem:[%s4837_s1 + $0x40] sm:$0xff] }
  0x1a   : > { %v304_v36 = vor.u32 %v303_v32, %v300_v31  ;;  %v401_v41 = vrot.slane %v400_v25, 4  ;;  %v411_v42 = vrot.slane %v410_v30, 4  ;;  %v319_v48 = vrot.slane %v317_v35, 5  ;;  %v4018_v11 = vld [vmem:[%s3949_s17 + $0x44] sm:$0x1]  ;;  %v3685_v17 = vld [vmem:[%s4837_s1 + $0xb8] sm:$0xff] }
  0x1b   : > { %3761 = vmatpush.bf16.msra.mxu2 %v3674_v8  ;;  %589 = vmatpush.bf16.msra.mxu0 %v3674_v8  ;;  %v314_v38 = vor.u32 %v313_v34, %v309_v33  ;;  %v421_v51 = vshll.u32 %v264_v39, 16  ;;  %v427_v53 = vshll.u32 %v265_v44, 16  ;;  %v431_v54 = vshrl.u32 %v265_v44, 16  ;;  %v3662_v8 = vld [vmem:[%s4837_s1] sm:$0xff]  ;;  %v3701_v18 = vld [vmem:[%s4837_s1 + $0xf8] sm:$0xff]  ;;  %v3658_v23 = vld [vmem:[%s3949_s17 + $0x30] sm:$0xff] }
  0x1c   : > { %3769 = vmatpush.bf16.msra.mxu3 %v3666_v9  ;;  %734 = vmatpush.bf16.msra.mxu1 %v3666_v9  ;;  %v305_v46 = vrot.slane %v304_v36, 4  ;;  %v406_v57 = vsel %vm3985_vm2, %v401_v41, %v405_v19  ;;  %v416_v58 = vsel %vm3985_vm2, %v411_v42, %v415_v43  ;;  %v322_v59 = vshrl.u32 %v256_v49, 16  ;;  %v4029_v20 = vld [vmem:[%s3949_s17 + $0x14] sm:$0x1]  ;;  %v3654_v27 = vld [vmem:[%s3949_s17] sm:$0xff]  ;;  %v3709_v30 = vld [vmem:[%s4837_s1 + $0x138] sm:$0xff] }
  0x1d   : > { %v315_v47 = vrot.slane %v314_v38, 4  ;;  %v325_v60 = vshll.u32 %v256_v49, 16  ;;  %v331_v63 = vshll.u32 %v3991_v52, 16  ;;  %v335_v0 = vshrl.u32 %v3991_v52, 16  ;;  %v3700_v34 = vld [vmem:[%s4837_s1 + $0xf0] sm:$0xff]  ;;  %s2979_s27 = sshll.u32 %s246_s26, 3 }
  0x1e   : > { %v310_v61 = vsel %vm3985_vm2, %v305_v46, %v309_v33  ;;  %v420_v1 = vrot.slane %v418_v50, 4  ;;  %v423_v2 = vrot.slane %v421_v51, 5  ;;  %v514_v3 = vunpack.c.l.b16 %v406_v57  ;;  %v3684_v33 = vld [vmem:[%s4837_s1 + $0xb0] sm:$0xff]  ;;  %v267_v38 = vld [vmem:[%s3949_s17 + $0x4c] sm:$0xf]  ;;  %s4803_s18 = scalar_lea.vmem %s4841_s5, %s2979_s27 }
  0x1f   : > { %3762 = vmatpush.bf16.msra.mxu2 %v3673_v28  ;;  %590 = vmatpush.bf16.msra.mxu0 %v3673_v28  ;;  %v320_v62 = vsel %vm3985_vm2, %v315_v47, %v319_v48  ;;  %v515_v4 = vunpack.c.l.b16 %v416_v58  ;;  %v4009_v5 = vrot.slane %v427_v53, 5  ;;  %v433_v6 = vrot.slane %v431_v54, 4  ;;  %v258_v42 = vld [vmem:[%s3949_s17 + $0x18] sm:$0xf]  ;;  %v3708_v46 = vld [vmem:[%s4837_s1 + $0x130] sm:$0xff]  ;;  %v3683_v50 = vld [vmem:[%s4837_s1 + $0xa8] sm:$0xff] }
  0x20   : > { %3770 = vmatpush.bf16.msra.mxu3 %v3665_v29  ;;  %735 = vmatpush.bf16.msra.mxu1 %v3665_v29  ;;  %v506_v9 = vunpack.c.l.b16 %v310_v61  ;;  %v507_v10 = vunpack.c.l.b16 %v320_v62  ;;  %v324_v12 = vrot.slane %v322_v59, 4  ;;  %v327_v13 = vrot.slane %v325_v60, 5  ;;  %v266_v29 = vld [vmem:[%s3949_s17 + $0x48] sm:$0xf]  ;;  %v4053_v47 = vld [vmem:[%s3949_s17 + $0x1c] sm:$0xf] }
  0x21   : > { %v4020_v14 = vrot.slane %v331_v63, 5  ;;  %v337_v15 = vrot.slane %v335_v0, 4  ;;  %v424_v19 = vor.u32 %v423_v2, %v420_v1  ;;  %v526_v22 = vpack.c.b16 %v515_v4, %v514_v3  ;;  %v3717_v48 = vld [vmem:[%s4837_s1 + $0x178] sm:$0xff]  ;;  %v3699_v51 = vld [vmem:[%s4837_s1 + $0xe8] sm:$0xff]  ;;  %v3682_v2 = vld [vmem:[%s4837_s1 + $0xa0] sm:$0xff] }
  0x22   : > { %v434_v24 = vor.u32 %v433_v6, %v4009_v5  ;;  %v437_v25 = vshll.u32 %v4018_v11, 16  ;;  %v522_v26 = vpack.c.b16 %v507_v10, %v506_v9  ;;  %v328_v28 = vor.u32 %v327_v13, %v324_v12  ;;  %v3707_v0 = vld [vmem:[%s4837_s1 + $0x128] sm:$0xff]  ;;  %v3698_v3 = vld [vmem:[%s4837_s1 + $0xe0] sm:$0xff] }
  0x23   : > { %3763 = vmatpush.bf16.msra.mxu2 %v3672_v37  ;;  %591 = vmatpush.bf16.msra.mxu0 %v3672_v37  ;;  %v338_v31 = vor.u32 %v337_v15, %v4020_v14  ;;  %v341_v32 = vshll.u32 %v4029_v20, 16  ;;  %v425_v35 = vrot.slane %v424_v19, 4  ;;  %v442_v39 = vshrl.u32 %v266_v29, 16  ;;  %v4089_v13 = vld [vmem:[%s3949_s17 + $0x20] sm:$0x1] }
  0x24   : > { %3771 = vmatpush.bf16.msra.mxu3 %v3664_v40  ;;  %736 = vmatpush.bf16.msra.mxu1 %v3664_v40  ;;  %v435_v36 = vrot.slane %v434_v24, 4  ;;  %v439_v37 = vrot.slane %v437_v25, 5  ;;  %v445_v40 = vshll.u32 %v266_v29, 16  ;;  %v329_v41 = vrot.slane %v328_v28, 4  ;;  %v3697_v24 = vld [vmem:[%s4837_s1 + $0xd8] sm:$0xff] }
  0x25   : > { %v339_v43 = vrot.slane %v338_v31, 4  ;;  %v343_v44 = vrot.slane %v341_v32, 5  ;;  %v430_v49 = vsel %vm3985_vm2, %v425_v35, %v4009_v5  ;;  %v451_v53 = vshll.u32 %v267_v38, 16 }
  0x26   : > { %v455_v54 = vshrl.u32 %v267_v38, 16  ;;  %v447_v57 = vrot.slane %v445_v40, 5  ;;  %v346_v58 = vshrl.u32 %v258_v42, 16  ;;  %v334_v59 = vsel %vm3985_vm2, %v329_v41, %v4020_v14  ;;  %v3716_v38 = vld [vmem:[%s4837_s1 + $0x170] sm:$0xff] }
  0x27   : > { %3764 = vmatpush.bf16.msra.mxu2 %v3671_v55  ;;  %592 = vmatpush.bf16.msra.mxu0 %v3671_v55  ;;  %v440_v55 = vsel %vm3985_vm2, %v435_v36, %v439_v37  ;;  %v349_v60 = vshll.u32 %v258_v42, 16  ;;  %v355_v61 = vshll.u32 %v4053_v47, 16  ;;  %v359_v62 = vshrl.u32 %v4053_v47, 16  ;;  %v3680_v36 = vld [vmem:[%s4837_s1 + $0x90] sm:$0xff] }
  0x28   : > { %3772 = vmatpush.bf16.msra.mxu3 %v3663_v56  ;;  %737 = vmatpush.bf16.msra.mxu1 %v3663_v56  ;;  %v444_v56 = vrot.slane %v442_v39, 4  ;;  %v344_v63 = vsel %vm3985_vm2, %v339_v43, %v343_v44  ;;  %v516_v1 = vunpack.c.l.b16 %v430_v49  ;;  %v453_v4 = vrot.slane %v451_v53, 5  ;;  %v3696_v37 = vld [vmem:[%s4837_s1 + $0xd0] sm:$0xff]  ;;  %v4123_v44 = vld [vmem:[%s3949_s17 + $0x58] sm:$0xf]  ;;  %v3715_v49 = vld [vmem:[%s4837_s1 + $0x168] sm:$0xff] }
  0x29   : > { %v457_v5 = vrot.slane %v455_v54, 4  ;;  %v517_v6 = vunpack.c.l.b16 %v440_v55  ;;  %v348_v10 = vrot.slane %v346_v58, 4  ;;  %v509_v12 = vunpack.c.l.b16 %v344_v63  ;;  %v268_v41 = vld [vmem:[%s3949_s17 + $0x54] sm:$0xf] }
  0x2a   : > { %v448_v9 = vor.u32 %v447_v57, %v444_v56  ;;  %v351_v14 = vrot.slane %v349_v60, 5  ;;  %v4091_v15 = vrot.slane %v355_v61, 5  ;;  %v365_v28 = vshll.u32 %v4089_v13, 16  ;;  %v3679_v56 = vld [vmem:[%s4837_s1 + $0x88] sm:$0xff]  ;;  %v780_v60 = vld [vmem:[%s3949_s17] sm:$0xe] }
  0x2b   : > { %3765 = vmatpush.bf16.msra.mxu2 %v3670_v7  ;;  %593 = vmatpush.bf16.msra.mxu0 %v3670_v7  ;;  %v508_v7 = vunpack.c.l.b16 %v334_v59  ;;  %v458_v19 = vor.u32 %v457_v5, %v453_v4  ;;  %v527_v25 = vpack.c.b16 %v517_v6, %v516_v1  ;;  %v466_v55 = vshrl.u32 %v268_v41, 16  ;;  %v4142_v57 = vld [vmem:[%s3949_s17 + $0x28] sm:$0xf]  ;;  %v3714_v6 = vld [vmem:[%s4837_s1 + $0x160] sm:$0xff] }
  0x2c   : > { %3773 = vmatpush.bf16.msra.mxu3 %v3662_v8  ;;  %738 = vmatpush.bf16.msra.mxu1 %v3662_v8  ;;  %v4086_v8 = vld [vmem:[%s3949_s17 + $0x50] sm:$0x1]  ;;  %v352_v31 = vor.u32 %v351_v14, %v348_v10  ;;  %v367_v40 = vrot.slane %v365_v28, 5  ;;  %v469_v58 = vshll.u32 %v268_v41, 16  ;;  %v479_v59 = vshrl.u32 %v4123_v44, 16  ;;  %v3678_v14 = vld [vmem:[%s4837_s1 + $0x80] sm:$0xff] }
  0x2d   : > { %v523_v29 = vpack.c.b16 %v509_v12, %v508_v7  ;;  %v383_v5 = vshrl.u32 %v4142_v57, 16  ;;  %v3703_v7 = vld [vmem:[%s4837_s1 + $0x108] sm:$0xff]  ;;  %v468_v12 = vrot.slane %v466_v55, 4  ;;  %v3750_v61 = vld [vmem:[%s4838_s2] sm:$0xff] }
  0x2e   : > { %614 = vmatmul.bf16.vlgmr.msra.gmra.mxu2 %v526_v22  ;;  %594 = vmatmul.bf16.vlgmr.msra.gmra.mxu0 %v522_v26  ;;  %v461_v22 = vshll.u32 %v4086_v8, 16  ;;  %v3659_v26 = vld [vmem:[%s3949_s17 + $0x3c] sm:$0xff]  ;;  %v353_v42 = vrot.slane %v352_v31, 4  ;;  %v3249_v55 = vld [vmem:[%s3949_s17 + $0xc] sm:$0xf] }
  0x2f   : > { %960 = vmatpush.bf16.msrb.mxu2 %v3685_v17  ;;  %759 = vmatmul.bf16.vlgmr.msra.gmra.mxu3 %v3658_v23  ;;  %v361_v17 = vrot.slane %v359_v62, 4  ;;  %v3681_v23 = vld [vmem:[%s4837_s1 + $0x98] sm:$0xff] }
  0x30   : > { %1158 = vmatpush.bf16.msrb.mxu3 %v3701_v18  ;;  %739 = vmatmul.bf16.vlgmr.msra.gmra.mxu1 %v3654_v27  ;;  %v3706_v18 = vld [vmem:[%s4837_s1 + $0x120] sm:$0xff]  ;;  %v449_v27 = vrot.slane %v448_v9, 4  ;;  %v463_v35 = vrot.slane %v461_v22, 5  ;;  %v358_v63 = vsel %vm3985_vm2, %v353_v42, %v4091_v15  ;;  %v3656_v42 = vld [vmem:[%s3949_s17 + $0x18] sm:$0xff] }
  0x31   : > { %1536 = vmatpush.bf16.msrb.mxu0 %v3709_v30  ;;  %1786 = vmatpush.bf16.msrb.mxu1 %v3717_v48  ;;  %v3655_v30 = vld [vmem:[%s3949_s17 + $0xc] sm:$0xff]  ;;  %v362_v32 = vor.u32 %v361_v17, %v4091_v15  ;;  %v3694_v15 = vld [vmem:[%s4837_s1 + $0xc0] sm:$0xff] }
  0x32   : > { %v454_v39 = vsel %vm3985_vm2, %v449_v27, %v453_v4  ;;  %v3704_v48 = vld [vmem:[%s4837_s1 + $0x110] sm:$0xff]  ;;  %v379_v4 = vshll.u32 %v4142_v57, 16  ;;  %v4182_v27 = vld [vmem:[%s3949_s17 + $0x5c] sm:$0x1] }
  0x33   : > { %961 = vmatpush.bf16.msrb.mxu2 %v3684_v33  ;;  %v3705_v33 = vld [vmem:[%s4837_s1 + $0x118] sm:$0xff]  ;;  %v363_v43 = vrot.slane %v362_v32, 4  ;;  %v4136_v54 = vunpack.c.l.b16 %v454_v39  ;;  %v385_v32 = vrot.slane %v383_v5, 4 }
  0x34   : > { %1159 = vmatpush.bf16.msrb.mxu3 %v3700_v34  ;;  %v459_v34 = vrot.slane %v458_v19, 4  ;;  %v471_v19 = vrot.slane %v469_v58, 5  ;;  %v4187_v31 = vrot.slane %v379_v4, 5  ;;  %v4212_v58 = vld [vmem:[%s3949_s17 + $0x10] sm:$0xf] }
  0x35   : > { %1537 = vmatpush.bf16.msrb.mxu0 %v3708_v46  ;;  %1787 = vmatpush.bf16.msrb.mxu1 %v3716_v38  ;;  %v260_v46 = vld [vmem:[%s3949_s17 + $0x24] sm:$0xf] }
  0x36   : > { %v464_v53 = vsel %vm3985_vm2, %v459_v34, %v463_v35  ;;  %v373_v1 = vshll.u32 %v260_v46, 16  ;;  %v3702_v34 = vld [vmem:[%s4837_s1 + $0x100] sm:$0xff]  ;;  %v472_v38 = vor.u32 %v471_v19, %v468_v12 }
  0x37   : > { %962 = vmatpush.bf16.msrb.mxu2 %v3683_v50  ;;  %v809_v50 = vrot.slane %v3962_v16, 5  ;;  %v3695_v16 = vld [vmem:[%s4837_s1 + $0xc8] sm:$0xff]  ;;  %v519_v10 = vunpack.c.l.b16 %v464_v53 }
  0x38   : > { %1160 = vmatpush.bf16.msrb.mxu3 %v3699_v51  ;;  %v812_v51 = vrot.slane %v3965_v21, 5  ;;  %v475_v21 = vshll.u32 %v4123_v44, 16 }
  0x39   : > { %1538 = vmatpush.bf16.msrb.mxu0 %v3707_v0  ;;  %v811_v62 = vrot.slane %v809_v50, 4  ;;  %v370_v0 = vshrl.u32 %v260_v46, 16  ;;  %1788 = vmatpush.bf16.msrb.mxu1 %v3715_v49  ;;  %v3712_v49 = vld [vmem:[%s4837_s1 + $0x150] sm:$0xff] }
  0x3a   : > { %v4179_v22 = vrot.slane %v475_v21, 5  ;;  %v3741_v21 = vld [vmem:[%s4837_s1 + $0x1f8] sm:$0xff] }
  0x3b   : > { %963 = vmatpush.bf16.msrb.mxu2 %v3682_v2  ;;  %v3095_v2 = vrot.slane %v780_v60, 9  ;;  %v813_v9 = vsel %vm4152_vm5, %v811_v62, %v812_v51  ;;  %v372_v28 = vrot.slane %v370_v0, 4  ;;  %v3711_v62 = vld [vmem:[%s4837_s1 + $0x148] sm:$0xff] }
  0x3c   : > { %1161 = vmatpush.bf16.msrb.mxu3 %v3698_v3  ;;  %v368_v3 = vsel %vm3985_vm2, %v363_v43, %v367_v40  ;;  %v485_v40 = vshll.u32 %v4182_v27, 16  ;;  %v781_v0 = vld [vmem:[%s3949_s17 + $0xc] sm:$0xe] }
  0x3d   : > { %1539 = vmatpush.bf16.msrb.mxu0 %v3706_v18  ;;  %v810_v17 = vsel %vm4152_vm5, %v3095_v2, %v809_v50  ;;  %v881_v18 = vunpack.c.l.b16 %v813_v9  ;;  %1789 = vmatpush.bf16.msrb.mxu1 %v3714_v6  ;;  %v473_v50 = vrot.slane %v472_v38, 4  ;;  %v1248_v2 = vshrl.u32 %v3249_v55, 16 }
  0x3e   : > { %619 = vmatmul.bf16.gmra.mxu2 %v527_v25  ;;  %599 = vmatmul.bf16.gmra.mxu0 %v523_v29  ;;  %v510_v25 = vunpack.c.l.b16 %v358_v63  ;;  %v375_v29 = vrot.slane %v373_v1, 5  ;;  %v487_v53 = vrot.slane %v485_v40, 5  ;;  %v3749_v63 = vld [vmem:[%s4837_s1 + $0x238] sm:$0xff]  ;;  %v819_v1 = vrot.slane %v4029_v20, 5  ;;  %v3657_v40 = vld [vmem:[%s3949_s17 + $0x24] sm:$0xff] }
  0x3f   : > { %964 = vmatpush.bf16.msrb.mxu2 %v3681_v23  ;;  %764 = vmatmul.bf16.gmra.mxu3 %v3659_v26  ;;  %v481_v23 = vrot.slane %v479_v59, 4  ;;  %v511_v26 = vunpack.c.l.b16 %v368_v3  ;;  %v816_v59 = vrot.slane %v3991_v52, 5  ;;  %v1251_v3 = vshll.u32 %v3249_v55, 16  ;;  %v3740_v55 = vld [vmem:[%s4837_s1 + $0x1f0] sm:$0xff] }
  0x40   : > { %1162 = vmatpush.bf16.msrb.mxu3 %v3697_v24  ;;  %744 = vmatmul.bf16.gmra.mxu1 %v3655_v30  ;;  %v880_v24 = vunpack.c.l.b16 %v810_v17  ;;  %v4185_v30 = vld [vmem:[%s3949_s17 + $0x2c] sm:$0x1]  ;;  %v376_v43 = vor.u32 %v375_v29, %v372_v28  ;;  %v3096_v4 = vrot.slane %v781_v0, 9  ;;  %v478_v52 = vsel %vm3985_vm2, %v473_v50, %v4179_v22  ;;  %v3732_v50 = vld [vmem:[%s4837_s1 + $0x1b0] sm:$0xff] }
  0x41   : > { %1540 = vmatpush.bf16.msrb.mxu0 %v3705_v33  ;;  %v3713_v33 = vld [vmem:[%s4837_s1 + $0x158] sm:$0xff]  ;;  %v482_v39 = vor.u32 %v481_v23, %v4179_v22  ;;  %v524_v41 = vpack.c.b16 %v511_v26, %v510_v25  ;;  %v389_v46 = vshll.u32 %v4185_v30, 16  ;;  %v818_v5 = vrot.slane %v816_v59, 4 }
  0x42   : > { %v4195_v35 = vpack.c.b16 %v881_v18, %v880_v24  ;;  %1790 = vmatpush.bf16.msrb.mxu1 %v3713_v33  ;;  %v1257_v6 = vshll.u32 %v4212_v58, 16  ;;  %v817_v20 = vsel %vm4152_vm5, %v3096_v4, %v816_v59  ;;  %v520_v19 = vunpack.c.l.b16 %v478_v52 }
  0x43   : > { %965 = vmatpush.bf16.msrb.mxu2 %v3680_v36  ;;  %v528_v36 = vpack.c.b16 %v519_v10, %v4136_v54  ;;  %v483_v51 = vrot.slane %v482_v39, 4  ;;  %v3733_v54 = vld [vmem:[%s4837_s1 + $0x1b8] sm:$0xff]  ;;  %v820_v10 = vsel %vm4152_vm5, %v818_v5, %v819_v1  ;;  %v882_v17 = vunpack.c.l.b16 %v817_v20 }
  0x44   : > { %1163 = vmatpush.bf16.msrb.mxu3 %v3696_v37  ;;  %v3660_v37 = vld [vmem:[%s3949_s17 + $0x48] sm:$0xff]  ;;  %v883_v18 = vunpack.c.l.b16 %v820_v10  ;;  %v1250_v22 = vrot.slane %v1248_v2, 4  ;;  %v1253_v23 = vrot.slane %v1251_v3, 5  ;;  %v1259_v25 = vrot.slane %v1257_v6, 5 }
  0x45   : > { %1541 = vmatpush.bf16.msrb.mxu0 %v3704_v48  ;;  %v386_v48 = vor.u32 %v385_v32, %v4187_v31  ;;  %v488_v9 = vsel %vm3985_vm2, %v483_v51, %v487_v53  ;;  %v3251_v32 = vld [vmem:[%s3949_s17 + $0x14] sm:$0x1]  ;;  %v826_v59 = vrot.slane %v4089_v13, 5 }
  0x46   : > { %1791 = vmatpush.bf16.msrb.mxu1 %v3712_v49  ;;  %v521_v24 = vunpack.c.l.b16 %v488_v9  ;;  %v4245_v28 = vpack.c.b16 %v883_v18, %v882_v17  ;;  %v1254_v33 = vor.u32 %v1253_v23, %v1250_v22  ;;  %v1267_v38 = vshll.u32 %v3251_v32, 16  ;;  %v3254_v17 = vld [vmem:[%s3949_s17 + $0x20] sm:$0x1]  ;;  %v3686_v23 = vld [vmem:[%s3949_s17 + $0xc] sm:$0xff] }
  0x47   : > { %966 = vmatpush.bf16.msrb.mxu2 %v3679_v56  ;;  %v377_v56 = vrot.slane %v376_v43, 4  ;;  %v387_v60 = vrot.slane %v386_v48, 4  ;;  %v1638_v49 = vrot.slane %v3251_v32, 5 }
  0x48   : > { %1164 = vmatpush.bf16.msrb.mxu3 %v3695_v16  ;;  %v391_v16 = vrot.slane %v389_v46, 5  ;;  %v1255_v43 = vrot.slane %v1254_v33, 4  ;;  %v1269_v48 = vrot.slane %v1267_v38, 5  ;;  %v3322_v33 = vld [vmem:[%s3949_s17 + $0x18] sm:$0xe] }
  0x49   : > { %1542 = vmatpush.bf16.msrb.mxu0 %v3703_v7  ;;  %v1261_v7 = vshrl.u32 %v4212_v58, 16  ;;  %v382_v12 = vsel %vm3985_vm2, %v377_v56, %v4187_v31  ;;  %v3748_v56 = vld [vmem:[%s4837_s1 + $0x230] sm:$0xff]  ;;  %v3255_v38 = vld [vmem:[%s3949_s17 + $0x24] sm:$0xf] }
  0x4a   : > { %1792 = vmatpush.bf16.msrb.mxu1 %v3711_v62  ;;  %v512_v29 = vunpack.c.l.b16 %v382_v12 }
  0x4b   : > { %967 = vmatpush.bf16.msrb.mxu2 %v3678_v14  ;;  %v392_v14 = vsel %vm3985_vm2, %v387_v60, %v391_v16  ;;  %v1263_v26 = vrot.slane %v1261_v7, 4  ;;  %v4263_v16 = vld [vmem:[%s3949_s17 + $0x1c] sm:$0xf]  ;;  %v1260_v60 = vsel %vm3985_vm2, %v1255_v43, %v1259_v25  ;;  %v3330_v43 = vrot.slane %v3322_v33, 9  ;;  %v3259_v33 = vld [vmem:[%s3949_s17 + $0x34] sm:$0xf] }
  0x4c   : > { %1165 = vmatpush.bf16.msrb.mxu3 %v3694_v15  ;;  %v3710_v15 = vld [vmem:[%s4837_s1 + $0x140] sm:$0xff]  ;;  %v513_v31 = vunpack.c.l.b16 %v392_v14  ;;  %v1285_v13 = vshrl.u32 %v4263_v16, 16  ;;  %v1456_v7 = vunpack.c.l.b16 %v1260_v60  ;;  %v1642_v32 = vrot.slane %v4263_v16, 5 }
  0x4d   : > { %1543 = vmatpush.bf16.msrb.mxu0 %v3702_v34  ;;  %v529_v34 = vpack.c.b16 %v521_v24, %v520_v19 }
  0x4e   : > { %624 = vmatmul.bf16.gmra.mxu2 %v528_v36  ;;  %604 = vmatmul.bf16.gmra.mxu0 %v524_v41  ;;  %v3661_v36 = vld [vmem:[%s3949_s17 + $0x54] sm:$0xff]  ;;  %v525_v39 = vpack.c.b16 %v513_v31, %v512_v29  ;;  %v1635_v41 = vrot.slane %v4212_v58, 5  ;;  %v1287_v19 = vrot.slane %v1285_v13, 4 }
  0x4f   : > { %769 = vmatmul.bf16.gmra.mxu3 %v3660_v37  ;;  %1984 = vmatpush.bf16.msra.mxu2 %v3733_v54  ;;  %v1264_v37 = vor.u32 %v1263_v26, %v1259_v25  ;;  %v3252_v54 = vld [vmem:[%s3949_s17 + $0x18] sm:$0xf]  ;;  %v1291_v25 = vshll.u32 %v3254_v17, 16 }
  0x50   : > { %749 = vmatmul.bf16.gmra.mxu1 %v3656_v42  ;;  %2362 = vmatpush.bf16.msra.mxu3 %v3741_v21  ;;  %v3321_v42 = vld [vmem:[%s3949_s17 + $0xc] sm:$0xe]  ;;  %v1637_v53 = vrot.slane %v1635_v41, 4  ;;  %v782_v58 = vld [vmem:[%s3949_s17 + $0x18] sm:$0xe]  ;;  %v823_v21 = vrot.slane %v4053_v47, 5 }
  0x51   : > { %2612 = vmatpush.bf16.msra.mxu0 %v3749_v63  ;;  %1793 = vmatpush.bf16.msrb.mxu1 %v3710_v15  ;;  %v1265_v46 = vrot.slane %v1264_v37, 4  ;;  %v3329_v51 = vrot.slane %v3321_v42, 9  ;;  %v3097_v62 = vrot.slane %v782_v58, 9  ;;  %v1272_v0 = vshrl.u32 %v3252_v54, 16  ;;  %v3731_v37 = vld [vmem:[%s4837_s1 + $0x1a8] sm:$0xff] }
  0x52   : > { %v1275_v1 = vshll.u32 %v3252_v54, 16  ;;  %v825_v2 = vrot.slane %v823_v21, 4  ;;  %v1281_v47 = vshll.u32 %v4263_v16, 16  ;;  %v1639_v5 = vsel %vm4152_vm5, %v1637_v53, %v1638_v49  ;;  %v3739_v42 = vld [vmem:[%s4837_s1 + $0x1e8] sm:$0xff] }
  0x53   : > { %1985 = vmatpush.bf16.msra.mxu2 %v3732_v50  ;;  %v1270_v63 = vsel %vm3985_vm2, %v1265_v46, %v1269_v48  ;;  %v1636_v3 = vsel %vm4152_vm5, %v3329_v51, %v1635_v41  ;;  %v824_v4 = vsel %vm4152_vm5, %v3097_v62, %v823_v21  ;;  %v1274_v12 = vrot.slane %v1272_v0, 4  ;;  %v4294_v41 = vld [vmem:[%s3949_s17 + $0x28] sm:$0xf]  ;;  %v783_v48 = vld [vmem:[%s3949_s17 + $0x24] sm:$0xe] }
  0x54   : > { %2363 = vmatpush.bf16.msra.mxu3 %v3740_v55  ;;  %v827_v52 = vsel %vm4152_vm5, %v825_v2, %v826_v59  ;;  %v884_v6 = vunpack.c.l.b16 %v824_v4  ;;  %v1457_v20 = vunpack.c.l.b16 %v1270_v63  ;;  %v1706_v10 = vunpack.c.l.b16 %v1636_v3  ;;  %v3257_v3 = vld [vmem:[%s3949_s17 + $0x2c] sm:$0x1] }
  0x55   : > { %2613 = vmatpush.bf16.msra.mxu0 %v3748_v56  ;;  %v885_v9 = vunpack.c.l.b16 %v827_v52  ;;  %v1277_v14 = vrot.slane %v1275_v1, 5  ;;  %v1707_v15 = vunpack.c.l.b16 %v1639_v5  ;;  %v1283_v18 = vrot.slane %v1281_v47, 5 }
  0x56   : > { %v1472_v26 = vpack.c.b16 %v1457_v20, %v1456_v7  ;;  %v1644_v46 = vrot.slane %v1642_v32, 4  ;;  %v830_v49 = vrot.slane %v4142_v57, 5  ;;  %v833_v50 = vrot.slane %v4185_v30, 5  ;;  %v3687_v20 = vld [vmem:[%s3949_s17 + $0x18] sm:$0xff] }
  0x57   : > { %v4283_v22 = vpack.c.b16 %v885_v9, %v884_v6  ;;  %v1278_v24 = vor.u32 %v1277_v14, %v1274_v12  ;;  %v1722_v29 = vpack.c.b16 %v1707_v15, %v1706_v10  ;;  %v1288_v31 = vor.u32 %v1287_v19, %v1283_v18  ;;  %1986 = vmatpush.bf16.msra.mxu2 %v3731_v37 }
  0x58   : > { %v1296_v51 = vshrl.u32 %v3255_v38, 16  ;;  %v1299_v53 = vshll.u32 %v3255_v38, 16  ;;  %2364 = vmatpush.bf16.msra.mxu3 %v3739_v42  ;;  %v3098_v54 = vrot.slane %v783_v48, 9  ;;  %v1305_v55 = vshll.u32 %v4294_v41, 16 }
  0x59   : > { %v1309_v56 = vshrl.u32 %v4294_v41, 16  ;;  %v832_v16 = vrot.slane %v830_v49, 4  ;;  %v1643_v30 = vsel %vm4152_vm5, %v3330_v43, %v1642_v32  ;;  %v1315_v9 = vshll.u32 %v3257_v3, 16  ;;  %v3746_v32 = vld [vmem:[%s4837_s1 + $0x220] sm:$0xff] }
  0x5a   : > { %v831_v57 = vsel %vm4152_vm5, %v3098_v54, %v830_v49  ;;  %v1298_v63 = vrot.slane %v1296_v51, 4  ;;  %v1301_v0 = vrot.slane %v1299_v53, 5  ;;  %v1307_v47 = vrot.slane %v1305_v55, 5  ;;  %v3260_v54 = vld [vmem:[%s3949_s17 + $0x38] sm:$0x1]  ;;  %v3688_v55 = vld [vmem:[%s3949_s17 + $0x24] sm:$0xff] }
  0x5b   : > { %v834_v60 = vsel %vm4152_vm5, %v832_v16, %v833_v50  ;;  %v886_v62 = vunpack.c.l.b16 %v831_v57  ;;  %v1311_v13 = vrot.slane %v1309_v56, 4  ;;  %v1708_v5 = vunpack.c.l.b16 %v1643_v30 }
  0x5c   : > { %v887_v1 = vunpack.c.l.b16 %v834_v60  ;;  %v1302_v7 = vor.u32 %v1301_v0, %v1298_v63  ;;  %v1649_v12 = vrot.slane %v4294_v41, 5  ;;  %v1317_v19 = vrot.slane %v1315_v9, 5  ;;  %v3729_v60 = vld [vmem:[%s4837_s1 + $0x198] sm:$0xff] }
  0x5d   : > { %v1312_v10 = vor.u32 %v1311_v13, %v1307_v47  ;;  %v1329_v41 = vshll.u32 %v3259_v33, 16  ;;  %v1333_v42 = vshrl.u32 %v3259_v33, 16  ;;  %v1339_v57 = vshll.u32 %v3260_v54, 16 }
  0x5e   : > { %629 = vmatmul.bf16.gmra.mxu2 %v529_v34  ;;  %609 = vmatmul.bf16.gmra.mxu0 %v525_v39  ;;  %v1279_v34 = vrot.slane %v1278_v24, 4  ;;  %v1289_v39 = vrot.slane %v1288_v31, 4  ;;  %v4320_v6 = vpack.c.b16 %v887_v1, %v886_v62  ;;  %v3738_v31 = vld [vmem:[%s4837_s1 + $0x1e0] sm:$0xff]  ;;  %v1656_v30 = vrot.slane %v3259_v33, 5  ;;  %v3261_v1 = vld [vmem:[%s3949_s17 + $0x3c] sm:$0xf] }
  0x5f   : > { %774 = vmatmul.bf16.gmra.mxu3 %v3661_v36  ;;  %v1293_v36 = vrot.slane %v1291_v25, 5  ;;  %v1651_v25 = vrot.slane %v1649_v12, 4  ;;  %v1331_v51 = vrot.slane %v1329_v41, 5  ;;  %v1335_v53 = vrot.slane %v1333_v42, 4  ;;  %v784_v33 = vld [vmem:[%s3949_s17 + $0x30] sm:$0xe] }
  0x60   : > { %754 = vmatmul.bf16.gmra.mxu1 %v3657_v40  ;;  %v1645_v40 = vrot.slane %v3254_v17, 5  ;;  %v1284_v58 = vsel %vm3985_vm2, %v1279_v34, %v1283_v18  ;;  %v3323_v17 = vld [vmem:[%s3949_s17 + $0x24] sm:$0xe]  ;;  %v1303_v18 = vrot.slane %v1302_v7, 4  ;;  %2365 = vmatpush.bf16.msra.mxu3 %v3738_v31  ;;  %v1341_v0 = vrot.slane %v1339_v57, 5 }
  0x61   : > { %v1294_v21 = vsel %vm3985_vm2, %v1289_v39, %v1293_v36  ;;  %v1458_v2 = vunpack.c.l.b16 %v1284_v58  ;;  %v3331_v24 = vrot.slane %v3323_v17, 9  ;;  %v1659_v13 = vrot.slane %v3260_v54, 5  ;;  %v3736_v54 = vld [vmem:[%s4837_s1 + $0x1d0] sm:$0xff] }
  0x62   : > { %v1646_v59 = vsel %vm4152_vm5, %v1644_v46, %v1645_v40  ;;  %v1459_v4 = vunpack.c.l.b16 %v1294_v21  ;;  %v1308_v34 = vsel %vm3985_vm2, %v1303_v18, %v1307_v47  ;;  %v1336_v21 = vor.u32 %v1335_v53, %v1331_v51  ;;  %v4380_v53 = vld [vmem:[%s3949_s17 + $0x4c] sm:$0xf] }
  0x63   : > { %v1709_v52 = vunpack.c.l.b16 %v1646_v59  ;;  %v1650_v37 = vsel %vm4152_vm5, %v3331_v24, %v1649_v12  ;;  %v3324_v59 = vld [vmem:[%s3949_s17 + $0x30] sm:$0xe]  ;;  %v1658_v47 = vrot.slane %v1656_v30, 4  ;;  %v3099_v41 = vrot.slane %v784_v33, 9 }
  0x64   : > { %v1473_v14 = vpack.c.b16 %v1459_v4, %v1458_v2  ;;  %v1710_v46 = vunpack.c.l.b16 %v1650_v37  ;;  %v1337_v63 = vrot.slane %v1336_v21, 4  ;;  %v3737_v2 = vld [vmem:[%s4837_s1 + $0x1d8] sm:$0xff]  ;;  %v1344_v4 = vshrl.u32 %v3261_v1, 16 }
  0x65   : > { %v1723_v15 = vpack.c.b16 %v1709_v52, %v1708_v5  ;;  %2366 = vmatpush.bf16.msra.mxu3 %v3737_v2  ;;  %v1347_v5 = vshll.u32 %v3261_v1, 16  ;;  %v1660_v12 = vsel %vm4152_vm5, %v1658_v47, %v1659_v13  ;;  %v3744_v47 = vld [vmem:[%s4837_s1 + $0x210] sm:$0xff] }
  0x66   : > { %v1342_v7 = vsel %vm3985_vm2, %v1337_v63, %v1341_v0  ;;  %v1346_v18 = vrot.slane %v1344_v4, 4  ;;  %v1713_v24 = vunpack.c.l.b16 %v1660_v12  ;;  %v3820_v12 = vld [vmem:[%s3949_s17 + $0x40] sm:$0xf] }
  0x67   : > { %v1463_v17 = vunpack.c.l.b16 %v1342_v7 }
  0x69   : > { %2367 = vmatpush.bf16.msra.mxu3 %v3736_v54 }
  0x6e   : > { %968 = vmatmul.bf16.vlgmr.msrb.gmra.mxu2 %v4195_v35  ;;  %1544 = vmatmul.bf16.vlgmr.msrb.gmra.mxu0 %v1472_v26  ;;  %v3747_v35 = vld [vmem:[%s4837_s1 + $0x228] sm:$0xff]  ;;  %v1652_v26 = vrot.slane %v3257_v3, 5  ;;  %v3332_v3 = vrot.slane %v3324_v59, 9  ;;  %v1377_v59 = vshll.u32 %v4380_v53, 16 }
  0x6f   : > { %1166 = vmatmul.bf16.vlgmr.msrb.gmra.mxu3 %v3686_v23  ;;  %2614 = vmatpush.bf16.msra.mxu0 %v3747_v35  ;;  %v1313_v23 = vrot.slane %v1312_v10, 4  ;;  %v1460_v35 = vunpack.c.l.b16 %v1308_v34 }
  0x70   : > { %1794 = vmatmul.bf16.vlgmr.msrb.gmra.mxu1 %v1722_v29  ;;  %v3730_v29 = vld [vmem:[%s4837_s1 + $0x1a0] sm:$0xff]  ;;  %v1653_v38 = vsel %vm4152_vm5, %v1651_v25, %v1652_v26  ;;  %v1657_v10 = vsel %vm4152_vm5, %v3332_v3, %v1656_v30  ;;  %v1379_v4 = vrot.slane %v1377_v59, 5 }
  0x71   : > { %1987 = vmatpush.bf16.msra.mxu2 %v3730_v29  ;;  %v1318_v36 = vsel %vm3985_vm2, %v1313_v23, %v1317_v19  ;;  %v1711_v48 = vunpack.c.l.b16 %v1653_v38  ;;  %v1349_v19 = vrot.slane %v1347_v5, 5  ;;  %v1712_v23 = vunpack.c.l.b16 %v1657_v10  ;;  %v3818_v29 = vld [vmem:[%s3949_s17 + $0x34] sm:$0xf]  ;;  %v3266_v10 = vld [vmem:[%s3949_s17 + $0x50] sm:$0x1] }
  0x72   : > { %v1461_v43 = vunpack.c.l.b16 %v1318_v36  ;;  %v837_v31 = vrot.slane %v3818_v29, 5 }
  0x73   : > { %2615 = vmatpush.bf16.msra.mxu0 %v3746_v32  ;;  %v1724_v16 = vpack.c.b16 %v1711_v48, %v1710_v46  ;;  %v3263_v32 = vld [vmem:[%s3949_s17 + $0x44] sm:$0x1]  ;;  %v1350_v34 = vor.u32 %v1349_v19, %v1346_v18  ;;  %v1725_v37 = vpack.c.b16 %v1713_v24, %v1712_v23  ;;  %v3325_v46 = vld [vmem:[%s3949_s17 + $0x3c] sm:$0xe]  ;;  %v1387_v24 = vshll.u32 %v3266_v10, 16 }
  0x74   : > { %v1474_v56 = vpack.c.b16 %v1461_v43, %v1460_v35  ;;  %v839_v42 = vrot.slane %v837_v31, 4  ;;  %v3819_v35 = vld [vmem:[%s3949_s17 + $0x38] sm:$0x1]  ;;  %v785_v18 = vld [vmem:[%s3949_s17 + $0x3c] sm:$0xe] }
  0x75   : > { %1988 = vmatpush.bf16.msra.mxu2 %v3729_v60  ;;  %v840_v43 = vrot.slane %v3819_v35, 5  ;;  %v1351_v48 = vrot.slane %v1350_v34, 4  ;;  %v1381_v60 = vshrl.u32 %v4380_v53, 16  ;;  %v3100_v34 = vrot.slane %v785_v18, 9  ;;  %v3267_v35 = vld [vmem:[%s3949_s17 + $0x54] sm:$0xf] }
  0x77   : > { %v841_v21 = vsel %vm4152_vm5, %v839_v42, %v840_v43  ;;  %v1383_v5 = vrot.slane %v1381_v60, 4  ;;  %v3735_v43 = vld [vmem:[%s4837_s1 + $0x1c8] sm:$0xff] }
  0x78   : > { %v889_v3 = vunpack.c.l.b16 %v841_v21  ;;  %2368 = vmatpush.bf16.msra.mxu3 %v3735_v43 }
  0x79   : > { %v1384_v23 = vor.u32 %v1383_v5, %v1379_v4 }
  0x7e   : > { %973 = vmatmul.bf16.gmra.mxu2 %v4245_v28  ;;  %1549 = vmatmul.bf16.gmra.mxu0 %v1473_v14  ;;  %v3258_v28 = vld [vmem:[%s3949_s17 + $0x30] sm:$0xf]  ;;  %v3745_v14 = vld [vmem:[%s4837_s1 + $0x218] sm:$0xff] }
  0x7f   : > { %1171 = vmatmul.bf16.gmra.mxu3 %v3687_v20  ;;  %v1320_v39 = vshrl.u32 %v3258_v28, 16  ;;  %v1323_v40 = vshll.u32 %v3258_v28, 16  ;;  %2616 = vmatpush.bf16.msra.mxu0 %v3745_v14  ;;  %v3689_v28 = vld [vmem:[%s3949_s17 + $0x30] sm:$0xff]  ;;  %v844_v14 = vrot.slane %v3820_v12, 5  ;;  %v3691_v12 = vld [vmem:[%s3949_s17 + $0x48] sm:$0xff] }
  0x80   : > { %1799 = vmatmul.bf16.gmra.mxu1 %v1723_v15 }
  0x81   : > { %v1322_v49 = vrot.slane %v1320_v39, 4  ;;  %v1325_v50 = vrot.slane %v1323_v40, 5  ;;  %v1363_v39 = vshll.u32 %v3263_v32, 16 }
  0x83   : > { %v1326_v58 = vor.u32 %v1325_v50, %v1322_v49  ;;  %v3728_v49 = vld [vmem:[%s4837_s1 + $0x190] sm:$0xff]  ;;  %2617 = vmatpush.bf16.msra.mxu0 %v3744_v47 }
  0x84   : > { %1989 = vmatpush.bf16.msra.mxu2 %v3728_v49 }
  0x85   : > { %v1327_v62 = vrot.slane %v1326_v58, 4  ;;  %v838_v58 = vsel %vm4152_vm5, %v3099_v41, %v837_v31  ;;  %v3727_v41 = vld [vmem:[%s4837_s1 + $0x188] sm:$0xff] }
  0x86   : > { %v888_v2 = vunpack.c.l.b16 %v838_v58  ;;  %v1395_v58 = vshll.u32 %v3267_v35, 16 }
  0x87   : > { %v1332_v52 = vsel %vm3985_vm2, %v1327_v62, %v1331_v51  ;;  %v3264_v51 = vld [vmem:[%s3949_s17 + $0x48] sm:$0xf] }
  0x88   : > { %v1462_v15 = vunpack.c.l.b16 %v1332_v52  ;;  %v1368_v57 = vshrl.u32 %v3264_v51, 16  ;;  %v1371_v30 = vshll.u32 %v3264_v51, 16  ;;  %1990 = vmatpush.bf16.msra.mxu2 %v3727_v41  ;;  %v845_v51 = vsel %vm4152_vm5, %v3100_v34, %v844_v14 }
  0x8a   : > { %v1475_v36 = vpack.c.b16 %v1463_v17, %v1462_v15  ;;  %v1370_v13 = vrot.slane %v1368_v57, 4  ;;  %v900_v15 = vpack.c.b16 %v889_v3, %v888_v2  ;;  %v3690_v17 = vld [vmem:[%s3949_s17 + $0x3c] sm:$0xff] }
  0x8e   : > { %978 = vmatmul.bf16.gmra.mxu2 %v4283_v22  ;;  %1554 = vmatmul.bf16.gmra.mxu0 %v1474_v56  ;;  %v3262_v22 = vld [vmem:[%s3949_s17 + $0x40] sm:$0xf]  ;;  %v3333_v56 = vrot.slane %v3325_v46, 9 }
  0x8f   : > { %1176 = vmatmul.bf16.gmra.mxu3 %v3688_v55  ;;  %v1353_v9 = vshll.u32 %v3262_v22, 16  ;;  %v1357_v20 = vshrl.u32 %v3262_v22, 16  ;;  %v1663_v40 = vrot.slane %v3262_v22, 5  ;;  %v1365_v55 = vrot.slane %v1363_v39, 5 }
  0x90   : > { %1804 = vmatmul.bf16.gmra.mxu1 %v1724_v16  ;;  %v1373_v22 = vrot.slane %v1371_v30, 5  ;;  %v1385_v39 = vrot.slane %v1384_v23, 4 }
  0x91   : > { %v1355_v25 = vrot.slane %v1353_v9, 5  ;;  %v1359_v26 = vrot.slane %v1357_v20, 4  ;;  %v1665_v16 = vrot.slane %v1663_v40, 4  ;;  %v1664_v0 = vsel %vm4152_vm5, %v3333_v56, %v1663_v40 }
  0x92   : > { %v1714_v9 = vunpack.c.l.b16 %v1664_v0  ;;  %v1374_v19 = vor.u32 %v1373_v22, %v1370_v13  ;;  %v1389_v40 = vrot.slane %v1387_v24, 5  ;;  %v3743_v0 = vld [vmem:[%s4837_s1 + $0x208] sm:$0xff]  ;;  %v1397_v22 = vrot.slane %v1395_v58, 5 }
  0x93   : > { %v1360_v38 = vor.u32 %v1359_v26, %v1355_v25  ;;  %v1356_v62 = vsel %vm3985_vm2, %v1351_v48, %v1355_v25  ;;  %v1673_v48 = vrot.slane %v3266_v10, 5  ;;  %2618 = vmatpush.bf16.msra.mxu0 %v3743_v0  ;;  %v3742_v0 = vld [vmem:[%s4837_s1 + $0x200] sm:$0xff] }
  0x94   : > { %v1464_v52 = vunpack.c.l.b16 %v1356_v62  ;;  %v1390_v56 = vsel %vm3985_vm2, %v1385_v39, %v1389_v40  ;;  %v890_v62 = vunpack.c.l.b16 %v845_v51 }
  0x95   : > { %v1361_v50 = vrot.slane %v1360_v38, 4  ;;  %v1375_v38 = vrot.slane %v1374_v19, 4  ;;  %v1467_v2 = vunpack.c.l.b16 %v1390_v56  ;;  %v786_v19 = vld [vmem:[%s3949_s17 + $0x48] sm:$0xe] }
  0x96   : > { %v3101_v34 = vrot.slane %v786_v19, 9 }
  0x97   : > { %v1366_v63 = vsel %vm3985_vm2, %v1361_v50, %v1365_v55  ;;  %v1380_v55 = vsel %vm3985_vm2, %v1375_v38, %v1379_v4  ;;  %v3726_v38 = vld [vmem:[%s4837_s1 + $0x180] sm:$0xff]  ;;  %2619 = vmatpush.bf16.msra.mxu0 %v3742_v0 }
  0x98   : > { %v1465_v7 = vunpack.c.l.b16 %v1366_v63  ;;  %1991 = vmatpush.bf16.msra.mxu2 %v3726_v38 }
  0x9a   : > { %v1476_v25 = vpack.c.b16 %v1465_v7, %v1464_v52  ;;  %v3269_v52 = vld [vmem:[%s3949_s17 + $0x5c] sm:$0x1] }
  0x9e   : > { %983 = vmatmul.bf16.gmra.mxu2 %v4320_v6  ;;  %1559 = vmatmul.bf16.gmra.mxu0 %v1475_v36  ;;  %v1666_v6 = vrot.slane %v3263_v32, 5  ;;  %v3326_v32 = vld [vmem:[%s3949_s17 + $0x48] sm:$0xe]  ;;  %v846_v36 = vrot.slane %v844_v14, 4 }
  0x9f   : > { %1181 = vmatmul.bf16.gmra.mxu3 %v3689_v28  ;;  %v1670_v28 = vrot.slane %v4380_v53, 5  ;;  %v3334_v42 = vrot.slane %v3326_v32, 9 }
  0xa0   : > { %1809 = vmatmul.bf16.gmra.mxu1 %v1725_v37  ;;  %v1667_v1 = vsel %vm4152_vm5, %v1665_v16, %v1666_v6  ;;  %v847_v37 = vrot.slane %v4018_v11, 5  ;;  %v4419_v11 = vld [vmem:[%s3949_s17 + $0x58] sm:$0xf]  ;;  %v1392_v16 = vshrl.u32 %v3267_v35, 16 }
  0xa1   : > { %v1715_v20 = vunpack.c.l.b16 %v1667_v1  ;;  %v1672_v46 = vrot.slane %v1670_v28, 4  ;;  %v1671_v6 = vsel %vm4152_vm5, %v3334_v42, %v1670_v28  ;;  %v1401_v21 = vshll.u32 %v4419_v11, 16  ;;  %v3327_v28 = vld [vmem:[%s3949_s17 + $0x54] sm:$0xe]  ;;  %v3734_v42 = vld [vmem:[%s4837_s1 + $0x1c0] sm:$0xff] }
  0xa2   : > { %v848_v53 = vsel %vm4152_vm5, %v846_v36, %v847_v37  ;;  %v1405_v57 = vshrl.u32 %v4419_v11, 16  ;;  %v1466_v1 = vunpack.c.l.b16 %v1380_v55  ;;  %v1716_v3 = vunpack.c.l.b16 %v1671_v6  ;;  %2369 = vmatpush.bf16.msra.mxu3 %v3734_v42 }
  0xa3   : > { %v1726_v26 = vpack.c.b16 %v1715_v20, %v1714_v9  ;;  %v1674_v60 = vsel %vm4152_vm5, %v1672_v46, %v1673_v48  ;;  %v891_v63 = vunpack.c.l.b16 %v848_v53  ;;  %v1394_v47 = vrot.slane %v1392_v16, 4  ;;  %v3270_v48 = vld [vmem:[%s3949_s17 + $0x60] sm:$0xf] }
  0xa4   : > { %v1717_v13 = vunpack.c.l.b16 %v1674_v60  ;;  %v1403_v4 = vrot.slane %v1401_v21, 5  ;;  %v1407_v5 = vrot.slane %v1405_v57, 4  ;;  %v1477_v14 = vpack.c.b16 %v1467_v2, %v1466_v1 }
  0xa5   : > { %v901_v10 = vpack.c.b16 %v891_v63, %v890_v62  ;;  %v1398_v23 = vor.u32 %v1397_v22, %v1394_v47  ;;  %v854_v37 = vrot.slane %v4086_v8, 5  ;;  %v3335_v35 = vrot.slane %v3327_v28, 9 }
  0xa6   : > { %v1727_v18 = vpack.c.b16 %v1717_v13, %v1716_v3  ;;  %v1408_v24 = vor.u32 %v1407_v5, %v1403_v4  ;;  %v1680_v46 = vrot.slane %v3269_v52, 5  ;;  %v1416_v16 = vshrl.u32 %v3270_v48, 16 }
  0xa7   : > { %v1399_v39 = vrot.slane %v1398_v23, 4  ;;  %v1419_v6 = vshll.u32 %v3270_v48, 16  ;;  %v787_v23 = vld [vmem:[%s3949_s17 + $0x54] sm:$0xe] }
  0xa8   : > { %v1409_v40 = vrot.slane %v1408_v24, 4  ;;  %v858_v24 = vrot.slane %v4123_v44, 5  ;;  %v3102_v38 = vrot.slane %v787_v23, 9  ;;  %v861_v44 = vrot.slane %v4182_v27, 5 }
  0xa9   : > { %v1404_v55 = vsel %vm3985_vm2, %v1399_v39, %v1403_v4  ;;  %v1418_v4 = vrot.slane %v1416_v16, 4  ;;  %v1421_v5 = vrot.slane %v1419_v6, 5  ;;  %v3483_v39 = vld [vmem:[%s3949_s17 + $0x18] sm:$0xf] }
  0xaa   : > { %v1468_v3 = vunpack.c.l.b16 %v1404_v55  ;;  %v859_v27 = vsel %vm4152_vm5, %v3102_v38, %v858_v24 }
  0xab   : > { %v595_v29 = vpop.f32.mrf.mxu0 }
  0xad   : > { %v740_v31 = vpop.f32.mrf.mxu1 }
  0xae   : > { %v4408_v33 = vadd.f32 %v740_v31, %v595_v29  ;;  %988 = vmatmul.bf16.gmra.mxu2 %v900_v15  ;;  %1564 = vmatmul.bf16.gmra.mxu0 %v1476_v25  ;;  %v3821_v15 = vld [vmem:[%s3949_s17 + $0x4c] sm:$0xf]  ;;  %v1411_v25 = vshll.u32 %v3269_v52, 16  ;;  %v1677_v31 = vrot.slane %v4419_v11, 5  ;;  %v3272_v52 = vld [vmem:[%s3949_s17 + $0x68] sm:$0x1] }
  0xaf   : > { %1186 = vmatmul.bf16.gmra.mxu3 %v3690_v17  ;;  %v851_v17 = vrot.slane %v3821_v15, 5 }
  0xb0   : > { %1814 = vmatmul.bf16.gmra.mxu1 %v1726_v26  ;;  %v1413_v41 = vrot.slane %v1411_v25, 5  ;;  %v1679_v43 = vrot.slane %v1677_v31, 4  ;;  %v1678_v57 = vsel %vm4152_vm5, %v3335_v35, %v1677_v31  ;;  %v1422_v25 = vor.u32 %v1421_v5, %v1418_v4  ;;  %v4501_v35 = vld [vmem:[%s3949_s17 + $0x1c] sm:$0xf] }
  0xb1   : > { %v615_v49 = vpop.f32.mrf.mxu2  ;;  %v853_v36 = vrot.slane %v851_v17, 4  ;;  %v852_v51 = vsel %vm4152_vm5, %v3101_v34, %v851_v17  ;;  %v1718_v13 = vunpack.c.l.b16 %v1678_v57  ;;  %v3692_v17 = vld [vmem:[%s3949_s17 + $0x54] sm:$0xff]  ;;  %v2087_v16 = vshrl.u32 %v4501_v35, 16 }
  0xb2   : > { %v760_v50 = vpop.f32.mrf.mxu3  ;;  %v1414_v56 = vsel %vm3985_vm2, %v1409_v40, %v1413_v41  ;;  %v1681_v60 = vsel %vm4152_vm5, %v1679_v43, %v1680_v46  ;;  %v892_v1 = vunpack.c.l.b16 %v852_v51  ;;  %v860_v40 = vrot.slane %v858_v24, 4  ;;  %v3693_v24 = vld [vmem:[%s3949_s17 + $0x60] sm:$0xff] }
  0xb3   : > { %v4425_v54 = vadd.f32 %v760_v50, %v615_v49  ;;  %v4435_v30 = vpop.f32.mrf.mxu0  ;;  %v4463_v49 = vld [vmem:[%s3949_s17 + $0x64] sm:$0xf]  ;;  %v855_v53 = vsel %vm4152_vm5, %v853_v36, %v854_v37  ;;  %v1469_v47 = vunpack.c.l.b16 %v1414_v56  ;;  %v1719_v22 = vunpack.c.l.b16 %v1681_v60  ;;  %v3328_v37 = vld [vmem:[%s3949_s17 + $0x60] sm:$0xe] }
  0xb4   : > { %v1425_v62 = vshll.u32 %v4463_v49, 16  ;;  %v1429_v63 = vshrl.u32 %v4463_v49, 16  ;;  %v893_v2 = vunpack.c.l.b16 %v855_v53  ;;  %v1684_v34 = vrot.slane %v4463_v49, 5 }
  0xb5   : > { %v4437_v59 = vpop.f32.mrf.mxu1  ;;  %v1728_v19 = vpack.c.b16 %v1719_v22, %v1718_v13  ;;  %v1423_v41 = vrot.slane %v1422_v25, 4  ;;  %v3336_v46 = vrot.slane %v3328_v37, 9  ;;  %v2074_v51 = vshrl.u32 %v3483_v39, 16  ;;  %v3485_v22 = vld [vmem:[%s3949_s17 + $0x20] sm:$0x1] }
  0xb6   : > { %v902_v15 = vpack.c.b16 %v893_v2, %v892_v1  ;;  %v1686_v48 = vrot.slane %v1684_v34, 4  ;;  %v2077_v53 = vshll.u32 %v3483_v39, 16  ;;  %v2083_v56 = vshll.u32 %v4501_v35, 16 }
  0xb7   : > { %v862_v6 = vsel %vm4152_vm5, %v860_v40, %v861_v44  ;;  %v1685_v0 = vsel %vm4152_vm5, %v3336_v46, %v1684_v34  ;;  %v2076_v2 = vrot.slane %v2074_v51, 4  ;;  %v2089_v5 = vrot.slane %v2087_v16, 4  ;;  %v3487_v46 = vld [vmem:[%s3949_s17 + $0x28] sm:$0xf] }
  0xb8   : > { %v895_v13 = vunpack.c.l.b16 %v862_v6  ;;  %v2085_v4 = vrot.slane %v2083_v56, 5  ;;  %v2107_v6 = vshll.u32 %v3487_v46, 16 }
  0xb9   : > { %v617_v7 = vpop.f32.mrf.mxu2 }
  0xba   : > { %v762_v9 = vpop.f32.mrf.mxu3  ;;  %v2090_v25 = vor.u32 %v2089_v5, %v2085_v4  ;;  %v3488_v5 = vld [vmem:[%s3949_s17 + $0x2c] sm:$0x1] }
  0xbb   : > { %v4445_v20 = vadd.f32 %v762_v9, %v617_v7  ;;  %v600_v26 = vpop.f32.mrf.mxu0  ;;  %v1427_v7 = vrot.slane %v1425_v62, 5  ;;  %v1431_v9 = vrot.slane %v1429_v63, 4 }
  0xbc   : > { %v2091_v44 = vrot.slane %v2090_v25, 4 }
  0xbd   : > { %v745_v29 = vpop.f32.mrf.mxu1  ;;  %v1432_v28 = vor.u32 %v1431_v9, %v1427_v7  ;;  %v1428_v62 = vsel %vm3985_vm2, %v1423_v41, %v1427_v7  ;;  %v1720_v9 = vunpack.c.l.b16 %v1685_v0 }
  0xbe   : > { %v4451_v32 = vadd.f32 %v745_v29, %v600_v26  ;;  %993 = vmatmul.bf16.gmra.mxu2 %v901_v10  ;;  %1569 = vmatmul.bf16.gmra.mxu0 %v1477_v14  ;;  %v1435_v26 = vshll.u32 %v3272_v52, 16 }
  0xbf   : > { %1191 = vmatmul.bf16.gmra.mxu3 %v3691_v12  ;;  %v1433_v43 = vrot.slane %v1432_v28, 4  ;;  %v3555_v28 = vld [vmem:[%s3949_s17 + $0x18] sm:$0xe] }
  0xc0   : > { %1819 = vmatmul.bf16.gmra.mxu1 %v1727_v18  ;;  %v1478_v18 = vpack.c.b16 %v1469_v47, %v1468_v3  ;;  %v1437_v42 = vrot.slane %v1435_v26, 5  ;;  %v2079_v3 = vrot.slane %v2077_v53, 5  ;;  %v894_v47 = vunpack.c.l.b16 %v859_v27 }
  0xc1   : > { %v620_v11 = vpop.f32.mrf.mxu2  ;;  %v2461_v26 = vrot.slane %v4501_v35, 5  ;;  %v3563_v41 = vrot.slane %v3555_v28, 9  ;;  %v3486_v35 = vld [vmem:[%s3949_s17 + $0x24] sm:$0xf]  ;;  %v4555_v28 = vld [vmem:[%s3949_s17 + $0x34] sm:$0xf] }
  0xc2   : > { %v765_v8 = vpop.f32.mrf.mxu3  ;;  %v1438_v63 = vsel %vm3985_vm2, %v1433_v43, %v1437_v42  ;;  %v903_v23 = vpack.c.b16 %v895_v13, %v894_v47  ;;  %v2464_v43 = vrot.slane %v3485_v22, 5  ;;  %v2098_v16 = vshrl.u32 %v3486_v35, 16 }
  0xc3   : > { %v4465_v50 = vadd.f32 %v765_v8, %v620_v11  ;;  %v4475_v58 = vpop.f32.mrf.mxu0  ;;  %v1687_v11 = vrot.slane %v3272_v52, 5  ;;  %v1470_v52 = vunpack.c.l.b16 %v1428_v62  ;;  %v1471_v7 = vunpack.c.l.b16 %v1438_v63 }
  0xc4   : > { %v2463_v42 = vrot.slane %v2461_v26, 4  ;;  %v2462_v53 = vsel %vm4152_vm5, %v3563_v41, %v2461_v26  ;;  %v2101_v27 = vshll.u32 %v3486_v35, 16  ;;  %v2111_v62 = vshrl.u32 %v3487_v46, 16 }
  0xc5   : > { %v4477_v21 = vpop.f32.mrf.mxu1  ;;  %v1688_v1 = vsel %vm4152_vm5, %v1686_v48, %v1687_v11  ;;  %v2100_v47 = vrot.slane %v2098_v16, 4  ;;  %v2468_v26 = vrot.slane %v3487_v46, 5  ;;  %v2471_v41 = vrot.slane %v3488_v5, 5 }
  0xc6   : > { %v2465_v56 = vsel %vm4152_vm5, %v2463_v42, %v2464_v43  ;;  %v2103_v13 = vrot.slane %v2101_v27, 5  ;;  %v2135_v46 = vshrl.u32 %v4555_v28, 16 }
  0xc9   : > { %v622_v10 = vpop.f32.mrf.mxu2 }
  0xca   : > { %v767_v12 = vpop.f32.mrf.mxu3 }
  0xcb   : > { %v4489_v14 = vadd.f32 %v767_v12, %v622_v10  ;;  %v605_v29 = vpop.f32.mrf.mxu0  ;;  %v1721_v10 = vunpack.c.l.b16 %v1688_v1 }
  0xcd   : > { %v750_v31 = vpop.f32.mrf.mxu1 }
  0xce   : > { %v4495_v36 = vadd.f32 %v750_v31, %v605_v29  ;;  %998 = vmatmul.bf16.gmra.mxu2 %v902_v15  ;;  %1574 = vmatmul.bf16.gmra.mxu0 %v1478_v18  ;;  %v2093_v18 = vshll.u32 %v3485_v22, 16  ;;  %v1479_v29 = vpack.c.b16 %v1471_v7, %v1470_v52  ;;  %v1729_v31 = vpack.c.b16 %v1721_v10, %v1720_v9  ;;  %v3757_v52 = vld [vmem:[%s4838_s2 + $0x38] sm:$0xff] }
  0xcf   : > { %1196 = vmatmul.bf16.gmra.mxu3 %v3692_v17  ;;  %v2080_v17 = vor.u32 %v2079_v3, %v2076_v2  ;;  %v2532_v2 = vunpack.c.l.b16 %v2462_v53  ;;  %v2533_v3 = vunpack.c.l.b16 %v2465_v56  ;;  %v2109_v22 = vrot.slane %v2107_v6, 5  ;;  %2805 = vmatpush.bf16.msra.mxu1 %v3757_v52  ;;  %v3756_v52 = vld [vmem:[%s4838_s2 + $0x30] sm:$0xff] }
  0xd0   : > { %1824 = vmatmul.bf16.gmra.mxu1 %v1728_v19  ;;  %v2095_v40 = vrot.slane %v2093_v18, 5  ;;  %v2104_v18 = vor.u32 %v2103_v13, %v2100_v47  ;;  %v3491_v13 = vld [vmem:[%s3949_s17 + $0x38] sm:$0x1] }
  0xd1   : > { %v625_v8 = vpop.f32.mrf.mxu2  ;;  %v2081_v39 = vrot.slane %v2080_v17, 4  ;;  %v2548_v17 = vpack.c.b16 %v2533_v3, %v2532_v2  ;;  %v2137_v2 = vrot.slane %v2135_v46, 4 }
  0xd2   : > { %v770_v49 = vpop.f32.mrf.mxu3  ;;  %v2096_v51 = vsel %vm3985_vm2, %v2091_v44, %v2095_v40  ;;  %v2470_v44 = vrot.slane %v2468_v26, 4 }
  0xd3   : > { %v4503_v55 = vadd.f32 %v770_v49, %v625_v8  ;;  %v4511_v57 = vpop.f32.mrf.mxu0  ;;  %v2086_v8 = vsel %vm3985_vm2, %v2081_v39, %v2085_v4  ;;  %v2283_v1 = vunpack.c.l.b16 %v2096_v51  ;;  %v2113_v4 = vrot.slane %v2111_v62, 4  ;;  %2806 = vmatpush.bf16.msra.mxu1 %v3756_v52  ;;  %v3494_v52 = vld [vmem:[%s3949_s17 + $0x44] sm:$0x1] }
  0xd4   : > { %v2282_v0 = vunpack.c.l.b16 %v2086_v8  ;;  %v2472_v6 = vsel %vm4152_vm5, %v2470_v44, %v2471_v41  ;;  %v2478_v41 = vrot.slane %v3491_v13, 5 }
  0xd5   : > { %v4513_v60 = vpop.f32.mrf.mxu1 }
  0xd9   : > { %v627_v12 = vpop.f32.mrf.mxu2 }
  0xda   : > { %v772_v15 = vpop.f32.mrf.mxu3 }
  0xdb   : > { %v4524_v19 = vadd.f32 %v772_v15, %v627_v12  ;;  %v610_v34 = vpop.f32.mrf.mxu0  ;;  %v3718_v12 = vld [vmem:[%s3949_s17 + $0x18] sm:$0xff]  ;;  %v2298_v15 = vpack.c.b16 %v2283_v1, %v2282_v0 }
  0xdd   : > { %v755_v37 = vpop.f32.mrf.mxu1 }
  0xde   : > { %v4529_v38 = vadd.f32 %v755_v37, %v610_v34  ;;  %1003 = vmatmul.bf16.gmra.mxu2 %v903_v23  ;;  %1579 = vmatmul.bf16.gmra.mxu0 %v1479_v29  ;;  %v2114_v23 = vor.u32 %v2113_v4, %v2109_v22  ;;  %v3556_v29 = vld [vmem:[%s3949_s17 + $0x24] sm:$0xe]  ;;  %v2105_v34 = vrot.slane %v2104_v18, 4  ;;  %v2535_v4 = vunpack.c.l.b16 %v2472_v6 }
  0xdf   : > { %1201 = vmatmul.bf16.gmra.mxu3 %v3693_v24  ;;  %v2117_v24 = vshll.u32 %v3488_v5, 16  ;;  %v3564_v40 = vrot.slane %v3556_v29, 9  ;;  %v743_v5 = vadd.f32 %v4437_v59, %v4435_v30  ;;  %v3557_v29 = vld [vmem:[%s3949_s17 + $0x30] sm:$0xe] }
  0xe0   : > { %1829 = vmatmul.bf16.gmra.mxu1 %v1729_v31  ;;  %v3489_v31 = vld [vmem:[%s3949_s17 + $0x30] sm:$0xf]  ;;  %v2115_v37 = vrot.slane %v2114_v23, 4  ;;  %v2110_v51 = vsel %vm3985_vm2, %v2105_v34, %v2109_v22  ;;  %v3719_v23 = vld [vmem:[%s3949_s17 + $0x24] sm:$0xff] }
  0xe1   : > { %v630_v48 = vpop.f32.mrf.mxu2  ;;  %v2119_v39 = vrot.slane %v2117_v24, 5  ;;  %v2122_v35 = vshrl.u32 %v3489_v31, 16  ;;  %v2469_v27 = vsel %vm4152_vm5, %v3564_v40, %v2468_v26  ;;  %v2284_v3 = vunpack.c.l.b16 %v2110_v51 }
  0xe2   : > { %v775_v11 = vpop.f32.mrf.mxu3  ;;  %v2534_v22 = vunpack.c.l.b16 %v2469_v27  ;;  %v3565_v40 = vrot.slane %v3557_v29, 9 }
  0xe3   : > { %v4535_v49 = vadd.f32 %v775_v11, %v630_v48  ;;  %v4543_v63 = vpop.f32.mrf.mxu0  ;;  %v2125_v48 = vshll.u32 %v3489_v31, 16  ;;  %v2131_v11 = vshll.u32 %v4555_v28, 16  ;;  %v2120_v53 = vsel %vm3985_vm2, %v2115_v37, %v2119_v39 }
  0xe4   : > { %v2124_v62 = vrot.slane %v2122_v35, 4  ;;  %v2285_v47 = vunpack.c.l.b16 %v2120_v53  ;;  %v2549_v26 = vpack.c.b16 %v2535_v4, %v2534_v22 }
  0xe5   : > { %v2127_v0 = vrot.slane %v2125_v48, 5  ;;  %v2133_v1 = vrot.slane %v2131_v11, 5 }
  0xe6   : > { %v2299_v24 = vpack.c.b16 %v2285_v47, %v2284_v3 }
  0xe9   : > { %v632_v7 = vpop.f32.mrf.mxu2 }
  0xea   : > { %v777_v9 = vpop.f32.mrf.mxu3 }
  0xeb   : > { %v4549_v10 = vadd.f32 %v777_v9, %v632_v7  ;;  %v1545_v25 = vpop.f32.mrf.mxu0 }
  0xee   : > { %1992 = vmatmul.bf16.vlgmr.msra.gmra.mxu2 %v3718_v12  ;;  %2620 = vmatmul.bf16.vlgmr.msra.gmra.mxu0 %v2548_v17  ;;  %v2128_v12 = vor.u32 %v2127_v0, %v2124_v62  ;;  %v2141_v17 = vshll.u32 %v3491_v13, 16 }
  0xef   : > { %2370 = vmatmul.bf16.vlgmr.msra.gmra.mxu3 %v2298_v15  ;;  %v2138_v15 = vor.u32 %v2137_v2, %v2133_v1 }
  0xf0   : > { %v2129_v31 = vrot.slane %v2128_v12, 4  ;;  %v2143_v37 = vrot.slane %v2141_v17, 5  ;;  %v3720_v17 = vld [vmem:[%s3949_s17 + $0x30] sm:$0xff] }
  0xf1   : > { %v969_v42 = vpop.f32.mrf.mxu2  ;;  %v2139_v34 = vrot.slane %v2138_v15, 4 }
  0xf2   : > { %v1167_v43 = vpop.f32.mrf.mxu3  ;;  %v1009_v8 = vadd.f32 %v969_v42, %v4408_v33  ;;  %v3492_v42 = vld [vmem:[%s3949_s17 + $0x3c] sm:$0xf]  ;;  %v2134_v48 = vsel %vm3985_vm2, %v2129_v31, %v2133_v1  ;;  %v3495_v31 = vld [vmem:[%s3949_s17 + $0x48] sm:$0xf] }
  0xf3   : > { %v1547_v16 = vpop.f32.mrf.mxu0  ;;  %v2144_v46 = vsel %vm3985_vm2, %v2139_v34, %v2143_v37  ;;  %v2146_v53 = vshrl.u32 %v3492_v42, 16  ;;  %v4611_v34 = vld [vmem:[%s3949_s17 + $0x4c] sm:$0xf] }
  0xf4   : > { %v1207_v56 = vadd.f32 %v1167_v43, %v1009_v8  ;;  %v2287_v1 = vunpack.c.l.b16 %v2144_v46  ;;  %v2173_v46 = vshll.u32 %v3495_v31, 16 }
  0xf5   : > { %v2148_v47 = vrot.slane %v2146_v53, 4 }
  0xf6   : > { %v4568_v33 = vadd.f32 %v1545_v25, %v1207_v56  ;;  %v2475_v25 = vrot.slane %v4555_v28, 5  ;;  %v4583_v28 = vld [vmem:[%s3949_s17 + $0x40] sm:$0xf]  ;;  %v2149_v56 = vshll.u32 %v3492_v42, 16 }
  0xf7   : > { %v2159_v27 = vshrl.u32 %v4583_v28, 16 }
  0xf8   : > { %v2477_v44 = vrot.slane %v2475_v25, 4  ;;  %v2476_v8 = vsel %vm4152_vm5, %v3565_v40, %v2475_v25  ;;  %v2151_v13 = vrot.slane %v2149_v56, 5 }
  0xf9   : > { %v971_v7 = vpop.f32.mrf.mxu2  ;;  %v2536_v2 = vunpack.c.l.b16 %v2476_v8  ;;  %v2161_v4 = vrot.slane %v2159_v27, 4  ;;  %v2183_v8 = vshrl.u32 %v4611_v34, 16 }
  0xfa   : > { %v1169_v9 = vpop.f32.mrf.mxu3  ;;  %v1010_v18 = vadd.f32 %v971_v7, %v743_v5  ;;  %v2479_v51 = vsel %vm4152_vm5, %v2477_v44, %v2478_v41  ;;  %v748_v5 = vadd.f32 %v4477_v21, %v4475_v58  ;;  %v3755_v7 = vld [vmem:[%s4838_s2 + $0x28] sm:$0xff]  ;;  %v2482_v21 = vrot.slane %v4583_v28, 5 }
  0xfb   : > { %v1550_v59 = vpop.f32.mrf.mxu0  ;;  %v2537_v3 = vunpack.c.l.b16 %v2479_v51  ;;  %2807 = vmatpush.bf16.msra.mxu1 %v3755_v7  ;;  %v3754_v7 = vld [vmem:[%s4838_s2 + $0x20] sm:$0xff] }
  0xfc   : > { %v1208_v30 = vadd.f32 %v1169_v9, %v1010_v18  ;;  %v2484_v42 = vrot.slane %v2482_v21, 4 }
  0xfe   : > { %1997 = vmatmul.bf16.gmra.mxu2 %v3719_v23  ;;  %v4579_v39 = vadd.f32 %v1547_v16, %v1208_v30  ;;  %2625 = vmatmul.bf16.gmra.mxu0 %v2549_v26  ;;  %v2155_v16 = vshll.u32 %v4583_v28, 16  ;;  %v2550_v23 = vpack.c.b16 %v2537_v3, %v2536_v2  ;;  %v2165_v26 = vshll.u32 %v3494_v52, 16  ;;  %v3558_v30 = vld [vmem:[%s3949_s17 + $0x3c] sm:$0xe] }
  0xff   : > { %2375 = vmatmul.bf16.gmra.mxu3 %v2299_v24  ;;  %v2152_v24 = vor.u32 %v2151_v13, %v2148_v47  ;;  %v3566_v41 = vrot.slane %v3558_v30, 9  ;;  %v2179_v28 = vshll.u32 %v4611_v34, 16  ;;  %v2185_v3 = vrot.slane %v2183_v8, 4  ;;  %2808 = vmatpush.bf16.msra.mxu1 %v3754_v7  ;;  %v3753_v7 = vld [vmem:[%s4838_s2 + $0x18] sm:$0xff] }
 0x100   : > { %v2157_v22 = vrot.slane %v2155_v16, 5  ;;  %v2167_v44 = vrot.slane %v2165_v26, 5  ;;  %v2489_v26 = vrot.slane %v4611_v34, 5  ;;  %v4639_v34 = vld [vmem:[%s3949_s17 + $0x58] sm:$0xf] }
 0x101   : > { %v974_v43 = vpop.f32.mrf.mxu2  ;;  %v2153_v37 = vrot.slane %v2152_v24, 4  ;;  %v2181_v2 = vrot.slane %v2179_v28, 5  ;;  %v3721_v24 = vld [vmem:[%s3949_s17 + $0x3c] sm:$0xff] }
 0x102   : > { %v1172_v35 = vpop.f32.mrf.mxu3  ;;  %v1011_v11 = vadd.f32 %v974_v43, %v4451_v32  ;;  %v2286_v32 = vunpack.c.l.b16 %v2134_v48  ;;  %v2162_v25 = vor.u32 %v2161_v4, %v2157_v22  ;;  %v2485_v43 = vrot.slane %v3494_v52, 5 }
 0x103   : > { %v1552_v62 = vpop.f32.mrf.mxu0  ;;  %v2158_v53 = vsel %vm3985_vm2, %v2153_v37, %v2157_v22  ;;  %v3497_v22 = vld [vmem:[%s3949_s17 + $0x50] sm:$0x1]  ;;  %v753_v52 = vadd.f32 %v4513_v60, %v4511_v57  ;;  %2809 = vmatpush.bf16.msra.mxu1 %v3753_v7 }
 0x104   : > { %v1209_v6 = vadd.f32 %v1172_v35, %v1011_v11  ;;  %v2300_v18 = vpack.c.b16 %v2287_v1, %v2286_v32  ;;  %v2163_v40 = vrot.slane %v2162_v25, 4  ;;  %v2170_v11 = vshrl.u32 %v3495_v31, 16 }
 0x105   : > { %v2175_v1 = vrot.slane %v2173_v46, 5  ;;  %v2288_v47 = vunpack.c.l.b16 %v2158_v53 }
 0x106   : > { %v4596_v0 = vadd.f32 %v1550_v59, %v1209_v6  ;;  %v2168_v56 = vsel %vm3985_vm2, %v2163_v40, %v2167_v44  ;;  %v2483_v6 = vsel %vm4152_vm5, %v3566_v41, %v2482_v21  ;;  %v2172_v32 = vrot.slane %v2170_v11, 4 }
 0x107   : > { %v2289_v13 = vunpack.c.l.b16 %v2168_v56  ;;  %v2538_v4 = vunpack.c.l.b16 %v2483_v6  ;;  %v2491_v44 = vrot.slane %v2489_v26, 4  ;;  %v2492_v41 = vrot.slane %v3497_v22, 5 }
 0x108   : > { %v2203_v56 = vshll.u32 %v4639_v34, 16 }
 0x109   : > { %v976_v9 = vpop.f32.mrf.mxu2  ;;  %v2301_v25 = vpack.c.b16 %v2289_v13, %v2288_v47  ;;  %v2493_v8 = vsel %vm4152_vm5, %v2491_v44, %v2492_v41 }
 0x10a   : > { %v1174_v12 = vpop.f32.mrf.mxu3  ;;  %v1012_v15 = vadd.f32 %v976_v9, %v748_v5 }
 0x10b   : > { %v1555_v58 = vpop.f32.mrf.mxu0 }
 0x10c   : > { %v1210_v29 = vadd.f32 %v1174_v12, %v1012_v15  ;;  %v2176_v15 = vor.u32 %v2175_v1, %v2172_v32 }
 0x10e   : > { %2002 = vmatmul.bf16.gmra.mxu2 %v3720_v17  ;;  %v4607_v59 = vadd.f32 %v1552_v62, %v1210_v29  ;;  %2630 = vmatmul.bf16.gmra.mxu0 %v2550_v23  ;;  %v2486_v62 = vsel %vm4152_vm5, %v2484_v42, %v2485_v43  ;;  %v2186_v17 = vor.u32 %v2185_v3, %v2181_v2  ;;  %v2177_v21 = vrot.slane %v2176_v15, 4  ;;  %v3498_v42 = vld [vmem:[%s3949_s17 + $0x54] sm:$0xf] }
 0x10f   : > { %2380 = vmatmul.bf16.gmra.mxu3 %v2300_v18  ;;  %v2539_v5 = vunpack.c.l.b16 %v2486_v62  ;;  %v2189_v18 = vshll.u32 %v3497_v22, 16  ;;  %v2197_v53 = vshll.u32 %v3498_v42, 16  ;;  %v757_v62 = vpop.f32.mrf.mxu1  ;;  %v2541_v3 = vunpack.c.l.b16 %v2493_v8 }
 0x110   : > { %v2187_v30 = vrot.slane %v2186_v17, 4  ;;  %v2205_v22 = vrot.slane %v2203_v56, 5  ;;  %v3722_v17 = vld [vmem:[%s3949_s17 + $0x48] sm:$0xff] }
 0x111   : > { %v979_v35 = vpop.f32.mrf.mxu2  ;;  %v2551_v29 = vpack.c.b16 %v2539_v5, %v2538_v4  ;;  %v2191_v31 = vrot.slane %v2189_v18, 5  ;;  %v2199_v13 = vrot.slane %v2197_v53, 5  ;;  %v758_v5 = vadd.f32 %v757_v62, %v4543_v63 }
 0x112   : > { %v1177_v48 = vpop.f32.mrf.mxu3  ;;  %v1013_v51 = vadd.f32 %v979_v35, %v4495_v36 }
 0x113   : > { %v1557_v27 = vpop.f32.mrf.mxu0  ;;  %v2192_v46 = vsel %vm3985_vm2, %v2187_v30, %v2191_v31  ;;  %v4666_v30 = vld [vmem:[%s3949_s17 + $0x64] sm:$0xf] }
 0x114   : > { %v1211_v16 = vadd.f32 %v1177_v48, %v1013_v51  ;;  %v2182_v48 = vsel %vm3985_vm2, %v2177_v21, %v2181_v2  ;;  %v2194_v51 = vshrl.u32 %v3498_v42, 16  ;;  %v2291_v1 = vunpack.c.l.b16 %v2192_v46  ;;  %v3501_v21 = vld [vmem:[%s3949_s17 + $0x60] sm:$0xf] }
 0x115   : > { %v2221_v46 = vshll.u32 %v3501_v21, 16 }
 0x116   : > { %v4624_v36 = vadd.f32 %v1555_v58, %v1211_v16  ;;  %v3559_v58 = vld [vmem:[%s3949_s17 + $0x48] sm:$0xe]  ;;  %v2207_v16 = vshrl.u32 %v4639_v34, 16  ;;  %v2196_v47 = vrot.slane %v2194_v51, 4 }
 0x117   : > { %v3567_v40 = vrot.slane %v3559_v58, 9  ;;  %v2496_v58 = vrot.slane %v4639_v34, 5  ;;  %v2227_v34 = vshll.u32 %v4666_v30, 16 }
 0x118   : > { %v2209_v4 = vrot.slane %v2207_v16, 4 }
 0x119   : > { %v981_v9 = vpop.f32.mrf.mxu2  ;;  %v2490_v28 = vsel %vm4152_vm5, %v3567_v40, %v2489_v26  ;;  %v2498_v42 = vrot.slane %v2496_v58, 4 }
 0x11a   : > { %v1179_v12 = vpop.f32.mrf.mxu3  ;;  %v1014_v23 = vadd.f32 %v981_v9, %v753_v52  ;;  %v2540_v2 = vunpack.c.l.b16 %v2490_v28  ;;  %v3500_v52 = vld [vmem:[%s3949_s17 + $0x5c] sm:$0x1]  ;;  %v2231_v28 = vshrl.u32 %v4666_v30, 16 }
 0x11b   : > { %v1560_v60 = vpop.f32.mrf.mxu0  ;;  %v2213_v26 = vshll.u32 %v3500_v52, 16 }
 0x11c   : > { %v1212_v57 = vadd.f32 %v1179_v12, %v1014_v23  ;;  %v2552_v23 = vpack.c.b16 %v2541_v3, %v2540_v2  ;;  %v2233_v2 = vrot.slane %v2231_v28, 4 }
 0x11d   : > { %v2215_v44 = vrot.slane %v2213_v26, 5  ;;  %v3561_v26 = vld [vmem:[%s3949_s17 + $0x60] sm:$0xe] }
 0x11e   : > { %2007 = vmatmul.bf16.gmra.mxu2 %v3721_v24  ;;  %v4635_v37 = vadd.f32 %v1557_v27, %v1212_v57  ;;  %2635 = vmatmul.bf16.gmra.mxu0 %v2551_v29  ;;  %v2200_v24 = vor.u32 %v2199_v13, %v2196_v47  ;;  %v3560_v57 = vld [vmem:[%s3949_s17 + $0x54] sm:$0xe]  ;;  %v3503_v13 = vld [vmem:[%s3949_s17 + $0x68] sm:$0x1] }
 0x11f   : > { %2385 = vmatmul.bf16.gmra.mxu3 %v2301_v25  ;;  %v2210_v25 = vor.u32 %v2209_v4, %v2205_v22  ;;  %v3568_v41 = vrot.slane %v3560_v57, 9 }
 0x120   : > { %v2201_v31 = vrot.slane %v2200_v24, 4  ;;  %v2503_v24 = vrot.slane %v4666_v30, 5  ;;  %v3505_v30 = vld [vmem:[%s3949_s17 + $0x70] sm:$0xf] }
 0x121   : > { %v984_v43 = vpop.f32.mrf.mxu2  ;;  %v2211_v40 = vrot.slane %v2210_v25, 4 }
 0x122   : > { %v1182_v35 = vpop.f32.mrf.mxu3  ;;  %v1015_v11 = vadd.f32 %v984_v43, %v4529_v38  ;;  %v2290_v38 = vunpack.c.l.b16 %v2182_v48  ;;  %v2499_v43 = vrot.slane %v3500_v52, 5  ;;  %v2206_v51 = vsel %vm3985_vm2, %v2201_v31, %v2205_v22 }
 0x123   : > { %v1562_v6 = vpop.f32.mrf.mxu0  ;;  %v2216_v53 = vsel %vm3985_vm2, %v2211_v40, %v2215_v44  ;;  %v2292_v3 = vunpack.c.l.b16 %v2206_v51  ;;  %v3569_v40 = vrot.slane %v3561_v26, 9  ;;  %v2506_v44 = vrot.slane %v3503_v13, 5  ;;  %v3562_v26 = vld [vmem:[%s3949_s17 + $0x6c] sm:$0xe] }
 0x124   : > { %v1213_v27 = vadd.f32 %v1182_v35, %v1015_v11  ;;  %v2302_v18 = vpack.c.b16 %v2291_v1, %v2290_v38  ;;  %v2218_v11 = vshrl.u32 %v3501_v21, 16  ;;  %v2223_v38 = vrot.slane %v2221_v46, 5 }
 0x125   : > { %v2229_v1 = vrot.slane %v2227_v34, 5  ;;  %v2293_v47 = vunpack.c.l.b16 %v2216_v53  ;;  %v2504_v46 = vsel %vm4152_vm5, %v3569_v40, %v2503_v24  ;;  %v2251_v51 = vshll.u32 %v3505_v30, 16 }
 0x126   : > { %v4652_v32 = vadd.f32 %v1560_v60, %v1213_v27  ;;  %v2497_v27 = vsel %vm4152_vm5, %v3568_v41, %v2496_v58  ;;  %v2220_v62 = vrot.slane %v2218_v11, 4  ;;  %v3504_v41 = vld [vmem:[%s3949_s17 + $0x6c] sm:$0xf]  ;;  %v2255_v53 = vshrl.u32 %v3505_v30, 16 }
 0x127   : > { %v2542_v22 = vunpack.c.l.b16 %v2497_v27  ;;  %v2242_v28 = vshrl.u32 %v3504_v41, 16 }
 0x129   : > { %v986_v9 = vpop.f32.mrf.mxu2 }
 0x12a   : > { %v1184_v12 = vpop.f32.mrf.mxu3  ;;  %v1016_v15 = vadd.f32 %v986_v9, %v758_v5  ;;  %v3752_v5 = vld [vmem:[%s4838_s2 + $0x10] sm:$0xff]  ;;  %v2224_v9 = vor.u32 %v2223_v38, %v2220_v62  ;;  %v2544_v62 = vunpack.c.l.b16 %v2504_v46 }
 0x12b   : > { %v1565_v63 = vpop.f32.mrf.mxu0  ;;  %2810 = vmatpush.bf16.msra.mxu1 %v3752_v5 }
 0x12c   : > { %v1214_v29 = vadd.f32 %v1184_v12, %v1016_v15  ;;  %v2234_v12 = vor.u32 %v2233_v2, %v2229_v1  ;;  %v2237_v15 = vshll.u32 %v3503_v13, 16  ;;  %v2225_v58 = vrot.slane %v2224_v9, 4  ;;  %v3506_v13 = vld [vmem:[%s3949_s17 + $0x74] sm:$0x1] }
 0x12e   : > { %2012 = vmatmul.bf16.gmra.mxu2 %v3722_v17  ;;  %v4662_v60 = vadd.f32 %v1562_v6, %v1214_v29  ;;  %2640 = vmatmul.bf16.gmra.mxu0 %v2552_v23  ;;  %v2500_v6 = vsel %vm4152_vm5, %v2498_v42, %v2499_v43  ;;  %v2303_v23 = vpack.c.b16 %v2293_v47, %v2292_v3  ;;  %v2235_v57 = vrot.slane %v2234_v12, 4 }
 0x12f   : > { %2390 = vmatmul.bf16.gmra.mxu3 %v2302_v18  ;;  %v2543_v4 = vunpack.c.l.b16 %v2500_v6  ;;  %v3723_v18 = vld [vmem:[%s3949_s17 + $0x54] sm:$0xff]  ;;  %v2239_v21 = vrot.slane %v2237_v15, 5  ;;  %v2253_v3 = vrot.slane %v2251_v51, 5  ;;  %v2257_v47 = vrot.slane %v2255_v53, 4 }
 0x131   : > { %v989_v35 = vpop.f32.mrf.mxu2  ;;  %v2553_v25 = vpack.c.b16 %v2543_v4, %v2542_v22  ;;  %v2240_v11 = vsel %vm3985_vm2, %v2235_v57, %v2239_v21  ;;  %v3751_v22 = vld [vmem:[%s4838_s2 + $0x8] sm:$0xff]  ;;  %v3570_v21 = vrot.slane %v3562_v26, 9 }
 0x132   : > { %v1187_v48 = vpop.f32.mrf.mxu3  ;;  %v1017_v8 = vadd.f32 %v989_v35, %v4425_v54  ;;  %v2230_v35 = vsel %vm3985_vm2, %v2225_v58, %v2229_v1  ;;  %v2244_v1 = vrot.slane %v2242_v28, 4  ;;  %2811 = vmatpush.bf16.msra.mxu1 %v3751_v22 }
 0x133   : > { %v1567_v16 = vpop.f32.mrf.mxu0  ;;  %v2294_v27 = vunpack.c.l.b16 %v2230_v35 }
 0x134   : > { %v1215_v56 = vadd.f32 %v1187_v48, %v1017_v8  ;;  %v2245_v8 = vshll.u32 %v3504_v41, 16 }
 0x136   : > { %v4679_v54 = vadd.f32 %v1565_v63, %v1215_v56  ;;  %v2247_v2 = vrot.slane %v2245_v8, 5  ;;  %2812 = vmatpush.bf16.msra.mxu1 %v3750_v61 }
 0x138   : > { %v2248_v15 = vor.u32 %v2247_v2, %v2244_v1 }
 0x139   : > { %v991_v52 = vpop.f32.mrf.mxu2 }
 0x13a   : > { %v1189_v7 = vpop.f32.mrf.mxu3  ;;  %v1018_v17 = vadd.f32 %v991_v52, %v4445_v20  ;;  %v2505_v20 = vrot.slane %v2503_v24, 4  ;;  %v2249_v58 = vrot.slane %v2248_v15, 4 }
 0x13b   : > { %v1570_v63 = vpop.f32.mrf.mxu0 }
 0x13c   : > { %v1216_v29 = vadd.f32 %v1189_v7, %v1018_v17  ;;  %v2507_v34 = vsel %vm4152_vm5, %v2505_v20, %v2506_v44  ;;  %v3724_v7 = vld [vmem:[%s3949_s17 + $0x60] sm:$0xff]  ;;  %v2258_v17 = vor.u32 %v2257_v47, %v2253_v3  ;;  %v2513_v20 = vrot.slane %v3506_v13, 5 }
 0x13d   : > { %v2545_v38 = vunpack.c.l.b16 %v2507_v34 }
 0x13e   : > { %2017 = vmatmul.bf16.gmra.mxu2 %v3723_v18  ;;  %v4689_v31 = vadd.f32 %v1567_v16, %v1216_v29  ;;  %2645 = vmatmul.bf16.gmra.mxu0 %v2553_v25  ;;  %v2261_v18 = vshll.u32 %v3506_v13, 16  ;;  %v2510_v25 = vrot.slane %v3505_v30, 5  ;;  %v1795_v29 = vpop.f32.mrf.mxu1  ;;  %v2259_v57 = vrot.slane %v2258_v17, 4 }
 0x13f   : > { %2395 = vmatmul.bf16.gmra.mxu3 %v2303_v23  ;;  %v2554_v12 = vpack.c.b16 %v2545_v38, %v2544_v62  ;;  %v2254_v30 = vsel %vm3985_vm2, %v2249_v58, %v2253_v3 }
 0x140   : > { %v2512_v40 = vrot.slane %v2510_v25, 4  ;;  %v2296_v28 = vunpack.c.l.b16 %v2254_v30 }
 0x141   : > { %v994_v42 = vpop.f32.mrf.mxu2 }
 0x142   : > { %v1192_v43 = vpop.f32.mrf.mxu3  ;;  %v1019_v48 = vadd.f32 %v994_v42, %v4465_v50  ;;  %v2295_v50 = vunpack.c.l.b16 %v2240_v11  ;;  %v2511_v11 = vsel %vm4152_vm5, %v3570_v21, %v2510_v25  ;;  %v2514_v46 = vsel %vm4152_vm5, %v2512_v40, %v2513_v20 }
 0x143   : > { %v1572_v16 = vpop.f32.mrf.mxu0  ;;  %v2547_v51 = vunpack.c.l.b16 %v2514_v46 }
 0x144   : > { %v1217_v56 = vadd.f32 %v1192_v43, %v1019_v48  ;;  %v2304_v9 = vpack.c.b16 %v2295_v50, %v2294_v27  ;;  %v3725_v27 = vld [vmem:[%s3949_s17 + $0x6c] sm:$0xff] }
 0x146   : > { %v4702_v6 = vadd.f32 %v1570_v63, %v1217_v56  ;;  %v1797_v53 = vpop.f32.mrf.mxu1 }
 0x149   : > { %v996_v4 = vpop.f32.mrf.mxu2 }
 0x14a   : > { %v1194_v5 = vpop.f32.mrf.mxu3  ;;  %v1020_v52 = vadd.f32 %v996_v4, %v4489_v14  ;;  %v2263_v14 = vrot.slane %v2261_v18, 5 }
 0x14b   : > { %v1575_v24 = vpop.f32.mrf.mxu0 }
 0x14c   : > { %v1218_v23 = vadd.f32 %v1194_v5, %v1020_v52  ;;  %v2264_v43 = vsel %vm3985_vm2, %v2259_v57, %v2263_v14  ;;  %v1836_v14 = vadd.f32 %v1797_v53, %v4579_v39 }
 0x14d   : > { %v2297_v8 = vunpack.c.l.b16 %v2264_v43 }
 0x14e   : > { %2022 = vmatmul.bf16.gmra.mxu2 %v3724_v7  ;;  %v4711_v63 = vadd.f32 %v1572_v16, %v1218_v23  ;;  %2650 = vmatmul.bf16.gmra.mxu0 %v2554_v12  ;;  %v1800_v13 = vpop.f32.mrf.mxu1  ;;  %v1835_v23 = vadd.f32 %v1795_v29, %v4568_v33  ;;  %v4748_v33 = vld [vmem:[%s4839_s3 + $0x1] ss:$0 sm:$0xff] }
 0x14f   : > { %2400 = vmatmul.bf16.gmra.mxu3 %v2304_v9  ;;  %v2305_v50 = vpack.c.b16 %v2297_v8, %v2296_v28  ;;  %v1837_v39 = vadd.f32 %v1800_v13, %v4596_v0 }
 0x151   : > { %v999_v44 = vpop.f32.mrf.mxu2 }
 0x152   : > { %v1197_v41 = vpop.f32.mrf.mxu3  ;;  %v1021_v42 = vadd.f32 %v999_v44, %v4503_v55  ;;  %v2546_v55 = vunpack.c.l.b16 %v2511_v11 }
 0x153   : > { %v1577_v48 = vpop.f32.mrf.mxu0 }
 0x154   : > { %v1219_v35 = vadd.f32 %v1197_v41, %v1021_v42  ;;  %v2555_v62 = vpack.c.b16 %v2547_v51, %v2546_v55 }
 0x156   : > { %v4722_v34 = vadd.f32 %v1575_v24, %v1219_v35  ;;  %v1802_v12 = vpop.f32.mrf.mxu1 }
 0x159   : > { %v1001_v56 = vpop.f32.mrf.mxu2 }
 0x15a   : > { %v1199_v16 = vpop.f32.mrf.mxu3  ;;  %v1022_v45 = vadd.f32 %v1001_v56, %v4524_v19 }
 0x15b   : > { %v1580_v1 = vpop.f32.mrf.mxu0 }
 0x15c   : > { %v1220_v38 = vadd.f32 %v1199_v16, %v1022_v45  ;;  %v1838_v45 = vadd.f32 %v1802_v12, %v4607_v59 }
 0x15e   : > { %2027 = vmatmul.bf16.gmra.mxu2 %v3725_v27  ;;  %v4729_v2 = vadd.f32 %v1577_v48, %v1220_v38  ;;  %2655 = vmatmul.bf16.gmra.mxu0 %v2555_v62  ;;  %v1805_v57 = vpop.f32.mrf.mxu1 }
 0x15f   : > { %2405 = vmatmul.bf16.gmra.mxu3 %v2305_v50  ;;  %v1839_v13 = vadd.f32 %v1805_v57, %v4624_v36 }
 0x161   : > { %v1004_v3 = vpop.f32.mrf.mxu2 }
 0x162   : > { %v1202_v47 = vpop.f32.mrf.mxu3  ;;  %v1023_v19 = vadd.f32 %v1004_v3, %v4535_v49 }
 0x163   : > { %v1582_v4 = vpop.f32.mrf.mxu0 }
 0x164   : > { %v1221_v22 = vadd.f32 %v1202_v47, %v1023_v19 }
 0x166   : > { %v4732_v5 = vadd.f32 %v1580_v1, %v1221_v22  ;;  %v1807_v43 = vpop.f32.mrf.mxu1 }
 0x169   : > { %v1006_v52 = vpop.f32.mrf.mxu2 }
 0x16a   : > { %v1204_v7 = vpop.f32.mrf.mxu3  ;;  %v1024_v9 = vadd.f32 %v1006_v52, %v4549_v10  ;;  %v4742_v10 = vld [vmem:[%s4839_s3] ss:$0 sm:$0xff] }
 0x16b   : > { %v2621_v17 = vpop.f32.mrf.mxu0 }
 0x16c   : > { %v1222_v15 = vadd.f32 %v1204_v7, %v1024_v9 }
 0x16e   : > { %v4735_v18 = vadd.f32 %v1582_v4, %v1222_v15  ;;  %v1810_v62 = vpop.f32.mrf.mxu1 }
 0x171   : > { %v1993_v24 = vpop.f32.mrf.mxu2 }
 0x172   : > { %v2371_v25 = vpop.f32.mrf.mxu3  ;;  %v2033_v26 = vadd.f32 %v1993_v24, %v1835_v23 }
 0x173   : > { %v2623_v49 = vpop.f32.mrf.mxu0 }
 0x174   : > { %v2411_v58 = vadd.f32 %v2371_v25, %v2033_v26  ;;  %v1840_v25 = vadd.f32 %v1807_v43, %v4635_v37 }
 0x176   : > { %v2661_v21 = vadd.f32 %v2621_v17, %v2411_v58  ;;  %v1812_v9 = vpop.f32.mrf.mxu1 }
 0x178   : > { %v2679_v41 = vmul.f32 %v4742_v10, %v2661_v21 }
 0x179   : > { %v1995_v40 = vpop.f32.mrf.mxu2 }
 0x17a   : > { %v2373_v20 = vpop.f32.mrf.mxu3  ;;  %v2034_v44 = vadd.f32 %v1995_v40, %v1836_v14  ;;  %v2697_v35 = vadd.f32 %v4748_v33, %v2679_v41 }
 0x17b   : > { %v2626_v42 = vpop.f32.mrf.mxu0 }
 0x17c   : > { %v2412_v29 = vadd.f32 %v2373_v20, %v2034_v44  ;;  %v2713_v55 = vmax.f32 %v2697_v35, 0.0  ;;  %v1841_v44 = vadd.f32 %v1810_v62, %v4652_v32 }
 0x17e   : > { %v2662_v30 = vadd.f32 %v2623_v49, %v2412_v29  ;;  %v1815_v40 = vpop.f32.mrf.mxu1 }
 0x180   : > { %v2680_v48 = vmul.f32 %v4742_v10, %v2662_v30 }
 0x181   : > { %v1998_v11 = vpop.f32.mrf.mxu2 }
 0x182   : > { %v2376_v46 = vpop.f32.mrf.mxu3  ;;  %v2698_v28 = vadd.f32 %v4748_v33, %v2680_v48  ;;  %v2035_v8 = vadd.f32 %v1998_v11, %v1837_v39 }
 0x183   : > { %v2628_v56 = vpop.f32.mrf.mxu0 }
 0x184   : > { %v2714_v51 = vmax.f32 %v2698_v28, 0.0  ;;  %v2413_v53 = vadd.f32 %v2376_v46, %v2035_v8  ;;  %v1842_v28 = vadd.f32 %v1812_v9, %v4662_v60 }
 0x186   : > { %v2729_v16 = vpack.c.bf16 %v2714_v51, %v2713_v55  ;;  %v2663_v27 = vadd.f32 %v2626_v42, %v2413_v53  ;;  %v1817_v8 = vpop.f32.mrf.mxu1 }
 0x188   : > { %2813 = vmatmul.bf16.vlgmr.msra.gmra.mxu1 %v2729_v16  ;;  %v2681_v1 = vmul.f32 %v4742_v10, %v2663_v27 }
 0x189   : > { %v2000_v0 = vpop.f32.mrf.mxu2 }
 0x18a   : > { %v2378_v50 = vpop.f32.mrf.mxu3  ;;  %v2036_v38 = vadd.f32 %v2000_v0, %v1838_v45  ;;  %v2699_v22 = vadd.f32 %v4748_v33, %v2681_v1  ;;  %v1843_v0 = vadd.f32 %v1815_v40, %v4679_v54 }
 0x18b   : > { %v2631_v3 = vpop.f32.mrf.mxu0 }
 0x18c   : > { %v2414_v61 = vadd.f32 %v2378_v50, %v2036_v38  ;;  %v2715_v17 = vmax.f32 %v2699_v22, 0.0 }
 0x18e   : > { %v2664_v47 = vadd.f32 %v2628_v56, %v2414_v61  ;;  %v1820_v60 = vpop.f32.mrf.mxu1 }
 0x190   : > { %v2682_v19 = vmul.f32 %v4742_v10, %v2664_v47 }
 0x191   : > { %v2003_v4 = vpop.f32.mrf.mxu2 }
 0x192   : > { %v2381_v52 = vpop.f32.mrf.mxu3  ;;  %v2037_v59 = vadd.f32 %v2003_v4, %v1839_v13  ;;  %v2700_v7 = vadd.f32 %v4748_v33, %v2682_v19 }
 0x193   : > { %v2633_v15 = vpop.f32.mrf.mxu0 }
 0x194   : > { %v2415_v12 = vadd.f32 %v2381_v52, %v2037_v59  ;;  %v2716_v23 = vmax.f32 %v2700_v7, 0.0  ;;  %v1844_v52 = vadd.f32 %v1817_v8, %v4689_v31 }
 0x196   : > { %v2730_v24 = vpack.c.bf16 %v2716_v23, %v2715_v17  ;;  %v2665_v26 = vadd.f32 %v2631_v3, %v2415_v12  ;;  %v1822_v12 = vpop.f32.mrf.mxu1 }
 0x198   : > { %2818 = vmatmul.bf16.gmra.mxu1 %v2730_v24  ;;  %v2683_v57 = vmul.f32 %v4742_v10, %v2665_v26 }
 0x199   : > { %v2005_v36 = vpop.f32.mrf.mxu2 }
 0x19a   : > { %v2383_v58 = vpop.f32.mrf.mxu3  ;;  %v2038_v49 = vadd.f32 %v2005_v36, %v1840_v25  ;;  %v2701_v29 = vadd.f32 %v4748_v33, %v2683_v57  ;;  %v1845_v25 = vadd.f32 %v1820_v60, %v4702_v6 }
 0x19b   : > { %v2636_v21 = vpop.f32.mrf.mxu0 }
 0x19c   : > { %v2416_v14 = vadd.f32 %v2383_v58, %v2038_v49  ;;  %v2717_v48 = vmax.f32 %v2701_v29, 0.0  ;;  %v1846_v29 = vadd.f32 %v1822_v12, %v4711_v63 }
 0x19e   : > { %v2666_v20 = vadd.f32 %v2633_v15, %v2416_v14 }
 0x1a0   : > { %v2684_v41 = vmul.f32 %v4742_v10, %v2666_v20 }
 0x1a1   : > { %v2008_v42 = vpop.f32.mrf.mxu2 }
 0x1a2   : > { %v2386_v30 = vpop.f32.mrf.mxu3  ;;  %v2039_v37 = vadd.f32 %v2008_v42, %v1841_v44  ;;  %v2702_v39 = vadd.f32 %v4748_v33, %v2684_v41  ;;  %v1825_v44 = vpop.f32.mrf.mxu1 }
 0x1a3   : > { %v2638_v35 = vpop.f32.mrf.mxu0 }
 0x1a4   : > { %v2417_v43 = vadd.f32 %v2386_v30, %v2039_v37  ;;  %v2718_v11 = vmax.f32 %v2702_v39, 0.0 }
 0x1a6   : > { %v2731_v46 = vpack.c.bf16 %v2718_v11, %v2717_v48  ;;  %v2667_v55 = vadd.f32 %v2636_v21, %v2417_v43  ;;  %v1847_v11 = vadd.f32 %v1825_v44, %v4722_v34 }
 0x1a8   : > { %2823 = vmatmul.bf16.gmra.mxu1 %v2731_v46  ;;  %v2685_v56 = vmul.f32 %v4742_v10, %v2667_v55 }
 0x1a9   : > { %v2010_v32 = vpop.f32.mrf.mxu2 }
 0x1aa   : > { %v2388_v51 = vpop.f32.mrf.mxu3  ;;  %v2040_v53 = vadd.f32 %v2010_v32, %v1842_v28  ;;  %v2703_v62 = vadd.f32 %v4748_v33, %v2685_v56  ;;  %v1827_v46 = vpop.f32.mrf.mxu1 }
 0x1ab   : > { %v2641_v45 = vpop.f32.mrf.mxu0 }
 0x1ac   : > { %v2418_v16 = vadd.f32 %v2388_v51, %v2040_v53  ;;  %v2719_v19 = vmax.f32 %v2703_v62, 0.0 }
 0x1ae   : > { %v2668_v27 = vadd.f32 %v2638_v35, %v2418_v16 }
 0x1b0   : > { %v2686_v50 = vmul.f32 %v4742_v10, %v2668_v27  ;;  %v1848_v27 = vadd.f32 %v1827_v46, %v4729_v2 }
 0x1b1   : > { %v2013_v38 = vpop.f32.mrf.mxu2 }
 0x1b2   : > { %v2391_v1 = vpop.f32.mrf.mxu3  ;;  %v2041_v61 = vadd.f32 %v2013_v38, %v1843_v0  ;;  %v2704_v3 = vadd.f32 %v4748_v33, %v2686_v50 }
 0x1b3   : > { %v2643_v13 = vpop.f32.mrf.mxu0 }
 0x1b4   : > { %v2419_v47 = vadd.f32 %v2391_v1, %v2041_v61  ;;  %v2720_v22 = vmax.f32 %v2704_v3, 0.0  ;;  %v1830_v1 = vpop.f32.mrf.mxu1 }
 0x1b6   : > { %v2732_v4 = vpack.c.bf16 %v2720_v22, %v2719_v19  ;;  %v2669_v59 = vadd.f32 %v2641_v45, %v2419_v47  ;;  %v1849_v47 = vadd.f32 %v1830_v1, %v4732_v5 }
 0x1b8   : > { %2828 = vmatmul.bf16.gmra.mxu1 %v2732_v4  ;;  %v2687_v15 = vmul.f32 %v4742_v10, %v2669_v59 }
 0x1b9   : > { %v2015_v54 = vpop.f32.mrf.mxu2 }
 0x1ba   : > { %v2393_v7 = vpop.f32.mrf.mxu3  ;;  %v2042_v9 = vadd.f32 %v2015_v54, %v1844_v52  ;;  %v2705_v36 = vadd.f32 %v4748_v33, %v2687_v15 }
 0x1bb   : > { %v2646_v23 = vpop.f32.mrf.mxu0 }
 0x1bc   : > { %v2420_v17 = vadd.f32 %v2393_v7, %v2042_v9  ;;  %v2721_v40 = vmax.f32 %v2705_v36, 0.0  ;;  %v1832_v12 = vpop.f32.mrf.mxu1 }
 0x1be   : > { %v2670_v24 = vadd.f32 %v2643_v13, %v2420_v17  ;;  %v1850_v17 = vadd.f32 %v1832_v12, %v4735_v18 }
 0x1c0   : > { %v2688_v26 = vmul.f32 %v4742_v10, %v2670_v24 }
 0x1c1   : > { %v2018_v58 = vpop.f32.mrf.mxu2 }
 0x1c2   : > { %v2396_v49 = vpop.f32.mrf.mxu3  ;;  %v2043_v31 = vadd.f32 %v2018_v58, %v1845_v25  ;;  %v2706_v57 = vadd.f32 %v4748_v33, %v2688_v26 }
 0x1c3   : > { %v2648_v21 = vpop.f32.mrf.mxu0 }
 0x1c4   : > { %v2421_v14 = vadd.f32 %v2396_v49, %v2043_v31  ;;  %v2722_v20 = vmax.f32 %v2706_v57, 0.0 }
 0x1c6   : > { %v2733_v41 = vpack.c.bf16 %v2722_v20, %v2721_v40  ;;  %v2671_v42 = vadd.f32 %v2646_v23, %v2421_v14  ;;  %v3817_v20 = vld [vmem:[%s4840_s4] ss:$0 sm:$0xff] }
 0x1c8   : > { %2833 = vmatmul.bf16.gmra.mxu1 %v2733_v41  ;;  %v2689_v39 = vmul.f32 %v4742_v10, %v2671_v42 }
 0x1c9   : > { %v2020_v6 = vpop.f32.mrf.mxu2 }
 0x1ca   : > { %v2398_v30 = vpop.f32.mrf.mxu3  ;;  %v2044_v37 = vadd.f32 %v2020_v6, %v1846_v29  ;;  %v2707_v8 = vadd.f32 %v4748_v33, %v2689_v39 }
 0x1cb   : > { %v2651_v48 = vpop.f32.mrf.mxu0 }
 0x1cc   : > { %v2422_v43 = vadd.f32 %v2398_v30, %v2044_v37  ;;  %v2723_v56 = vmax.f32 %v2707_v8, 0.0 }
 0x1ce   : > { %v2672_v35 = vadd.f32 %v2648_v21, %v2422_v43 }
 0x1d0   : > { %v2690_v28 = vmul.f32 %v4742_v10, %v2672_v35 }
 0x1d1   : > { %v2023_v55 = vpop.f32.mrf.mxu2 }
 0x1d2   : > { %v2401_v32 = vpop.f32.mrf.mxu3  ;;  %v2045_v63 = vadd.f32 %v2023_v55, %v1847_v11  ;;  %v2708_v51 = vadd.f32 %v4748_v33, %v2690_v28 }
 0x1d3   : > { %v2653_v50 = vpop.f32.mrf.mxu0 }
 0x1d4   : > { %v2423_v53 = vadd.f32 %v2401_v32, %v2045_v63  ;;  %v2724_v16 = vmax.f32 %v2708_v51, 0.0 }
 0x1d6   : > { %v2734_v45 = vpack.c.bf16 %v2724_v16, %v2723_v56  ;;  %v2673_v0 = vadd.f32 %v2651_v48, %v2423_v53 }
 0x1d8   : > { %2838 = vmatmul.bf16.gmra.mxu1 %v2734_v45  ;;  %v2691_v60 = vmul.f32 %v4742_v10, %v2673_v0 }
 0x1d9   : > { %v2025_v34 = vpop.f32.mrf.mxu2 }
 0x1da   : > { %v2403_v62 = vpop.f32.mrf.mxu3  ;;  %v2046_v38 = vadd.f32 %v2025_v34, %v1848_v27  ;;  %v2709_v19 = vadd.f32 %v4748_v33, %v2691_v60 }
 0x1db   : > { %v2656_v59 = vpop.f32.mrf.mxu0 }
 0x1dc   : > { %v2424_v61 = vadd.f32 %v2403_v62, %v2046_v38  ;;  %v2725_v7 = vmax.f32 %v2709_v19, 0.0 }
 0x1de   : > { %v2674_v3 = vadd.f32 %v2653_v50, %v2424_v61 }
 0x1e0   : > { %v2692_v13 = vmul.f32 %v4742_v10, %v2674_v3 }
 0x1e1   : > { %v2028_v22 = vpop.f32.mrf.mxu2 }
 0x1e2   : > { %v2406_v4 = vpop.f32.mrf.mxu3  ;;  %v2047_v2 = vadd.f32 %v2028_v22, %v1849_v47  ;;  %v2710_v52 = vadd.f32 %v4748_v33, %v2692_v13 }
 0x1e3   : > { %v2658_v58 = vpop.f32.mrf.mxu0 }
 0x1e4   : > { %v2425_v54 = vadd.f32 %v2406_v4, %v2047_v2  ;;  %v2726_v9 = vmax.f32 %v2710_v52, 0.0 }
 0x1e6   : > { %v2735_v15 = vpack.c.bf16 %v2726_v9, %v2725_v7  ;;  %v2675_v23 = vadd.f32 %v2656_v59, %v2425_v54 }
 0x1e8   : > { %2843 = vmatmul.bf16.gmra.mxu1 %v2735_v15  ;;  %v2693_v26 = vmul.f32 %v4742_v10, %v2675_v23 }
 0x1e9   : > { %v2030_v5 = vpop.f32.mrf.mxu2 }
 0x1ea   : > { %v2048_v24 = vadd.f32 %v2030_v5, %v1850_v17  ;;  %v2408_v25 = vpop.f32.mrf.mxu3  ;;  %v2711_v57 = vadd.f32 %v4748_v33, %v2693_v26 }
 0x1ec   : > { %v2426_v36 = vadd.f32 %v2408_v25, %v2048_v24  ;;  %v2727_v21 = vmax.f32 %v2711_v57, 0.0 }
 0x1ee   : > { %v2676_v49 = vadd.f32 %v2658_v58, %v2426_v36 }
 0x1f0   : > { %v2694_v31 = vmul.f32 %v4742_v10, %v2676_v49 }
 0x1f2   : > { %v2712_v14 = vadd.f32 %v4748_v33, %v2694_v31 }
 0x1f4   : > { %v2728_v18 = vmax.f32 %v2712_v14, 0.0 }
 0x1f6   : > { %v2736_v40 = vpack.c.bf16 %v2728_v18, %v2727_v21 }
 0x1f8   : > { %2848 = vmatmul.bf16.gmra.mxu1 %v2736_v40 }
 0x205   : > { %v2814_v10 = vpop.f32.mrf.mxu1 }
 0x206   : > { %v2815_v33 = vadd.f32 %v3817_v20, %v2814_v10 }
 0x208   : > { %2854 = vst [vmem:[%s4803_s18] sm:$0xff] %v2815_v33 }
 0x20d   : > { %v2816_v44 = vpop.f32.mrf.mxu1 }
 0x20e   : > { %v2817_v41 = vadd.f32 %v3817_v20, %v2816_v44 }
 0x210   : > { %2855 = vst [vmem:[%s4803_s18 + $0x8] sm:$0xff] %v2817_v41 }
 0x215   : > { %v2819_v29 = vpop.f32.mrf.mxu1 }
 0x216   : > { %v2820_v42 = vadd.f32 %v3817_v20, %v2819_v29 }
 0x218   : > { %2856 = vst [vmem:[%s4803_s18 + $0x10] sm:$0xff] %v2820_v42 }
 0x21d   : > { %v2821_v6 = vpop.f32.mrf.mxu1 }
 0x21e   : > { %v2822_v30 = vadd.f32 %v3817_v20, %v2821_v6 }
 0x220   : > { %2857 = vst [vmem:[%s4803_s18 + $0x18] sm:$0xff] %v2822_v30 }
 0x225   : > { %v2824_v37 = vpop.f32.mrf.mxu1 }
 0x226   : > { %v2825_v39 = vadd.f32 %v3817_v20, %v2824_v37 }
 0x228   : > { %2858 = vst [vmem:[%s4803_s18 + $0x20] sm:$0xff] %v2825_v39 }
 0x22d   : > { %v2826_v43 = vpop.f32.mrf.mxu1 }
 0x22e   : > { %v2827_v35 = vadd.f32 %v3817_v20, %v2826_v43 }
 0x230   : > { %2859 = vst [vmem:[%s4803_s18 + $0x28] sm:$0xff] %v2827_v35 }
 0x235   : > { %v2829_v48 = vpop.f32.mrf.mxu1 }
 0x236   : > { %v2830_v11 = vadd.f32 %v3817_v20, %v2829_v48 }
 0x238   : > { %2860 = vst [vmem:[%s4803_s18 + $0x30] sm:$0xff] %v2830_v11 }
 0x23d   : > { %v2831_v46 = vpop.f32.mrf.mxu1 }
 0x23e   : > { %v2832_v28 = vadd.f32 %v3817_v20, %v2831_v46 }
 0x240   : > { %2861 = vst [vmem:[%s4803_s18 + $0x38] sm:$0xff] %v2832_v28 }
 0x245   : > { %v2834_v8 = vpop.f32.mrf.mxu1 }
 0x246   : > { %v2835_v55 = vadd.f32 %v3817_v20, %v2834_v8 }
 0x248   : > { %2862 = vst [vmem:[%s4803_s18 + $0x40] sm:$0xff] %v2835_v55 }
 0x24d   : > { %v2836_v32 = vpop.f32.mrf.mxu1 }
 0x24e   : > { %v2837_v63 = vadd.f32 %v3817_v20, %v2836_v32 }
 0x250   : > { %2863 = vst [vmem:[%s4803_s18 + $0x48] sm:$0xff] %v2837_v63 }
 0x255   : > { %v2839_v51 = vpop.f32.mrf.mxu1 }
 0x256   : > { %v2840_v53 = vadd.f32 %v3817_v20, %v2839_v51 }
 0x258   : > { %2864 = vst [vmem:[%s4803_s18 + $0x50] sm:$0xff] %v2840_v53 }
 0x25d   : > { %v2841_v56 = vpop.f32.mrf.mxu1 }
 0x25e   : > { %v2842_v16 = vadd.f32 %v3817_v20, %v2841_v56 }
 0x260   : > { %2865 = vst [vmem:[%s4803_s18 + $0x58] sm:$0xff] %v2842_v16 }
 0x265   : > { %v2844_v45 = vpop.f32.mrf.mxu1 }
 0x266   : > { %v2845_v27 = vadd.f32 %v3817_v20, %v2844_v45 }
 0x268   : > { %2866 = vst [vmem:[%s4803_s18 + $0x60] sm:$0xff] %v2845_v27 }
 0x26d   : > { %v2846_v0 = vpop.f32.mrf.mxu1 }
 0x26e   : > { %v2847_v50 = vadd.f32 %v3817_v20, %v2846_v0 }
 0x270   : > { %2867 = vst [vmem:[%s4803_s18 + $0x68] sm:$0xff] %v2847_v50 }
 0x275   : > { %v2849_v34 = vpop.f32.mrf.mxu1 }
 0x276   : > { %v2850_v62 = vadd.f32 %v3817_v20, %v2849_v34 }
 0x278   : > { %2868 = vst [vmem:[%s4803_s18 + $0x70] sm:$0xff] %v2850_v62 }
 0x27d   : > { %v2851_v38 = vpop.f32.mrf.mxu1 }
 0x27e   : > { %v2852_v1 = vadd.f32 %v3817_v20, %v2851_v38 }
 0x280   : > { %2869 = vst [vmem:[%s4803_s18 + $0x78] sm:$0xff] %v2852_v1 }
 0x281 PF: > { %s15_s22 = sadd.s32 1, %s3860_s22   ;;  %s4846_s18 = smov %s3852_s20 }
 0x282   : > { %p12_p7 = scmp.ge.s32.totalorder %s15_s22, 6   ;;  %s4847_s19 = smov %s3856_s21 }
 0x283   : > { %s4848_s20 = smov %s4851_s23  ;;  %s4849_s21 = smov %s4855_s24 }
 0x284   :  { %14 = sbr.rel (!%p12_p7) target bundleno = 3 (0x3), region = 81 }

// kernel: deeplabv3_core_forward.2
= control target key start
LH: loop header
LB: loop body
LE: loop exit
PB: predicated region body
PF: predicated region fallthrough
CT: control target
= control target key end

     0   :  { %s9494_s21 = smov 0   ;;  %s9496_s22 = smov 0   ;;  %s12331_s0 = inlined_call_operand.vmem [shape: bf16[2,52,52,64], index: 0, kind: input, shape index: {}]   ;;  %s12332_s1 = inlined_call_operand.vmem [shape: bf16[64,128], index: 1, kind: input, shape index: {}]   ;;  %s12333_s2 = inlined_call_operand.vmem [shape: bf16[27,64,128], index: 2, kind: input, shape index: {}]   ;;  %s12334_s3 = inlined_call_operand.vmem [shape: bf16[4,128,128], index: 3, kind: input, shape index: {}]   ;;  %s12335_s4 = inlined_call_operand.vmem [shape: f32[10,128], index: 4, kind: input, shape index: {}]   ;;  %s12336_s5 = inlined_call_operand.vmem [shape: f32[2,1,128], index: 5, kind: input, shape index: {}]   ;;  %s12337_s6 = inlined_call_operand.vmem [shape: bf16[2,16,16,128], index: 6, kind: output, shape index: {}]  }
   0x1   :  { %s9498_s23 = smov 0   ;;  %s9500_s24 = smov 0  }
   0x2   :  { %s9502_s25 = smov 0  }
   0x3 LB: > { %s25_s26 = sadd.s32 1, %s9449_s23  ;;  %s28_s27 = sadd.s32 1, %s9453_s24  ;;  %s9457_s25 = sphi %s9502_s25, %s16_s25   ;;  %s9453_s24 = sphi %s9500_s24, %s12405_s24   ;;  %s9449_s23 = sphi %s9498_s23, %s12404_s23   ;;  %s9445_s22 = sphi %s9496_s22, %s12403_s22   ;;  %s9441_s21 = sphi %s9494_s21, %s12402_s21  }
   0x4   : > { %p26_p0 = scmp.ge.s32.totalorder %s25_s26, 2  ;;  %p7240_p1 = scmp.ge.s32.totalorder %s9457_s25, 1 }
   0x5   : > { %p234_p2 = scmp.lt.s32.totalorder %s9457_s25, 5 }
   0x6   : > { %s12407_s26 = smov (%p26_p0, %s25_s26), 0  ;;  %s12409_s27 = smov (!%p26_p0, %s28_s27), %s9453_s24 }
   0x7   : > { %p235_p3 = pnand %p7240_p1, %p234_p2  ;;  %p30_p4 = scmp.ge.s32.totalorder %s12409_s27, 2 }
   0x9   : > { %s12411_s27 = smov (%p30_p4, %s12409_s27), 0  ;;  %238 = sbr.rel (%p235_p3) target bundleno = 1511 (0x5e7), region = 44 }
   0xe   : > { %v9130_v0 = vld [vmem:[%s12332_s1 + $0x18] sm:$0xff]  ;;  %p272_p5 = scmp.lt.s32.totalorder %s9445_s22, 1  ;;  %v9129_v4 = vld [vmem:[%s12332_s1 + $0x10] sm:$0xff]  ;;  %s7248_s20 = smul.u32 224, %s9441_s21  ;;  %vm345_vm0 = vcmask 1042432   ;;  %vm346_vm1 = vcmask 1046532  }
   0xf   : > { %v9146_v1 = vld [vmem:[%s12333_s2 + $0x38] sm:$0xff]  ;;  %489 = vmatpush.bf16.msra.mxu0 %v9130_v0  ;;  %v9145_v5 = vld [vmem:[%s12333_s2 + $0x30] sm:$0xff]  ;;  %v9128_v8 = vld [vmem:[%s12332_s1 + $0x8] sm:$0xff]  ;;  %vm662_vm3 = vcmask 1041408   ;;  %vm663_vm4 = vcmask 1045508   ;;  %vm460_vm6 = vcmask 523264  }
  0x10   : > { %v9142_v2 = vld [vmem:[%s12333_s2 + $0x18] sm:$0xff]  ;;  %918 = vmatpush.bf16.msra.mxu1 %v9146_v1  ;;  %s12413_s22 = smov (!%p272_p5, %s9445_s22), 1  ;;  %v9141_v6 = vld [vmem:[%s12333_s2 + $0x10] sm:$0xff]  ;;  %v9144_v9 = vld [vmem:[%s12333_s2 + $0x28] sm:$0xff]  ;;  %vm2745_vm7 = vcmask 1040384   ;;  %vm2746_vm8 = vcmask 1044484  }
  0x11   : > { %v9158_v3 = vld [vmem:[%s12333_s2 + $0x58] sm:$0xff]  ;;  %1039 = vmatpush.bf16.msra.mxu2 %v9142_v2  ;;  %v9157_v7 = vld [vmem:[%s12333_s2 + $0x50] sm:$0xff]  ;;  %s9367_s28 = smul.u32 1456, %s12413_s22  ;;  %v9140_v10 = vld [vmem:[%s12333_s2 + $0x8] sm:$0xff]  ;;  %s279_s7 = scalar_lea.vmem %s12336_s5, %s12413_s22 }
  0x12   : > { %1185 = vmatpush.bf16.msra.mxu3 %v9158_v3  ;;  %v9156_v11 = vld [vmem:[%s12333_s2 + $0x48] sm:$0xff]  ;;  %vm9569_vm2 = vmor %vm345_vm0, %vm346_vm1  ;;  %v9127_v13 = vld [vmem:[%s12332_s1] sm:$0xff]  ;;  %s7242_s10 = sshll.u32 %s9441_s21, 3  ;;  %s7244_s18 = sshll.u32 %s12413_s22, 5 }
  0x13   : > { %490 = vmatpush.bf16.msra.mxu0 %v9129_v4  ;;  %s276_s15 = scalar_lea.vmem %s12331_s0, %s9367_s28  ;;  %v9143_v14 = vld [vmem:[%s12333_s2 + $0x20] sm:$0xff]  ;;  %vm9598_vm5 = vmor %vm662_vm3, %vm663_vm4  ;;  %v9162_v33 = vld [vmem:[%s12333_s2 + $0x78] sm:$0xff]  ;;  %p283_p6 = scmp.lt.s32.totalorder %s7242_s10, 15 }
  0x14   : > { %919 = vmatpush.bf16.msra.mxu1 %v9145_v5  ;;  %s9573_s16 = scalar_lea.vmem %s276_s15, %s7248_s20  ;;  %v9139_v18 = vld [vmem:[%s12333_s2] sm:$0xff]  ;;  %v9166_v38 = vld [vmem:[%s12333_s2 + $0x98] sm:$0xff]  ;;  %vm10358_vm9 = vmor %vm2745_vm7, %vm2746_vm8 }
  0x15   : > { %1040 = vmatpush.bf16.msra.mxu2 %v9141_v6  ;;  %v7249_v15 = vld [vmem:[%s9573_s16 + $0x200] sm:$0xe]  ;;  %v7250_v16 = vld [vmem:[%s9573_s16 + $0x204] sm:$0xf]  ;;  %v7251_v17 = vld [vmem:[%s9573_s16 + $0x208] sm:$0x1] }
  0x16   : > { %1186 = vmatpush.bf16.msra.mxu3 %v9157_v7  ;;  %v7273_v19 = vrot.slane %v7249_v15, 9  ;;  %v350_v20 = vrot.slane %v7250_v16, 5  ;;  %v353_v21 = vrot.slane %v7251_v17, 5  ;;  %v7339_v22 = vld [vmem:[%s9573_s16 + $0x158] sm:$0xe]  ;;  %v9155_v23 = vld [vmem:[%s12333_s2 + $0x40] sm:$0xff] }
  0x17   : > { %491 = vmatpush.bf16.msra.mxu0 %v9128_v8  ;;  %v7340_v24 = vld [vmem:[%s9573_s16 + $0x15c] sm:$0xf]  ;;  %v7341_v25 = vld [vmem:[%s9573_s16 + $0x160] sm:$0x1]  ;;  %v7363_v26 = vrot.slane %v7339_v22, 9  ;;  %s12415_s10 = smov (!%p283_p6, %s7242_s10), 15 }
  0x18   : > { %920 = vmatpush.bf16.msra.mxu1 %v9144_v9  ;;  %v351_v27 = vsel %vm9569_vm2, %v7273_v19, %v350_v20  ;;  %v352_v28 = vrot.slane %v350_v20, 4  ;;  %v779_v29 = vrot.slane %v7340_v24, 5  ;;  %v782_v30 = vrot.slane %v7341_v25, 5  ;;  %v7307_v31 = vld [vmem:[%s9573_s16 + $0x154] sm:$0xc]  ;;  %v9147_v47 = vld [vmem:[%s9573_s16 + $0x15c] sm:$0xff] }
  0x19   : > { %1041 = vmatpush.bf16.msra.mxu2 %v9140_v10  ;;  %v412_v34 = vunpack.c.l.b16 %v351_v27  ;;  %v7308_v35 = vld [vmem:[%s9573_s16 + $0x158] sm:$0xf]  ;;  %v7309_v36 = vld [vmem:[%s9573_s16 + $0x15c] sm:$0x3]  ;;  %v7331_v37 = vrot.slane %v7307_v31, 10  ;;  %s7243_s17 = sshll.u32 %s12415_s10, 1 }
  0x1a   : > { %1187 = vmatpush.bf16.msra.mxu3 %v9156_v11  ;;  %v354_v39 = vsel %vm9569_vm2, %v352_v28, %v353_v21  ;;  %v780_v40 = vsel %vm9569_vm2, %v7363_v26, %v779_v29  ;;  %v781_v41 = vrot.slane %v779_v29, 4  ;;  %v667_v42 = vrot.slane %v7308_v35, 6  ;;  %v7253_v43 = vld [vmem:[%s9573_s16 + $0x220] sm:$0xf]  ;;  %v7252_v51 = vld [vmem:[%s9573_s16 + $0x21c] sm:$0xe] }
  0x1b   : > { %492 = vmatpush.bf16.msra.mxu0 %v9127_v13  ;;  %v413_v44 = vunpack.c.l.b16 %v354_v39  ;;  %v842_v45 = vunpack.c.l.b16 %v780_v40  ;;  %v670_v46 = vrot.slane %v7309_v36, 6  ;;  %v357_v52 = vrot.slane %v7253_v43, 5  ;;  %v7343_v53 = vld [vmem:[%s9573_s16 + $0x178] sm:$0xf]  ;;  %v7254_v57 = vld [vmem:[%s9573_s16 + $0x224] sm:$0x1] }
  0x1c   : > { %921 = vmatpush.bf16.msra.mxu1 %v9143_v14  ;;  %v783_v48 = vsel %vm9569_vm2, %v781_v41, %v782_v30  ;;  %v668_v49 = vsel %vm9598_vm5, %v7331_v37, %v667_v42  ;;  %v669_v50 = vrot.slane %v667_v42, 4  ;;  %v7311_v58 = vld [vmem:[%s9573_s16 + $0x174] sm:$0xf]  ;;  %v7274_v62 = vrot.slane %v7252_v51, 9  ;;  %v7344_v0 = vld [vmem:[%s9573_s16 + $0x17c] sm:$0x1] }
  0x1d   : > { %1042 = vmatpush.bf16.msra.mxu2 %v9139_v18  ;;  %v9622_v54 = vpack.c.b16 %v413_v44, %v412_v34  ;;  %v843_v55 = vunpack.c.l.b16 %v783_v48  ;;  %v963_v56 = vunpack.c.l.b16 %v668_v49  ;;  %v7342_v63 = vld [vmem:[%s9573_s16 + $0x174] sm:$0xe]  ;;  %v786_v1 = vrot.slane %v7343_v53, 5  ;;  %v7310_v6 = vld [vmem:[%s9573_s16 + $0x170] sm:$0xc]  ;;  %v9148_v31 = vld [vmem:[%s9573_s16 + $0x178] sm:$0xff] }
  0x1e   : > { %1188 = vmatpush.bf16.msra.mxu3 %v9155_v23  ;;  %v671_v59 = vsel %vm9598_vm5, %v669_v50, %v670_v46  ;;  %v359_v2 = vrot.slane %v357_v52, 4  ;;  %v360_v3 = vrot.slane %v7254_v57, 5  ;;  %v674_v4 = vrot.slane %v7311_v58, 6  ;;  %v7312_v7 = vld [vmem:[%s9573_s16 + $0x178] sm:$0x3]  ;;  %v9161_v13 = vld [vmem:[%s12333_s2 + $0x70] sm:$0xff] }
  0x1f   : > { %1435 = vmatpush.bf16.msrb.mxu0 %v9162_v33  ;;  %v858_v60 = vpack.c.b16 %v843_v55, %v842_v45  ;;  %v964_v61 = vunpack.c.l.b16 %v671_v59  ;;  %v7364_v8 = vrot.slane %v7342_v63, 9  ;;  %v788_v9 = vrot.slane %v786_v1, 4  ;;  %v9165_v14 = vld [vmem:[%s12333_s2 + $0x90] sm:$0xff]  ;;  %v7256_v27 = vld [vmem:[%s9573_s16 + $0x23c] sm:$0xf] }
  0x20   : > { %1533 = vmatpush.bf16.msrb.mxu1 %v9166_v38  ;;  %7297 = vmatmul.msk.bf16.vlgmr.msra.gmra.mxu0 %vm460_vm6, %v9622_v54  ;;  %v789_v10 = vrot.slane %v7344_v0, 5  ;;  %v358_v11 = vsel %vm9569_vm2, %v7274_v62, %v357_v52  ;;  %v361_v15 = vsel %vm9569_vm2, %v359_v2, %v360_v3  ;;  %v7332_v16 = vrot.slane %v7310_v6, 10  ;;  %v7346_v33 = vld [vmem:[%s9573_s16 + $0x194] sm:$0xf]  ;;  %v7255_v34 = vld [vmem:[%s9573_s16 + $0x238] sm:$0xe] }
  0x21   : > { %7491 = vmatmul.msk.bf16.vlgmr.msra.gmra.mxu3 %vm460_vm6, %v9147_v47  ;;  %7395 = vmatmul.msk.bf16.vlgmr.msra.gmra.mxu1 %vm460_vm6, %v858_v60  ;;  %v979_v5 = vpack.c.b16 %v964_v61, %v963_v56  ;;  %v676_v17 = vrot.slane %v674_v4, 4  ;;  %v677_v18 = vrot.slane %v7312_v7, 6  ;;  %v787_v19 = vsel %vm9569_vm2, %v7364_v8, %v786_v1  ;;  %v7257_v37 = vld [vmem:[%s9573_s16 + $0x240] sm:$0x1]  ;;  %v7314_v38 = vld [vmem:[%s9573_s16 + $0x190] sm:$0xf] }
  0x22   : > { %v790_v20 = vsel %vm9569_vm2, %v788_v9, %v789_v10  ;;  %v414_v21 = vunpack.c.l.b16 %v358_v11  ;;  %v415_v22 = vunpack.c.l.b16 %v361_v15  ;;  %v675_v23 = vsel %vm9598_vm5, %v7332_v16, %v674_v4  ;;  %v7345_v42 = vld [vmem:[%s9573_s16 + $0x190] sm:$0xe]  ;;  %v7347_v43 = vld [vmem:[%s9573_s16 + $0x198] sm:$0x1]  ;;  %v7313_v47 = vld [vmem:[%s9573_s16 + $0x18c] sm:$0xc] }
  0x23   : > { %7419 = vmatmul.msk.bf16.vlgmr.msra.gmra.mxu2 %vm460_vm6, %v979_v5  ;;  %1436 = vmatpush.bf16.msrb.mxu0 %v9161_v13  ;;  %v678_v24 = vsel %vm9598_vm5, %v676_v17, %v677_v18  ;;  %v844_v25 = vunpack.c.l.b16 %v787_v19  ;;  %v845_v26 = vunpack.c.l.b16 %v790_v20  ;;  %v965_v29 = vunpack.c.l.b16 %v675_v23  ;;  %v7315_v48 = vld [vmem:[%s9573_s16 + $0x194] sm:$0x3]  ;;  %v7259_v2 = vld [vmem:[%s9573_s16 + $0x258] sm:$0xf]  ;;  %v7349_v7 = vld [vmem:[%s9573_s16 + $0x1b0] sm:$0xf] }
  0x24   : > { %1534 = vmatpush.bf16.msrb.mxu1 %v9165_v14  ;;  %v9656_v28 = vpack.c.b16 %v415_v22, %v414_v21  ;;  %v966_v30 = vunpack.c.l.b16 %v678_v24  ;;  %v364_v35 = vrot.slane %v7256_v27, 5  ;;  %v793_v39 = vrot.slane %v7346_v33, 5  ;;  %v9149_v6 = vld [vmem:[%s9573_s16 + $0x194] sm:$0xff]  ;;  %v7260_v11 = vld [vmem:[%s9573_s16 + $0x25c] sm:$0x1] }
  0x25   : > { %v859_v36 = vpack.c.b16 %v845_v26, %v844_v25  ;;  %v7275_v41 = vrot.slane %v7255_v34, 9  ;;  %v367_v45 = vrot.slane %v7257_v37, 5  ;;  %v681_v46 = vrot.slane %v7314_v38, 6  ;;  %v7258_v8 = vld [vmem:[%s9573_s16 + $0x254] sm:$0xe] }
  0x26   : > { %v980_v40 = vpack.c.b16 %v966_v30, %v965_v29  ;;  %v366_v44 = vrot.slane %v364_v35, 4  ;;  %v7365_v49 = vrot.slane %v7345_v42, 9  ;;  %v795_v50 = vrot.slane %v793_v39, 4  ;;  %v7317_v13 = vld [vmem:[%s9573_s16 + $0x1ac] sm:$0xf] }
  0x27   : > { %v796_v51 = vrot.slane %v7347_v43, 5  ;;  %v365_v52 = vsel %vm9569_vm2, %v7275_v41, %v364_v35  ;;  %v7333_v55 = vrot.slane %v7313_v47, 10  ;;  %v683_v56 = vrot.slane %v681_v46, 4  ;;  %v7348_v17 = vld [vmem:[%s9573_s16 + $0x1ac] sm:$0xe] }
  0x28   : > { %v368_v53 = vsel %vm9569_vm2, %v366_v44, %v367_v45  ;;  %v684_v57 = vrot.slane %v7315_v48, 6  ;;  %v794_v58 = vsel %vm9569_vm2, %v7365_v49, %v793_v39  ;;  %v416_v60 = vunpack.c.l.b16 %v365_v52  ;;  %v7350_v18 = vld [vmem:[%s9573_s16 + $0x1b4] sm:$0x1]  ;;  %v7316_v22 = vld [vmem:[%s9573_s16 + $0x1a8] sm:$0xc] }
  0x29   : > { %v797_v59 = vsel %vm9569_vm2, %v795_v50, %v796_v51  ;;  %v417_v61 = vunpack.c.l.b16 %v368_v53  ;;  %v682_v62 = vsel %vm9598_vm5, %v7333_v55, %v681_v46  ;;  %v846_v0 = vunpack.c.l.b16 %v794_v58  ;;  %v7318_v23 = vld [vmem:[%s9573_s16 + $0x1b0] sm:$0x3]  ;;  %v9160_v29 = vld [vmem:[%s12333_s2 + $0x68] sm:$0xff]  ;;  %v7262_v44 = vld [vmem:[%s9573_s16 + $0x274] sm:$0xf] }
  0x2a   : > { %v685_v63 = vsel %vm9598_vm5, %v683_v56, %v684_v57  ;;  %v847_v1 = vunpack.c.l.b16 %v797_v59  ;;  %v967_v4 = vunpack.c.l.b16 %v682_v62  ;;  %v371_v9 = vrot.slane %v7259_v2, 5  ;;  %v9164_v30 = vld [vmem:[%s12333_s2 + $0x88] sm:$0xff]  ;;  %1437 = vmatpush.bf16.msrb.mxu0 %v9160_v29  ;;  %v9150_v48 = vld [vmem:[%s9573_s16 + $0x1b0] sm:$0xff]  ;;  %v7263_v53 = vld [vmem:[%s9573_s16 + $0x278] sm:$0x1] }
  0x2b   : > { %v9685_v3 = vpack.c.b16 %v417_v61, %v416_v60  ;;  %v968_v5 = vunpack.c.l.b16 %v685_v63  ;;  %v800_v14 = vrot.slane %v7349_v7, 5  ;;  %v7276_v16 = vrot.slane %v7258_v8, 9  ;;  %1535 = vmatpush.bf16.msrb.mxu1 %v9164_v30  ;;  %v7352_v49 = vld [vmem:[%s9573_s16 + $0x1cc] sm:$0xf]  ;;  %v7261_v50 = vld [vmem:[%s9573_s16 + $0x270] sm:$0xe] }
  0x2c   : > { %v860_v10 = vpack.c.b16 %v847_v1, %v846_v0  ;;  %v373_v19 = vrot.slane %v371_v9, 4  ;;  %v374_v20 = vrot.slane %v7260_v11, 5  ;;  %v688_v21 = vrot.slane %v7317_v13, 6  ;;  %v7320_v55 = vld [vmem:[%s9573_s16 + $0x1c8] sm:$0xf] }
  0x2d   : > { %v981_v15 = vpack.c.b16 %v968_v5, %v967_v4  ;;  %v7366_v24 = vrot.slane %v7348_v17, 9  ;;  %v802_v25 = vrot.slane %v800_v14, 4  ;;  %v803_v26 = vrot.slane %v7350_v18, 5  ;;  %v7351_v59 = vld [vmem:[%s9573_s16 + $0x1c8] sm:$0xe] }
  0x2e   : > { %v372_v27 = vsel %vm9569_vm2, %v7276_v16, %v371_v9  ;;  %v7334_v33 = vrot.slane %v7316_v22, 10  ;;  %v690_v34 = vrot.slane %v688_v21, 4  ;;  %v691_v35 = vrot.slane %v7318_v23, 6  ;;  %v7353_v60 = vld [vmem:[%s9573_s16 + $0x1d0] sm:$0x1] }
  0x2f   : > { %v804_v37 = vsel %vm9569_vm2, %v802_v25, %v803_v26  ;;  %v418_v38 = vunpack.c.l.b16 %v372_v27  ;;  %v378_v51 = vrot.slane %v7262_v44, 5  ;;  %v807_v56 = vrot.slane %v7352_v49, 5  ;;  %v7319_v0 = vld [vmem:[%s9573_s16 + $0x1c4] sm:$0xc]  ;;  %v7321_v1 = vld [vmem:[%s9573_s16 + $0x1cc] sm:$0x3] }
  0x30   : > { %7298 = vmatmul.msk.bf16.gmra.mxu0 %vm460_vm6, %v9656_v28  ;;  %v692_v41 = vsel %vm9598_vm5, %v690_v34, %v691_v35  ;;  %v849_v43 = vunpack.c.l.b16 %v804_v37  ;;  %v7277_v58 = vrot.slane %v7261_v50, 9  ;;  %v381_v62 = vrot.slane %v7263_v53, 5  ;;  %v7355_v25 = vld [vmem:[%s9573_s16 + $0x1e8] sm:$0xf]  ;;  %v7264_v26 = vld [vmem:[%s9573_s16 + $0x28c] sm:$0xe] }
  0x31   : > { %7492 = vmatmul.msk.bf16.gmra.mxu3 %vm460_vm6, %v9148_v31  ;;  %7396 = vmatmul.msk.bf16.gmra.mxu1 %vm460_vm6, %v859_v36  ;;  %v375_v31 = vsel %vm9569_vm2, %v373_v19, %v374_v20  ;;  %v801_v36 = vsel %vm9569_vm2, %v7366_v24, %v800_v14  ;;  %v970_v47 = vunpack.c.l.b16 %v692_v41  ;;  %v380_v61 = vrot.slane %v378_v51, 4  ;;  %v7265_v20 = vld [vmem:[%s9573_s16 + $0x290] sm:$0xf]  ;;  %v7266_v30 = vld [vmem:[%s9573_s16 + $0x294] sm:$0x1]  ;;  %v9163_v49 = vld [vmem:[%s12333_s2 + $0x80] sm:$0xff] }
  0x32   : > { %v419_v39 = vunpack.c.l.b16 %v375_v31  ;;  %v848_v42 = vunpack.c.l.b16 %v801_v36  ;;  %v695_v63 = vrot.slane %v7320_v55, 6  ;;  %v7367_v2 = vrot.slane %v7351_v59, 9  ;;  %v9151_v24 = vld [vmem:[%s9573_s16 + $0x1cc] sm:$0xff]  ;;  %v7323_v31 = vld [vmem:[%s9573_s16 + $0x1e4] sm:$0xf]  ;;  %1536 = vmatpush.bf16.msrb.mxu1 %v9163_v49 }
  0x33   : > { %7420 = vmatmul.msk.bf16.gmra.mxu2 %vm460_vm6, %v980_v40  ;;  %v689_v40 = vsel %vm9598_vm5, %v7334_v33, %v688_v21  ;;  %v809_v4 = vrot.slane %v807_v56, 4  ;;  %v810_v5 = vrot.slane %v7353_v60, 5  ;;  %v382_v7 = vsel %vm9569_vm2, %v380_v61, %v381_v62  ;;  %v7354_v36 = vld [vmem:[%s9573_s16 + $0x1e4] sm:$0xe]  ;;  %v7356_v37 = vld [vmem:[%s9573_s16 + $0x1ec] sm:$0x1] }
  0x34   : > { %v9720_v45 = vpack.c.b16 %v419_v39, %v418_v38  ;;  %v969_v46 = vunpack.c.l.b16 %v689_v40  ;;  %v861_v52 = vpack.c.b16 %v849_v43, %v848_v42  ;;  %v7335_v8 = vrot.slane %v7319_v0, 10  ;;  %v7322_v41 = vld [vmem:[%s9573_s16 + $0x1e0] sm:$0xc]  ;;  %v7324_v42 = vld [vmem:[%s9573_s16 + $0x1e8] sm:$0x3] }
  0x35   : > { %v697_v9 = vrot.slane %v695_v63, 4  ;;  %v808_v11 = vsel %vm9569_vm2, %v7367_v2, %v807_v56  ;;  %v811_v13 = vsel %vm9569_vm2, %v809_v4, %v810_v5  ;;  %v385_v27 = vrot.slane %v7265_v20, 5  ;;  %v9152_v4 = vld [vmem:[%s9573_s16 + $0x1e8] sm:$0xff]  ;;  %v7358_v5 = vld [vmem:[%s9573_s16 + $0x204] sm:$0xf] }
  0x36   : > { %v982_v57 = vpack.c.b16 %v970_v47, %v969_v46  ;;  %v696_v16 = vsel %vm9598_vm5, %v7335_v8, %v695_v63  ;;  %v850_v18 = vunpack.c.l.b16 %v808_v11  ;;  %v851_v19 = vunpack.c.l.b16 %v811_v13  ;;  %v7268_v63 = vld [vmem:[%s9573_s16 + $0x2ac] sm:$0xf]  ;;  %v7325_v20 = vld [vmem:[%s9573_s16 + $0x1fc] sm:$0xc] }
  0x37   : > { %v971_v22 = vunpack.c.l.b16 %v696_v16  ;;  %v814_v33 = vrot.slane %v7355_v25, 5  ;;  %v7278_v35 = vrot.slane %v7264_v26, 9  ;;  %v387_v38 = vrot.slane %v385_v27, 4  ;;  %v7359_v16 = vld [vmem:[%s9573_s16 + $0x208] sm:$0x1] }
  0x38   : > { %v862_v29 = vpack.c.b16 %v851_v19, %v850_v18  ;;  %v388_v39 = vrot.slane %v7266_v30, 5  ;;  %v702_v40 = vrot.slane %v7323_v31, 6  ;;  %v7368_v43 = vrot.slane %v7354_v36, 9  ;;  %v9181_v30 = vld [vmem:[%s12333_s2 + $0xd0] sm:$0xff] }
  0x39   : > { %v816_v44 = vrot.slane %v814_v33, 4  ;;  %v817_v46 = vrot.slane %v7356_v37, 5  ;;  %v386_v47 = vsel %vm9569_vm2, %v7278_v35, %v385_v27  ;;  %v705_v53 = vrot.slane %v7324_v42, 6  ;;  %v9178_v27 = vld [vmem:[%s12333_s2 + $0xb8] sm:$0xff]  ;;  %v9177_v36 = vld [vmem:[%s12333_s2 + $0xb0] sm:$0xff] }
  0x3a   : > { %v389_v50 = vsel %vm9569_vm2, %v387_v38, %v388_v39  ;;  %v815_v55 = vsel %vm9569_vm2, %v7368_v43, %v814_v33  ;;  %v821_v11 = vrot.slane %v7358_v5, 5  ;;  %v824_v26 = vrot.slane %v7359_v16, 5  ;;  %1695 = vmatpush.bf16.msrb.mxu2 %v9178_v27  ;;  %v9198_v16 = vld [vmem:[%s12333_s2 + $0x118] sm:$0xff] }
  0x3b   : > { %v818_v56 = vsel %vm9569_vm2, %v816_v44, %v817_v46  ;;  %v852_v61 = vunpack.c.l.b16 %v815_v55  ;;  %v7337_v33 = vrot.slane %v7325_v20, 10  ;;  %v9176_v44 = vld [vmem:[%s12333_s2 + $0xa8] sm:$0xff]  ;;  %v7270_v55 = vld [vmem:[%s9573_s16 + $0x2c4] sm:$0xe]  ;;  %2361 = vmatpush.bf16.msra.mxu1 %v9198_v16 }
  0x3c   : > { %v853_v62 = vunpack.c.l.b16 %v818_v56  ;;  %v823_v25 = vrot.slane %v821_v11, 4 }
  0x3e   : > { %v863_v8 = vpack.c.b16 %v853_v62, %v852_v61  ;;  %v825_v38 = vsel %vm9569_vm2, %v823_v25, %v824_v26  ;;  %1696 = vmatpush.bf16.msrb.mxu2 %v9177_v36  ;;  %v9175_v62 = vld [vmem:[%s12333_s2 + $0xa0] sm:$0xff] }
  0x40   : > { %7299 = vmatmul.msk.bf16.gmra.mxu0 %vm460_vm6, %v9685_v3 }
  0x41   : > { %7493 = vmatmul.msk.bf16.gmra.mxu3 %vm460_vm6, %v9149_v6  ;;  %7397 = vmatmul.msk.bf16.gmra.mxu1 %vm460_vm6, %v860_v10  ;;  %v379_v6 = vsel %vm9569_vm2, %v7277_v58, %v378_v51  ;;  %v698_v10 = vrot.slane %v7321_v1, 6  ;;  %v7336_v51 = vrot.slane %v7322_v41, 10  ;;  %v423_v58 = vunpack.c.l.b16 %v389_v50  ;;  %v9180_v41 = vld [vmem:[%s12333_s2 + $0xc8] sm:$0xff] }
  0x42   : > { %v420_v14 = vunpack.c.l.b16 %v379_v6  ;;  %v7267_v6 = vld [vmem:[%s9573_s16 + $0x2a8] sm:$0xe]  ;;  %1697 = vmatpush.bf16.msrb.mxu2 %v9176_v44  ;;  %v7671_v44 = vld [vmem:[%s9573_s16 + $0x2ac] sm:$0x3] }
  0x43   : > { %7421 = vmatmul.msk.bf16.gmra.mxu2 %vm460_vm6, %v981_v15  ;;  %v421_v15 = vunpack.c.l.b16 %v382_v7  ;;  %v699_v17 = vsel %vm9598_vm5, %v697_v9, %v698_v10  ;;  %v703_v59 = vsel %vm9598_vm5, %v7336_v51, %v702_v40  ;;  %v392_v7 = vrot.slane %v7268_v63, 5  ;;  %v7269_v9 = vld [vmem:[%s9573_s16 + $0x2b0] sm:$0x1]  ;;  %v7326_v10 = vld [vmem:[%s9573_s16 + $0x200] sm:$0xf] }
  0x44   : > { %v972_v23 = vunpack.c.l.b16 %v699_v17  ;;  %v973_v1 = vunpack.c.l.b16 %v703_v59  ;;  %v395_v18 = vrot.slane %v7269_v9, 5  ;;  %v709_v19 = vrot.slane %v7326_v10, 6  ;;  %v7329_v59 = vld [vmem:[%s9573_s16 + $0x21c] sm:$0xf]  ;;  %v7330_v9 = vld [vmem:[%s9573_s16 + $0x220] sm:$0x3] }
  0x45   : > { %v9749_v21 = vpack.c.b16 %v421_v15, %v420_v14  ;;  %v7279_v14 = vrot.slane %v7267_v6, 9  ;;  %v7357_v15 = vld [vmem:[%s9573_s16 + $0x200] sm:$0xe]  ;;  %v394_v17 = vrot.slane %v392_v7, 4  ;;  %v719_v20 = vrot.slane %v7330_v9, 6 }
  0x46   : > { %v983_v34 = vpack.c.b16 %v972_v23, %v971_v22  ;;  %v7327_v22 = vld [vmem:[%s9573_s16 + $0x204] sm:$0x3]  ;;  %v9182_v23 = vld [vmem:[%s12333_s2 + $0xd8] sm:$0xff]  ;;  %v710_v42 = vsel %vm9598_vm5, %v7337_v33, %v709_v19  ;;  %1698 = vmatpush.bf16.msrb.mxu2 %v9175_v62  ;;  %v7500_v33 = vld [vmem:[%s9573_s16 + $0x200] sm:$0xf] }
  0x47   : > { %12346 = vst [vmem:[#allocation2_spill] sm:$0xff] %v9749_v21  ;;  %1949 = vmatpush.bf16.msrb.mxu3 %v9182_v23  ;;  %v396_v31 = vsel %vm9569_vm2, %v394_v17, %v395_v18  ;;  %v712_v35 = vrot.slane %v7327_v22, 6  ;;  %v975_v50 = vunpack.c.l.b16 %v710_v42  ;;  %v7499_v42 = vld [vmem:[%s9573_s16 + $0x1fc] sm:$0xc] }
  0x4b   : > { %1950 = vmatpush.bf16.msrb.mxu3 %v9181_v30 }
  0x4f   : > { %1951 = vmatpush.bf16.msrb.mxu3 %v9180_v41 }
  0x50   : > { %7300 = vmatmul.msk.bf16.gmra.mxu0 %vm460_vm6, %v9720_v45 }
  0x51   : > { %7494 = vmatmul.msk.bf16.gmra.mxu3 %vm460_vm6, %v9150_v48  ;;  %7398 = vmatmul.msk.bf16.gmra.mxu1 %vm460_vm6, %v861_v52  ;;  %v9159_v48 = vld [vmem:[%s12333_s2 + $0x60] sm:$0xff]  ;;  %v704_v52 = vrot.slane %v702_v40, 4  ;;  %v425_v40 = vunpack.c.l.b16 %v396_v31 }
  0x52   : > { %1438 = vmatpush.bf16.msrb.mxu0 %v9159_v48  ;;  %v7271_v48 = vld [vmem:[%s9573_s16 + $0x2c8] sm:$0xf] }
  0x53   : > { %7422 = vmatmul.msk.bf16.gmra.mxu2 %vm460_vm6, %v982_v57  ;;  %v422_v57 = vunpack.c.l.b16 %v386_v47  ;;  %v706_v60 = vsel %vm9598_vm5, %v704_v52, %v705_v53  ;;  %v855_v47 = vunpack.c.l.b16 %v825_v38  ;;  %v9153_v52 = vld [vmem:[%s9573_s16 + $0x204] sm:$0xff]  ;;  %v7361_v53 = vld [vmem:[%s9573_s16 + $0x220] sm:$0xf]  ;;  %v399_v56 = vrot.slane %v7271_v48, 5 }
  0x54   : > { %v974_v2 = vunpack.c.l.b16 %v706_v60  ;;  %v9179_v60 = vld [vmem:[%s12333_s2 + $0xc0] sm:$0xff]  ;;  %v828_v61 = vrot.slane %v7361_v53, 5  ;;  %v1813_v53 = vrot.slane %v7671_v44, 6 }
  0x55   : > { %v9784_v0 = vpack.c.b16 %v423_v58, %v422_v57  ;;  %v7272_v58 = vld [vmem:[%s9573_s16 + $0x2cc] sm:$0x1]  ;;  %v401_v5 = vrot.slane %v399_v56, 4  ;;  %1952 = vmatpush.bf16.msrb.mxu3 %v9179_v60 }
  0x56   : > { %v984_v13 = vpack.c.b16 %v974_v2, %v973_v1  ;;  %v7280_v1 = vrot.slane %v7270_v55, 9  ;;  %v7360_v2 = vld [vmem:[%s9573_s16 + $0x21c] sm:$0xe]  ;;  %v402_v6 = vrot.slane %v7272_v58, 5 }
  0x57   : > { %12347 = vst [vmem:[#allocation3_spill] sm:$0xff] %v9784_v0  ;;  %v7370_v10 = vrot.slane %v7360_v2, 9 }
  0x58   : > { %v403_v17 = vsel %vm9569_vm2, %v401_v5, %v402_v6  ;;  %v7502_v6 = vld [vmem:[%s9573_s16 + $0x218] sm:$0xc] }
  0x59   : > { %v829_v22 = vsel %vm9569_vm2, %v7370_v10, %v828_v61  ;;  %v427_v25 = vunpack.c.l.b16 %v403_v17  ;;  %v9900_v10 = vld [vmem:[%s12335_s4] ss:$0 sm:$0xff]  ;;  %v7524_v16 = vrot.slane %v7502_v6, 10 }
  0x5a   : > { %v856_v30 = vunpack.c.l.b16 %v829_v22  ;;  %v9168_v6 = vld [vmem:[%s9573_s16 + $0x220] sm:$0xff] }
  0x60   : > { %7301 = vmatmul.msk.bf16.gmra.mxu0 %vm460_vm6, %v9749_v21 }
  0x61   : > { %7495 = vmatmul.msk.bf16.gmra.mxu3 %vm460_vm6, %v9151_v24  ;;  %7399 = vmatmul.msk.bf16.gmra.mxu1 %vm460_vm6, %v862_v29  ;;  %v7369_v24 = vrot.slane %v7357_v15, 9  ;;  %v393_v29 = vsel %vm9569_vm2, %v7279_v14, %v392_v7  ;;  %v716_v7 = vrot.slane %v7329_v59, 6  ;;  %v400_v14 = vsel %vm9569_vm2, %v7280_v1, %v399_v56  ;;  %v9186_v15 = vld [vmem:[%s12333_s2 + $0xf8] sm:$0xff]  ;;  %v7673_v1 = vld [vmem:[%s9573_s16 + $0x2c4] sm:$0xf] }
  0x62   : > { %v424_v39 = vunpack.c.l.b16 %v393_v29  ;;  %2199 = vmatpush.bf16.msra.mxu0 %v9186_v15  ;;  %v7670_v29 = vld [vmem:[%s9573_s16 + $0x2a8] sm:$0xf]  ;;  %v1817_v9 = vrot.slane %v7673_v1, 6  ;;  %v7677_v1 = vld [vmem:[%s9573_s16 + $0x2e4] sm:$0x3] }
  0x63   : > { %7423 = vmatmul.msk.bf16.gmra.mxu2 %vm460_vm6, %v983_v34  ;;  %v711_v34 = vrot.slane %v709_v19, 4  ;;  %v822_v37 = vsel %vm9569_vm2, %v7369_v24, %v821_v11  ;;  %v830_v11 = vrot.slane %v828_v61, 4  ;;  %v718_v19 = vrot.slane %v716_v7, 4  ;;  %v9167_v15 = vld [vmem:[%s9573_s16 + $0x204] sm:$0xff] }
  0x64   : > { %v854_v46 = vunpack.c.l.b16 %v822_v37  ;;  %v9831_v49 = vpack.c.b16 %v425_v40, %v424_v39  ;;  %v426_v24 = vunpack.c.l.b16 %v400_v14  ;;  %v9154_v37 = vld [vmem:[%s9573_s16 + $0x220] sm:$0xff]  ;;  %v1810_v38 = vrot.slane %v7670_v29, 6  ;;  %v9185_v29 = vld [vmem:[%s12333_s2 + $0xf0] sm:$0xff] }
  0x65   : > { %v713_v43 = vsel %vm9598_vm5, %v711_v34, %v712_v35  ;;  %v720_v27 = vsel %vm9598_vm5, %v718_v19, %v719_v20  ;;  %v1296_v39 = vrot.slane %v7500_v33, 6  ;;  %v7669_v40 = vld [vmem:[%s9573_s16 + $0x2a4] sm:$0xc]  ;;  %v1819_v20 = vrot.slane %v1817_v9, 4 }
  0x66   : > { %12348 = vst [vmem:[#allocation4_spill] sm:$0xff] %v9831_v49  ;;  %v976_v51 = vunpack.c.l.b16 %v713_v43  ;;  %v864_v57 = vpack.c.b16 %v855_v47, %v854_v46  ;;  %v9873_v34 = vpack.c.b16 %v427_v25, %v426_v24  ;;  %v978_v36 = vunpack.c.l.b16 %v720_v27  ;;  %v7501_v43 = vld [vmem:[%s9573_s16 + $0x204] sm:$0x3]  ;;  %v9911_v24 = vld [vmem:[%s12335_s4 + $0x1] ss:$0 sm:$0xff]  ;;  %2200 = vmatpush.bf16.msra.mxu0 %v9185_v29 }
  0x67   : > { %v7693_v47 = vrot.slane %v7669_v40, 10  ;;  %v1812_v48 = vrot.slane %v1810_v38, 4 }
  0x68   : > { %v985_v63 = vpack.c.b16 %v976_v51, %v975_v50  ;;  %12349 = vst [vmem:[#allocation5_spill] sm:$0xff] %v9873_v34  ;;  %v7523_v50 = vrot.slane %v7499_v42, 10  ;;  %v1298_v51 = vrot.slane %v1296_v39, 4 }
  0x69   : > { %v1814_v58 = vsel %vm9598_vm5, %v1812_v48, %v1813_v53 }
  0x6a   : > { %v1297_v55 = vsel %vm9598_vm5, %v7523_v50, %v1296_v39  ;;  %v1874_v62 = vunpack.c.l.b16 %v1814_v58 }
  0x6b   : > { %v1359_v59 = vunpack.c.l.b16 %v1297_v55 }
  0x70   : > { %7302 = vmatmul.msk.bf16.gmra.mxu0 %vm460_vm6, %v9784_v0 }
  0x71   : > { %7496 = vmatmul.msk.bf16.gmra.mxu3 %vm460_vm6, %v9152_v4  ;;  %7400 = vmatmul.msk.bf16.gmra.mxu1 %vm460_vm6, %v863_v8  ;;  %v7362_v4 = vld [vmem:[%s9573_s16 + $0x224] sm:$0x1]  ;;  %v7328_v8 = vld [vmem:[%s9573_s16 + $0x218] sm:$0xc] }
  0x72   : > { %v7338_v18 = vrot.slane %v7328_v8, 10  ;;  %v7672_v8 = vld [vmem:[%s9573_s16 + $0x2c0] sm:$0xc] }
  0x73   : > { %7424 = vmatmul.msk.bf16.gmra.mxu2 %vm460_vm6, %v984_v13  ;;  %v831_v13 = vrot.slane %v7362_v4, 5  ;;  %v7694_v17 = vrot.slane %v7672_v8, 10 }
  0x74   : > { %v717_v26 = vsel %vm9598_vm5, %v7338_v18, %v716_v7 }
  0x75   : > { %v832_v23 = vsel %vm9569_vm2, %v830_v11, %v831_v13  ;;  %v977_v35 = vunpack.c.l.b16 %v717_v26  ;;  %v7504_v11 = vld [vmem:[%s9573_s16 + $0x220] sm:$0x3]  ;;  %v7674_v13 = vld [vmem:[%s9573_s16 + $0x2c8] sm:$0x3]  ;;  %v1818_v27 = vsel %vm9598_vm5, %v7694_v17, %v1817_v9 }
  0x76   : > { %v857_v31 = vunpack.c.l.b16 %v832_v23  ;;  %v1306_v19 = vrot.slane %v7504_v11, 6  ;;  %v1820_v22 = vrot.slane %v7674_v13, 6 }
  0x77   : > { %v986_v46 = vpack.c.b16 %v978_v36, %v977_v35 }
  0x78   : > { %v865_v41 = vpack.c.b16 %v857_v31, %v856_v30  ;;  %v9197_v30 = vld [vmem:[%s12333_s2 + $0x110] sm:$0xff]  ;;  %v1821_v35 = vsel %vm9598_vm5, %v1819_v20, %v1820_v22 }
  0x79   : > { %2362 = vmatpush.bf16.msra.mxu1 %v9197_v30 }
  0x80   : > { %7303 = vmatmul.msk.bf16.gmra.mxu0 %vm460_vm6, %v9831_v49 }
  0x81   : > { %7497 = vmatmul.msk.bf16.gmra.mxu3 %vm460_vm6, %v9153_v52  ;;  %7401 = vmatmul.msk.bf16.gmra.mxu1 %vm460_vm6, %v864_v57  ;;  %v1299_v52 = vrot.slane %v7501_v43, 6  ;;  %v1811_v57 = vsel %vm9598_vm5, %v7693_v47, %v1810_v38 }
  0x82   : > { %v1873_v61 = vunpack.c.l.b16 %v1811_v57 }
  0x83   : > { %7425 = vmatmul.msk.bf16.gmra.mxu2 %vm460_vm6, %v985_v63  ;;  %v1300_v56 = vsel %vm9598_vm5, %v1298_v51, %v1299_v52  ;;  %v7503_v63 = vld [vmem:[%s9573_s16 + $0x21c] sm:$0xf]  ;;  %v7506_v51 = vld [vmem:[%s9573_s16 + $0x238] sm:$0xf]  ;;  %v7676_v52 = vld [vmem:[%s9573_s16 + $0x2e0] sm:$0xf] }
  0x84   : > { %v1360_v60 = vunpack.c.l.b16 %v1300_v56  ;;  %v1889_v4 = vpack.c.b16 %v1874_v62, %v1873_v61  ;;  %v1303_v7 = vrot.slane %v7503_v63, 6  ;;  %v7675_v61 = vld [vmem:[%s9573_s16 + $0x2dc] sm:$0xc]  ;;  %v1824_v62 = vrot.slane %v7676_v52, 6  ;;  %v7507_v63 = vld [vmem:[%s9573_s16 + $0x23c] sm:$0x3] }
  0x85   : > { %v7695_v8 = vrot.slane %v7675_v61, 10  ;;  %v1313_v11 = vrot.slane %v7507_v63, 6 }
  0x86   : > { %v1375_v2 = vpack.c.b16 %v1360_v60, %v1359_v59  ;;  %v1305_v18 = vrot.slane %v1303_v7, 4  ;;  %v1304_v26 = vsel %vm9598_vm5, %v7524_v16, %v1303_v7  ;;  %v7505_v59 = vld [vmem:[%s9573_s16 + $0x234] sm:$0xc]  ;;  %v1310_v60 = vrot.slane %v7506_v51, 6  ;;  %v7508_v51 = vld [vmem:[%s9573_s16 + $0x250] sm:$0xc] }
  0x87   : > { %v1361_v40 = vunpack.c.l.b16 %v1304_v26  ;;  %v7525_v7 = vrot.slane %v7505_v59, 10  ;;  %v1826_v13 = vrot.slane %v1824_v62, 4  ;;  %v7526_v63 = vrot.slane %v7508_v51, 10 }
  0x88   : > { %v1307_v33 = vsel %vm9598_vm5, %v1305_v18, %v1306_v19  ;;  %v1312_v9 = vrot.slane %v1310_v60, 4  ;;  %v1825_v19 = vsel %vm9598_vm5, %v7695_v8, %v1824_v62  ;;  %v9169_v62 = vld [vmem:[%s9573_s16 + $0x23c] sm:$0xff] }
  0x89   : > { %v1362_v44 = vunpack.c.l.b16 %v1307_v33  ;;  %v1311_v18 = vsel %vm9598_vm5, %v7525_v7, %v1310_v60 }
  0x8a   : > { %v1314_v22 = vsel %vm9598_vm5, %v1312_v9, %v1313_v11  ;;  %v1363_v30 = vunpack.c.l.b16 %v1311_v18 }
  0x8b   : > { %v1376_v56 = vpack.c.b16 %v1362_v44, %v1361_v40 }
  0x90   : > { %7304 = vmatmul.msk.bf16.gmra.mxu0 %vm460_vm6, %v9873_v34 }
  0x91   : > { %7498 = vmatmul.msk.bf16.gmra.mxu3 %vm460_vm6, %v9154_v37  ;;  %7402 = vmatmul.msk.bf16.gmra.mxu1 %vm460_vm6, %v865_v41  ;;  %v1875_v41 = vunpack.c.l.b16 %v1818_v27 }
  0x93   : > { %7426 = vmatmul.msk.bf16.gmra.mxu2 %vm460_vm6, %v986_v46  ;;  %v1876_v46 = vunpack.c.l.b16 %v1821_v35 }
  0x95   : > { %v1890_v57 = vpack.c.b16 %v1876_v46, %v1875_v41  ;;  %v7509_v41 = vld [vmem:[%s9573_s16 + $0x254] sm:$0xf] }
  0x96   : > { %v1317_v52 = vrot.slane %v7509_v41, 6 }
  0x98   : > { %v1318_v11 = vsel %vm9598_vm5, %v7526_v63, %v1317_v52 }
  0x9d   : > { %v494_v5 = vpop.f32.mrf.mxu0 }
  0x9e   : > { %v923_v14 = vpop.f32.mrf.mxu1  ;;  %v536_v23 = vmul.f32 %v9900_v10, %v494_v5 }
  0xa0   : > { %7555 = vmatmul.msk.bf16.vlgmr.msrb.gmra.mxu0 %vm460_vm6, %v1375_v2  ;;  %v554_v36 = vadd.f32 %v9911_v24, %v536_v23 }
  0xa1   : > { %7725 = vmatmul.msk.bf16.vlgmr.msrb.gmra.mxu3 %vm460_vm6, %v1889_v4  ;;  %7587 = vmatmul.msk.bf16.vlgmr.msrb.gmra.mxu1 %vm460_vm6, %v9622_v54 }
  0xa2   : > { %v570_v47 = vmax.f32 %v554_v36, 0.0  ;;  %v1364_v36 = vunpack.c.l.b16 %v1314_v22 }
  0xa3   : > { %7659 = vmatmul.msk.bf16.vlgmr.msrb.gmra.mxu2 %vm460_vm6, %v9167_v15 }
  0xa4   : > { %v1190_v25 = vpop.f32.mrf.mxu3  ;;  %v1377_v44 = vpack.c.b16 %v1364_v36, %v1363_v30 }
  0xa5   : > { %v496_v31 = vpop.f32.mrf.mxu0 }
  0xa6   : > { %v537_v37 = vmul.f32 %v9900_v10, %v496_v31  ;;  %v1044_v38 = vpop.f32.mrf.mxu2  ;;  %v925_v39 = vpop.f32.mrf.mxu1  ;;  %v1877_v31 = vunpack.c.l.b16 %v1825_v19 }
  0xa7   : > { %v1045_v42 = vadd.f32 %v1044_v38, %v923_v14  ;;  %v1827_v14 = vrot.slane %v7677_v1, 6 }
  0xa8   : > { %v555_v43 = vadd.f32 %v9911_v24, %v537_v37 }
  0xa9   : > { %v9933_v48 = vadd.f32 %v1190_v25, %v1045_v42  ;;  %v1828_v23 = vsel %vm9598_vm5, %v1826_v13, %v1827_v14  ;;  %v7679_v42 = vld [vmem:[%s9573_s16 + $0x2fc] sm:$0xf]  ;;  %v9184_v14 = vld [vmem:[%s12333_s2 + $0xe8] sm:$0xff] }
  0xaa   : > { %v571_v50 = vmax.f32 %v555_v43, 0.0  ;;  %v1878_v37 = vunpack.c.l.b16 %v1828_v23  ;;  %2201 = vmatpush.bf16.msra.mxu0 %v9184_v14 }
  0xac   : > { %v1192_v53 = vpop.f32.mrf.mxu3  ;;  %v9937_v55 = vpack.c.bf16 %v571_v50, %v570_v47  ;;  %v1891_v46 = vpack.c.b16 %v1878_v37, %v1877_v31 }
  0xad   : > { %v499_v58 = vpop.f32.mrf.mxu0 }
  0xae   : > { %v1046_v2 = vpop.f32.mrf.mxu2  ;;  %v928_v4 = vpop.f32.mrf.mxu1  ;;  %v538_v16 = vmul.f32 %v9900_v10, %v499_v58  ;;  %v7680_v58 = vld [vmem:[%s9573_s16 + $0x300] sm:$0x3] }
  0xaf   : > { %v1047_v5 = vadd.f32 %v1046_v2, %v925_v39  ;;  %v1319_v2 = vrot.slane %v1317_v52, 4  ;;  %v7681_v52 = vld [vmem:[%s9573_s16 + $0x314] sm:$0xc] }
  0xb0   : > { %7556 = vmatmul.msk.bf16.gmra.mxu0 %vm460_vm6, %v1376_v56  ;;  %v556_v25 = vadd.f32 %v9911_v24, %v538_v16  ;;  %v1831_v56 = vrot.slane %v7679_v42, 6  ;;  %v9196_v16 = vld [vmem:[%s12333_s2 + $0x108] sm:$0xff]  ;;  %v7697_v63 = vrot.slane %v7681_v52, 10  ;;  %v7684_v52 = vld [vmem:[%s9573_s16 + $0x330] sm:$0xc] }
  0xb1   : > { %7726 = vmatmul.msk.bf16.gmra.mxu3 %vm460_vm6, %v1890_v57  ;;  %v9946_v15 = vadd.f32 %v1192_v53, %v1047_v5  ;;  %7588 = vmatmul.msk.bf16.gmra.mxu1 %vm460_vm6, %v9656_v28  ;;  %v7678_v53 = vld [vmem:[%s9573_s16 + $0x2f8] sm:$0xc]  ;;  %v7510_v57 = vld [vmem:[%s9573_s16 + $0x258] sm:$0x3] }
  0xb2   : > { %v572_v38 = vmax.f32 %v556_v25, 0.0  ;;  %v7696_v1 = vrot.slane %v7678_v53, 10  ;;  %v1833_v5 = vrot.slane %v1831_v56, 4  ;;  %2363 = vmatpush.bf16.msra.mxu1 %v9196_v16 }
  0xb3   : > { %7660 = vmatmul.msk.bf16.gmra.mxu2 %vm460_vm6, %v9168_v6  ;;  %v1834_v6 = vrot.slane %v7680_v58, 6 }
  0xb4   : > { %v1195_v17 = vpop.f32.mrf.mxu3  ;;  %v1832_v13 = vsel %vm9598_vm5, %v7696_v1, %v1831_v56  ;;  %v7513_v56 = vld [vmem:[%s9573_s16 + $0x274] sm:$0x3] }
  0xb5   : > { %v501_v20 = vpop.f32.mrf.mxu0  ;;  %v1835_v19 = vsel %vm9598_vm5, %v1833_v5, %v1834_v6 }
  0xb6   : > { %v539_v26 = vmul.f32 %v9900_v10, %v501_v20  ;;  %v1049_v27 = vpop.f32.mrf.mxu2  ;;  %v930_v29 = vpop.f32.mrf.mxu1 }
  0xb7   : > { %v1050_v33 = vadd.f32 %v1049_v27, %v928_v4  ;;  %v1320_v4 = vrot.slane %v7510_v57, 6  ;;  %v1879_v27 = vunpack.c.l.b16 %v1832_v13  ;;  %v7683_v57 = vld [vmem:[%s9573_s16 + $0x31c] sm:$0x3] }
  0xb8   : > { %v557_v35 = vadd.f32 %v9911_v24, %v539_v26  ;;  %v1365_v26 = vunpack.c.l.b16 %v1318_v11  ;;  %v1841_v5 = vrot.slane %v7683_v57, 6  ;;  %v7686_v57 = vld [vmem:[%s9573_s16 + $0x338] sm:$0x3] }
  0xb9   : > { %v9963_v39 = vadd.f32 %v1195_v17, %v1050_v33  ;;  %v1321_v18 = vsel %vm9598_vm5, %v1319_v2, %v1320_v4  ;;  %v1880_v33 = vunpack.c.l.b16 %v1835_v19  ;;  %v1327_v2 = vrot.slane %v7513_v56, 6  ;;  %v7516_v56 = vld [vmem:[%s9573_s16 + $0x290] sm:$0x3] }
  0xba   : > { %v573_v40 = vmax.f32 %v557_v35, 0.0  ;;  %v1366_v31 = vunpack.c.l.b16 %v1321_v18 }
  0xbc   : > { %v1197_v43 = vpop.f32.mrf.mxu3  ;;  %v9967_v47 = vpack.c.bf16 %v573_v40, %v572_v38  ;;  %v7512_v38 = vld [vmem:[%s9573_s16 + $0x270] sm:$0xf]  ;;  %v7682_v40 = vld [vmem:[%s9573_s16 + $0x318] sm:$0xf]  ;;  %v1378_v42 = vpack.c.b16 %v1366_v31, %v1365_v26 }
  0xbd   : > { %v504_v50 = vpop.f32.mrf.mxu0  ;;  %v1324_v51 = vrot.slane %v7512_v38, 6  ;;  %v1838_v53 = vrot.slane %v7682_v40, 6  ;;  %v7685_v38 = vld [vmem:[%s9573_s16 + $0x334] sm:$0xf] }
  0xbe   : > { %v1051_v59 = vpop.f32.mrf.mxu2  ;;  %v933_v60 = vpop.f32.mrf.mxu1  ;;  %v540_v8 = vmul.f32 %v9900_v10, %v504_v50  ;;  %v7511_v50 = vld [vmem:[%s9573_s16 + $0x26c] sm:$0xc] }
  0xbf   : > { %v1052_v61 = vadd.f32 %v1051_v59, %v930_v29  ;;  %v1326_v1 = vrot.slane %v1324_v51, 4  ;;  %v1840_v4 = vrot.slane %v1838_v53, 4  ;;  %v1839_v13 = vsel %vm9598_vm5, %v7697_v63, %v1838_v53 }
  0xc0   : > { %7557 = vmatmul.msk.bf16.gmra.mxu0 %vm460_vm6, %v1377_v44  ;;  %v558_v20 = vadd.f32 %v9911_v24, %v540_v8  ;;  %v1845_v53 = vrot.slane %v7685_v38, 6  ;;  %v7698_v63 = vrot.slane %v7684_v52, 10  ;;  %v9136_v52 = vld [vmem:[%s12334_s3 + $0x28] sm:$0xff] }
  0xc1   : > { %7727 = vmatmul.msk.bf16.gmra.mxu3 %vm460_vm6, %v1891_v46  ;;  %v9976_v7 = vadd.f32 %v1197_v43, %v1052_v61  ;;  %7589 = vmatmul.msk.bf16.gmra.mxu1 %vm460_vm6, %v9685_v3  ;;  %v1892_v43 = vpack.c.b16 %v1880_v33, %v1879_v27  ;;  %v9170_v61 = vld [vmem:[%s9573_s16 + $0x258] sm:$0xff]  ;;  %v1328_v16 = vsel %vm9598_vm5, %v1326_v1, %v1327_v2  ;;  %v1334_v2 = vrot.slane %v7516_v56, 6 }
  0xc2   : > { %v574_v35 = vmax.f32 %v558_v20, 0.0 }
  0xc3   : > { %7661 = vmatmul.msk.bf16.gmra.mxu2 %vm460_vm6, %v9169_v62  ;;  %v7527_v62 = vrot.slane %v7511_v50, 10  ;;  %v7514_v50 = vld [vmem:[%s9573_s16 + $0x288] sm:$0xc] }
  0xc4   : > { %v1200_v9 = vpop.f32.mrf.mxu3 }
  0xc5   : > { %v506_v17 = vpop.f32.mrf.mxu0  ;;  %v1325_v11 = vsel %vm9598_vm5, %v7527_v62, %v1324_v51  ;;  %v7528_v62 = vrot.slane %v7514_v50, 10 }
  0xc6   : > { %v541_v22 = vmul.f32 %v9900_v10, %v506_v17  ;;  %v1054_v23 = vpop.f32.mrf.mxu2  ;;  %v935_v25 = vpop.f32.mrf.mxu1  ;;  %v1842_v17 = vsel %vm9598_vm5, %v1840_v4, %v1841_v5  ;;  %v1847_v4 = vrot.slane %v1845_v53, 4  ;;  %v1848_v5 = vrot.slane %v7686_v57, 6 }
  0xc7   : > { %v1055_v29 = vadd.f32 %v1054_v23, %v933_v60  ;;  %v1367_v23 = vunpack.c.l.b16 %v1325_v11  ;;  %v9138_v11 = vld [vmem:[%s12334_s3 + $0x38] sm:$0xff] }
  0xc8   : > { %v559_v30 = vadd.f32 %v9911_v24, %v541_v22  ;;  %2644 = vmatpush.bf16.msra.mxu3 %v9138_v11 }
  0xc9   : > { %v9999_v36 = vadd.f32 %v1200_v9, %v1055_v29  ;;  %v1368_v29 = vunpack.c.l.b16 %v1328_v16  ;;  %v1846_v16 = vsel %vm9598_vm5, %v7698_v63, %v1845_v53 }
  0xca   : > { %v575_v37 = vmax.f32 %v559_v30, 0.0  ;;  %v1882_v30 = vunpack.c.l.b16 %v1842_v17  ;;  %v9183_v17 = vld [vmem:[%s12333_s2 + $0xe0] sm:$0xff] }
  0xcb   : > { %2202 = vmatpush.bf16.msra.mxu0 %v9183_v17 }
  0xcc   : > { %v1202_v41 = vpop.f32.mrf.mxu3  ;;  %v10003_v44 = vpack.c.bf16 %v575_v37, %v574_v35  ;;  %v7515_v37 = vld [vmem:[%s9573_s16 + $0x28c] sm:$0xf] }
  0xcd   : > { %v509_v46 = vpop.f32.mrf.mxu0  ;;  %v1331_v51 = vrot.slane %v7515_v37, 6 }
  0xce   : > { %v1056_v58 = vpop.f32.mrf.mxu2  ;;  %v938_v59 = vpop.f32.mrf.mxu1  ;;  %v542_v8 = vmul.f32 %v9900_v10, %v509_v46 }
  0xcf   : > { %v1057_v60 = vadd.f32 %v1056_v58, %v935_v25  ;;  %v1881_v25 = vunpack.c.l.b16 %v1839_v13  ;;  %v1333_v1 = vrot.slane %v1331_v51, 4 }
  0xd0   : > { %7558 = vmatmul.msk.bf16.gmra.mxu0 %vm460_vm6, %v1378_v42  ;;  %v560_v18 = vadd.f32 %v9911_v24, %v542_v8 }
  0xd1   : > { %7728 = vmatmul.msk.bf16.gmra.mxu3 %vm460_vm6, %v1892_v43  ;;  %v10012_v6 = vadd.f32 %v1202_v41, %v1057_v60  ;;  %7590 = vmatmul.msk.bf16.gmra.mxu1 %vm460_vm6, %v9720_v45  ;;  %v1379_v41 = vpack.c.b16 %v1368_v29, %v1367_v23  ;;  %v1893_v42 = vpack.c.b16 %v1882_v30, %v1881_v25 }
  0xd2   : > { %v576_v31 = vmax.f32 %v560_v18, 0.0  ;;  %v9195_v18 = vld [vmem:[%s12333_s2 + $0x100] sm:$0xff] }
  0xd3   : > { %7662 = vmatmul.msk.bf16.gmra.mxu2 %vm460_vm6, %v9170_v61  ;;  %v9171_v61 = vld [vmem:[%s9573_s16 + $0x274] sm:$0xff]  ;;  %2364 = vmatpush.bf16.msra.mxu1 %v9195_v18 }
  0xd4   : > { %v1205_v9 = vpop.f32.mrf.mxu3 }
  0xd5   : > { %v511_v14 = vpop.f32.mrf.mxu0 }
  0xd6   : > { %v543_v19 = vmul.f32 %v9900_v10, %v511_v14  ;;  %v1059_v20 = vpop.f32.mrf.mxu2  ;;  %v940_v22 = vpop.f32.mrf.mxu1  ;;  %v1332_v14 = vsel %vm9598_vm5, %v7528_v62, %v1331_v51  ;;  %v7518_v51 = vld [vmem:[%s9573_s16 + $0x2a8] sm:$0xf]  ;;  %v7687_v62 = vld [vmem:[%s9573_s16 + $0x34c] sm:$0xc] }
  0xd7   : > { %v1060_v26 = vadd.f32 %v1059_v20, %v938_v59  ;;  %v1335_v20 = vsel %vm9598_vm5, %v1333_v1, %v1334_v2  ;;  %v1369_v30 = vunpack.c.l.b16 %v1332_v14  ;;  %v7519_v1 = vld [vmem:[%s9573_s16 + $0x2ac] sm:$0x3]  ;;  %v7689_v2 = vld [vmem:[%s9573_s16 + $0x354] sm:$0x3] }
  0xd8   : > { %v561_v27 = vadd.f32 %v9911_v24, %v543_v19  ;;  %v1370_v38 = vunpack.c.l.b16 %v1335_v20  ;;  %v1341_v18 = vrot.slane %v7519_v1, 6  ;;  %v1855_v20 = vrot.slane %v7689_v2, 6  ;;  %v9132_v1 = vld [vmem:[%s12334_s3 + $0x8] sm:$0xff] }
  0xd9   : > { %v10029_v33 = vadd.f32 %v1205_v9, %v1060_v26  ;;  %v9137_v26 = vld [vmem:[%s12334_s3 + $0x30] sm:$0xff] }
  0xda   : > { %v577_v35 = vmax.f32 %v561_v27, 0.0  ;;  %2645 = vmatpush.bf16.msra.mxu3 %v9137_v26  ;;  %v1380_v56 = vpack.c.b16 %v1370_v38, %v1369_v30 }
  0xdc   : > { %v1207_v40 = vpop.f32.mrf.mxu3  ;;  %v10033_v43 = vpack.c.bf16 %v577_v35, %v576_v31  ;;  %v1883_v31 = vunpack.c.l.b16 %v1846_v16  ;;  %v7699_v16 = vrot.slane %v7687_v62, 10 }
  0xdd   : > { %v514_v46 = vpop.f32.mrf.mxu0 }
  0xde   : > { %v1061_v58 = vpop.f32.mrf.mxu2  ;;  %v943_v59 = vpop.f32.mrf.mxu1  ;;  %v544_v9 = vmul.f32 %v9900_v10, %v514_v46  ;;  %2646 = vmatpush.bf16.msra.mxu3 %v9136_v52 }
  0xdf   : > { %v1062_v60 = vadd.f32 %v1061_v58, %v940_v22  ;;  %v1849_v22 = vsel %vm9598_vm5, %v1847_v4, %v1848_v5  ;;  %v9135_v4 = vld [vmem:[%s12334_s3 + $0x20] sm:$0xff] }
  0xe0   : > { %7559 = vmatmul.msk.bf16.gmra.mxu0 %vm460_vm6, %v1379_v41  ;;  %v562_v23 = vadd.f32 %v9911_v24, %v544_v9  ;;  %v7688_v41 = vld [vmem:[%s9573_s16 + $0x350] sm:$0xf] }
  0xe1   : > { %7729 = vmatmul.msk.bf16.gmra.mxu3 %vm460_vm6, %v1893_v42  ;;  %v10042_v8 = vadd.f32 %v1207_v40, %v1062_v60  ;;  %7591 = vmatmul.msk.bf16.gmra.mxu1 %vm460_vm6, %v9749_v21  ;;  %v1884_v40 = vunpack.c.l.b16 %v1849_v22  ;;  %v7517_v60 = vld [vmem:[%s9573_s16 + $0x2a4] sm:$0xc]  ;;  %v1852_v63 = vrot.slane %v7688_v41, 6 }
  0xe2   : > { %v578_v42 = vmax.f32 %v562_v23, 0.0  ;;  %v7529_v14 = vrot.slane %v7517_v60, 10  ;;  %2647 = vmatpush.bf16.msra.mxu3 %v9135_v4 }
  0xe3   : > { %7663 = vmatmul.msk.bf16.gmra.mxu2 %vm460_vm6, %v9171_v61  ;;  %v1894_v57 = vpack.c.b16 %v1884_v40, %v1883_v31  ;;  %v1338_v61 = vrot.slane %v7518_v51, 6  ;;  %v9133_v40 = vld [vmem:[%s12334_s3 + $0x10] sm:$0xff] }
  0xe4   : > { %v1210_v13 = vpop.f32.mrf.mxu3 }
  0xe5   : > { %v516_v19 = vpop.f32.mrf.mxu0  ;;  %v1340_v17 = vrot.slane %v1338_v61, 4 }
  0xe6   : > { %v545_v25 = vmul.f32 %v9900_v10, %v516_v19  ;;  %v1064_v27 = vpop.f32.mrf.mxu2  ;;  %v945_v29 = vpop.f32.mrf.mxu1  ;;  %v1854_v19 = vrot.slane %v1852_v63, 4 }
  0xe7   : > { %v1065_v35 = vadd.f32 %v1064_v27, %v943_v59  ;;  %v1339_v27 = vsel %vm9598_vm5, %v7529_v14, %v1338_v61  ;;  %v1342_v31 = vsel %vm9598_vm5, %v1340_v17, %v1341_v18  ;;  %v7522_v18 = vld [vmem:[%s9573_s16 + $0x2c8] sm:$0x3] }
  0xe8   : > { %v563_v37 = vadd.f32 %v9911_v24, %v545_v25  ;;  %v9134_v25 = vld [vmem:[%s12334_s3 + $0x18] sm:$0xff] }
  0xe9   : > { %v10072_v46 = vadd.f32 %v1210_v13, %v1065_v35  ;;  %v9172_v13 = vld [vmem:[%s9573_s16 + $0x290] sm:$0xff]  ;;  %v1856_v35 = vsel %vm9598_vm5, %v1854_v19, %v1855_v20  ;;  %2648 = vmatpush.bf16.msra.mxu3 %v9134_v25  ;;  %v9131_v20 = vld [vmem:[%s12334_s3] sm:$0xff] }
  0xea   : > { %v579_v50 = vmax.f32 %v563_v37, 0.0  ;;  %v7692_v19 = vld [vmem:[%s9573_s16 + $0x370] sm:$0x3] }
  0xec   : > { %v1212_v53 = vpop.f32.mrf.mxu3  ;;  %v10078_v58 = vpack.c.bf16 %v579_v50, %v578_v42  ;;  %v1371_v50 = vunpack.c.l.b16 %v1339_v27  ;;  %v9173_v27 = vld [vmem:[%s9573_s16 + $0x2ac] sm:$0xff] }
  0xed   : > { %v519_v59 = vpop.f32.mrf.mxu0  ;;  %2649 = vmatpush.bf16.msra.mxu3 %v9133_v40 }
  0xee   : > { %v1066_v5 = vpop.f32.mrf.mxu2  ;;  %v948_v9 = vpop.f32.mrf.mxu1  ;;  %v546_v23 = vmul.f32 %v9900_v10, %v519_v59  ;;  %v7691_v59 = vld [vmem:[%s9573_s16 + $0x36c] sm:$0xf] }
  0xef   : > { %v1067_v11 = vadd.f32 %v1066_v5, %v945_v29  ;;  %v1853_v29 = vsel %vm9598_vm5, %v7699_v16, %v1852_v63  ;;  %v7521_v63 = vld [vmem:[%s9573_s16 + $0x2c4] sm:$0xf]  ;;  %v7690_v16 = vld [vmem:[%s9573_s16 + $0x368] sm:$0xc]  ;;  %v1859_v17 = vrot.slane %v7691_v59, 6 }
  0xf0   : > { %7560 = vmatmul.msk.bf16.gmra.mxu0 %vm460_vm6, %v1380_v56  ;;  %v564_v37 = vadd.f32 %v9911_v24, %v546_v23  ;;  %v1885_v51 = vunpack.c.l.b16 %v1853_v29  ;;  %v1372_v56 = vunpack.c.l.b16 %v1342_v31  ;;  %v1345_v14 = vrot.slane %v7521_v63, 6 }
  0xf1   : > { %7730 = vmatmul.msk.bf16.gmra.mxu3 %vm460_vm6, %v1894_v57  ;;  %v10090_v22 = vadd.f32 %v1212_v53, %v1067_v11  ;;  %7592 = vmatmul.msk.bf16.gmra.mxu1 %vm460_vm6, %v9784_v0  ;;  %v1886_v57 = vunpack.c.l.b16 %v1856_v35  ;;  %v1348_v35 = vrot.slane %v7522_v18, 6 }
  0xf2   : > { %v580_v60 = vmax.f32 %v564_v37, 0.0  ;;  %v1381_v4 = vpack.c.b16 %v1372_v56, %v1371_v50  ;;  %2650 = vmatpush.bf16.msra.mxu3 %v9132_v1  ;;  %v1347_v31 = vrot.slane %v1345_v14, 4  ;;  %v1861_v37 = vrot.slane %v1859_v17, 4 }
  0xf3   : > { %7664 = vmatmul.msk.bf16.gmra.mxu2 %vm460_vm6, %v9172_v13  ;;  %v1895_v5 = vpack.c.b16 %v1886_v57, %v1885_v51  ;;  %v7520_v13 = vld [vmem:[%s9573_s16 + $0x2c0] sm:$0xc] }
  0xf4   : > { %v1215_v26 = vpop.f32.mrf.mxu3  ;;  %v7530_v29 = vrot.slane %v7520_v13, 10 }
  0xf5   : > { %v521_v30 = vpop.f32.mrf.mxu0 }
  0xf6   : > { %v547_v38 = vmul.f32 %v9900_v10, %v521_v30  ;;  %v1069_v41 = vpop.f32.mrf.mxu2  ;;  %v950_v42 = vpop.f32.mrf.mxu1  ;;  %v7700_v30 = vrot.slane %v7690_v16, 10  ;;  %2651 = vmatpush.bf16.msra.mxu3 %v9131_v20  ;;  %v1346_v50 = vsel %vm9598_vm5, %v7530_v29, %v1345_v14  ;;  %v7733_v29 = vld [vmem:[%s9573_s16 + $0x2a8] sm:$0xe] }
  0xf7   : > { %v1070_v52 = vadd.f32 %v1069_v41, %v948_v9  ;;  %v1373_v63 = vunpack.c.l.b16 %v1346_v50 }
  0xf8   : > { %v565_v53 = vadd.f32 %v9911_v24, %v547_v38  ;;  %v1862_v38 = vrot.slane %v7692_v19, 6  ;;  %v1860_v51 = vsel %vm9598_vm5, %v7700_v30, %v1859_v17  ;;  %v7734_v17 = vld [vmem:[%s9573_s16 + $0x2ac] sm:$0xf]  ;;  %v7735_v30 = vld [vmem:[%s9573_s16 + $0x2b0] sm:$0x1] }
  0xf9   : > { %v10114_v61 = vadd.f32 %v1215_v26, %v1070_v52  ;;  %v1887_v1 = vunpack.c.l.b16 %v1860_v51 }
  0xfa   : > { %v581_v62 = vmax.f32 %v565_v53, 0.0  ;;  %v1349_v53 = vsel %vm9598_vm5, %v1347_v31, %v1348_v35  ;;  %v1863_v56 = vsel %vm9598_vm5, %v1861_v37, %v1862_v38  ;;  %v9174_v37 = vld [vmem:[%s9573_s16 + $0x2c8] sm:$0xff]  ;;  %v7757_v38 = vrot.slane %v7733_v29, 9 }
  0xfc   : > { %v1217_v2 = vpop.f32.mrf.mxu3  ;;  %v10120_v9 = vpack.c.bf16 %v581_v62, %v580_v60 }
  0xfd   : > { %v524_v11 = vpop.f32.mrf.mxu0 }
  0xfe   : > { %v1071_v23 = vpop.f32.mrf.mxu2  ;;  %v953_v25 = vpop.f32.mrf.mxu1  ;;  %v548_v41 = vmul.f32 %v9900_v10, %v524_v11  ;;  %v1888_v11 = vunpack.c.l.b16 %v1863_v56 }
  0xff   : > { %v1072_v26 = vadd.f32 %v1071_v23, %v950_v42 }
 0x100   : > { %7561 = vmatmul.msk.bf16.gmra.mxu0 %vm460_vm6, %v1381_v4  ;;  %v566_v57 = vadd.f32 %v9911_v24, %v548_v41  ;;  %v1896_v20 = vpack.c.b16 %v1888_v11, %v1887_v1 }
 0x101   : > { %7731 = vmatmul.msk.bf16.gmra.mxu3 %vm460_vm6, %v1895_v5  ;;  %v10132_v40 = vadd.f32 %v1217_v2, %v1072_v26  ;;  %7593 = vmatmul.msk.bf16.gmra.mxu1 %vm460_vm6, %v9831_v49  ;;  %v1374_v5 = vunpack.c.l.b16 %v1349_v53 }
 0x102   : > { %v582_v13 = vmax.f32 %v566_v57, 0.0 }
 0x103   : > { %7665 = vmatmul.msk.bf16.gmra.mxu2 %vm460_vm6, %v9173_v27  ;;  %v1382_v19 = vpack.c.b16 %v1374_v5, %v1373_v63  ;;  %v2060_v27 = vrot.slane %v7734_v17, 5 }
 0x104   : > { %v1220_v42 = vpop.f32.mrf.mxu3 }
 0x105   : > { %v526_v52 = vpop.f32.mrf.mxu0  ;;  %v2062_v41 = vrot.slane %v2060_v27, 4  ;;  %v2061_v57 = vsel %vm9569_vm2, %v7757_v38, %v2060_v27 }
 0x106   : > { %v549_v59 = vmul.f32 %v9900_v10, %v526_v52  ;;  %v1074_v60 = vpop.f32.mrf.mxu2  ;;  %v955_v62 = vpop.f32.mrf.mxu1  ;;  %v9206_v52 = vld [vmem:[%s12334_s3 + $0x78] sm:$0xff]  ;;  %v2123_v5 = vunpack.c.l.b16 %v2061_v57 }
 0x107   : > { %v1075_v2 = vadd.f32 %v1074_v60, %v953_v25  ;;  %2547 = vmatpush.bf16.msra.mxu2 %v9206_v52 }
 0x108   : > { %v567_v4 = vadd.f32 %v9911_v24, %v549_v59 }
 0x109   : > { %v10149_v14 = vadd.f32 %v1220_v42, %v1075_v2  ;;  %v2063_v42 = vrot.slane %v7735_v30, 5  ;;  %v9187_v30 = vld [vmem:[%s9573_s16 + $0x2ac] sm:$0xff] }
 0x10a   : > { %v583_v16 = vmax.f32 %v567_v4, 0.0 }
 0x10b   : > { %v2064_v59 = vsel %vm9569_vm2, %v2062_v41, %v2063_v42 }
 0x10c   : > { %v1222_v18 = vpop.f32.mrf.mxu3  ;;  %v10152_v23 = vpack.c.bf16 %v583_v16, %v582_v13  ;;  %v2124_v11 = vunpack.c.l.b16 %v2064_v59 }
 0x10d   : > { %v529_v26 = vpop.f32.mrf.mxu0 }
 0x10e   : > { %v1076_v25 = vpop.f32.mrf.mxu2  ;;  %v958_v31 = vpop.f32.mrf.mxu1  ;;  %v550_v51 = vmul.f32 %v9900_v10, %v529_v26 }
 0x10f   : > { %v1077_v35 = vadd.f32 %v1076_v25, %v955_v62  ;;  %v7736_v25 = vld [vmem:[%s9573_s16 + $0x2c4] sm:$0xe] }
 0x110   : > { %7562 = vmatmul.msk.bf16.gmra.mxu0 %vm460_vm6, %v1382_v19  ;;  %v568_v60 = vadd.f32 %v9911_v24, %v550_v51  ;;  %v7758_v41 = vrot.slane %v7736_v25, 9 }
 0x111   : > { %7732 = vmatmul.msk.bf16.gmra.mxu3 %vm460_vm6, %v1896_v20  ;;  %v10159_v50 = vadd.f32 %v1222_v18, %v1077_v35  ;;  %7594 = vmatmul.msk.bf16.gmra.mxu1 %vm460_vm6, %v9873_v34  ;;  %v7737_v18 = vld [vmem:[%s9573_s16 + $0x2c8] sm:$0xf]  ;;  %v2139_v20 = vpack.c.b16 %v2124_v11, %v2123_v5 }
 0x112   : > { %v584_v13 = vmax.f32 %v568_v60, 0.0  ;;  %v2067_v27 = vrot.slane %v7737_v18, 5 }
 0x113   : > { %7666 = vmatmul.msk.bf16.gmra.mxu2 %vm460_vm6, %v9174_v37 }
 0x114   : > { %v1225_v53 = vpop.f32.mrf.mxu3  ;;  %v2069_v42 = vrot.slane %v2067_v27, 4  ;;  %v2068_v57 = vsel %vm9569_vm2, %v7758_v41, %v2067_v27  ;;  %v9188_v27 = vld [vmem:[%s9573_s16 + $0x2c8] sm:$0xff] }
 0x115   : > { %v531_v56 = vpop.f32.mrf.mxu0 }
 0x116   : > { %v551_v62 = vmul.f32 %v9900_v10, %v531_v56  ;;  %v1079_v63 = vpop.f32.mrf.mxu2  ;;  %v960_v1 = vpop.f32.mrf.mxu1 }
 0x117   : > { %v1080_v2 = vadd.f32 %v1079_v63, %v958_v31  ;;  %v7738_v31 = vld [vmem:[%s9573_s16 + $0x2cc] sm:$0x1] }
 0x118   : > { %v569_v4 = vadd.f32 %v9911_v24, %v551_v62  ;;  %v2070_v51 = vrot.slane %v7738_v31, 5 }
 0x119   : > { %v10175_v16 = vadd.f32 %v1225_v53, %v1080_v2  ;;  %v9205_v53 = vld [vmem:[%s12334_s3 + $0x70] sm:$0xff] }
 0x11a   : > { %v585_v17 = vmax.f32 %v569_v4, 0.0  ;;  %2548 = vmatpush.bf16.msra.mxu2 %v9205_v53  ;;  %v2071_v59 = vsel %vm9569_vm2, %v2069_v42, %v2070_v51  ;;  %v2125_v4 = vunpack.c.l.b16 %v2068_v57 }
 0x11b   : > { %v2126_v5 = vunpack.c.l.b16 %v2071_v59 }
 0x11c   : > { %v1227_v19 = vpop.f32.mrf.mxu3  ;;  %v10178_v26 = vpack.c.bf16 %v585_v17, %v584_v13  ;;  %v7740_v13 = vld [vmem:[%s9573_s16 + $0x2e4] sm:$0xf] }
 0x11d   : > { %v1440_v10 = vpop.f32.mrf.mxu0  ;;  %v2140_v18 = vpack.c.b16 %v2126_v5, %v2125_v4 }
 0x11e   : > { %v1480_v29 = vadd.f32 %v1440_v10, %v9933_v48  ;;  %v1081_v35 = vpop.f32.mrf.mxu2  ;;  %v1538_v24 = vpop.f32.mrf.mxu1  ;;  %v9214_v48 = vld [vmem:[%s12333_s2 + $0x158] sm:$0xff] }
 0x11f   : > { %v1082_v37 = vadd.f32 %v1081_v35, %v960_v1  ;;  %3002 = vmatpush.bf16.msrb.mxu0 %v9214_v48 }
 0x120   : > { %v1578_v38 = vadd.f32 %v1538_v24, %v1480_v29  ;;  %7789 = vmatmul.msk.bf16.vlgmr.msra.gmra.mxu0 %vm460_vm6, %v2139_v20  ;;  %v2074_v20 = vrot.slane %v7740_v13, 5  ;;  %v7739_v29 = vld [vmem:[%s9573_s16 + $0x2e0] sm:$0xe] }
 0x121   : > { %2652 = vmatmul.bf16.vlgmr.msra.gmra.mxu3 %v9937_v55  ;;  %v10186_v52 = vadd.f32 %v1227_v19, %v1082_v37  ;;  %7861 = vmatmul.msk.bf16.vlgmr.msra.gmra.mxu1 %vm460_vm6, %v9187_v30  ;;  %v7741_v30 = vld [vmem:[%s9573_s16 + $0x2e8] sm:$0x1]  ;;  %v7759_v24 = vrot.slane %v7739_v29, 9 }
 0x122   : > { %v2076_v37 = vrot.slane %v2074_v20, 4 }
 0x123   : > { %v2075_v48 = vsel %vm9569_vm2, %v7759_v24, %v2074_v20  ;;  %v7744_v20 = vld [vmem:[%s9573_s16 + $0x304] sm:$0x1] }
 0x124   : > { %v1954_v56 = vpop.f32.mrf.mxu3 }
 0x125   : > { %v1442_v55 = vpop.f32.mrf.mxu0 }
 0x126   : > { %v1481_v60 = vadd.f32 %v1442_v55, %v9946_v15  ;;  %v1700_v62 = vpop.f32.mrf.mxu2  ;;  %v1540_v63 = vpop.f32.mrf.mxu1 }
 0x127   : > { %v1740_v1 = vadd.f32 %v1700_v62, %v1578_v38  ;;  %v2077_v38 = vrot.slane %v7741_v30, 5 }
 0x128   : > { %v1579_v2 = vadd.f32 %v1540_v63, %v1481_v60  ;;  %v2127_v60 = vunpack.c.l.b16 %v2075_v48 }
 0x129   : > { %v10200_v11 = vadd.f32 %v1954_v56, %v1740_v1  ;;  %v7743_v1 = vld [vmem:[%s9573_s16 + $0x300] sm:$0xf] }
 0x12a   : > { %v2081_v13 = vrot.slane %v7743_v1, 5 }
 0x12c   : > { %v1956_v17 = vpop.f32.mrf.mxu3 }
 0x12d   : > { %v1445_v19 = vpop.f32.mrf.mxu0 }
 0x12e   : > { %v1482_v10 = vadd.f32 %v1445_v19, %v9963_v39  ;;  %v1702_v15 = vpop.f32.mrf.mxu2  ;;  %v1543_v25 = vpop.f32.mrf.mxu1  ;;  %v9204_v39 = vld [vmem:[%s12334_s3 + $0x68] sm:$0xff]  ;;  %v7742_v19 = vld [vmem:[%s9573_s16 + $0x2fc] sm:$0xe] }
 0x12f   : > { %v1741_v31 = vadd.f32 %v1702_v15, %v1579_v2  ;;  %2549 = vmatpush.bf16.msra.mxu2 %v9204_v39  ;;  %v7760_v30 = vrot.slane %v7742_v19, 9  ;;  %v2083_v15 = vrot.slane %v2081_v13, 4 }
 0x130   : > { %v1580_v35 = vadd.f32 %v1543_v25, %v1482_v10  ;;  %7790 = vmatmul.msk.bf16.gmra.mxu0 %vm460_vm6, %v2140_v18  ;;  %v9189_v18 = vld [vmem:[%s9573_s16 + $0x2e4] sm:$0xff]  ;;  %v2084_v25 = vrot.slane %v7744_v20, 5 }
 0x131   : > { %2657 = vmatmul.bf16.gmra.mxu3 %v9967_v47  ;;  %v10209_v41 = vadd.f32 %v1956_v17, %v1741_v31  ;;  %7862 = vmatmul.msk.bf16.gmra.mxu1 %vm460_vm6, %v9188_v27  ;;  %v2078_v47 = vsel %vm9569_vm2, %v2076_v37, %v2077_v38  ;;  %v2082_v37 = vsel %vm9569_vm2, %v7760_v30, %v2081_v13  ;;  %v7747_v13 = vld [vmem:[%s9573_s16 + $0x320] sm:$0x1] }
 0x132   : > { %v2128_v62 = vunpack.c.l.b16 %v2078_v47  ;;  %v2085_v38 = vsel %vm9569_vm2, %v2083_v15, %v2084_v25 }
 0x134   : > { %v1959_v42 = vpop.f32.mrf.mxu3  ;;  %v2141_v4 = vpack.c.b16 %v2128_v62, %v2127_v60 }
 0x135   : > { %v1447_v51 = vpop.f32.mrf.mxu0 }
 0x136   : > { %v1483_v53 = vadd.f32 %v1447_v51, %v9976_v7  ;;  %v1705_v56 = vpop.f32.mrf.mxu2  ;;  %v1545_v55 = vpop.f32.mrf.mxu1 }
 0x137   : > { %v1742_v57 = vadd.f32 %v1705_v56, %v1580_v35  ;;  %v9203_v35 = vld [vmem:[%s12334_s3 + $0x60] sm:$0xff]  ;;  %v2130_v56 = vunpack.c.l.b16 %v2085_v38 }
 0x138   : > { %v1581_v59 = vadd.f32 %v1545_v55, %v1483_v53  ;;  %2550 = vmatpush.bf16.msra.mxu2 %v9203_v35  ;;  %v2129_v53 = vunpack.c.l.b16 %v2082_v37 }
 0x139   : > { %v10220_v63 = vadd.f32 %v1959_v42, %v1742_v57  ;;  %v7746_v57 = vld [vmem:[%s9573_s16 + $0x31c] sm:$0xf] }
 0x13a   : > { %v2142_v60 = vpack.c.b16 %v2130_v56, %v2129_v53  ;;  %v2088_v1 = vrot.slane %v7746_v57, 5  ;;  %v9191_v56 = vld [vmem:[%s9573_s16 + $0x31c] sm:$0xff]  ;;  %v7748_v57 = vld [vmem:[%s9573_s16 + $0x334] sm:$0xe] }
 0x13c   : > { %v1961_v2 = vpop.f32.mrf.mxu3 }
 0x13d   : > { %v1450_v5 = vpop.f32.mrf.mxu0 }
 0x13e   : > { %v1484_v17 = vadd.f32 %v1450_v5, %v9999_v36  ;;  %v1707_v7 = vpop.f32.mrf.mxu2  ;;  %v1548_v10 = vpop.f32.mrf.mxu1  ;;  %v9213_v36 = vld [vmem:[%s12333_s2 + $0x150] sm:$0xff]  ;;  %v7745_v5 = vld [vmem:[%s9573_s16 + $0x318] sm:$0xe] }
 0x13f   : > { %v1743_v27 = vadd.f32 %v1707_v7, %v1581_v59  ;;  %3003 = vmatpush.bf16.msrb.mxu0 %v9213_v36  ;;  %v7761_v20 = vrot.slane %v7745_v5, 9  ;;  %v2090_v7 = vrot.slane %v2088_v1, 4 }
 0x140   : > { %v1582_v29 = vadd.f32 %v1548_v10, %v1484_v17  ;;  %7791 = vmatmul.msk.bf16.gmra.mxu0 %vm460_vm6, %v2141_v4  ;;  %v9190_v4 = vld [vmem:[%s9573_s16 + $0x300] sm:$0xff]  ;;  %v2091_v10 = vrot.slane %v7747_v13, 5 }
 0x141   : > { %2662 = vmatmul.bf16.gmra.mxu3 %v10003_v44  ;;  %v10229_v31 = vadd.f32 %v1961_v2, %v1743_v27  ;;  %7863 = vmatmul.msk.bf16.gmra.mxu1 %vm460_vm6, %v9189_v18  ;;  %v2089_v30 = vsel %vm9569_vm2, %v7761_v20, %v2088_v1 }
 0x142   : > { %v2131_v37 = vunpack.c.l.b16 %v2089_v30  ;;  %v7752_v30 = vld [vmem:[%s9573_s16 + $0x354] sm:$0xf] }
 0x144   : > { %v1964_v24 = vpop.f32.mrf.mxu3 }
 0x145   : > { %v1452_v44 = vpop.f32.mrf.mxu0 }
 0x146   : > { %v1485_v39 = vadd.f32 %v1452_v44, %v10012_v6  ;;  %v1710_v42 = vpop.f32.mrf.mxu2  ;;  %v1550_v51 = vpop.f32.mrf.mxu1 }
 0x147   : > { %v1744_v48 = vadd.f32 %v1710_v42, %v1582_v29  ;;  %v7749_v42 = vld [vmem:[%s9573_s16 + $0x338] sm:$0xf] }
 0x148   : > { %v1583_v47 = vadd.f32 %v1550_v51, %v1485_v39 }
 0x149   : > { %v10243_v55 = vadd.f32 %v1964_v24, %v1744_v48 }
 0x14c   : > { %v1966_v59 = vpop.f32.mrf.mxu3 }
 0x14d   : > { %v1455_v62 = vpop.f32.mrf.mxu0 }
 0x14e   : > { %v1486_v2 = vadd.f32 %v1455_v62, %v10029_v33  ;;  %v1712_v6 = vpop.f32.mrf.mxu2  ;;  %v1553_v17 = vpop.f32.mrf.mxu1  ;;  %v9202_v33 = vld [vmem:[%s12334_s3 + $0x58] sm:$0xff] }
 0x14f   : > { %v1745_v18 = vadd.f32 %v1712_v6, %v1583_v47  ;;  %2551 = vmatpush.bf16.msra.mxu2 %v9202_v33  ;;  %v2095_v47 = vrot.slane %v7749_v42, 5 }
 0x150   : > { %v1584_v19 = vadd.f32 %v1553_v17, %v1486_v2  ;;  %7792 = vmatmul.msk.bf16.gmra.mxu0 %vm460_vm6, %v2142_v60  ;;  %v9201_v17 = vld [vmem:[%s12334_s3 + $0x50] sm:$0xff] }
 0x151   : > { %2667 = vmatmul.bf16.gmra.mxu3 %v10033_v43  ;;  %v10252_v27 = vadd.f32 %v1966_v59, %v1745_v18  ;;  %7864 = vmatmul.msk.bf16.gmra.mxu1 %vm460_vm6, %v9190_v4  ;;  %v2092_v43 = vsel %vm9569_vm2, %v2090_v7, %v2091_v10  ;;  %v7750_v59 = vld [vmem:[%s9573_s16 + $0x33c] sm:$0x1]  ;;  %v7762_v4 = vrot.slane %v7748_v57, 9  ;;  %v2097_v5 = vrot.slane %v2095_v47, 4 }
 0x152   : > { %v2132_v38 = vunpack.c.l.b16 %v2092_v43  ;;  %v2098_v13 = vrot.slane %v7750_v59, 5 }
 0x153   : > { %2552 = vmatpush.bf16.msra.mxu2 %v9201_v17  ;;  %v2096_v18 = vsel %vm9569_vm2, %v7762_v4, %v2095_v47  ;;  %v7756_v17 = vld [vmem:[%s9573_s16 + $0x374] sm:$0x1] }
 0x154   : > { %v1969_v15 = vpop.f32.mrf.mxu3  ;;  %v2143_v51 = vpack.c.b16 %v2132_v38, %v2131_v37  ;;  %v2133_v33 = vunpack.c.l.b16 %v2096_v18 }
 0x155   : > { %v1457_v29 = vpop.f32.mrf.mxu0 }
 0x156   : > { %v1487_v25 = vadd.f32 %v1457_v29, %v10042_v8  ;;  %v1715_v36 = vpop.f32.mrf.mxu2  ;;  %v1555_v35 = vpop.f32.mrf.mxu1 }
 0x157   : > { %v1746_v24 = vadd.f32 %v1715_v36, %v1584_v19  ;;  %v2099_v19 = vsel %vm9569_vm2, %v2097_v5, %v2098_v13  ;;  %v9193_v13 = vld [vmem:[%s9573_s16 + $0x354] sm:$0xff] }
 0x158   : > { %v1585_v44 = vadd.f32 %v1555_v35, %v1487_v25  ;;  %v2134_v29 = vunpack.c.l.b16 %v2099_v19  ;;  %v2102_v25 = vrot.slane %v7752_v30, 5  ;;  %v9192_v35 = vld [vmem:[%s9573_s16 + $0x338] sm:$0xff]  ;;  %v9199_v30 = vld [vmem:[%s12334_s3 + $0x40] sm:$0xff] }
 0x159   : > { %v10263_v39 = vadd.f32 %v1969_v15, %v1746_v24  ;;  %v7751_v24 = vld [vmem:[%s9573_s16 + $0x350] sm:$0xe] }
 0x15a   : > { %v2144_v43 = vpack.c.b16 %v2134_v29, %v2133_v33  ;;  %v2104_v42 = vrot.slane %v2102_v25, 4 }
 0x15c   : > { %v1971_v2 = vpop.f32.mrf.mxu3 }
 0x15d   : > { %v1460_v48 = vpop.f32.mrf.mxu0 }
 0x15e   : > { %v1488_v53 = vadd.f32 %v1460_v48, %v10072_v46  ;;  %v1717_v60 = vpop.f32.mrf.mxu2  ;;  %v1558_v62 = vpop.f32.mrf.mxu1  ;;  %v9212_v46 = vld [vmem:[%s12333_s2 + $0x148] sm:$0xff] }
 0x15f   : > { %v1747_v8 = vadd.f32 %v1717_v60, %v1585_v44  ;;  %3004 = vmatpush.bf16.msrb.mxu0 %v9212_v46  ;;  %v7753_v44 = vld [vmem:[%s9573_s16 + $0x358] sm:$0x1]  ;;  %v7754_v46 = vld [vmem:[%s9573_s16 + $0x36c] sm:$0xe] }
 0x160   : > { %v10270_v1 = vadd.f32 %v1558_v62, %v1488_v53  ;;  %7793 = vmatmul.msk.bf16.gmra.mxu0 %vm460_vm6, %v2143_v51  ;;  %v2105_v51 = vrot.slane %v7753_v44, 5  ;;  %v7755_v62 = vld [vmem:[%s9573_s16 + $0x370] sm:$0xf] }
 0x161   : > { %2672 = vmatmul.bf16.gmra.mxu3 %v10078_v58  ;;  %v10274_v6 = vadd.f32 %v1971_v2, %v1747_v8  ;;  %7865 = vmatmul.msk.bf16.gmra.mxu1 %vm460_vm6, %v9191_v56  ;;  %v2109_v4 = vrot.slane %v7755_v62, 5 }
 0x163   : > { %v2111_v19 = vrot.slane %v2109_v4, 4 }
 0x165   : > { %v1462_v58 = vpop.f32.mrf.mxu0 }
 0x166   : > { %v1489_v20 = vadd.f32 %v1462_v58, %v10090_v22  ;;  %v1560_v7 = vpop.f32.mrf.mxu1  ;;  %v7763_v22 = vrot.slane %v7751_v24, 9 }
 0x168   : > { %v10288_v10 = vadd.f32 %v1560_v7, %v1489_v20  ;;  %v2103_v47 = vsel %vm9569_vm2, %v7763_v22, %v2102_v25  ;;  %v2112_v20 = vrot.slane %v7756_v17, 5  ;;  %v9211_v7 = vld [vmem:[%s12333_s2 + $0x140] sm:$0xff]  ;;  %v9194_v22 = vld [vmem:[%s9573_s16 + $0x370] sm:$0xff] }
 0x169   : > { %v2135_v59 = vunpack.c.l.b16 %v2103_v47  ;;  %3005 = vmatpush.bf16.msrb.mxu0 %v9211_v7  ;;  %v9222_v7 = vld [vmem:[%s12333_s2 + $0x198] sm:$0xff] }
 0x16a   : > { %v2113_v29 = vsel %vm9569_vm2, %v2111_v19, %v2112_v20  ;;  %v9218_v20 = vld [vmem:[%s12333_s2 + $0x178] sm:$0xff]  ;;  %3607 = vmatpush.bf16.msrb.mxu3 %v9222_v7 }
 0x16d   : > { %v1465_v15 = vpop.f32.mrf.mxu0 }
 0x16e   : > { %v1490_v36 = vadd.f32 %v1465_v15, %v10114_v61  ;;  %v1563_v37 = vpop.f32.mrf.mxu1  ;;  %v9200_v61 = vld [vmem:[%s12334_s3 + $0x48] sm:$0xff]  ;;  %v9210_v15 = vld [vmem:[%s12333_s2 + $0x138] sm:$0xff] }
 0x16f   : > { %2553 = vmatpush.bf16.msra.mxu2 %v9200_v61  ;;  %3123 = vmatpush.bf16.msrb.mxu1 %v9210_v15 }
 0x170   : > { %v10295_v38 = vadd.f32 %v1563_v37, %v1490_v36  ;;  %7794 = vmatmul.msk.bf16.gmra.mxu0 %vm460_vm6, %v2144_v43 }
 0x171   : > { %2677 = vmatmul.bf16.gmra.mxu3 %v10120_v9  ;;  %7866 = vmatmul.msk.bf16.gmra.mxu1 %vm460_vm6, %v9192_v35  ;;  %v2106_v9 = vsel %vm9569_vm2, %v2104_v42, %v2105_v51  ;;  %v2138_v35 = vunpack.c.l.b16 %v2113_v29  ;;  %v7992_v42 = vld [vmem:[%s9573_s16 + $0xb4] sm:$0xf]  ;;  %v7952_v51 = vld [vmem:[%s9573_s16 + $0xac] sm:$0xf] }
 0x172   : > { %v2136_v60 = vunpack.c.l.b16 %v2106_v9  ;;  %v2863_v47 = vrot.slane %v7992_v42, 5  ;;  %v2750_v9 = vrot.slane %v7952_v51, 7 }
 0x173   : > { %2554 = vmatpush.bf16.msra.mxu2 %v9199_v30 }
 0x174   : > { %v2145_v8 = vpack.c.b16 %v2136_v60, %v2135_v59  ;;  %v7993_v59 = vld [vmem:[%s9573_s16 + $0xb8] sm:$0x1]  ;;  %v2865_v62 = vrot.slane %v2863_v47, 4 }
 0x175   : > { %v1467_v48 = vpop.f32.mrf.mxu0 }
 0x176   : > { %v1491_v53 = vadd.f32 %v1467_v48, %v10132_v40  ;;  %v1565_v56 = vpop.f32.mrf.mxu1  ;;  %v7764_v40 = vrot.slane %v7754_v46, 9  ;;  %v9208_v48 = vld [vmem:[%s12333_s2 + $0x128] sm:$0xff] }
 0x177   : > { %3357 = vmatpush.bf16.msrb.mxu2 %v9218_v20 }
 0x178   : > { %v10308_v57 = vadd.f32 %v1565_v56, %v1491_v53  ;;  %v2110_v33 = vsel %vm9569_vm2, %v7764_v40, %v2109_v4  ;;  %v7991_v56 = vld [vmem:[%s9573_s16 + $0xb0] sm:$0xe]  ;;  %v9207_v4 = vld [vmem:[%s12333_s2 + $0x120] sm:$0xff] }
 0x179   : > { %v2137_v36 = vunpack.c.l.b16 %v2110_v33  ;;  %v8015_v60 = vrot.slane %v7991_v56, 9 }
 0x17b   : > { %v2146_v24 = vpack.c.b16 %v2138_v35, %v2137_v36  ;;  %v9226_v35 = vld [vmem:[%s12333_s2 + $0x1b8] sm:$0xff] }
 0x17c   : > { %3705 = vmatpush.bf16.msra.mxu0 %v9226_v35 }
 0x17d   : > { %v1470_v2 = vpop.f32.mrf.mxu0 }
 0x17e   : > { %v1492_v5 = vadd.f32 %v1470_v2, %v10149_v14  ;;  %v1568_v58 = vpop.f32.mrf.mxu1  ;;  %v7953_v2 = vld [vmem:[%s9573_s16 + $0xb0] sm:$0x7] }
 0x17f   : > { %v2753_v46 = vrot.slane %v7953_v2, 7 }
 0x180   : > { %v10315_v18 = vadd.f32 %v1568_v58, %v1492_v5  ;;  %7795 = vmatmul.msk.bf16.gmra.mxu0 %vm460_vm6, %v2145_v8  ;;  %v2866_v8 = vrot.slane %v7993_v59, 5  ;;  %v2864_v58 = vsel %vm9569_vm2, %v8015_v60, %v2863_v47  ;;  %v7996_v47 = vld [vmem:[%s9573_s16 + $0xd4] sm:$0x1]  ;;  %v7956_v60 = vld [vmem:[%s9573_s16 + $0xcc] sm:$0x7] }
 0x181   : > { %2682 = vmatmul.bf16.gmra.mxu3 %v10152_v23  ;;  %7867 = vmatmul.msk.bf16.gmra.mxu1 %vm460_vm6, %v9193_v13  ;;  %v2752_v13 = vrot.slane %v2750_v9, 4 }
 0x182   : > { %v2867_v40 = vsel %vm9569_vm2, %v2865_v62, %v2866_v8  ;;  %v10390_v62 = vpop.f32.mrf.mxu3 }
 0x183   : > { %v2754_v29 = vsel %vm10358_vm9, %v2752_v13, %v2753_v46  ;;  %v2927_v30 = vunpack.c.l.b16 %v2867_v40  ;;  %v10406_v40 = vld [vmem:[%s12335_s4 + $0x3] ss:$0 sm:$0xff] }
 0x184   : > { %v3048_v15 = vunpack.c.l.b16 %v2754_v29 }
 0x185   : > { %v1472_v14 = vpop.f32.mrf.mxu0 }
 0x186   : > { %v1493_v23 = vadd.f32 %v1472_v14, %v10159_v50  ;;  %v1570_v43 = vpop.f32.mrf.mxu1  ;;  %v9209_v50 = vld [vmem:[%s12333_s2 + $0x130] sm:$0xff] }
 0x187   : > { %3124 = vmatpush.bf16.msrb.mxu1 %v9209_v50 }
 0x188   : > { %v10334_v25 = vadd.f32 %v1570_v43, %v1493_v23 }
 0x18b   : > { %3125 = vmatpush.bf16.msrb.mxu1 %v9208_v48  ;;  %v7994_v48 = vld [vmem:[%s9573_s16 + $0xcc] sm:$0xe] }
 0x18c   : > { %v8016_v56 = vrot.slane %v7994_v48, 9 }
 0x18d   : > { %v1475_v44 = vpop.f32.mrf.mxu0 }
 0x18e   : > { %v1494_v37 = vadd.f32 %v1475_v44, %v10175_v16  ;;  %v1573_v61 = vpop.f32.mrf.mxu1  ;;  %v7951_v16 = vld [vmem:[%s9573_s16 + $0xa8] sm:$0x8] }
 0x18f   : > { %v7975_v5 = vrot.slane %v7951_v16, 11  ;;  %3126 = vmatpush.bf16.msrb.mxu1 %v9207_v4  ;;  %v2873_v16 = vrot.slane %v7996_v47, 5 }
 0x190   : > { %v10346_v53 = vadd.f32 %v1573_v61, %v1494_v37  ;;  %7796 = vmatmul.msk.bf16.gmra.mxu0 %vm460_vm6, %v2146_v24  ;;  %v7995_v37 = vld [vmem:[%s9573_s16 + $0xd0] sm:$0xf] }
 0x191   : > { %2687 = vmatmul.bf16.gmra.mxu3 %v10178_v26  ;;  %7868 = vmatmul.msk.bf16.gmra.mxu1 %vm460_vm6, %v9194_v22  ;;  %v2751_v33 = vsel %vm10358_vm9, %v7975_v5, %v2750_v9  ;;  %v7955_v22 = vld [vmem:[%s9573_s16 + $0xc8] sm:$0xf]  ;;  %v2870_v51 = vrot.slane %v7995_v37, 5  ;;  %v7954_v9 = vld [vmem:[%s9573_s16 + $0xc4] sm:$0x8]  ;;  %v2760_v5 = vrot.slane %v7956_v60, 7 }
 0x192   : > { %v3047_v43 = vunpack.c.l.b16 %v2751_v33  ;;  %v2757_v61 = vrot.slane %v7955_v22, 7  ;;  %v7976_v2 = vrot.slane %v7954_v9, 11  ;;  %v7957_v60 = vld [vmem:[%s9573_s16 + $0xe0] sm:$0x8]  ;;  %v9271_v26 = vld [vmem:[%s12333_s2 + $0x298] sm:$0xff] }
 0x193   : > { %v2872_v59 = vrot.slane %v2870_v51, 4  ;;  %v2871_v46 = vsel %vm9569_vm2, %v8016_v56, %v2870_v51  ;;  %v7998_v51 = vld [vmem:[%s9573_s16 + $0xec] sm:$0xf] }
 0x194   : > { %v3063_v44 = vpack.c.b16 %v3048_v15, %v3047_v43  ;;  %v2759_v4 = vrot.slane %v2757_v61, 4  ;;  %v2758_v7 = vsel %vm10358_vm9, %v7976_v2, %v2757_v61  ;;  %v2928_v29 = vunpack.c.l.b16 %v2871_v46  ;;  %v7958_v61 = vld [vmem:[%s9573_s16 + $0xe4] sm:$0xf] }
 0x195   : > { %v1477_v17 = vpop.f32.mrf.mxu0  ;;  %v3049_v15 = vunpack.c.l.b16 %v2758_v7  ;;  %v2877_v47 = vrot.slane %v7998_v51, 5  ;;  %v2764_v9 = vrot.slane %v7958_v61, 7  ;;  %v9225_v51 = vld [vmem:[%s12333_s2 + $0x1b0] sm:$0xff] }
 0x196   : > { %v1495_v19 = vadd.f32 %v1477_v17, %v10186_v52  ;;  %v1575_v14 = vpop.f32.mrf.mxu1  ;;  %v2926_v52 = vunpack.c.l.b16 %v2864_v58  ;;  %v2874_v17 = vsel %vm9569_vm2, %v2872_v59, %v2873_v16  ;;  %v7997_v59 = vld [vmem:[%s9573_s16 + $0xe8] sm:$0xe]  ;;  %v7999_v16 = vld [vmem:[%s9573_s16 + $0xf0] sm:$0x1]  ;;  %3706 = vmatpush.bf16.msra.mxu0 %v9225_v51 }
 0x197   : > { %v2879_v2 = vrot.slane %v2877_v47, 4  ;;  %v2766_v46 = vrot.slane %v2764_v9, 4 }
 0x198   : > { %v10377_v23 = vadd.f32 %v1575_v14, %v1495_v19  ;;  %v2942_v36 = vpack.c.b16 %v2927_v30, %v2926_v52  ;;  %v2761_v14 = vsel %vm10358_vm9, %v2759_v4, %v2760_v5  ;;  %v2929_v52 = vunpack.c.l.b16 %v2874_v17  ;;  %v7959_v5 = vld [vmem:[%s9573_s16 + $0xe8] sm:$0x7] }
 0x199   : > { %v2880_v4 = vrot.slane %v7999_v16, 5  ;;  %v2767_v17 = vrot.slane %v7959_v5, 7  ;;  %v7961_v16 = vld [vmem:[%s9573_s16 + $0x100] sm:$0xf] }
 0x19d   : > { %v2204_v50 = vpop.f32.mrf.mxu0 }
 0x19e   : > { %v2244_v24 = vadd.f32 %v2204_v50, %v10200_v11  ;;  %v2366_v42 = vpop.f32.mrf.mxu1  ;;  %v10395_v11 = vld [vmem:[%s12335_s4 + $0x2] ss:$0 sm:$0xff]  ;;  %v2943_v50 = vpack.c.b16 %v2929_v52, %v2928_v29  ;;  %v9217_v29 = vld [vmem:[%s12333_s2 + $0x170] sm:$0xff] }
 0x19f   : > { %v9221_v52 = vld [vmem:[%s12333_s2 + $0x190] sm:$0xff]  ;;  %3358 = vmatpush.bf16.msrb.mxu2 %v9217_v29 }
 0x1a0   : > { %8047 = vmatmul.msk.bf16.vlgmr.msrb.gmra.mxu0 %vm460_vm6, %v2942_v36  ;;  %v2406_v8 = vadd.f32 %v2366_v42, %v2244_v24  ;;  %v3050_v36 = vunpack.c.l.b16 %v2761_v14  ;;  %3608 = vmatpush.bf16.msrb.mxu3 %v9221_v52 }
 0x1a1   : > { %8071 = vmatmul.msk.bf16.vlgmr.msrb.gmra.mxu1 %vm460_vm6, %v3063_v44 }
 0x1a2   : > { %v2424_v58 = vmul.f32 %v10395_v11, %v2406_v8  ;;  %v3064_v42 = vpack.c.b16 %v3050_v36, %v3049_v15  ;;  %v8017_v8 = vrot.slane %v7997_v59, 9  ;;  %v2768_v15 = vsel %vm10358_vm9, %v2766_v46, %v2767_v17  ;;  %v8001_v59 = vld [vmem:[%s9573_s16 + $0x108] sm:$0xf]  ;;  %v7960_v46 = vld [vmem:[%s9573_s16 + $0xfc] sm:$0x8] }
 0x1a4   : > { %v2442_v30 = vadd.f32 %v10406_v40, %v2424_v58 }
 0x1a5   : > { %v2206_v13 = vpop.f32.mrf.mxu0 }
 0x1a6   : > { %v2245_v19 = vadd.f32 %v2206_v13, %v10209_v41  ;;  %v2368_v20 = vpop.f32.mrf.mxu1  ;;  %v10415_v41 = vpop.f32.mrf.mxu3  ;;  %v2458_v44 = vmax.f32 %v2442_v30, 0.0 }
 0x1a8   : > { %v2407_v33 = vadd.f32 %v2368_v20, %v2245_v19  ;;  %v2878_v19 = vsel %vm9569_vm2, %v8017_v8, %v2877_v47  ;;  %v2881_v20 = vsel %vm9569_vm2, %v2879_v2, %v2880_v4  ;;  %v2884_v8 = vrot.slane %v8001_v59, 5 }
 0x1a9   : > { %v2771_v2 = vrot.slane %v7961_v16, 7 }
 0x1aa   : > { %v2425_v43 = vmul.f32 %v10395_v11, %v2407_v33 }
 0x1ac   : > { %v2443_v35 = vadd.f32 %v10406_v40, %v2425_v43 }
 0x1ad   : > { %v2209_v24 = vpop.f32.mrf.mxu0 }
 0x1ae   : > { %v2459_v37 = vmax.f32 %v2443_v35, 0.0  ;;  %v2246_v22 = vadd.f32 %v2209_v24, %v10220_v63  ;;  %v2371_v48 = vpop.f32.mrf.mxu1  ;;  %v7977_v63 = vrot.slane %v7957_v60, 11  ;;  %v10431_v7 = vpop.f32.mrf.mxu3  ;;  %v2930_v35 = vunpack.c.l.b16 %v2878_v19  ;;  %v7962_v19 = vld [vmem:[%s9573_s16 + $0x104] sm:$0x7] }
 0x1af   : > { %v2774_v29 = vrot.slane %v7962_v19, 7  ;;  %v7963_v19 = vld [vmem:[%s9573_s16 + $0x118] sm:$0x8] }
 0x1b0   : > { %v2474_v56 = vpack.c.bf16 %v2459_v37, %v2458_v44  ;;  %8048 = vmatmul.msk.bf16.gmra.mxu0 %vm460_vm6, %v2943_v50  ;;  %v2408_v13 = vadd.f32 %v2371_v48, %v2246_v22  ;;  %v2765_v43 = vsel %vm10358_vm9, %v7977_v63, %v2764_v9  ;;  %v3052_v37 = vunpack.c.l.b16 %v2768_v15  ;;  %v8002_v63 = vld [vmem:[%s9573_s16 + $0x10c] sm:$0x1] }
 0x1b1   : > { %8072 = vmatmul.msk.bf16.gmra.mxu1 %vm460_vm6, %v3064_v42  ;;  %v3051_v44 = vunpack.c.l.b16 %v2765_v43 }
 0x1b2   : > { %2555 = vmatmul.bf16.vlgmr.msra.gmra.mxu2 %v2474_v56  ;;  %v2426_v14 = vmul.f32 %v10395_v11, %v2408_v13  ;;  %v8000_v13 = vld [vmem:[%s9573_s16 + $0x104] sm:$0xe] }
 0x1b3   : > { %v3065_v56 = vpack.c.b16 %v3052_v37, %v3051_v44  ;;  %v8018_v17 = vrot.slane %v8000_v13, 9 }
 0x1b4   : > { %v2444_v50 = vadd.f32 %v10406_v40, %v2426_v14  ;;  %v7978_v14 = vrot.slane %v7960_v46, 11 }
 0x1b5   : > { %v2211_v58 = vpop.f32.mrf.mxu0 }
 0x1b6   : > { %v2247_v33 = vadd.f32 %v2211_v58, %v10229_v31  ;;  %v2373_v30 = vpop.f32.mrf.mxu1  ;;  %v2931_v31 = vunpack.c.l.b16 %v2881_v20  ;;  %v2460_v48 = vmax.f32 %v2444_v50, 0.0  ;;  %v10454_v4 = vpop.f32.mrf.mxu3  ;;  %v2886_v58 = vrot.slane %v2884_v8, 4 }
 0x1b7   : > { %v2772_v50 = vsel %vm10358_vm9, %v7978_v14, %v2771_v2 }
 0x1b8   : > { %v2409_v36 = vadd.f32 %v2373_v30, %v2247_v33  ;;  %v2944_v42 = vpack.c.b16 %v2931_v31, %v2930_v35  ;;  %v2773_v33 = vrot.slane %v2771_v2, 4  ;;  %v2885_v30 = vsel %vm9569_vm2, %v8018_v17, %v2884_v8  ;;  %v1720_v35 = vpop.f32.mrf.mxu2  ;;  %v8004_v2 = vld [vmem:[%s9573_s16 + $0x124] sm:$0xf] }
 0x1b9   : > { %v2932_v37 = vunpack.c.l.b16 %v2885_v30  ;;  %v7979_v30 = vrot.slane %v7963_v19, 11 }
 0x1ba   : > { %v2427_v24 = vmul.f32 %v10395_v11, %v2409_v36 }
 0x1bc   : > { %v2445_v22 = vadd.f32 %v10406_v40, %v2427_v24  ;;  %v2775_v24 = vsel %vm10358_vm9, %v2773_v33, %v2774_v29 }
 0x1bd   : > { %v2214_v61 = vpop.f32.mrf.mxu0 }
 0x1be   : > { %v2248_v47 = vadd.f32 %v2214_v61, %v10243_v55  ;;  %v2461_v9 = vmax.f32 %v2445_v22, 0.0  ;;  %v2376_v60 = vpop.f32.mrf.mxu1  ;;  %v2887_v55 = vrot.slane %v8002_v63, 5  ;;  %v2891_v63 = vrot.slane %v8004_v2, 5 }
 0x1c0   : > { %v2475_v5 = vpack.c.bf16 %v2461_v9, %v2460_v48  ;;  %8049 = vmatmul.msk.bf16.gmra.mxu0 %vm460_vm6, %v2944_v42  ;;  %v2410_v20 = vadd.f32 %v2376_v60, %v2248_v47  ;;  %v2888_v43 = vsel %vm9569_vm2, %v2886_v58, %v2887_v55  ;;  %v10472_v42 = vpop.f32.mrf.mxu3  ;;  %v3054_v48 = vunpack.c.l.b16 %v2775_v24  ;;  %v8003_v58 = vld [vmem:[%s9573_s16 + $0x120] sm:$0xe]  ;;  %v8005_v55 = vld [vmem:[%s9573_s16 + $0x128] sm:$0x1] }
 0x1c1   : > { %8073 = vmatmul.msk.bf16.gmra.mxu1 %vm460_vm6, %v3065_v56  ;;  %v2933_v22 = vunpack.c.l.b16 %v2888_v43  ;;  %v8019_v14 = vrot.slane %v8003_v58, 9  ;;  %v2893_v33 = vrot.slane %v2891_v63, 4  ;;  %v2894_v29 = vrot.slane %v8005_v55, 5 }
 0x1c2   : > { %2560 = vmatmul.bf16.gmra.mxu2 %v2475_v5  ;;  %v2428_v15 = vmul.f32 %v10395_v11, %v2410_v20  ;;  %v7964_v5 = vld [vmem:[%s9573_s16 + $0x11c] sm:$0xf]  ;;  %v1722_v20 = vpop.f32.mrf.mxu2 }
 0x1c3   : > { %v2945_v9 = vpack.c.b16 %v2933_v22, %v2932_v37  ;;  %v2778_v46 = vrot.slane %v7964_v5, 7  ;;  %v2895_v24 = vsel %vm9569_vm2, %v2893_v33, %v2894_v29  ;;  %v9216_v22 = vld [vmem:[%s12333_s2 + $0x168] sm:$0xff] }
 0x1c4   : > { %v2446_v51 = vadd.f32 %v10406_v40, %v2428_v15  ;;  %3359 = vmatpush.bf16.msrb.mxu2 %v9216_v22 }
 0x1c5   : > { %v2216_v52 = vpop.f32.mrf.mxu0  ;;  %v2780_v43 = vrot.slane %v2778_v46, 4 }
 0x1c6   : > { %v2249_v36 = vadd.f32 %v2216_v52, %v10252_v27  ;;  %v2378_v31 = vpop.f32.mrf.mxu1  ;;  %v3053_v27 = vunpack.c.l.b16 %v2772_v50  ;;  %v2462_v59 = vmax.f32 %v2446_v51, 0.0  ;;  %v7965_v52 = vld [vmem:[%s9573_s16 + $0x120] sm:$0x7]  ;;  %v2892_v50 = vsel %vm9569_vm2, %v8019_v14, %v2891_v63  ;;  %v9220_v51 = vld [vmem:[%s12333_s2 + $0x188] sm:$0xff]  ;;  %v7967_v14 = vld [vmem:[%s9573_s16 + $0x138] sm:$0xf] }
 0x1c7   : > { %v2781_v15 = vrot.slane %v7965_v52, 7  ;;  %3609 = vmatpush.bf16.msrb.mxu3 %v9220_v51  ;;  %v2785_v52 = vrot.slane %v7967_v14, 7 }
 0x1c8   : > { %v2411_v44 = vadd.f32 %v2378_v31, %v2249_v36  ;;  %v3066_v8 = vpack.c.b16 %v3054_v48, %v3053_v27  ;;  %v10486_v36 = vpop.f32.mrf.mxu3  ;;  %v2779_v27 = vsel %vm10358_vm9, %v7979_v30, %v2778_v46 }
 0x1c9   : > { %v2782_v48 = vsel %vm10358_vm9, %v2780_v43, %v2781_v15  ;;  %v8006_v43 = vld [vmem:[%s9573_s16 + $0x13c] sm:$0xe]  ;;  %v8008_v15 = vld [vmem:[%s9573_s16 + $0x144] sm:$0x1] }
 0x1ca   : > { %v2429_v61 = vmul.f32 %v10395_v11, %v2411_v44  ;;  %v1725_v2 = vpop.f32.mrf.mxu2 }
 0x1cc   : > { %v2447_v47 = vadd.f32 %v10406_v40, %v2429_v61 }
 0x1cd   : > { %v2219_v56 = vpop.f32.mrf.mxu0 }
 0x1ce   : > { %v2250_v16 = vadd.f32 %v2219_v56, %v10263_v39  ;;  %v2463_v60 = vmax.f32 %v2447_v47, 0.0  ;;  %v2381_v13 = vpop.f32.mrf.mxu1  ;;  %v1748_v47 = vadd.f32 %v1720_v35, %v10270_v1  ;;  %v2935_v56 = vunpack.c.l.b16 %v2895_v24  ;;  %v9224_v1 = vld [vmem:[%s12333_s2 + $0x1a8] sm:$0xff] }
 0x1cf   : > { %3707 = vmatpush.bf16.msra.mxu0 %v9224_v1 }
 0x1d0   : > { %v2476_v17 = vpack.c.bf16 %v2463_v60, %v2462_v59  ;;  %8050 = vmatmul.msk.bf16.gmra.mxu0 %vm460_vm6, %v2945_v9  ;;  %v2412_v39 = vadd.f32 %v2381_v13, %v2250_v16  ;;  %v3055_v60 = vunpack.c.l.b16 %v2779_v27  ;;  %v2002_v5 = vadd.f32 %v10390_v62, %v1748_v47  ;;  %v10512_v46 = vpop.f32.mrf.mxu3  ;;  %v8007_v62 = vld [vmem:[%s9573_s16 + $0x140] sm:$0xf] }
 0x1d1   : > { %8074 = vmatmul.msk.bf16.gmra.mxu1 %vm460_vm6, %v3066_v8  ;;  %v3056_v8 = vunpack.c.l.b16 %v2782_v48  ;;  %v2898_v29 = vrot.slane %v8007_v62, 5 }
 0x1d2   : > { %2565 = vmatmul.bf16.gmra.mxu2 %v2476_v17  ;;  %v2430_v44 = vmul.f32 %v10395_v11, %v2412_v39  ;;  %v1749_v39 = vadd.f32 %v1722_v20, %v10288_v10  ;;  %v1727_v10 = vpop.f32.mrf.mxu2 }
 0x1d3   : > { %v3067_v19 = vpack.c.b16 %v3056_v8, %v3055_v60  ;;  %v2900_v24 = vrot.slane %v2898_v29, 4 }
 0x1d4   : > { %v2448_v59 = vadd.f32 %v10406_v40, %v2430_v44  ;;  %v2901_v44 = vrot.slane %v8008_v15, 5  ;;  %v2003_v48 = vadd.f32 %v10415_v41, %v1749_v39  ;;  %v1750_v41 = vadd.f32 %v1725_v2, %v10295_v38  ;;  %v7970_v39 = vld [vmem:[%s9573_s16 + $0x154] sm:$0xf] }
 0x1d5   : > { %v2221_v31 = vpop.f32.mrf.mxu0 }
 0x1d6   : > { %v2251_v37 = vadd.f32 %v2221_v31, %v10274_v6  ;;  %v2383_v61 = vpop.f32.mrf.mxu1  ;;  %v2934_v6 = vunpack.c.l.b16 %v2892_v50  ;;  %v2464_v17 = vmax.f32 %v2448_v59, 0.0  ;;  %v7966_v31 = vld [vmem:[%s9573_s16 + $0x134] sm:$0x8]  ;;  %v8020_v50 = vrot.slane %v8006_v43, 9 }
 0x1d7   : > { %v7980_v51 = vrot.slane %v7966_v31, 11  ;;  %v2792_v31 = vrot.slane %v7970_v39, 7 }
 0x1d8   : > { %v2413_v9 = vadd.f32 %v2383_v61, %v2251_v37  ;;  %v2946_v63 = vpack.c.b16 %v2935_v56, %v2934_v6  ;;  %v7968_v37 = vld [vmem:[%s9573_s16 + $0x13c] sm:$0x7]  ;;  %v2787_v61 = vrot.slane %v2785_v52, 4  ;;  %v2899_v47 = vsel %vm9569_vm2, %v8020_v50, %v2898_v29  ;;  %v10534_v8 = vpop.f32.mrf.mxu3 }
 0x1d9   : > { %v2788_v27 = vrot.slane %v7968_v37, 7  ;;  %v7969_v37 = vld [vmem:[%s9573_s16 + $0x150] sm:$0x8] }
 0x1da   : > { %v2431_v16 = vmul.f32 %v10395_v11, %v2413_v9  ;;  %v2902_v9 = vsel %vm9569_vm2, %v2900_v24, %v2901_v44  ;;  %v8009_v24 = vld [vmem:[%s9573_s16 + $0x158] sm:$0xe]  ;;  %v8011_v44 = vld [vmem:[%s9573_s16 + $0x160] sm:$0x1] }
 0x1db   : > { %v2789_v60 = vsel %vm10358_vm9, %v2787_v61, %v2788_v27  ;;  %v2908_v61 = vrot.slane %v8011_v44, 5  ;;  %v7971_v27 = vld [vmem:[%s9573_s16 + $0x158] sm:$0x7] }
 0x1dc   : > { %v2449_v13 = vadd.f32 %v10406_v40, %v2431_v16  ;;  %v2786_v16 = vsel %vm10358_vm9, %v7980_v51, %v2785_v52  ;;  %v8010_v52 = vld [vmem:[%s9573_s16 + $0x15c] sm:$0xf] }
 0x1dd   : > { %v2224_v35 = vpop.f32.mrf.mxu0  ;;  %v2905_v15 = vrot.slane %v8010_v52, 5  ;;  %v9223_v52 = vld [vmem:[%s12333_s2 + $0x1a0] sm:$0xff] }
 0x1de   : > { %v2252_v58 = vadd.f32 %v2224_v35, %v2002_v5  ;;  %v2465_v55 = vmax.f32 %v2449_v13, 0.0  ;;  %v2386_v33 = vpop.f32.mrf.mxu1  ;;  %v2936_v13 = vunpack.c.l.b16 %v2899_v47  ;;  %v7981_v47 = vrot.slane %v7969_v37, 11  ;;  %3708 = vmatpush.bf16.msra.mxu0 %v9223_v52 }
 0x1df   : > { %v2907_v51 = vrot.slane %v2905_v15, 4 }
 0x1e0   : > { %v2477_v30 = vpack.c.bf16 %v2465_v55, %v2464_v17  ;;  %8051 = vmatmul.msk.bf16.gmra.mxu0 %vm460_vm6, %v2946_v63  ;;  %v2414_v22 = vadd.f32 %v2386_v33, %v2252_v58  ;;  %v2937_v63 = vunpack.c.l.b16 %v2902_v9  ;;  %v3057_v17 = vunpack.c.l.b16 %v2786_v16 }
 0x1e1   : > { %8075 = vmatmul.msk.bf16.gmra.mxu1 %vm460_vm6, %v3067_v19  ;;  %v3058_v58 = vunpack.c.l.b16 %v2789_v60  ;;  %v2004_v55 = vadd.f32 %v10431_v7, %v1750_v41  ;;  %v1751_v7 = vadd.f32 %v1727_v10, %v10308_v57  ;;  %v2794_v9 = vrot.slane %v2792_v31, 4  ;;  %v9215_v41 = vld [vmem:[%s12333_s2 + $0x160] sm:$0xff] }
 0x1e2   : > { %2570 = vmatmul.bf16.gmra.mxu2 %v2477_v30  ;;  %v2432_v6 = vmul.f32 %v10395_v11, %v2414_v22  ;;  %v2947_v62 = vpack.c.b16 %v2937_v63, %v2936_v13  ;;  %v1730_v30 = vpop.f32.mrf.mxu2  ;;  %v8021_v22 = vrot.slane %v8009_v24, 9 }
 0x1e3   : > { %v3068_v29 = vpack.c.b16 %v3058_v58, %v3057_v17  ;;  %v2005_v57 = vadd.f32 %v10454_v4, %v1751_v7  ;;  %v2793_v4 = vsel %vm10358_vm9, %v7981_v47, %v2792_v31  ;;  %3360 = vmatpush.bf16.msrb.mxu2 %v9215_v41  ;;  %v7973_v7 = vld [vmem:[%s9573_s16 + $0x170] sm:$0xf]  ;;  %v8145_v41 = vld [vmem:[%s9573_s16 + $0x200] sm:$0x7] }
 0x1e4   : > { %v2450_v1 = vadd.f32 %v10406_v40, %v2432_v6  ;;  %v2795_v6 = vrot.slane %v7971_v27, 7  ;;  %v2799_v44 = vrot.slane %v7973_v7, 7  ;;  %v8014_v27 = vld [vmem:[%s9573_s16 + $0x17c] sm:$0x1] }
 0x1e5   : > { %v2226_v20 = vpop.f32.mrf.mxu0 }
 0x1e6   : > { %v2253_v56 = vadd.f32 %v2226_v20, %v2003_v48  ;;  %v2388_v59 = vpop.f32.mrf.mxu1  ;;  %v2466_v2 = vmax.f32 %v2450_v1, 0.0  ;;  %v10548_v48 = vpop.f32.mrf.mxu3  ;;  %v2796_v63 = vsel %vm10358_vm9, %v2794_v9, %v2795_v6  ;;  %v1752_v1 = vadd.f32 %v1730_v30, %v10315_v18 }
 0x1e7   : > { %v2915_v6 = vrot.slane %v8014_v27, 5 }
 0x1e8   : > { %v2415_v5 = vadd.f32 %v2388_v59, %v2253_v56  ;;  %v2906_v56 = vsel %vm9569_vm2, %v8021_v22, %v2905_v15  ;;  %v2909_v59 = vsel %vm9569_vm2, %v2907_v51, %v2908_v61  ;;  %v8012_v61 = vld [vmem:[%s9573_s16 + $0x174] sm:$0xe] }
 0x1e9   : > { %v2938_v17 = vunpack.c.l.b16 %v2906_v56  ;;  %v2939_v58 = vunpack.c.l.b16 %v2909_v59  ;;  %v8022_v47 = vrot.slane %v8012_v61, 9  ;;  %v8143_v56 = vld [vmem:[%s9573_s16 + $0x1f8] sm:$0x8]  ;;  %v8144_v59 = vld [vmem:[%s9573_s16 + $0x1fc] sm:$0xf] }
 0x1ea   : > { %v2433_v35 = vmul.f32 %v10395_v11, %v2415_v5  ;;  %v9219_v5 = vld [vmem:[%s12333_s2 + $0x180] sm:$0xff] }
 0x1eb   : > { %3610 = vmatpush.bf16.msrb.mxu3 %v9219_v5  ;;  %v8167_v5 = vrot.slane %v8143_v56, 11 }
 0x1ec   : > { %v2451_v19 = vadd.f32 %v10406_v40, %v2433_v35 }
 0x1ed   : > { %v2229_v38 = vpop.f32.mrf.mxu0 }
 0x1ee   : > { %v2254_v14 = vadd.f32 %v2229_v38, %v2004_v55  ;;  %v2467_v33 = vmax.f32 %v2451_v19, 0.0  ;;  %v2391_v43 = vpop.f32.mrf.mxu1  ;;  %v1732_v55 = vpop.f32.mrf.mxu2  ;;  %v3059_v38 = vunpack.c.l.b16 %v2793_v4 }
 0x1ef   : > { %v1753_v37 = vadd.f32 %v1732_v55, %v10334_v25  ;;  %v2801_v25 = vrot.slane %v2799_v44, 4  ;;  %v3471_v55 = vrot.slane %v8145_v41, 7 }
 0x1f0   : > { %v2478_v50 = vpack.c.bf16 %v2467_v33, %v2466_v2  ;;  %8052 = vmatmul.msk.bf16.gmra.mxu0 %vm460_vm6, %v2947_v62  ;;  %v2416_v20 = vadd.f32 %v2391_v43, %v2254_v14  ;;  %v3060_v2 = vunpack.c.l.b16 %v2796_v63  ;;  %v2006_v14 = vadd.f32 %v10472_v42, %v1752_v1  ;;  %v10571_v33 = vpop.f32.mrf.mxu3  ;;  %v8013_v42 = vld [vmem:[%s9573_s16 + $0x178] sm:$0xf] }
 0x1f1   : > { %8076 = vmatmul.msk.bf16.gmra.mxu1 %vm460_vm6, %v3068_v29  ;;  %v2948_v29 = vpack.c.b16 %v2939_v58, %v2938_v17  ;;  %v2912_v24 = vrot.slane %v8013_v42, 5  ;;  %v2007_v4 = vadd.f32 %v10486_v36, %v1753_v37  ;;  %v3468_v58 = vrot.slane %v8144_v59, 7  ;;  %v9234_v59 = vld [vmem:[%s12333_s2 + $0x1f8] sm:$0xff] }
 0x1f2   : > { %2575 = vmatmul.bf16.gmra.mxu2 %v2478_v50  ;;  %v2434_v16 = vmul.f32 %v10395_v11, %v2416_v20  ;;  %v3069_v31 = vpack.c.b16 %v3060_v2, %v3059_v38  ;;  %v7972_v20 = vld [vmem:[%s9573_s16 + $0x16c] sm:$0x8] }
 0x1f3   : > { %v2914_v9 = vrot.slane %v2912_v24, 4  ;;  %4209 = vmatpush.bf16.msra.mxu2 %v9234_v59 }
 0x1f4   : > { %v2452_v19 = vadd.f32 %v10406_v40, %v2434_v16 }
 0x1f5   : > { %v2231_v10 = vpop.f32.mrf.mxu0  ;;  %v2916_v17 = vsel %vm9569_vm2, %v2914_v9, %v2915_v6 }
 0x1f6   : > { %v2255_v60 = vadd.f32 %v2231_v10, %v2005_v57  ;;  %v2393_v13 = vpop.f32.mrf.mxu1  ;;  %v2468_v30 = vmax.f32 %v2452_v19, 0.0  ;;  %v7974_v57 = vld [vmem:[%s9573_s16 + $0x174] sm:$0x7]  ;;  %v7982_v10 = vrot.slane %v7972_v20, 11  ;;  %v1735_v16 = vpop.f32.mrf.mxu2 }
 0x1f7   : > { %v1754_v19 = vadd.f32 %v1735_v16, %v10346_v53  ;;  %v9238_v16 = vld [vmem:[%s12333_s2 + $0x218] sm:$0xff] }
 0x1f8   : > { %v2417_v35 = vadd.f32 %v2393_v13, %v2255_v60  ;;  %v2802_v60 = vrot.slane %v7974_v57, 7  ;;  %v9230_v13 = vld [vmem:[%s12333_s2 + $0x1d8] sm:$0xff]  ;;  %v2800_v36 = vsel %vm10358_vm9, %v7982_v10, %v2799_v44  ;;  %4459 = vmatpush.bf16.msra.mxu3 %v9238_v16 }
 0x1f9   : > { %3955 = vmatpush.bf16.msra.mxu1 %v9230_v13  ;;  %v3061_v42 = vunpack.c.l.b16 %v2800_v36  ;;  %v9228_v13 = vld [vmem:[%s12333_s2 + $0x1c8] sm:$0xff] }
 0x1fa   : > { %v2435_v62 = vmul.f32 %v10395_v11, %v2417_v35  ;;  %v2913_v35 = vsel %vm9569_vm2, %v8022_v47, %v2912_v24  ;;  %v2008_v24 = vadd.f32 %v10512_v46, %v1754_v19 }
 0x1fc   : > { %v2453_v18 = vadd.f32 %v10406_v40, %v2435_v62  ;;  %v10599_v62 = vpop.f32.mrf.mxu3 }
 0x1fd   : > { %v2234_v39 = vpop.f32.mrf.mxu0 }
 0x1fe   : > { %v2256_v43 = vadd.f32 %v2234_v39, %v2006_v14  ;;  %v2469_v15 = vmax.f32 %v2453_v18, 0.0  ;;  %v2396_v50 = vpop.f32.mrf.mxu1  ;;  %v2803_v14 = vsel %vm10358_vm9, %v2801_v25, %v2802_v60  ;;  %v3469_v18 = vsel %vm10358_vm9, %v8167_v5, %v3468_v58 }
 0x1ff   : > { %v2940_v39 = vunpack.c.l.b16 %v2913_v35  ;;  %v3062_v7 = vunpack.c.l.b16 %v2803_v14  ;;  %v8148_v35 = vld [vmem:[%s9573_s16 + $0x21c] sm:$0x7] }
 0x200   : > { %v2418_v22 = vadd.f32 %v2396_v50, %v2256_v43  ;;  %v2479_v51 = vpack.c.bf16 %v2469_v15, %v2468_v30  ;;  %8053 = vmatmul.msk.bf16.gmra.mxu0 %vm460_vm6, %v2948_v29  ;;  %v3470_v29 = vrot.slane %v3468_v58, 4  ;;  %v2941_v30 = vunpack.c.l.b16 %v2916_v17 }
 0x201   : > { %8077 = vmatmul.msk.bf16.gmra.mxu1 %vm460_vm6, %v3069_v31  ;;  %v3531_v43 = vunpack.c.l.b16 %v3469_v18  ;;  %v3070_v9 = vpack.c.b16 %v3062_v7, %v3061_v42 }
 0x202   : > { %2580 = vmatmul.bf16.gmra.mxu2 %v2479_v51  ;;  %v2436_v63 = vmul.f32 %v10395_v11, %v2418_v22  ;;  %v3472_v15 = vsel %vm10358_vm9, %v3470_v29, %v3471_v55  ;;  %v2949_v37 = vpack.c.b16 %v2941_v30, %v2940_v39  ;;  %v1737_v51 = vpop.f32.mrf.mxu2  ;;  %v9227_v55 = vld [vmem:[%s12333_s2 + $0x1c0] sm:$0xff] }
 0x203   : > { %v3532_v50 = vunpack.c.l.b16 %v3472_v15  ;;  %v1755_v57 = vadd.f32 %v1737_v51, %v10377_v23  ;;  %v9229_v23 = vld [vmem:[%s12333_s2 + $0x1d0] sm:$0xff]  ;;  %v8239_v30 = vld [vmem:[%s9573_s16 + $0x204] sm:$0x8] }
 0x204   : > { %v2454_v53 = vadd.f32 %v10406_v40, %v2436_v63  ;;  %v10615_v10 = vpop.f32.mrf.mxu3  ;;  %3956 = vmatpush.bf16.msra.mxu1 %v9229_v23  ;;  %v8263_v15 = vrot.slane %v8239_v30, 11  ;;  %v8244_v30 = vld [vmem:[%s9573_s16 + $0x228] sm:$0x7] }
 0x205   : > { %v2236_v1 = vpop.f32.mrf.mxu0  ;;  %v3547_v22 = vpack.c.b16 %v3532_v50, %v3531_v43  ;;  %v2009_v25 = vadd.f32 %v10534_v8, %v1755_v57  ;;  %v9242_v8 = vld [vmem:[%s12333_s2 + $0x238] sm:$0xff]  ;;  %v8241_v43 = vld [vmem:[%s9573_s16 + $0x20c] sm:$0x7] }
 0x206   : > { %v2257_v38 = vadd.f32 %v2236_v1, %v2007_v4  ;;  %v2398_v2 = vpop.f32.mrf.mxu1  ;;  %v2470_v27 = vmax.f32 %v2454_v53, 0.0  ;;  %v8146_v4 = vld [vmem:[%s9573_s16 + $0x214] sm:$0x8]  ;;  %v8147_v1 = vld [vmem:[%s9573_s16 + $0x218] sm:$0xf]  ;;  %4709 = vmatpush.bf16.msrb.mxu0 %v9242_v8  ;;  %v3819_v42 = vrot.slane %v8241_v43, 7 }
 0x207   : > { %8199 = vmatmul.msk.bf16.vlgmr.msrb.gmra.mxu3 %vm460_vm6, %v3547_v22  ;;  %v8168_v17 = vrot.slane %v8146_v4, 11  ;;  %v3475_v19 = vrot.slane %v8147_v1, 7  ;;  %v8080_v50 = vld [vmem:[%s9573_s16 + $0xb8] sm:$0xf]  ;;  %v8150_v4 = vld [vmem:[%s9573_s16 + $0x234] sm:$0xf] }
 0x208   : > { %v2419_v52 = vadd.f32 %v2398_v2, %v2257_v38  ;;  %3957 = vmatpush.bf16.msra.mxu1 %v9228_v13  ;;  %v3478_v38 = vrot.slane %v8148_v35, 7  ;;  %v8240_v2 = vld [vmem:[%s9573_s16 + $0x208] sm:$0xf]  ;;  %v8149_v13 = vld [vmem:[%s9573_s16 + $0x230] sm:$0x8]  ;;  %v3482_v8 = vrot.slane %v8150_v4, 7 }
 0x209   : > { %v3816_v36 = vrot.slane %v8240_v2, 7  ;;  %v3477_v39 = vrot.slane %v3475_v19, 4  ;;  %v8153_v4 = vld [vmem:[%s9573_s16 + $0x250] sm:$0xf] }
 0x20a   : > { %v2437_v31 = vmul.f32 %v10395_v11, %v2419_v52  ;;  %v3476_v52 = vsel %vm10358_vm9, %v8168_v17, %v3475_v19  ;;  %v8169_v17 = vrot.slane %v8149_v13, 11  ;;  %v8243_v19 = vld [vmem:[%s9573_s16 + $0x224] sm:$0xf]  ;;  %v3484_v2 = vrot.slane %v3482_v8, 4  ;;  %v8152_v13 = vld [vmem:[%s9573_s16 + $0x24c] sm:$0x8] }
 0x20b   : > { %v3533_v53 = vunpack.c.l.b16 %v3476_v52 }
 0x20c   : > { %v2455_v44 = vadd.f32 %v10406_v40, %v2437_v31  ;;  %v10643_v14 = vpop.f32.mrf.mxu3  ;;  %v3818_v31 = vrot.slane %v3816_v36, 4  ;;  %3958 = vmatpush.bf16.msra.mxu1 %v9227_v55 }
 0x20d   : > { %v2239_v61 = vpop.f32.mrf.mxu0  ;;  %12352 = vst [vmem:[#allocation6_spill] sm:$0xff] %v10643_v14  ;;  %v8378_v14 = vld [vmem:[%s9573_s16 + $0x3a4] sm:$0xe] }
 0x20e   : > { %v2258_v20 = vadd.f32 %v2239_v61, %v2008_v24  ;;  %v2471_v47 = vmax.f32 %v2455_v44, 0.0  ;;  %v2401_v6 = vpop.f32.mrf.mxu1  ;;  %v3479_v24 = vsel %vm10358_vm9, %v3477_v39, %v3478_v38  ;;  %v3820_v22 = vsel %vm10358_vm9, %v3818_v31, %v3819_v42  ;;  %v8242_v39 = vld [vmem:[%s9573_s16 + $0x220] sm:$0x8]  ;;  %v8083_v42 = vld [vmem:[%s9573_s16 + $0xd4] sm:$0xf] }
 0x20f   : > { %v3534_v44 = vunpack.c.l.b16 %v3479_v24  ;;  %v3483_v38 = vsel %vm10358_vm9, %v8169_v17, %v3482_v8  ;;  %v3826_v31 = vrot.slane %v8244_v30, 7  ;;  %v8170_v17 = vrot.slane %v8152_v13, 11 }
 0x210   : > { %v2480_v56 = vpack.c.bf16 %v2471_v47, %v2470_v27  ;;  %8054 = vmatmul.msk.bf16.gmra.mxu0 %vm460_vm6, %v2949_v37  ;;  %v2420_v46 = vadd.f32 %v2401_v6, %v2258_v20  ;;  %v3817_v37 = vsel %vm10358_vm9, %v8263_v15, %v3816_v36  ;;  %v3880_v20 = vunpack.c.l.b16 %v3820_v22 }
 0x211   : > { %8078 = vmatmul.msk.bf16.gmra.mxu1 %vm460_vm6, %v3070_v9  ;;  %v3879_v27 = vunpack.c.l.b16 %v3817_v37  ;;  %v3218_v9 = vrot.slane %v8080_v50, 7  ;;  %v3548_v6 = vpack.c.b16 %v3534_v44, %v3533_v53  ;;  %v3823_v36 = vrot.slane %v8243_v19, 7  ;;  %v9241_v19 = vld [vmem:[%s12333_s2 + $0x230] sm:$0xff] }
 0x212   : > { %2585 = vmatmul.bf16.gmra.mxu2 %v2480_v56  ;;  %v2438_v41 = vmul.f32 %v10395_v11, %v2420_v46  ;;  %v8081_v46 = vld [vmem:[%s9573_s16 + $0xbc] sm:$0x7]  ;;  %v3535_v52 = vunpack.c.l.b16 %v3483_v38  ;;  %v8264_v53 = vrot.slane %v8242_v39, 11  ;;  %v3489_v8 = vrot.slane %v8153_v4, 7  ;;  %4710 = vmatpush.bf16.msrb.mxu0 %v9241_v19 }
 0x213   : > { %v3895_v59 = vpack.c.b16 %v3880_v20, %v3879_v27  ;;  %v3220_v16 = vrot.slane %v3218_v9, 4  ;;  %v3825_v15 = vrot.slane %v3823_v36, 4  ;;  %v8082_v20 = vld [vmem:[%s9573_s16 + $0xd0] sm:$0x8] }
 0x214   : > { %v2456_v18 = vadd.f32 %v10406_v40, %v2438_v41  ;;  %v3824_v24 = vsel %vm10358_vm9, %v8264_v53, %v3823_v36  ;;  %v8246_v36 = vld [vmem:[%s9573_s16 + $0x240] sm:$0xf]  ;;  %v8245_v53 = vld [vmem:[%s9573_s16 + $0x23c] sm:$0x8] }
 0x215   : > { %v2241_v60 = vpop.f32.mrf.mxu0 }
 0x216   : > { %v2259_v5 = vadd.f32 %v2241_v60, %v2009_v25  ;;  %v2403_v63 = vpop.f32.mrf.mxu1  ;;  %v2472_v51 = vmax.f32 %v2456_v18, 0.0  ;;  %v3221_v25 = vrot.slane %v8081_v46, 7  ;;  %v10667_v60 = vpop.f32.mrf.mxu3  ;;  %v9233_v46 = vld [vmem:[%s12333_s2 + $0x1f0] sm:$0xff] }
 0x217   : > { %8200 = vmatmul.msk.bf16.gmra.mxu3 %vm460_vm6, %v3548_v6  ;;  %12353 = vst [vmem:[#allocation7_spill] sm:$0xff] %v10667_v60  ;;  %4210 = vmatpush.bf16.msra.mxu2 %v9233_v46 }
 0x218   : > { %v2421_v58 = vadd.f32 %v2403_v63, %v2259_v5  ;;  %v8151_v63 = vld [vmem:[%s9573_s16 + $0x238] sm:$0x7]  ;;  %v3222_v1 = vsel %vm10358_vm9, %v3220_v16, %v3221_v25 }
 0x21a   : > { %v2439_v29 = vmul.f32 %v10395_v11, %v2421_v58  ;;  %v3485_v58 = vrot.slane %v8151_v63, 7  ;;  %v8154_v63 = vld [vmem:[%s9573_s16 + $0x254] sm:$0x7] }
 0x21c   : > { %v2457_v7 = vadd.f32 %v10406_v40, %v2439_v29  ;;  %v8079_v40 = vld [vmem:[%s9573_s16 + $0xb4] sm:$0x8]  ;;  %v3282_v29 = vunpack.c.l.b16 %v3222_v1  ;;  %v3486_v43 = vsel %vm10358_vm9, %v3484_v2, %v3485_v58  ;;  %v3492_v58 = vrot.slane %v8154_v63, 7 }
 0x21d   : > { %v3007_v11 = vpop.f32.mrf.mxu0  ;;  %v8103_v23 = vrot.slane %v8079_v40, 11 }
 0x21e   : > { %v2473_v61 = vmax.f32 %v2457_v7, 0.0  ;;  %v3128_v47 = vpop.f32.mrf.mxu1  ;;  %v3536_v7 = vunpack.c.l.b16 %v3486_v43  ;;  %v10690_v44 = vpop.f32.mrf.mxu3 }
 0x21f   : > { %v10660_v56 = vadd.f32 %v3128_v47, %v3007_v11  ;;  %v3219_v5 = vsel %vm10358_vm9, %v8103_v23, %v3218_v9  ;;  %v3827_v11 = vsel %vm10358_vm9, %v3825_v15, %v3826_v31  ;;  %12354 = vst [vmem:[#allocation8_spill] sm:$0xff] %v10690_v44  ;;  %v3225_v47 = vrot.slane %v8083_v42, 7  ;;  %v8084_v9 = vld [vmem:[%s9573_s16 + $0xd8] sm:$0x7]  ;;  %v8247_v15 = vld [vmem:[%s9573_s16 + $0x244] sm:$0x7] }
 0x220   : > { %v2481_v57 = vpack.c.bf16 %v2473_v61, %v2472_v51  ;;  %8231 = vmatmul.msk.bf16.vlgmr.msra.gmra.mxu0 %vm460_vm6, %v9622_v54  ;;  %v3281_v18 = vunpack.c.l.b16 %v3219_v5  ;;  %v3549_v22 = vpack.c.b16 %v3536_v7, %v3535_v52  ;;  %v3881_v51 = vunpack.c.l.b16 %v3824_v24  ;;  %v8086_v24 = vld [vmem:[%s9573_s16 + $0xf0] sm:$0xf]  ;;  %v8435_v44 = vld [vmem:[%s9573_s16 + $0x35c] sm:$0x7] }
 0x221   : > { %8295 = vmatmul.msk.bf16.vlgmr.msra.gmra.mxu1 %vm460_vm6, %v3895_v59  ;;  %v3882_v61 = vunpack.c.l.b16 %v3827_v11  ;;  %v9237_v59 = vld [vmem:[%s12333_s2 + $0x210] sm:$0xff]  ;;  %v3227_v23 = vrot.slane %v3225_v47, 4  ;;  %v3228_v16 = vrot.slane %v8084_v9, 7  ;;  %v3830_v52 = vrot.slane %v8246_v36, 7 }
 0x222   : > { %2590 = vmatmul.bf16.gmra.mxu2 %v2481_v57  ;;  %v3297_v37 = vpack.c.b16 %v3282_v29, %v3281_v18  ;;  %v8104_v57 = vrot.slane %v8082_v20, 11  ;;  %4460 = vmatpush.bf16.msra.mxu3 %v9237_v59  ;;  %v3490_v18 = vsel %vm10358_vm9, %v8170_v17, %v3489_v8  ;;  %v3491_v29 = vrot.slane %v3489_v8, 4  ;;  %v8155_v17 = vld [vmem:[%s9573_s16 + $0x268] sm:$0x8]  ;;  %v8156_v8 = vld [vmem:[%s9573_s16 + $0x26c] sm:$0xf] }
 0x223   : > { %v3896_v6 = vpack.c.b16 %v3882_v61, %v3881_v51  ;;  %v3229_v1 = vsel %vm10358_vm9, %v3227_v23, %v3228_v16  ;;  %v3537_v43 = vunpack.c.l.b16 %v3490_v18  ;;  %v8265_v42 = vrot.slane %v8245_v53, 11  ;;  %v8087_v23 = vld [vmem:[%s9573_s16 + $0xf4] sm:$0x7] }
 0x224   : > { %v3226_v5 = vsel %vm10358_vm9, %v8104_v57, %v3225_v47  ;;  %v3284_v30 = vunpack.c.l.b16 %v3229_v1  ;;  %v3493_v31 = vsel %vm10358_vm9, %v3491_v29, %v3492_v58  ;;  %v3832_v7 = vrot.slane %v3830_v52, 4  ;;  %v8085_v57 = vld [vmem:[%s9573_s16 + $0xec] sm:$0x8]  ;;  %v8157_v58 = vld [vmem:[%s9573_s16 + $0x270] sm:$0x7] }
 0x225   : > { %v3009_v41 = vpop.f32.mrf.mxu0  ;;  %v3283_v39 = vunpack.c.l.b16 %v3226_v5  ;;  %v3538_v11 = vunpack.c.l.b16 %v3493_v31  ;;  %v3831_v51 = vsel %vm10358_vm9, %v8265_v42, %v3830_v52  ;;  %v3232_v46 = vrot.slane %v8086_v24, 7  ;;  %v8250_v24 = vld [vmem:[%s9573_s16 + $0x260] sm:$0x7] }
 0x226   : > { %v3130_v35 = vpop.f32.mrf.mxu1  ;;  %v10719_v38 = vpop.f32.mrf.mxu3  ;;  %v3883_v47 = vunpack.c.l.b16 %v3831_v51  ;;  %v8105_v5 = vrot.slane %v8085_v57, 11  ;;  %v3235_v4 = vrot.slane %v8087_v23, 7  ;;  %v8171_v18 = vrot.slane %v8155_v17, 11 }
 0x227   : > { %v10676_v55 = vadd.f32 %v3130_v35, %v3009_v41  ;;  %8201 = vmatmul.msk.bf16.gmra.mxu3 %vm460_vm6, %v3549_v22  ;;  %12355 = vst [vmem:[#allocation9_spill] sm:$0xff] %v10719_v38  ;;  %v3550_v20 = vpack.c.b16 %v3538_v11, %v3537_v43  ;;  %v3234_v13 = vrot.slane %v3232_v46, 4  ;;  %v3496_v29 = vrot.slane %v8156_v8, 7  ;;  %v8090_v8 = vld [vmem:[%s9573_s16 + $0x110] sm:$0x7] }
 0x228   : > { %v3499_v52 = vrot.slane %v8157_v58, 7 }
 0x229   : > { %v3236_v19 = vsel %vm10358_vm9, %v3234_v13, %v3235_v4  ;;  %v3497_v43 = vsel %vm10358_vm9, %v8171_v18, %v3496_v29  ;;  %v3498_v53 = vrot.slane %v3496_v29, 4  ;;  %v9236_v18 = vld [vmem:[%s12333_s2 + $0x208] sm:$0xff] }
 0x22a   : > { %v3286_v42 = vunpack.c.l.b16 %v3236_v19  ;;  %4461 = vmatpush.bf16.msra.mxu3 %v9236_v18 }
 0x22b   : > { %v3500_v11 = vsel %vm10358_vm9, %v3498_v53, %v3499_v52  ;;  %v3242_v52 = vrot.slane %v8090_v8, 7 }
 0x22d   : > { %v3012_v50 = vpop.f32.mrf.mxu0 }
 0x22e   : > { %v3133_v27 = vpop.f32.mrf.mxu1 }
 0x22f   : > { %v10693_v40 = vadd.f32 %v3133_v27, %v3012_v50  ;;  %v3833_v50 = vrot.slane %v8247_v15, 7  ;;  %v3298_v27 = vpack.c.b16 %v3284_v30, %v3283_v39  ;;  %v8249_v30 = vld [vmem:[%s9573_s16 + $0x25c] sm:$0xf] }
 0x230   : > { %8232 = vmatmul.msk.bf16.gmra.mxu0 %vm460_vm6, %v9656_v28  ;;  %v3837_v15 = vrot.slane %v8249_v30, 7 }
 0x231   : > { %8296 = vmatmul.msk.bf16.gmra.mxu1 %vm460_vm6, %v3896_v6  ;;  %v3834_v61 = vsel %vm10358_vm9, %v3832_v7, %v3833_v50  ;;  %v3539_v7 = vunpack.c.l.b16 %v3497_v43  ;;  %v8248_v50 = vld [vmem:[%s9573_s16 + $0x258] sm:$0x8] }
 0x232   : > { %8135 = vmatmul.msk.bf16.vlgmr.msrb.gmra.mxu2 %vm460_vm6, %v3297_v37  ;;  %v3884_v9 = vunpack.c.l.b16 %v3834_v61  ;;  %v3839_v51 = vrot.slane %v3837_v15, 4  ;;  %v3840_v61 = vrot.slane %v8250_v24, 7 }
 0x234   : > { %v3897_v16 = vpack.c.b16 %v3884_v9, %v3883_v47  ;;  %v3540_v47 = vunpack.c.l.b16 %v3500_v11 }
 0x235   : > { %v10707_v25 = vpop.f32.mrf.mxu2  ;;  %v3014_v41 = vpop.f32.mrf.mxu0 }
 0x236   : > { %v3135_v35 = vpop.f32.mrf.mxu1 }
 0x237   : > { %v10721_v2 = vadd.f32 %v3135_v35, %v3014_v41  ;;  %8202 = vmatmul.msk.bf16.gmra.mxu3 %vm460_vm6, %v3550_v20  ;;  %v10744_v41 = vpop.f32.mrf.mxu3  ;;  %v3233_v35 = vsel %vm10358_vm9, %v8105_v5, %v3232_v46  ;;  %v8089_v20 = vld [vmem:[%s9573_s16 + $0x10c] sm:$0xf]  ;;  %v3841_v46 = vsel %vm10358_vm9, %v3839_v51, %v3840_v61 }
 0x238   : > { %12356 = vst [vmem:[#allocation10_spill] sm:$0xff] %v10744_v41  ;;  %v3285_v31 = vunpack.c.l.b16 %v3233_v35  ;;  %v3886_v13 = vunpack.c.l.b16 %v3841_v46  ;;  %v3239_v35 = vrot.slane %v8089_v20, 7  ;;  %v9240_v61 = vld [vmem:[%s12333_s2 + $0x228] sm:$0xff] }
 0x239   : > { %4711 = vmatpush.bf16.msrb.mxu0 %v9240_v61  ;;  %v8093_v61 = vld [vmem:[%s9573_s16 + $0x12c] sm:$0x7] }
 0x23a   : > { %v3299_v23 = vpack.c.b16 %v3286_v42, %v3285_v31  ;;  %v3241_v29 = vrot.slane %v3239_v35, 4  ;;  %v8158_v31 = vld [vmem:[%s9573_s16 + $0x284] sm:$0x8]  ;;  %v8159_v42 = vld [vmem:[%s9573_s16 + $0x288] sm:$0xf] }
 0x23b   : > { %v8172_v11 = vrot.slane %v8158_v31, 11 }
 0x23d   : > { %v10731_v37 = vpop.f32.mrf.mxu2  ;;  %v3017_v22 = vpop.f32.mrf.mxu0 }
 0x23e   : > { %v3138_v6 = vpop.f32.mrf.mxu1 }
 0x23f   : > { %v10738_v59 = vadd.f32 %v3138_v6, %v3017_v22  ;;  %v8266_v22 = vrot.slane %v8248_v50, 11  ;;  %v3243_v50 = vsel %vm10358_vm9, %v3241_v29, %v3242_v52 }
 0x240   : > { %8233 = vmatmul.msk.bf16.gmra.mxu0 %vm460_vm6, %v9685_v3 }
 0x241   : > { %8297 = vmatmul.msk.bf16.gmra.mxu1 %vm460_vm6, %v3897_v16  ;;  %v3838_v57 = vsel %vm10358_vm9, %v8266_v22, %v3837_v15  ;;  %v3551_v16 = vpack.c.b16 %v3540_v47, %v3539_v7  ;;  %v8160_v7 = vld [vmem:[%s9573_s16 + $0x28c] sm:$0x7]  ;;  %v3503_v22 = vrot.slane %v8159_v42, 7  ;;  %v8252_v47 = vld [vmem:[%s9573_s16 + $0x278] sm:$0xf] }
 0x242   : > { %8136 = vmatmul.msk.bf16.gmra.mxu2 %vm460_vm6, %v3298_v27  ;;  %v10766_v27 = vpop.f32.mrf.mxu3  ;;  %v3885_v5 = vunpack.c.l.b16 %v3838_v57  ;;  %v3506_v51 = vrot.slane %v8160_v7, 7  ;;  %v3844_v46 = vrot.slane %v8252_v47, 7 }
 0x243   : > { %12357 = vst [vmem:[#allocation11_spill] sm:$0xff] %v10766_v27  ;;  %v3505_v57 = vrot.slane %v3503_v22, 4 }
 0x244   : > { %v3898_v58 = vpack.c.b16 %v3886_v13, %v3885_v5  ;;  %v8251_v13 = vld [vmem:[%s9573_s16 + $0x274] sm:$0x8]  ;;  %v3846_v8 = vrot.slane %v3844_v46, 4 }
 0x245   : > { %v10748_v63 = vpop.f32.mrf.mxu2  ;;  %v3019_v1 = vpop.f32.mrf.mxu0 }
 0x246   : > { %v3140_v36 = vpop.f32.mrf.mxu1 }
 0x247   : > { %v10757_v39 = vadd.f32 %v3140_v36, %v3019_v1  ;;  %v8088_v1 = vld [vmem:[%s9573_s16 + $0x108] sm:$0x8]  ;;  %8203 = vmatmul.msk.bf16.gmra.mxu3 %vm460_vm6, %v3551_v16  ;;  %v3288_v16 = vunpack.c.l.b16 %v3243_v50 }
 0x248   : > { %v8106_v19 = vrot.slane %v8088_v1, 11  ;;  %v9232_v36 = vld [vmem:[%s12333_s2 + $0x1e8] sm:$0xff]  ;;  %v3507_v1 = vsel %vm10358_vm9, %v3505_v57, %v3506_v51 }
 0x249   : > { %4211 = vmatpush.bf16.msra.mxu2 %v9232_v36  ;;  %v3542_v36 = vunpack.c.l.b16 %v3507_v1  ;;  %v8163_v1 = vld [vmem:[%s9573_s16 + $0x2a8] sm:$0x7] }
 0x24a   : > { %v10792_v53 = vpop.f32.mrf.mxu3  ;;  %v3240_v15 = vsel %vm10358_vm9, %v8106_v19, %v3239_v35  ;;  %v8267_v35 = vrot.slane %v8251_v13, 11  ;;  %v8092_v19 = vld [vmem:[%s9573_s16 + $0x128] sm:$0xf]  ;;  %v8161_v13 = vld [vmem:[%s9573_s16 + $0x2a0] sm:$0x8] }
 0x24b   : > { %12359 = vst [vmem:[#allocation13_spill] sm:$0xff] %v10792_v53  ;;  %v8098_v53 = vld [vmem:[%s9573_s16 + $0x160] sm:$0xf] }
 0x24c   : > { %v3845_v52 = vsel %vm10358_vm9, %v8267_v35, %v3844_v46  ;;  %v3249_v46 = vrot.slane %v8093_v61, 7 }
 0x24d   : > { %v10769_v9 = vpop.f32.mrf.mxu2  ;;  %v3022_v6 = vpop.f32.mrf.mxu0  ;;  %v3887_v42 = vunpack.c.l.b16 %v3845_v52 }
 0x24e   : > { %v3143_v4 = vpop.f32.mrf.mxu1 }
 0x24f   : > { %v10776_v17 = vadd.f32 %v3143_v4, %v3022_v6  ;;  %v3504_v6 = vsel %vm10358_vm9, %v8172_v11, %v3503_v22  ;;  %v8253_v4 = vld [vmem:[%s9573_s16 + $0x27c] sm:$0x7]  ;;  %v3246_v11 = vrot.slane %v8092_v19, 7 }
 0x250   : > { %8234 = vmatmul.msk.bf16.gmra.mxu0 %vm460_vm6, %v9720_v45  ;;  %v3541_v5 = vunpack.c.l.b16 %v3504_v6 }
 0x251   : > { %8298 = vmatmul.msk.bf16.gmra.mxu1 %vm460_vm6, %v3898_v58  ;;  %v3847_v58 = vrot.slane %v8253_v4, 7  ;;  %v3248_v57 = vrot.slane %v3246_v11, 4  ;;  %v8162_v4 = vld [vmem:[%s9573_s16 + $0x2a4] sm:$0xf] }
 0x252   : > { %8137 = vmatmul.msk.bf16.gmra.mxu2 %vm460_vm6, %v3299_v23  ;;  %v3287_v23 = vunpack.c.l.b16 %v3240_v15  ;;  %v3552_v31 = vpack.c.b16 %v3542_v36, %v3541_v5  ;;  %v10821_v22 = vpop.f32.mrf.mxu3  ;;  %v3510_v19 = vrot.slane %v8162_v4, 7  ;;  %v3513_v36 = vrot.slane %v8163_v1, 7 }
 0x253   : > { %12361 = vst [vmem:[#allocation15_spill] sm:$0xff] %v10821_v22  ;;  %v3250_v35 = vsel %vm10358_vm9, %v3248_v57, %v3249_v46  ;;  %v8095_v46 = vld [vmem:[%s9573_s16 + $0x144] sm:$0xf] }
 0x254   : > { %v3300_v15 = vpack.c.b16 %v3288_v16, %v3287_v23 }
 0x255   : > { %v10790_v30 = vpop.f32.mrf.mxu2  ;;  %v3024_v43 = vpop.f32.mrf.mxu0 }
 0x256   : > { %12358 = vst [vmem:[#allocation12_spill] sm:$0xff] %v10790_v30  ;;  %v3145_v24 = vpop.f32.mrf.mxu1 }
 0x257   : > { %v10804_v20 = vadd.f32 %v3145_v24, %v3024_v43  ;;  %v3848_v43 = vsel %vm10358_vm9, %v3846_v8, %v3847_v58  ;;  %v8091_v24 = vld [vmem:[%s9573_s16 + $0x124] sm:$0x8]  ;;  %8204 = vmatmul.msk.bf16.gmra.mxu3 %vm460_vm6, %v3552_v31  ;;  %v8173_v58 = vrot.slane %v8161_v13, 11 }
 0x258   : > { %v3888_v7 = vunpack.c.l.b16 %v3848_v43  ;;  %v8107_v6 = vrot.slane %v8091_v24, 11  ;;  %v3512_v43 = vrot.slane %v3510_v19, 4  ;;  %v8254_v24 = vld [vmem:[%s9573_s16 + $0x290] sm:$0x8] }
 0x259   : > { %v3511_v52 = vsel %vm10358_vm9, %v8173_v58, %v3510_v19 }
 0x25a   : > { %v3899_v47 = vpack.c.b16 %v3888_v7, %v3887_v42  ;;  %v3247_v5 = vsel %vm10358_vm9, %v8107_v6, %v3246_v11  ;;  %v10847_v31 = vpop.f32.mrf.mxu3  ;;  %v3290_v7 = vunpack.c.l.b16 %v3250_v35  ;;  %v8256_v11 = vld [vmem:[%s9573_s16 + $0x298] sm:$0x7]  ;;  %v3514_v61 = vsel %vm10358_vm9, %v3512_v43, %v3513_v36  ;;  %v8094_v43 = vld [vmem:[%s9573_s16 + $0x140] sm:$0x8] }
 0x25b   : > { %12363 = vst [vmem:[#allocation17_spill] sm:$0xff] %v10847_v31  ;;  %v3289_v42 = vunpack.c.l.b16 %v3247_v5  ;;  %v3854_v57 = vrot.slane %v8256_v11, 7  ;;  %v3544_v13 = vunpack.c.l.b16 %v3514_v61  ;;  %v8096_v11 = vld [vmem:[%s9573_s16 + $0x148] sm:$0x7] }
 0x25d   : > { %v10814_v18 = vpop.f32.mrf.mxu2  ;;  %v3027_v29 = vpop.f32.mrf.mxu0  ;;  %v3301_v58 = vpack.c.b16 %v3290_v7, %v3289_v42  ;;  %v9231_v42 = vld [vmem:[%s12333_s2 + $0x1e0] sm:$0xff] }
 0x25e   : > { %12360 = vst [vmem:[#allocation14_spill] sm:$0xff] %v10814_v18  ;;  %v3148_v50 = vpop.f32.mrf.mxu1  ;;  %v9235_v7 = vld [vmem:[%s12333_s2 + $0x200] sm:$0xff]  ;;  %4212 = vmatpush.bf16.msra.mxu2 %v9231_v42 }
 0x25f   : > { %v10823_v51 = vadd.f32 %v3148_v50, %v3027_v29  ;;  %v8255_v29 = vld [vmem:[%s9573_s16 + $0x294] sm:$0xf]  ;;  %v3543_v50 = vunpack.c.l.b16 %v3511_v52  ;;  %4462 = vmatpush.bf16.msra.mxu3 %v9235_v7 }
 0x260   : > { %8235 = vmatmul.msk.bf16.gmra.mxu0 %vm460_vm6, %v9749_v21 }
 0x261   : > { %8299 = vmatmul.msk.bf16.gmra.mxu1 %vm460_vm6, %v3899_v47  ;;  %v8268_v47 = vrot.slane %v8254_v24, 11  ;;  %v3553_v19 = vpack.c.b16 %v3544_v13, %v3543_v50  ;;  %v3253_v24 = vrot.slane %v8095_v46, 7 }
 0x262   : > { %8138 = vmatmul.msk.bf16.gmra.mxu2 %vm460_vm6, %v3300_v15  ;;  %v3851_v15 = vrot.slane %v8255_v29, 7 }
 0x263   : > { %v3255_v50 = vrot.slane %v3253_v24, 4 }
 0x264   : > { %v3853_v6 = vrot.slane %v3851_v15, 4  ;;  %v3852_v5 = vsel %vm10358_vm9, %v8268_v47, %v3851_v15  ;;  %v8108_v15 = vrot.slane %v8094_v43, 11  ;;  %v3256_v47 = vrot.slane %v8096_v11, 7  ;;  %v9239_v43 = vld [vmem:[%s12333_s2 + $0x220] sm:$0xff]  ;;  %v8258_v11 = vld [vmem:[%s9573_s16 + $0x2b0] sm:$0xf] }
 0x265   : > { %v10831_v23 = vpop.f32.mrf.mxu2  ;;  %v10833_v16 = vpop.f32.mrf.mxu0  ;;  %v3889_v29 = vunpack.c.l.b16 %v3852_v5  ;;  %v8165_v5 = vld [vmem:[%s9573_s16 + $0x2c0] sm:$0xf]  ;;  %4712 = vmatpush.bf16.msrb.mxu0 %v9239_v43 }
 0x266   : > { %12362 = vst [vmem:[#allocation16_spill] sm:$0xff] %v10831_v23  ;;  %v10842_v8 = vpop.f32.mrf.mxu1  ;;  %v3855_v35 = vsel %vm10358_vm9, %v3853_v6, %v3854_v57  ;;  %v10875_v6 = vpop.f32.mrf.mxu3  ;;  %v3254_v13 = vsel %vm10358_vm9, %v8108_v15, %v3253_v24  ;;  %v3858_v15 = vrot.slane %v8258_v11, 7 }
 0x267   : > { %v3890_v52 = vunpack.c.l.b16 %v3855_v35  ;;  %8205 = vmatmul.msk.bf16.gmra.mxu3 %vm460_vm6, %v3553_v19  ;;  %12365 = vst [vmem:[#allocation19_spill] sm:$0xff] %v10875_v6  ;;  %v8166_v35 = vld [vmem:[%s9573_s16 + $0x2c4] sm:$0x7]  ;;  %v3291_v42 = vunpack.c.l.b16 %v3254_v13  ;;  %v8259_v6 = vld [vmem:[%s9573_s16 + $0x2b4] sm:$0x7] }
 0x268   : > { %v3861_v22 = vrot.slane %v8259_v6, 7  ;;  %v8097_v6 = vld [vmem:[%s9573_s16 + $0x15c] sm:$0x8] }
 0x269   : > { %v3900_v61 = vpack.c.b16 %v3890_v52, %v3889_v29  ;;  %v3517_v52 = vrot.slane %v8165_v5, 7  ;;  %5548 = vmatpush.bf16.msra.mxu0 %v9271_v26 }
 0x26d   : > { %v10854_v4 = vpop.f32.mrf.mxu2  ;;  %v3032_v1 = vpop.f32.mrf.mxu0 }
 0x26e   : > { %12364 = vst [vmem:[#allocation18_spill] sm:$0xff] %v10854_v4  ;;  %v3153_v36 = vpop.f32.mrf.mxu1 }
 0x26f   : > { %v10861_v31 = vadd.f32 %v3153_v36, %v3032_v1  ;;  %v8164_v1 = vld [vmem:[%s9573_s16 + $0x2bc] sm:$0x8]  ;;  %v3520_v36 = vrot.slane %v8166_v35, 7  ;;  %v3860_v35 = vrot.slane %v3858_v15, 4 }
 0x270   : > { %8236 = vmatmul.msk.bf16.gmra.mxu0 %vm460_vm6, %v9784_v0  ;;  %v8174_v29 = vrot.slane %v8164_v1, 11 }
 0x271   : > { %8300 = vmatmul.msk.bf16.gmra.mxu1 %vm460_vm6, %v3900_v61  ;;  %v3519_v61 = vrot.slane %v3517_v52, 4 }
 0x272   : > { %8139 = vmatmul.msk.bf16.gmra.mxu2 %vm460_vm6, %v3301_v58  ;;  %v3257_v58 = vsel %vm10358_vm9, %v3255_v50, %v3256_v47  ;;  %v3518_v24 = vsel %vm10358_vm9, %v8174_v29, %v3517_v52  ;;  %v8257_v47 = vld [vmem:[%s9573_s16 + $0x2ac] sm:$0x8] }
 0x273   : > { %v3292_v7 = vunpack.c.l.b16 %v3257_v58  ;;  %v3545_v50 = vunpack.c.l.b16 %v3518_v24  ;;  %v3521_v1 = vsel %vm10358_vm9, %v3519_v61, %v3520_v36  ;;  %v8269_v5 = vrot.slane %v8257_v47, 11  ;;  %v10907_v24 = vpop.f32.mrf.mxu3 }
 0x274   : > { %v3546_v27 = vunpack.c.l.b16 %v3521_v1  ;;  %v3862_v58 = vsel %vm10358_vm9, %v3860_v35, %v3861_v22  ;;  %12368 = vst [vmem:[#allocation22_spill] sm:$0xff] %v10907_v24  ;;  %v3260_v47 = vrot.slane %v8098_v53, 7  ;;  %v8370_v35 = vld [vmem:[%s9573_s16 + $0x354] sm:$0xf] }
 0x275   : > { %v10877_v57 = vpop.f32.mrf.mxu2  ;;  %v10879_v46 = vpop.f32.mrf.mxu0  ;;  %v3859_v13 = vsel %vm10358_vm9, %v8269_v5, %v3858_v15  ;;  %v3302_v52 = vpack.c.b16 %v3292_v7, %v3291_v42  ;;  %v3892_v36 = vunpack.c.l.b16 %v3862_v58  ;;  %v8369_v5 = vld [vmem:[%s9573_s16 + $0x350] sm:$0xe] }
 0x276   : > { %12366 = vst [vmem:[#allocation20_spill] sm:$0xff] %v10877_v57  ;;  %v10888_v19 = vpop.f32.mrf.mxu1  ;;  %v3554_v43 = vpack.c.b16 %v3546_v27, %v3545_v50  ;;  %v3891_v11 = vunpack.c.l.b16 %v3859_v13  ;;  %v8109_v27 = vrot.slane %v8097_v6, 11  ;;  %v3262_v22 = vrot.slane %v3260_v47, 4 }
 0x278   : > { %v3901_v15 = vpack.c.b16 %v3892_v36, %v3891_v11  ;;  %8206 = vmatmul.msk.bf16.gmra.mxu3 %vm460_vm6, %v3554_v43  ;;  %v3261_v50 = vsel %vm10358_vm9, %v8109_v27, %v3260_v47  ;;  %v4320_v43 = vrot.slane %v8370_v35, 5  ;;  %v8261_v11 = vld [vmem:[%s9573_s16 + $0x2cc] sm:$0xf] }
 0x279   : > { %v3865_v47 = vrot.slane %v8261_v11, 7 }
 0x27a   : > { %v4322_v6 = vrot.slane %v4320_v43, 4 }
 0x27b   : > { %v10932_v36 = vpop.f32.mrf.mxu3  ;;  %v3867_v35 = vrot.slane %v3865_v47, 4 }
 0x27d   : > { %v10901_v41 = vpop.f32.mrf.mxu2  ;;  %v3037_v29 = vpop.f32.mrf.mxu0 }
 0x27e   : > { %12367 = vst [vmem:[#allocation21_spill] sm:$0xff] %v10901_v41  ;;  %v3158_v61 = vpop.f32.mrf.mxu1  ;;  %v8099_v41 = vld [vmem:[%s9573_s16 + $0x164] sm:$0x7] }
 0x27f   : > { %v10910_v1 = vadd.f32 %v3158_v61, %v3037_v29  ;;  %v3263_v42 = vrot.slane %v8099_v41, 7  ;;  %v8371_v29 = vld [vmem:[%s9573_s16 + $0x358] sm:$0x1] }
 0x280   : > { %8237 = vmatmul.msk.bf16.gmra.mxu0 %vm460_vm6, %v9831_v49  ;;  %v4323_v41 = vrot.slane %v8371_v29, 5  ;;  %v8101_v49 = vld [vmem:[%s9573_s16 + $0x17c] sm:$0xf] }
 0x281   : > { %8301 = vmatmul.msk.bf16.gmra.mxu1 %vm460_vm6, %v3901_v15  ;;  %v3264_v13 = vsel %vm10358_vm9, %v3262_v22, %v3263_v42  ;;  %v3293_v15 = vunpack.c.l.b16 %v3261_v50  ;;  %v8262_v22 = vld [vmem:[%s9573_s16 + $0x2d0] sm:$0x7]  ;;  %v3267_v38 = vrot.slane %v8101_v49, 7  ;;  %v4573_v49 = vrot.slane %v8435_v44, 7 }
 0x282   : > { %8140 = vmatmul.msk.bf16.gmra.mxu2 %vm460_vm6, %v3302_v52  ;;  %v8393_v52 = vrot.slane %v8369_v5, 9  ;;  %v3294_v27 = vunpack.c.l.b16 %v3264_v13  ;;  %v4324_v42 = vsel %vm9569_vm2, %v4322_v6, %v4323_v41  ;;  %v3868_v29 = vrot.slane %v8262_v22, 7  ;;  %v8100_v22 = vld [vmem:[%s9573_s16 + $0x178] sm:$0x8] }
 0x283   : > { %v4384_v57 = vunpack.c.l.b16 %v4324_v42 }
 0x284   : > { %v4321_v61 = vsel %vm9569_vm2, %v8393_v52, %v4320_v43  ;;  %v3869_v13 = vsel %vm10358_vm9, %v3867_v35, %v3868_v29  ;;  %v3303_v43 = vpack.c.b16 %v3294_v27, %v3293_v15  ;;  %v8110_v27 = vrot.slane %v8100_v22, 11  ;;  %v8374_v22 = vld [vmem:[%s9573_s16 + $0x374] sm:$0x1] }
 0x285   : > { %v10918_v7 = vpop.f32.mrf.mxu2  ;;  %v10920_v53 = vpop.f32.mrf.mxu0  ;;  %v4383_v24 = vunpack.c.l.b16 %v4321_v61  ;;  %v8434_v61 = vld [vmem:[%s9573_s16 + $0x358] sm:$0xf]  ;;  %v3269_v35 = vrot.slane %v3267_v38, 4 }
 0x286   : > { %12369 = vst [vmem:[#allocation23_spill] sm:$0xff] %v10918_v7  ;;  %v10929_v58 = vpop.f32.mrf.mxu1  ;;  %v8260_v7 = vld [vmem:[%s9573_s16 + $0x2c8] sm:$0x8]  ;;  %v4570_v42 = vrot.slane %v8434_v61, 7 }
 0x287   : > { %v8270_v5 = vrot.slane %v8260_v7, 11  ;;  %v4399_v41 = vpack.c.b16 %v4384_v57, %v4383_v24  ;;  %v3894_v7 = vunpack.c.l.b16 %v3869_v13 }
 0x288   : > { %v4572_v15 = vrot.slane %v4570_v42, 4 }
 0x289   : > { %v3866_v50 = vsel %vm10358_vm9, %v8270_v5, %v3865_v47  ;;  %v8433_v5 = vld [vmem:[%s9573_s16 + $0x354] sm:$0x8]  ;;  %8425 = vmatmul.msk.bf16.vlgmr.msra.gmra.mxu3 %vm460_vm6, %v4399_v41 }
 0x28a   : > { %v3893_v11 = vunpack.c.l.b16 %v3866_v50  ;;  %v10957_v57 = vpop.f32.mrf.mxu3  ;;  %v8457_v24 = vrot.slane %v8433_v5, 11  ;;  %v4574_v41 = vsel %vm10358_vm9, %v4572_v15, %v4573_v49 }
 0x28b   : > { %v4634_v61 = vunpack.c.l.b16 %v4574_v41 }
 0x28c   : > { %v3902_v47 = vpack.c.b16 %v3894_v7, %v3893_v11  ;;  %v4571_v13 = vsel %vm10358_vm9, %v8457_v24, %v4570_v42  ;;  %v8373_v11 = vld [vmem:[%s9573_s16 + $0x370] sm:$0xf]  ;;  %v4330_v42 = vrot.slane %v8374_v22, 5  ;;  %v8437_v22 = vld [vmem:[%s9573_s16 + $0x374] sm:$0xf] }
 0x28d   : > { %v10941_v0 = vpop.f32.mrf.mxu2  ;;  %v3042_v52 = vpop.f32.mrf.mxu0  ;;  %v4327_v7 = vrot.slane %v8373_v11, 5  ;;  %v4577_v23 = vrot.slane %v8437_v22, 7 }
 0x28e   : > { %12370 = vst [vmem:[#allocation24_spill] sm:$0xff] %v10941_v0  ;;  %v3163_v6 = vpop.f32.mrf.mxu1  ;;  %v8102_v0 = vld [vmem:[%s9573_s16 + $0x180] sm:$0x7] }
 0x28f   : > { %v10949_v4 = vadd.f32 %v3163_v6, %v3042_v52  ;;  %v3270_v29 = vrot.slane %v8102_v0, 7  ;;  %v4633_v0 = vunpack.c.l.b16 %v4571_v13  ;;  %v8372_v6 = vld [vmem:[%s9573_s16 + $0x36c] sm:$0xe]  ;;  %v4329_v5 = vrot.slane %v4327_v7, 4 }
 0x290   : > { %8238 = vmatmul.msk.bf16.gmra.mxu0 %vm460_vm6, %v9873_v34 }
 0x291   : > { %8302 = vmatmul.msk.bf16.gmra.mxu1 %vm460_vm6, %v3902_v47  ;;  %v3271_v44 = vsel %vm10358_vm9, %v3269_v35, %v3270_v29  ;;  %v8394_v47 = vrot.slane %v8372_v6, 9  ;;  %v8306_v35 = vld [vmem:[%s9573_s16 + $0x34c] sm:$0xf]  ;;  %v4649_v29 = vpack.c.b16 %v4634_v61, %v4633_v0  ;;  %v4579_v61 = vrot.slane %v4577_v23, 4 }
 0x292   : > { %8141 = vmatmul.msk.bf16.gmra.mxu2 %vm460_vm6, %v3303_v43  ;;  %v3268_v43 = vsel %vm10358_vm9, %v8110_v27, %v3267_v38  ;;  %v3296_v15 = vunpack.c.l.b16 %v3271_v44  ;;  %v10976_v49 = vpop.f32.mrf.mxu3  ;;  %v4331_v27 = vsel %vm9569_vm2, %v4329_v5, %v4330_v42  ;;  %v4070_v34 = vrot.slane %v8306_v35, 7  ;;  %v8438_v5 = vld [vmem:[%s9573_s16 + $0x378] sm:$0x7] }
 0x293   : > { %v3295_v24 = vunpack.c.l.b16 %v3268_v43  ;;  %v4328_v38 = vsel %vm9569_vm2, %v8394_v47, %v4327_v7  ;;  %v4386_v41 = vunpack.c.l.b16 %v4331_v27  ;;  %v8307_v7 = vld [vmem:[%s9573_s16 + $0x350] sm:$0x7]  ;;  %v8436_v47 = vld [vmem:[%s9573_s16 + $0x370] sm:$0x8]  ;;  %v4580_v42 = vrot.slane %v8438_v5, 7  ;;  %v9267_v5 = vld [vmem:[%s12333_s2 + $0x278] sm:$0xff] }
 0x294   : > { %v4385_v13 = vunpack.c.l.b16 %v4328_v38  ;;  %v8458_v0 = vrot.slane %v8436_v47, 11  ;;  %v4073_v38 = vrot.slane %v8307_v7, 7  ;;  %5177 = vmatpush.bf16.msrb.mxu2 %v9267_v5 }
 0x295   : > { %v10961_v52 = vpop.f32.mrf.mxu2  ;;  %v10963_v50 = vpop.f32.mrf.mxu0  ;;  %v3304_v43 = vpack.c.b16 %v3296_v15, %v3295_v24  ;;  %v4072_v15 = vrot.slane %v4070_v34, 4 }
 0x296   : > { %12371 = vst [vmem:[#allocation25_spill] sm:$0xff] %v10961_v52  ;;  %v4400_v44 = vpack.c.b16 %v4386_v41, %v4385_v13  ;;  %v8305_v52 = vld [vmem:[%s9573_s16 + $0x348] sm:$0x8]  ;;  %v4578_v13 = vsel %vm10358_vm9, %v8458_v0, %v4577_v23  ;;  %v4581_v41 = vsel %vm10358_vm9, %v4579_v61, %v4580_v42  ;;  %v8377_v23 = vld [vmem:[%s9573_s16 + $0x390] sm:$0x1] }
 0x297   : > { %v8329_v24 = vrot.slane %v8305_v52, 11  ;;  %v4074_v52 = vsel %vm10358_vm9, %v4072_v15, %v4073_v38  ;;  %v4635_v7 = vunpack.c.l.b16 %v4578_v13  ;;  %v4636_v47 = vunpack.c.l.b16 %v4581_v41  ;;  %v8309_v15 = vld [vmem:[%s9573_s16 + $0x368] sm:$0xf] }
 0x298   : > { %v4337_v61 = vrot.slane %v8377_v23, 5  ;;  %v4134_v21 = vunpack.c.l.b16 %v4074_v52  ;;  %v4077_v23 = vrot.slane %v8309_v15, 7 }
 0x299   : > { %8426 = vmatmul.msk.bf16.gmra.mxu3 %vm460_vm6, %v4400_v44  ;;  %v8376_v44 = vld [vmem:[%s9573_s16 + $0x38c] sm:$0xf]  ;;  %v4650_v38 = vpack.c.b16 %v4636_v47, %v4635_v7  ;;  %v8440_v7 = vld [vmem:[%s9573_s16 + $0x390] sm:$0xf]  ;;  %v8308_v47 = vld [vmem:[%s9573_s16 + $0x364] sm:$0x8] }
 0x29a   : > { %v10995_v27 = vpop.f32.mrf.mxu3  ;;  %v4334_v22 = vrot.slane %v8376_v44, 5  ;;  %v9250_v44 = vld [vmem:[%s12334_s3 + $0xb8] sm:$0xff] }
 0x29b   : > { %4895 = vmatpush.bf16.msrb.mxu1 %v9250_v44 }
 0x29d   : > { %v10983_v11 = vpop.f32.mrf.mxu2  ;;  %v10985_v6 = vpop.f32.mrf.mxu0 }
 0x29e   : > { %12372 = vst [vmem:[#allocation26_spill] sm:$0xff] %v10983_v11  ;;  %v4336_v11 = vrot.slane %v4334_v22, 4 }
 0x2a0   : > { %8489 = vmatmul.msk.bf16.vlgmr.msrb.gmra.mxu0 %vm460_vm6, %v4649_v29 }
 0x2a2   : > { %8142 = vmatmul.msk.bf16.gmra.mxu2 %vm460_vm6, %v3304_v43  ;;  %v4071_v43 = vsel %vm10358_vm9, %v8329_v24, %v4070_v34  ;;  %v4338_v24 = vsel %vm9569_vm2, %v4336_v11, %v4337_v61  ;;  %v11020_v13 = vpop.f32.mrf.mxu3  ;;  %v8310_v61 = vld [vmem:[%s9573_s16 + $0x36c] sm:$0x7] }
 0x2a3   : > { %v4133_v42 = vunpack.c.l.b16 %v4071_v43  ;;  %v4388_v41 = vunpack.c.l.b16 %v4338_v24  ;;  %v8441_v24 = vld [vmem:[%s9573_s16 + $0x394] sm:$0x7] }
 0x2a5   : > { %v10997_v35 = vpop.f32.mrf.mxu2  ;;  %v10999_v29 = vpop.f32.mrf.mxu0  ;;  %v4149_v11 = vpack.c.b16 %v4134_v21, %v4133_v42  ;;  %v8330_v21 = vrot.slane %v8308_v47, 11  ;;  %v4079_v42 = vrot.slane %v4077_v23, 4 }
 0x2a6   : > { %12373 = vst [vmem:[#allocation27_spill] sm:$0xff] %v10997_v35  ;;  %v8375_v35 = vld [vmem:[%s9573_s16 + $0x388] sm:$0xe] }
 0x2a7   : > { %v8395_v0 = vrot.slane %v8375_v35, 9 }
 0x2a9   : > { %v4335_v34 = vsel %vm9569_vm2, %v8395_v0, %v4334_v22  ;;  %v4584_v0 = vrot.slane %v8440_v7, 7  ;;  %v4078_v7 = vsel %vm10358_vm9, %v8330_v21, %v4077_v23 }
 0x2aa   : > { %v4387_v35 = vunpack.c.l.b16 %v4335_v34  ;;  %v8439_v34 = vld [vmem:[%s9573_s16 + $0x38c] sm:$0x8]  ;;  %v11038_v15 = vpop.f32.mrf.mxu3 }
 0x2ab   : > { %v8459_v60 = vrot.slane %v8439_v34, 11  ;;  %v4586_v18 = vrot.slane %v4584_v0, 4 }
 0x2ac   : > { %v4401_v5 = vpack.c.b16 %v4388_v41, %v4387_v35  ;;  %v4080_v35 = vrot.slane %v8310_v61, 7 }
 0x2ad   : > { %v2593_v43 = vpop.f32.mrf.mxu2  ;;  %v11025_v52 = vpop.f32.mrf.mxu0 }
 0x2ae   : > { %v11028_v22 = vadd.f32 %v10932_v36, %v2593_v43  ;;  %8427 = vmatmul.msk.bf16.gmra.mxu3 %vm460_vm6, %v4401_v5  ;;  %v4587_v36 = vrot.slane %v8441_v24, 7  ;;  %v4081_v47 = vsel %vm10358_vm9, %v4079_v42, %v4080_v35  ;;  %v8312_v42 = vld [vmem:[%s9573_s16 + $0x384] sm:$0xf] }
 0x2af   : > { %v4136_v23 = vunpack.c.l.b16 %v4081_v47  ;;  %v8311_v47 = vld [vmem:[%s9573_s16 + $0x380] sm:$0x8] }
 0x2b0   : > { %12374 = vst [vmem:[#allocation28_spill] sm:$0xff] %v11028_v22  ;;  %8490 = vmatmul.msk.bf16.gmra.mxu0 %vm460_vm6, %v4650_v38  ;;  %v4585_v38 = vsel %vm10358_vm9, %v8459_v60, %v4584_v0  ;;  %v4588_v43 = vsel %vm10358_vm9, %v4586_v18, %v4587_v36  ;;  %v8380_v60 = vld [vmem:[%s9573_s16 + $0x3ac] sm:$0x1]  ;;  %v8396_v0 = vrot.slane %v8378_v14, 9  ;;  %v4135_v36 = vunpack.c.l.b16 %v4078_v7 }
 0x2b1   : > { %v4637_v24 = vunpack.c.l.b16 %v4585_v38  ;;  %v4638_v22 = vunpack.c.l.b16 %v4588_v43  ;;  %v4344_v18 = vrot.slane %v8380_v60, 5  ;;  %v8313_v60 = vld [vmem:[%s9573_s16 + $0x388] sm:$0x7] }
 0x2b2   : > { %8361 = vmatmul.msk.bf16.vlgmr.msra.gmra.mxu2 %vm460_vm6, %v4149_v11  ;;  %v8379_v11 = vld [vmem:[%s9573_s16 + $0x3a8] sm:$0xf]  ;;  %v4150_v7 = vpack.c.b16 %v4136_v23, %v4135_v36  ;;  %v8331_v23 = vrot.slane %v8311_v47, 11 }
 0x2b3   : > { %v4341_v61 = vrot.slane %v8379_v11, 5  ;;  %v4651_v35 = vpack.c.b16 %v4638_v22, %v4637_v24  ;;  %v8443_v22 = vld [vmem:[%s9573_s16 + $0x3ac] sm:$0xf] }
 0x2b5   : > { %v3362_v41 = vpop.f32.mrf.mxu2  ;;  %v11040_v44 = vpop.f32.mrf.mxu0  ;;  %v4343_v30 = vrot.slane %v4341_v61, 4  ;;  %v4342_v21 = vsel %vm9569_vm2, %v8396_v0, %v4341_v61  ;;  %v4084_v61 = vrot.slane %v8312_v42, 7  ;;  %v8442_v0 = vld [vmem:[%s9573_s16 + $0x3a8] sm:$0x8] }
 0x2b6   : > { %v3402_v5 = vadd.f32 %v3362_v41, %v10660_v56  ;;  %v11063_v41 = vpop.f32.mrf.mxu3  ;;  %v4389_v14 = vunpack.c.l.b16 %v4342_v21  ;;  %v8460_v21 = vrot.slane %v8442_v0, 11  ;;  %v8381_v0 = vld [vmem:[%s9573_s16 + $0x3c0] sm:$0xe] }
 0x2b7   : > { %v4086_v42 = vrot.slane %v4084_v61, 4 }
 0x2b8   : > { %v3652_v34 = vadd.f32 %v10957_v57, %v3402_v5  ;;  %v4345_v57 = vsel %vm9569_vm2, %v4343_v30, %v4344_v18  ;;  %v8444_v18 = vld [vmem:[%s9573_s16 + $0x3b0] sm:$0x7] }
 0x2b9   : > { %v4390_v38 = vunpack.c.l.b16 %v4345_v57  ;;  %v4594_v36 = vrot.slane %v8444_v18, 7  ;;  %v8383_v18 = vld [vmem:[%s9573_s16 + $0x3c8] sm:$0x1] }
 0x2ba   : > { %v11056_v56 = vadd.f32 %v10985_v6, %v3652_v34  ;;  %v9249_v6 = vld [vmem:[%s12334_s3 + $0xb0] sm:$0xff]  ;;  %v4591_v34 = vrot.slane %v8443_v22, 7 }
 0x2bb   : > { %v4402_v30 = vpack.c.b16 %v4390_v38, %v4389_v14  ;;  %4896 = vmatpush.bf16.msrb.mxu1 %v9249_v6 }
 0x2bc   : > { %v4593_v57 = vrot.slane %v4591_v34, 4  ;;  %v4592_v6 = vsel %vm10358_vm9, %v8460_v21, %v4591_v34  ;;  %v9266_v34 = vld [vmem:[%s12333_s2 + $0x270] sm:$0xff] }
 0x2bd   : > { %v3364_v43 = vpop.f32.mrf.mxu2  ;;  %v11068_v5 = vpop.f32.mrf.mxu0  ;;  %5178 = vmatpush.bf16.msrb.mxu2 %v9266_v34 }
 0x2be   : > { %v3403_v11 = vadd.f32 %v3364_v43, %v10676_v55  ;;  %8428 = vmatmul.msk.bf16.gmra.mxu3 %vm460_vm6, %v4402_v30  ;;  %v11083_v14 = vpop.f32.mrf.mxu3  ;;  %v4595_v43 = vsel %vm10358_vm9, %v4593_v57, %v4594_v36  ;;  %v4351_v57 = vrot.slane %v8383_v18, 5 }
 0x2c0   : > { %v3653_v24 = vadd.f32 %v10976_v49, %v3403_v11  ;;  %8491 = vmatmul.msk.bf16.gmra.mxu0 %vm460_vm6, %v4651_v35  ;;  %v4087_v49 = vrot.slane %v8313_v60, 7  ;;  %v8382_v11 = vld [vmem:[%s9573_s16 + $0x3c4] sm:$0xf]  ;;  %v4640_v60 = vunpack.c.l.b16 %v4595_v43 }
 0x2c1   : > { %v4348_v22 = vrot.slane %v8382_v11, 5 }
 0x2c2   : > { %8362 = vmatmul.msk.bf16.gmra.mxu2 %vm460_vm6, %v4150_v7  ;;  %v11081_v55 = vadd.f32 %v10999_v29, %v3653_v24  ;;  %v4085_v7 = vsel %vm10358_vm9, %v8331_v23, %v4084_v61  ;;  %v4088_v30 = vsel %vm10358_vm9, %v4086_v42, %v4087_v49  ;;  %v4639_v24 = vunpack.c.l.b16 %v4592_v6  ;;  %v8315_v49 = vld [vmem:[%s9573_s16 + $0x3a0] sm:$0xf] }
 0x2c3   : > { %v4350_v21 = vrot.slane %v4348_v22, 4  ;;  %v4137_v36 = vunpack.c.l.b16 %v4085_v7  ;;  %v4138_v23 = vunpack.c.l.b16 %v4088_v30  ;;  %v4091_v34 = vrot.slane %v8315_v49, 7 }
 0x2c5   : > { %v3367_v35 = vpop.f32.mrf.mxu2  ;;  %v11085_v38 = vpop.f32.mrf.mxu0  ;;  %v4352_v42 = vsel %vm9569_vm2, %v4350_v21, %v4351_v57  ;;  %v8445_v21 = vld [vmem:[%s9573_s16 + $0x3c4] sm:$0x8]  ;;  %v8447_v57 = vld [vmem:[%s9573_s16 + $0x3cc] sm:$0x7]  ;;  %v4093_v49 = vrot.slane %v4091_v34, 4 }
 0x2c6   : > { %v3404_v29 = vadd.f32 %v3367_v35, %v10693_v40  ;;  %v8397_v40 = vrot.slane %v8381_v0, 9  ;;  %v4652_v35 = vpack.c.b16 %v4640_v60, %v4639_v24  ;;  %v11111_v6 = vpop.f32.mrf.mxu3  ;;  %v8446_v24 = vld [vmem:[%s9573_s16 + $0x3c8] sm:$0xf]  ;;  %v8314_v60 = vld [vmem:[%s9573_s16 + $0x39c] sm:$0x8] }
 0x2c7   : > { %v4598_v0 = vrot.slane %v8446_v24, 7 }
 0x2c8   : > { %v3654_v47 = vadd.f32 %v10995_v27, %v3404_v29  ;;  %v4349_v27 = vsel %vm9569_vm2, %v8397_v40, %v4348_v22  ;;  %v9248_v29 = vld [vmem:[%s12334_s3 + $0xa8] sm:$0xff]  ;;  %v4151_v22 = vpack.c.b16 %v4138_v23, %v4137_v36  ;;  %v8316_v40 = vld [vmem:[%s9573_s16 + $0x3a4] sm:$0x7]  ;;  %v4601_v36 = vrot.slane %v8447_v57, 7 }
 0x2c9   : > { %v4391_v43 = vunpack.c.l.b16 %v4349_v27  ;;  %4897 = vmatpush.bf16.msrb.mxu1 %v9248_v29  ;;  %v8461_v27 = vrot.slane %v8445_v21, 11  ;;  %v8332_v23 = vrot.slane %v8314_v60, 11  ;;  %v8384_v21 = vld [vmem:[%s9573_s16 + $0x3dc] sm:$0xe] }
 0x2ca   : > { %v11104_v61 = vadd.f32 %v11025_v52, %v3654_v47  ;;  %v4392_v52 = vunpack.c.l.b16 %v4352_v42  ;;  %v4600_v42 = vrot.slane %v4598_v0, 4  ;;  %v8398_v57 = vrot.slane %v8384_v21, 9 }
 0x2cb   : > { %v4599_v29 = vsel %vm10358_vm9, %v8461_v27, %v4598_v0  ;;  %v8386_v0 = vld [vmem:[%s9573_s16 + $0x3e4] sm:$0x1] }
 0x2cc   : > { %v4403_v47 = vpack.c.b16 %v4392_v52, %v4391_v43 }
 0x2cd   : > { %v3369_v11 = vpop.f32.mrf.mxu2  ;;  %v11116_v7 = vpop.f32.mrf.mxu0 }
 0x2ce   : > { %v3405_v30 = vadd.f32 %v3369_v11, %v10721_v2  ;;  %8429 = vmatmul.msk.bf16.gmra.mxu3 %vm460_vm6, %v4403_v47  ;;  %v11131_v43 = vpop.f32.mrf.mxu3  ;;  %v4602_v11 = vsel %vm10358_vm9, %v4600_v42, %v4601_v36  ;;  %v4358_v42 = vrot.slane %v8386_v0, 5 }
 0x2d0   : > { %v3655_v18 = vadd.f32 %v11020_v13, %v3405_v30  ;;  %8492 = vmatmul.msk.bf16.gmra.mxu0 %vm460_vm6, %v4652_v35  ;;  %v4094_v13 = vrot.slane %v8316_v40, 7  ;;  %v8385_v30 = vld [vmem:[%s9573_s16 + $0x3e0] sm:$0xf]  ;;  %v4642_v40 = vunpack.c.l.b16 %v4602_v11 }
 0x2d1   : > { %v4355_v24 = vrot.slane %v8385_v30, 5 }
 0x2d2   : > { %8363 = vmatmul.msk.bf16.gmra.mxu2 %vm460_vm6, %v4151_v22  ;;  %v11129_v2 = vadd.f32 %v11040_v44, %v3655_v18  ;;  %v4092_v22 = vsel %vm10358_vm9, %v8332_v23, %v4091_v34  ;;  %v4095_v47 = vsel %vm10358_vm9, %v4093_v49, %v4094_v13  ;;  %v4641_v18 = vunpack.c.l.b16 %v4599_v29  ;;  %v8318_v49 = vld [vmem:[%s9573_s16 + $0x3bc] sm:$0xf] }
 0x2d3   : > { %v4357_v27 = vrot.slane %v4355_v24, 4  ;;  %v4139_v36 = vunpack.c.l.b16 %v4092_v22  ;;  %v4140_v34 = vunpack.c.l.b16 %v4095_v47  ;;  %v4356_v23 = vsel %vm9569_vm2, %v8398_v57, %v4355_v24  ;;  %v8319_v57 = vld [vmem:[%s9573_s16 + $0x3c0] sm:$0x7] }
 0x2d4   : > { %v4653_v13 = vpack.c.b16 %v4642_v40, %v4641_v18  ;;  %v4393_v29 = vunpack.c.l.b16 %v4356_v23  ;;  %v8317_v18 = vld [vmem:[%s9573_s16 + $0x3b8] sm:$0x8]  ;;  %v4098_v40 = vrot.slane %v8318_v49, 7 }
 0x2d5   : > { %v3372_v35 = vpop.f32.mrf.mxu2  ;;  %v11133_v52 = vpop.f32.mrf.mxu0  ;;  %v4152_v47 = vpack.c.b16 %v4140_v34, %v4139_v36  ;;  %v8333_v34 = vrot.slane %v8317_v18, 11 }
 0x2d6   : > { %v3406_v44 = vadd.f32 %v3372_v35, %v10738_v59  ;;  %v11156_v35 = vpop.f32.mrf.mxu3  ;;  %v4100_v49 = vrot.slane %v4098_v40, 4 }
 0x2d8   : > { %v3656_v60 = vadd.f32 %v11038_v15, %v3406_v44  ;;  %v4359_v15 = vsel %vm9569_vm2, %v4357_v27, %v4358_v42  ;;  %v8448_v27 = vld [vmem:[%s9573_s16 + $0x3e0] sm:$0x8]  ;;  %v8450_v42 = vld [vmem:[%s9573_s16 + $0x3e8] sm:$0x7] }
 0x2d9   : > { %v4394_v11 = vunpack.c.l.b16 %v4359_v15  ;;  %v8462_v23 = vrot.slane %v8448_v27, 11  ;;  %v4608_v36 = vrot.slane %v8450_v42, 7  ;;  %v8387_v27 = vld [vmem:[%s9573_s16 + $0x3f8] sm:$0xe]  ;;  %v8389_v42 = vld [vmem:[%s9573_s16 + $0x400] sm:$0x1] }
 0x2da   : > { %v11149_v59 = vadd.f32 %v11068_v5, %v3656_v60  ;;  %v9247_v5 = vld [vmem:[%s12334_s3 + $0xa0] sm:$0xff] }
 0x2db   : > { %v4404_v24 = vpack.c.b16 %v4394_v11, %v4393_v29  ;;  %4898 = vmatpush.bf16.msrb.mxu1 %v9247_v5  ;;  %v8449_v60 = vld [vmem:[%s9573_s16 + $0x3e4] sm:$0xf] }
 0x2dc   : > { %v4605_v21 = vrot.slane %v8449_v60, 7 }
 0x2dd   : > { %v3374_v44 = vpop.f32.mrf.mxu2  ;;  %v11161_v30 = vpop.f32.mrf.mxu0 }
 0x2de   : > { %v3407_v22 = vadd.f32 %v3374_v44, %v10757_v39  ;;  %8430 = vmatmul.msk.bf16.gmra.mxu3 %vm460_vm6, %v4404_v24  ;;  %v4607_v15 = vrot.slane %v4605_v21, 4  ;;  %v11176_v29 = vpop.f32.mrf.mxu3  ;;  %v4606_v5 = vsel %vm10358_vm9, %v8462_v23, %v4605_v21  ;;  %v9265_v21 = vld [vmem:[%s12333_s2 + $0x268] sm:$0xff] }
 0x2df   : > { %5179 = vmatpush.bf16.msrb.mxu2 %v9265_v21 }
 0x2e0   : > { %v3657_v0 = vadd.f32 %v11063_v41, %v3407_v22  ;;  %8493 = vmatmul.msk.bf16.gmra.mxu0 %vm460_vm6, %v4653_v13  ;;  %v4101_v41 = vrot.slane %v8319_v57, 7  ;;  %v4609_v44 = vsel %vm10358_vm9, %v4607_v15, %v4608_v36  ;;  %v8388_v22 = vld [vmem:[%s9573_s16 + $0x3fc] sm:$0xf]  ;;  %v4365_v15 = vrot.slane %v8389_v42, 5 }
 0x2e1   : > { %v4362_v60 = vrot.slane %v8388_v22, 5  ;;  %v4644_v57 = vunpack.c.l.b16 %v4609_v44 }
 0x2e2   : > { %8364 = vmatmul.msk.bf16.gmra.mxu2 %vm460_vm6, %v4152_v47  ;;  %v11174_v39 = vadd.f32 %v11085_v38, %v3657_v0  ;;  %v4099_v47 = vsel %vm10358_vm9, %v8333_v34, %v4098_v40  ;;  %v4102_v24 = vsel %vm10358_vm9, %v4100_v49, %v4101_v41  ;;  %v4643_v0 = vunpack.c.l.b16 %v4606_v5  ;;  %v8321_v41 = vld [vmem:[%s9573_s16 + $0x3d8] sm:$0xf] }
 0x2e3   : > { %v4364_v23 = vrot.slane %v4362_v60, 4  ;;  %v4141_v36 = vunpack.c.l.b16 %v4099_v47  ;;  %v4142_v34 = vunpack.c.l.b16 %v4102_v24  ;;  %v4105_v21 = vrot.slane %v8321_v41, 7 }
 0x2e5   : > { %v3377_v13 = vpop.f32.mrf.mxu2  ;;  %v11178_v11 = vpop.f32.mrf.mxu0  ;;  %v4366_v49 = vsel %vm9569_vm2, %v4364_v23, %v4365_v15  ;;  %v8451_v23 = vld [vmem:[%s9573_s16 + $0x3fc] sm:$0x8]  ;;  %v8453_v15 = vld [vmem:[%s9573_s16 + $0x404] sm:$0x7]  ;;  %v4107_v41 = vrot.slane %v4105_v21, 4 }
 0x2e6   : > { %v3408_v38 = vadd.f32 %v3377_v13, %v10776_v17  ;;  %v8399_v17 = vrot.slane %v8387_v27, 9  ;;  %v4654_v13 = vpack.c.b16 %v4644_v57, %v4643_v0  ;;  %v11204_v5 = vpop.f32.mrf.mxu3  ;;  %v8452_v0 = vld [vmem:[%s9573_s16 + $0x400] sm:$0xf]  ;;  %v8320_v57 = vld [vmem:[%s9573_s16 + $0x3d4] sm:$0x8] }
 0x2e7   : > { %v4612_v27 = vrot.slane %v8452_v0, 7 }
 0x2e8   : > { %v3658_v18 = vadd.f32 %v11083_v14, %v3408_v38  ;;  %v4363_v14 = vsel %vm9569_vm2, %v8399_v17, %v4362_v60  ;;  %v9246_v38 = vld [vmem:[%s12334_s3 + $0x98] sm:$0xff]  ;;  %v4153_v60 = vpack.c.b16 %v4142_v34, %v4141_v36  ;;  %v4615_v36 = vrot.slane %v8453_v15, 7 }
 0x2e9   : > { %v4395_v44 = vunpack.c.l.b16 %v4363_v14  ;;  %4899 = vmatpush.bf16.msrb.mxu1 %v9246_v38  ;;  %v8322_v17 = vld [vmem:[%s9573_s16 + $0x3dc] sm:$0x7]  ;;  %v8463_v14 = vrot.slane %v8451_v23, 11  ;;  %v8334_v34 = vrot.slane %v8320_v57, 11  ;;  %v8390_v23 = vld [vmem:[%s9573_s16 + $0x414] sm:$0xe] }
 0x2ea   : > { %v11197_v40 = vadd.f32 %v11116_v7, %v3658_v18  ;;  %v4396_v7 = vunpack.c.l.b16 %v4366_v49  ;;  %v4614_v49 = vrot.slane %v4612_v27, 4  ;;  %v8400_v15 = vrot.slane %v8390_v23, 9 }
 0x2eb   : > { %v4613_v38 = vsel %vm10358_vm9, %v8463_v14, %v4612_v27  ;;  %v8392_v27 = vld [vmem:[%s9573_s16 + $0x41c] sm:$0x1] }
 0x2ec   : > { %v4405_v18 = vpack.c.b16 %v4396_v7, %v4395_v44 }
 0x2ed   : > { %v3379_v22 = vpop.f32.mrf.mxu2  ;;  %v11209_v47 = vpop.f32.mrf.mxu0 }
 0x2ee   : > { %v3409_v24 = vadd.f32 %v3379_v22, %v10804_v20  ;;  %8431 = vmatmul.msk.bf16.gmra.mxu3 %vm460_vm6, %v4405_v18  ;;  %v11224_v44 = vpop.f32.mrf.mxu3  ;;  %v4616_v22 = vsel %vm10358_vm9, %v4614_v49, %v4615_v36  ;;  %v4372_v49 = vrot.slane %v8392_v27, 5  ;;  %v8325_v27 = vld [vmem:[%s9573_s16 + $0x3f8] sm:$0x7] }
 0x2f0   : > { %v3659_v42 = vadd.f32 %v11111_v6, %v3409_v24  ;;  %8494 = vmatmul.msk.bf16.gmra.mxu0 %vm460_vm6, %v4654_v13  ;;  %v4108_v6 = vrot.slane %v8322_v17, 7  ;;  %v8391_v24 = vld [vmem:[%s9573_s16 + $0x418] sm:$0xf]  ;;  %v4646_v17 = vunpack.c.l.b16 %v4616_v22 }
 0x2f1   : > { %v4369_v0 = vrot.slane %v8391_v24, 5 }
 0x2f2   : > { %8365 = vmatmul.msk.bf16.gmra.mxu2 %vm460_vm6, %v4153_v60  ;;  %v11222_v20 = vadd.f32 %v11133_v52, %v3659_v42  ;;  %v4106_v60 = vsel %vm10358_vm9, %v8334_v34, %v4105_v21  ;;  %v4109_v18 = vsel %vm10358_vm9, %v4107_v41, %v4108_v6  ;;  %v4645_v42 = vunpack.c.l.b16 %v4613_v38  ;;  %v8324_v41 = vld [vmem:[%s9573_s16 + $0x3f4] sm:$0xf] }
 0x2f3   : > { %v4371_v14 = vrot.slane %v4369_v0, 4  ;;  %v4143_v36 = vunpack.c.l.b16 %v4106_v60  ;;  %v4370_v21 = vsel %vm9569_vm2, %v8400_v15, %v4369_v0  ;;  %v3151_v34 = vadd.f32 %v10842_v8, %v10833_v16  ;;  %v8455_v16 = vld [vmem:[%s9573_s16 + $0x41c] sm:$0xf]  ;;  %v8323_v8 = vld [vmem:[%s9573_s16 + $0x3f0] sm:$0x8] }
 0x2f4   : > { %v4655_v6 = vpack.c.b16 %v4646_v17, %v4645_v42  ;;  %v4112_v42 = vrot.slane %v8324_v41, 7  ;;  %v4619_v17 = vrot.slane %v8455_v16, 7  ;;  %v8454_v15 = vld [vmem:[%s9573_s16 + $0x418] sm:$0x8]  ;;  %v4115_v41 = vrot.slane %v8325_v27, 7 }
 0x2f5   : > { %v3382_v13 = vpop.f32.mrf.mxu2  ;;  %v11226_v7 = vpop.f32.mrf.mxu0  ;;  %v3156_v27 = vadd.f32 %v10888_v19, %v10879_v46  ;;  %v9263_v46 = vld [vmem:[%s12333_s2 + $0x258] sm:$0xff] }
 0x2f6   : > { %v3410_v52 = vadd.f32 %v3382_v13, %v10823_v51  ;;  %v4144_v13 = vunpack.c.l.b16 %v4109_v18  ;;  %v11251_v38 = vpop.f32.mrf.mxu3  ;;  %5314 = vmatpush.bf16.msrb.mxu3 %v9263_v46  ;;  %v9243_v46 = vld [vmem:[%s12334_s3 + $0x80] sm:$0xff] }
 0x2f8   : > { %v3660_v57 = vadd.f32 %v11131_v43, %v3410_v52  ;;  %v4373_v43 = vsel %vm9569_vm2, %v4371_v14, %v4372_v49  ;;  %v9245_v52 = vld [vmem:[%s12334_s3 + $0x90] sm:$0xff]  ;;  %v4154_v0 = vpack.c.b16 %v4144_v13, %v4143_v36  ;;  %v8456_v14 = vld [vmem:[%s9573_s16 + $0x420] sm:$0x7]  ;;  %v8464_v49 = vrot.slane %v8454_v15, 11 }
 0x2f9   : > { %v4398_v22 = vunpack.c.l.b16 %v4373_v43  ;;  %4900 = vmatpush.bf16.msrb.mxu1 %v9245_v52  ;;  %v4622_v13 = vrot.slane %v8456_v14, 7  ;;  %v8335_v43 = vrot.slane %v8323_v8, 11  ;;  %v9264_v8 = vld [vmem:[%s12333_s2 + $0x260] sm:$0xff] }
 0x2fa   : > { %v11242_v51 = vadd.f32 %v11161_v30, %v3660_v57  ;;  %v4397_v30 = vunpack.c.l.b16 %v4370_v21  ;;  %v4621_v21 = vrot.slane %v4619_v17, 4  ;;  %5180 = vmatpush.bf16.msrb.mxu2 %v9264_v8 }
 0x2fc   : > { %v4406_v57 = vpack.c.b16 %v4398_v22, %v4397_v30  ;;  %v4623_v52 = vsel %vm10358_vm9, %v4621_v21, %v4622_v13 }
 0x2fd   : > { %v3384_v24 = vpop.f32.mrf.mxu2  ;;  %v11256_v60 = vpop.f32.mrf.mxu0  ;;  %v4648_v16 = vunpack.c.l.b16 %v4623_v52 }
 0x2fe   : > { %v3411_v18 = vadd.f32 %v3384_v24, %v3151_v34  ;;  %8432 = vmatmul.msk.bf16.gmra.mxu3 %vm460_vm6, %v4406_v57  ;;  %v4114_v34 = vrot.slane %v4112_v42, 4  ;;  %v11270_v30 = vpop.f32.mrf.mxu3 }
 0x300   : > { %v3661_v23 = vadd.f32 %v11156_v35, %v3411_v18  ;;  %8495 = vmatmul.msk.bf16.gmra.mxu0 %vm460_vm6, %v4655_v6  ;;  %v4620_v6 = vsel %vm10358_vm9, %v8464_v49, %v4619_v17  ;;  %v4116_v18 = vsel %vm10358_vm9, %v4114_v34, %v4115_v41  ;;  %v11287_v17 = vpop.f32.mrf.mxu1  ;;  %v9244_v49 = vld [vmem:[%s12334_s3 + $0x88] sm:$0xff] }
 0x301   : > { %v4647_v57 = vunpack.c.l.b16 %v4620_v6  ;;  %4901 = vmatpush.bf16.msrb.mxu1 %v9244_v49  ;;  %v8328_v6 = vld [vmem:[%s9573_s16 + $0x414] sm:$0x7]  ;;  %v3161_v49 = vadd.f32 %v10929_v58, %v10920_v53 }
 0x302   : > { %8366 = vmatmul.msk.bf16.gmra.mxu2 %vm460_vm6, %v4154_v0  ;;  %v11268_v36 = vadd.f32 %v11178_v11, %v3661_v23  ;;  %v4113_v11 = vsel %vm10358_vm9, %v8335_v43, %v4112_v42  ;;  %v4146_v42 = vunpack.c.l.b16 %v4116_v18  ;;  %v4122_v18 = vrot.slane %v8328_v6, 7  ;;  %v9270_v53 = vld [vmem:[%s12333_s2 + $0x290] sm:$0xff] }
 0x303   : > { %v4656_v15 = vpack.c.b16 %v4648_v16, %v4647_v57  ;;  %5549 = vmatpush.bf16.msra.mxu0 %v9270_v53 }
 0x305   : > { %v3387_v35 = vpop.f32.mrf.mxu2  ;;  %v11272_v22 = vpop.f32.mrf.mxu0  ;;  %4902 = vmatpush.bf16.msrb.mxu1 %v9243_v46 }
 0x306   : > { %v3412_v24 = vadd.f32 %v3387_v35, %v10861_v31  ;;  %v4145_v31 = vunpack.c.l.b16 %v4113_v11  ;;  %v11295_v14 = vpop.f32.mrf.mxu3  ;;  %v8326_v35 = vld [vmem:[%s9573_s16 + $0x40c] sm:$0x8] }
 0x308   : > { %v3662_v0 = vadd.f32 %v11176_v29, %v3412_v24  ;;  %v8327_v29 = vld [vmem:[%s9573_s16 + $0x410] sm:$0xf]  ;;  %v4155_v43 = vpack.c.b16 %v4146_v42, %v4145_v31  ;;  %v11309_v19 = vpop.f32.mrf.mxu1  ;;  %v8336_v24 = vrot.slane %v8326_v35, 11  ;;  %v9260_v35 = vld [vmem:[%s12333_s2 + $0x240] sm:$0xff] }
 0x309   : > { %v4119_v34 = vrot.slane %v8327_v29, 7 }
 0x30a   : > { %v11290_v23 = vadd.f32 %v11209_v47, %v3662_v0 }
 0x30b   : > { %v4121_v11 = vrot.slane %v4119_v34, 4  ;;  %v4120_v8 = vsel %vm10358_vm9, %v8336_v24, %v4119_v34  ;;  %v4988_v24 = vld [vmem:[%s9573_s16 + $0x8] sm:$0xe] }
 0x30c   : > { %v4147_v29 = vunpack.c.l.b16 %v4120_v8  ;;  %v8555_v8 = vrot.slane %v4988_v24, 9 }
 0x30d   : > { %v3389_v21 = vpop.f32.mrf.mxu2  ;;  %v11300_v13 = vpop.f32.mrf.mxu0  ;;  %v4123_v31 = vsel %vm10358_vm9, %v4121_v11, %v4122_v18  ;;  %v4990_v11 = vld [vmem:[%s9573_s16 + $0x10] sm:$0x1] }
 0x30e   : > { %v3413_v47 = vadd.f32 %v3389_v21, %v3156_v27 }
 0x310   : > { %v3663_v41 = vadd.f32 %v11204_v5, %v3413_v47  ;;  %8496 = vmatmul.msk.bf16.gmra.mxu0 %vm460_vm6, %v4656_v15  ;;  %v11315_v5 = vpop.f32.mrf.mxu3  ;;  %v4148_v15 = vunpack.c.l.b16 %v4123_v31  ;;  %v5041_v31 = vrot.slane %v4990_v11, 5 }
 0x312   : > { %8367 = vmatmul.msk.bf16.gmra.mxu2 %vm460_vm6, %v4155_v43  ;;  %v11313_v52 = vadd.f32 %v11226_v7, %v3663_v41  ;;  %v9262_v7 = vld [vmem:[%s12333_s2 + $0x250] sm:$0xff]  ;;  %v4156_v41 = vpack.c.b16 %v4148_v15, %v4147_v29 }
 0x313   : > { %5315 = vmatpush.bf16.msrb.mxu3 %v9262_v7  ;;  %v9269_v7 = vld [vmem:[%s12333_s2 + $0x288] sm:$0xff]  ;;  %v5359_v15 = vld [vmem:[%s9573_s16 + $0x10] sm:$0xc] }
 0x314   : > { %5550 = vmatpush.bf16.msra.mxu0 %v9269_v7 }
 0x315   : > { %v3392_v0 = vpop.f32.mrf.mxu2  ;;  %v11317_v57 = vpop.f32.mrf.mxu0 }
 0x316   : > { %v3414_v16 = vadd.f32 %v3392_v0, %v10910_v1  ;;  %v9261_v1 = vld [vmem:[%s12333_s2 + $0x248] sm:$0xff]  ;;  %v9252_v0 = vld [vmem:[%s9573_s16] sm:$0xff] }
 0x317   : > { %5316 = vmatpush.bf16.msrb.mxu3 %v9261_v1  ;;  %v5361_v1 = vld [vmem:[%s9573_s16 + $0x18] sm:$0x3] }
 0x318   : > { %v3664_v42 = vadd.f32 %v11224_v44, %v3414_v16  ;;  %v11339_v44 = vpop.f32.mrf.mxu1  ;;  %v11341_v21 = vpop.f32.mrf.mxu3  ;;  %v5360_v16 = vld [vmem:[%s9573_s16 + $0x14] sm:$0xf] }
 0x31a   : > { %v11329_v27 = vadd.f32 %v11256_v60, %v3664_v42  ;;  %v4989_v60 = vld [vmem:[%s9573_s16 + $0xc] sm:$0xf]  ;;  %v5409_v42 = vrot.slane %v5360_v16, 6 }
 0x31b   : > { %v5038_v58 = vrot.slane %v4989_v60, 5  ;;  %5317 = vmatpush.bf16.msrb.mxu3 %v9260_v35 }
 0x31c   : > { %v5411_v60 = vrot.slane %v5409_v42, 4 }
 0x31d   : > { %v3394_v47 = vpop.f32.mrf.mxu2  ;;  %v11344_v43 = vpop.f32.mrf.mxu0  ;;  %v5039_v35 = vsel %vm9569_vm2, %v8555_v8, %v5038_v58 }
 0x31e   : > { %v3415_v34 = vadd.f32 %v3394_v47, %v3161_v49  ;;  %8643 = vmatmul.msk.bf16.vlgmr.msrb.gmra.mxu3 %vm460_vm6, %v9252_v0  ;;  %v8651_v49 = vrot.slane %v5359_v15, 10  ;;  %v5412_v47 = vrot.slane %v5361_v1, 6  ;;  %v5101_v16 = vunpack.c.l.b16 %v5039_v35 }
 0x320   : > { %v3665_v6 = vadd.f32 %v11251_v38, %v3415_v34  ;;  %v5040_v38 = vrot.slane %v5038_v58, 4  ;;  %v11367_v29 = vpop.f32.mrf.mxu3  ;;  %v11374_v34 = vpop.f32.mrf.mxu1  ;;  %v5410_v46 = vsel %vm9598_vm5, %v8651_v49, %v5409_v42  ;;  %v5413_v24 = vsel %vm9598_vm5, %v5411_v60, %v5412_v47  ;;  %v4992_v42 = vld [vmem:[%s9573_s16 + $0x28] sm:$0xf]  ;;  %v4991_v47 = vld [vmem:[%s9573_s16 + $0x24] sm:$0xe] }
 0x321   : > { %v5473_v0 = vunpack.c.l.b16 %v5413_v24 }
 0x322   : > { %8368 = vmatmul.msk.bf16.gmra.mxu2 %vm460_vm6, %v4156_v41  ;;  %v11360_v18 = vadd.f32 %v11272_v22, %v3665_v6  ;;  %v5042_v53 = vsel %vm9569_vm2, %v5040_v38, %v5041_v31  ;;  %v9268_v6 = vld [vmem:[%s12333_s2 + $0x280] sm:$0xff]  ;;  %v3166_v31 = vadd.f32 %v11287_v17, %v10963_v50 }
 0x323   : > { %5551 = vmatpush.bf16.msra.mxu0 %v9268_v6  ;;  %v5102_v8 = vunpack.c.l.b16 %v5042_v53  ;;  %v9253_v53 = vld [vmem:[%s9573_s16 + $0x1c] sm:$0xff]  ;;  %v5363_v6 = vld [vmem:[%s9573_s16 + $0x30] sm:$0xf] }
 0x325   : > { %v3397_v26 = vpop.f32.mrf.mxu2  ;;  %v11372_v22 = vpop.f32.mrf.mxu0  ;;  %v5117_v17 = vpack.c.b16 %v5102_v8, %v5101_v16  ;;  %v5364_v8 = vld [vmem:[%s9573_s16 + $0x34] sm:$0x3] }
 0x326   : > { %v3416_v41 = vadd.f32 %v3397_v26, %v10949_v4  ;;  %v5472_v4 = vunpack.c.l.b16 %v5410_v46  ;;  %v5045_v26 = vrot.slane %v4992_v42, 5  ;;  %v8556_v46 = vrot.slane %v4991_v47, 9 }
 0x328   : > { %v3666_v11 = vadd.f32 %v11270_v30, %v3416_v41  ;;  %v5488_v38 = vpack.c.b16 %v5473_v0, %v5472_v4  ;;  %v11394_v7 = vpop.f32.mrf.mxu3  ;;  %v9287_v30 = vld [vmem:[%s12333_s2 + $0x2d8] sm:$0xff]  ;;  %v11406_v49 = vpop.f32.mrf.mxu1  ;;  %v4993_v41 = vld [vmem:[%s9573_s16 + $0x2c] sm:$0x1]  ;;  %v5047_v24 = vrot.slane %v5045_v26, 4  ;;  %v5416_v4 = vrot.slane %v5363_v6, 6 }
 0x329   : > { %5824 = vmatpush.bf16.msra.mxu2 %v9287_v30  ;;  %v4000_v0 = vadd.f32 %v11309_v19, %v11056_v56 }
 0x32a   : > { %v11390_v58 = vadd.f32 %v11300_v13, %v3666_v11  ;;  %8683 = vmatmul.msk.bf16.vlgmr.msra.gmra.mxu0 %vm460_vm6, %v5488_v38  ;;  %v9283_v13 = vld [vmem:[%s12333_s2 + $0x2b8] sm:$0xff]  ;;  %v5048_v11 = vrot.slane %v4993_v41, 5  ;;  %v5418_v30 = vrot.slane %v5416_v4, 4 }
 0x32b   : > { %5726 = vmatpush.bf16.msra.mxu1 %v9283_v13  ;;  %v5419_v13 = vrot.slane %v5364_v8, 6 }
 0x32c   : > { %v5049_v56 = vsel %vm9569_vm2, %v5047_v24, %v5048_v11  ;;  %v11441_v24 = vld [vmem:[%s12335_s4 + $0x4] ss:$0 sm:$0xff]  ;;  %v4001_v11 = vadd.f32 %v11339_v44, %v11081_v55  ;;  %v4994_v55 = vld [vmem:[%s9573_s16 + $0x40] sm:$0xe] }
 0x32d   : > { %v3399_v15 = vpop.f32.mrf.mxu2  ;;  %v11404_v1 = vpop.f32.mrf.mxu0  ;;  %v5104_v6 = vunpack.c.l.b16 %v5049_v56  ;;  %v9254_v56 = vld [vmem:[%s9573_s16 + $0x38] sm:$0xff] }
 0x32e   : > { %v3417_v50 = vadd.f32 %v3399_v15, %v3166_v31  ;;  %8644 = vmatmul.msk.bf16.gmra.mxu3 %vm460_vm6, %v9253_v53  ;;  %v5046_v15 = vsel %vm9569_vm2, %v8556_v46, %v5045_v26 }
 0x32f   : > { %v5103_v53 = vunpack.c.l.b16 %v5046_v15  ;;  %v8557_v15 = vrot.slane %v4994_v55, 9 }
 0x330   : > { %v3667_v60 = vadd.f32 %v11295_v14, %v3417_v50  ;;  %v5362_v14 = vld [vmem:[%s9573_s16 + $0x2c] sm:$0xc]  ;;  %v5420_v50 = vsel %vm9598_vm5, %v5418_v30, %v5419_v13  ;;  %v11435_v41 = vpop.f32.mrf.mxu1  ;;  %v4996_v13 = vld [vmem:[%s9573_s16 + $0x48] sm:$0x1] }
 0x331   : > { %v11419_v16 = vpop.f32.mrf.mxu3  ;;  %v8652_v31 = vrot.slane %v5362_v14, 10  ;;  %v5475_v47 = vunpack.c.l.b16 %v5420_v50 }
 0x332   : > { %v11412_v35 = vadd.f32 %v11317_v57, %v3667_v60  ;;  %8587 = vmatmul.msk.bf16.vlgmr.msrb.gmra.mxu2 %vm460_vm6, %v5117_v17 }
 0x333   : > { %v5417_v19 = vsel %vm9598_vm5, %v8652_v31, %v5416_v4  ;;  %v4995_v4 = vld [vmem:[%s9573_s16 + $0x44] sm:$0xf] }
 0x334   : > { %v5474_v60 = vunpack.c.l.b16 %v5417_v19  ;;  %v11455_v31 = vld [vmem:[%s12335_s4 + $0x5] ss:$0 sm:$0xff]  ;;  %v5052_v44 = vrot.slane %v4995_v4, 5  ;;  %v5366_v19 = vld [vmem:[%s9573_s16 + $0x4c] sm:$0xf] }
 0x335   : > { %v4214_v38 = vpop.f32.mrf.mxu2  ;;  %v11424_v57 = vpop.f32.mrf.mxu0 }
 0x336   : > { %v4254_v42 = vadd.f32 %v4214_v38, %v4000_v0  ;;  %v5489_v26 = vpack.c.b16 %v5475_v47, %v5474_v60  ;;  %v5055_v60 = vrot.slane %v4996_v13, 5  ;;  %v5423_v47 = vrot.slane %v5366_v19, 6 }
 0x338   : > { %v4504_v17 = vadd.f32 %v11315_v5, %v4254_v42 }
 0x339   : > { %v11445_v5 = vpop.f32.mrf.mxu3 }
 0x33a   : > { %v4754_v46 = vadd.f32 %v11344_v43, %v4504_v17  ;;  %8684 = vmatmul.msk.bf16.gmra.mxu0 %vm460_vm6, %v5489_v26  ;;  %v5118_v43 = vpack.c.b16 %v5104_v6, %v5103_v53  ;;  %v5054_v17 = vrot.slane %v5052_v44, 4  ;;  %v4002_v53 = vadd.f32 %v11374_v34, %v11104_v61  ;;  %v11467_v6 = vpop.f32.mrf.mxu1 }
 0x33b   : > { %v5053_v61 = vsel %vm9569_vm2, %v8557_v15, %v5052_v44 }
 0x33c   : > { %v4772_v38 = vmul.f32 %v11441_v24, %v4754_v46  ;;  %v5367_v46 = vld [vmem:[%s9573_s16 + $0x50] sm:$0x3] }
 0x33d   : > { %v4216_v0 = vpop.f32.mrf.mxu2  ;;  %v11449_v14 = vpop.f32.mrf.mxu0 }
 0x33e   : > { %v4255_v8 = vadd.f32 %v4216_v0, %v4001_v11  ;;  %v4790_v50 = vadd.f32 %v11455_v31, %v4772_v38  ;;  %8645 = vmatmul.msk.bf16.gmra.mxu3 %vm460_vm6, %v9254_v56 }
 0x340   : > { %v4505_v30 = vadd.f32 %v11341_v21, %v4255_v8  ;;  %v5425_v8 = vrot.slane %v5423_v47, 4  ;;  %v4806_v34 = vmax.f32 %v4790_v50, 0.0  ;;  %v4003_v50 = vadd.f32 %v11406_v49, %v11129_v2 }
 0x341   : > { %v11470_v26 = vpop.f32.mrf.mxu3 }
 0x342   : > { %v4755_v42 = vadd.f32 %v11372_v22, %v4505_v30  ;;  %8588 = vmatmul.msk.bf16.gmra.mxu2 %vm460_vm6, %v5118_v43  ;;  %v5365_v22 = vld [vmem:[%s9573_s16 + $0x48] sm:$0xc]  ;;  %v5426_v43 = vrot.slane %v5367_v46, 6  ;;  %v5056_v30 = vsel %vm9569_vm2, %v5054_v17, %v5055_v60  ;;  %v5105_v46 = vunpack.c.l.b16 %v5053_v61  ;;  %v9282_v17 = vld [vmem:[%s12333_s2 + $0x2b0] sm:$0xff]  ;;  %v4998_v60 = vld [vmem:[%s9573_s16 + $0x60] sm:$0xf] }
 0x343   : > { %v8653_v0 = vrot.slane %v5365_v22, 10  ;;  %5727 = vmatpush.bf16.msra.mxu1 %v9282_v17 }
 0x344   : > { %v4773_v21 = vmul.f32 %v11441_v24, %v4755_v42  ;;  %v5427_v42 = vsel %vm9598_vm5, %v5425_v8, %v5426_v43 }
 0x345   : > { %v4219_v11 = vpop.f32.mrf.mxu2  ;;  %v11475_v4 = vpop.f32.mrf.mxu0  ;;  %v5424_v13 = vsel %vm9598_vm5, %v8653_v0, %v5423_v47 }
 0x346   : > { %v4791_v38 = vadd.f32 %v11455_v31, %v4773_v21  ;;  %v4256_v55 = vadd.f32 %v4219_v11, %v4002_v53  ;;  %v5476_v22 = vunpack.c.l.b16 %v5424_v13  ;;  %v5477_v21 = vunpack.c.l.b16 %v5427_v42  ;;  %v11500_v0 = vpop.f32.mrf.mxu1  ;;  %v9255_v42 = vld [vmem:[%s9573_s16 + $0x54] sm:$0xff] }
 0x347   : > { %v5106_v11 = vunpack.c.l.b16 %v5056_v30 }
 0x348   : > { %v4807_v56 = vmax.f32 %v4791_v38, 0.0  ;;  %v4506_v19 = vadd.f32 %v11367_v29, %v4256_v55  ;;  %v5490_v44 = vpack.c.b16 %v5477_v21, %v5476_v22  ;;  %v9286_v29 = vld [vmem:[%s12333_s2 + $0x2d0] sm:$0xff]  ;;  %v4997_v38 = vld [vmem:[%s9573_s16 + $0x5c] sm:$0xe]  ;;  %v5059_v55 = vrot.slane %v4998_v60, 5 }
 0x349   : > { %v5119_v49 = vpack.c.b16 %v5106_v11, %v5105_v46  ;;  %5825 = vmatpush.bf16.msra.mxu2 %v9286_v29  ;;  %v11503_v43 = vpop.f32.mrf.mxu3  ;;  %v8558_v13 = vrot.slane %v4997_v38, 9  ;;  %v4004_v46 = vadd.f32 %v11435_v41, %v11149_v59 }
 0x34a   : > { %v4822_v53 = vpack.c.bf16 %v4807_v56, %v4806_v34  ;;  %v4756_v15 = vadd.f32 %v11404_v1, %v4506_v19  ;;  %8685 = vmatmul.msk.bf16.gmra.mxu0 %vm460_vm6, %v5490_v44  ;;  %v4999_v34 = vld [vmem:[%s9573_s16 + $0x64] sm:$0x1]  ;;  %v5369_v56 = vld [vmem:[%s9573_s16 + $0x68] sm:$0xf]  ;;  %v5061_v22 = vrot.slane %v5059_v55, 4 }
 0x34b   : > { %v5062_v21 = vrot.slane %v4999_v34, 5  ;;  %v5370_v44 = vld [vmem:[%s9573_s16 + $0x6c] sm:$0x3] }
 0x34c   : > { %4903 = vmatmul.bf16.vlgmr.msrb.gmra.mxu1 %v4822_v53  ;;  %v4774_v8 = vmul.f32 %v11441_v24, %v4756_v15  ;;  %v5430_v53 = vrot.slane %v5369_v56, 6  ;;  %v5433_v17 = vrot.slane %v5370_v44, 6 }
 0x34d   : > { %v4221_v47 = vpop.f32.mrf.mxu2  ;;  %v11498_v1 = vpop.f32.mrf.mxu0  ;;  %v5063_v59 = vsel %vm9569_vm2, %v5061_v22, %v5062_v21 }
 0x34e   : > { %v4257_v2 = vadd.f32 %v4221_v47, %v4003_v50  ;;  %v4792_v19 = vadd.f32 %v11455_v31, %v4774_v8  ;;  %8646 = vmatmul.msk.bf16.gmra.mxu3 %vm460_vm6, %v9255_v42  ;;  %v5432_v29 = vrot.slane %v5430_v53, 4  ;;  %v3977_v38 = vpop.f32.mrf.mxu1 }
 0x350   : > { %v4507_v61 = vadd.f32 %v11394_v7, %v4257_v2  ;;  %v5368_v7 = vld [vmem:[%s9573_s16 + $0x64] sm:$0xc]  ;;  %v5060_v2 = vsel %vm9569_vm2, %v8558_v13, %v5059_v55  ;;  %v5434_v8 = vsel %vm9598_vm5, %v5432_v29, %v5433_v17  ;;  %v5002_v17 = vld [vmem:[%s9573_s16 + $0x80] sm:$0x1] }
 0x351   : > { %v8654_v50 = vrot.slane %v5368_v7, 10  ;;  %v5479_v42 = vunpack.c.l.b16 %v5434_v8  ;;  %v11531_v56 = vpop.f32.mrf.mxu3  ;;  %v5107_v13 = vunpack.c.l.b16 %v5060_v2  ;;  %v5372_v2 = vld [vmem:[%s9573_s16 + $0x84] sm:$0xf]  ;;  %v5069_v8 = vrot.slane %v5002_v17, 5 }
 0x352   : > { %v4757_v30 = vadd.f32 %v11424_v57, %v4507_v61  ;;  %8589 = vmatmul.msk.bf16.gmra.mxu2 %vm460_vm6, %v5119_v49  ;;  %v4808_v49 = vmax.f32 %v4792_v19, 0.0  ;;  %v5108_v19 = vunpack.c.l.b16 %v5063_v59 }
 0x353   : > { %v5431_v41 = vsel %vm9598_vm5, %v8654_v50, %v5430_v53  ;;  %v4005_v53 = vadd.f32 %v11467_v6, %v11174_v39  ;;  %v5000_v50 = vld [vmem:[%s9573_s16 + $0x78] sm:$0xe] }
 0x354   : > { %v4775_v11 = vmul.f32 %v11441_v24, %v4757_v30  ;;  %v5478_v30 = vunpack.c.l.b16 %v5431_v41  ;;  %v5120_v44 = vpack.c.b16 %v5108_v19, %v5107_v13 }
 0x355   : > { %v4224_v57 = vpop.f32.mrf.mxu2  ;;  %v11519_v15 = vpop.f32.mrf.mxu0 }
 0x356   : > { %v4258_v60 = vadd.f32 %v4224_v57, %v4004_v46  ;;  %v4793_v47 = vadd.f32 %v11455_v31, %v4775_v11  ;;  %v5491_v22 = vpack.c.b16 %v5479_v42, %v5478_v30  ;;  %v11544_v39 = vpop.f32.mrf.mxu1  ;;  %v5373_v30 = vld [vmem:[%s9573_s16 + $0x88] sm:$0x3] }
 0x358   : > { %v4508_v61 = vadd.f32 %v11419_v16, %v4258_v60  ;;  %v4809_v34 = vmax.f32 %v4793_v47, 0.0  ;;  %v5001_v16 = vld [vmem:[%s9573_s16 + $0x7c] sm:$0xf]  ;;  %v8559_v60 = vrot.slane %v5000_v50, 9  ;;  %v9256_v47 = vld [vmem:[%s9573_s16 + $0x70] sm:$0xff] }
 0x359   : > { %v5066_v29 = vrot.slane %v5001_v16, 5  ;;  %v11551_v59 = vpop.f32.mrf.mxu3 }
 0x35a   : > { %v4823_v55 = vpack.c.bf16 %v4809_v34, %v4808_v49  ;;  %v4758_v21 = vadd.f32 %v11449_v14, %v4508_v61  ;;  %8686 = vmatmul.msk.bf16.gmra.mxu0 %vm460_vm6, %v5491_v22  ;;  %v5437_v61 = vrot.slane %v5372_v2, 6  ;;  %v5440_v22 = vrot.slane %v5373_v30, 6 }
 0x35b   : > { %v5068_v41 = vrot.slane %v5066_v29, 4  ;;  %v5067_v16 = vsel %vm9569_vm2, %v8559_v60, %v5066_v29  ;;  %v4007_v2 = vadd.f32 %v3977_v38, %v11222_v20 }
 0x35c   : > { %4908 = vmatmul.bf16.gmra.mxu1 %v4823_v55  ;;  %v4776_v57 = vmul.f32 %v11441_v24, %v4758_v21  ;;  %v5439_v19 = vrot.slane %v5437_v61, 4 }
 0x35d   : > { %v4226_v46 = vpop.f32.mrf.mxu2  ;;  %v11538_v11 = vpop.f32.mrf.mxu0 }
 0x35e   : > { %v4259_v7 = vadd.f32 %v4226_v46, %v4005_v53  ;;  %v4794_v49 = vadd.f32 %v11455_v31, %v4776_v57  ;;  %8647 = vmatmul.msk.bf16.gmra.mxu3 %vm460_vm6, %v9256_v47 }
 0x360   : > { %v4509_v14 = vadd.f32 %v11445_v5, %v4259_v7  ;;  %v4006_v5 = vadd.f32 %v11500_v0, %v11197_v40  ;;  %v4810_v46 = vmax.f32 %v4794_v49, 0.0  ;;  %v5070_v40 = vsel %vm9569_vm2, %v5068_v41, %v5069_v8  ;;  %v3982_v49 = vpop.f32.mrf.mxu1  ;;  %v9281_v41 = vld [vmem:[%s12333_s2 + $0x2a8] sm:$0xff]  ;;  %v5004_v8 = vld [vmem:[%s9573_s16 + $0x98] sm:$0xf] }
 0x361   : > { %v5441_v7 = vsel %vm9598_vm5, %v5439_v19, %v5440_v22  ;;  %v5110_v47 = vunpack.c.l.b16 %v5070_v40  ;;  %5728 = vmatpush.bf16.msra.mxu1 %v9281_v41  ;;  %v5073_v30 = vrot.slane %v5004_v8, 5 }
 0x362   : > { %v4759_v6 = vadd.f32 %v11475_v4, %v4509_v14  ;;  %8590 = vmatmul.msk.bf16.gmra.mxu2 %vm460_vm6, %v5120_v44  ;;  %v5371_v4 = vld [vmem:[%s9573_s16 + $0x80] sm:$0xc]  ;;  %v5481_v14 = vunpack.c.l.b16 %v5441_v7  ;;  %v4008_v7 = vadd.f32 %v11544_v39, %v11242_v51 }
 0x363   : > { %v8655_v13 = vrot.slane %v5371_v4, 10  ;;  %v5003_v4 = vld [vmem:[%s9573_s16 + $0x94] sm:$0xe] }
 0x364   : > { %v4777_v34 = vmul.f32 %v11441_v24, %v4759_v6  ;;  %v5109_v6 = vunpack.c.l.b16 %v5067_v16  ;;  %v8560_v22 = vrot.slane %v5003_v4, 9 }
 0x365   : > { %v4229_v42 = vpop.f32.mrf.mxu2  ;;  %v11559_v55 = vpop.f32.mrf.mxu0  ;;  %v5438_v0 = vsel %vm9598_vm5, %v8655_v13, %v5437_v61  ;;  %v5005_v13 = vld [vmem:[%s9573_s16 + $0x9c] sm:$0x1] }
 0x366   : > { %v4260_v21 = vadd.f32 %v4229_v42, %v4006_v5  ;;  %v4795_v53 = vadd.f32 %v11455_v31, %v4777_v34  ;;  %v5480_v50 = vunpack.c.l.b16 %v5438_v0  ;;  %v5121_v38 = vpack.c.b16 %v5110_v47, %v5109_v6 }
 0x367   : > { %v5076_v40 = vrot.slane %v5005_v13, 5 }
 0x368   : > { %v4510_v44 = vadd.f32 %v11470_v26, %v4260_v21  ;;  %v4811_v57 = vmax.f32 %v4795_v53, 0.0  ;;  %v5492_v29 = vpack.c.b16 %v5481_v14, %v5480_v50  ;;  %v9285_v26 = vld [vmem:[%s12333_s2 + $0x2c8] sm:$0xff]  ;;  %v5375_v53 = vld [vmem:[%s9573_s16 + $0xa0] sm:$0xf]  ;;  %v3985_v6 = vpop.f32.mrf.mxu1 }
 0x369   : > { %5826 = vmatpush.bf16.msra.mxu2 %v9285_v26  ;;  %v9257_v21 = vld [vmem:[%s9573_s16 + $0x8c] sm:$0xff]  ;;  %v5444_v0 = vrot.slane %v5375_v53, 6 }
 0x36a   : > { %v4824_v17 = vpack.c.bf16 %v4811_v57, %v4810_v46  ;;  %v4760_v60 = vadd.f32 %v11498_v1, %v4510_v44  ;;  %8687 = vmatmul.msk.bf16.gmra.mxu0 %vm460_vm6, %v5492_v29  ;;  %v11581_v1 = vpop.f32.mrf.mxu3  ;;  %v5075_v46 = vrot.slane %v5073_v30, 4  ;;  %v5376_v57 = vld [vmem:[%s9573_s16 + $0xa4] sm:$0x3] }
 0x36b   : > { %v5446_v14 = vrot.slane %v5444_v0, 4 }
 0x36c   : > { %4913 = vmatmul.bf16.gmra.mxu1 %v4824_v17  ;;  %v4778_v5 = vmul.f32 %v11441_v24, %v4760_v60  ;;  %v5447_v17 = vrot.slane %v5376_v57, 6  ;;  %v5074_v60 = vsel %vm9569_vm2, %v8560_v22, %v5073_v30  ;;  %v5077_v51 = vsel %vm9569_vm2, %v5075_v46, %v5076_v40  ;;  %v5006_v40 = vld [vmem:[%s9573_s16 + $0xb0] sm:$0xe]  ;;  %v9258_v57 = vld [vmem:[%s9573_s16 + $0xa8] sm:$0xff] }
 0x36d   : > { %v4231_v61 = vpop.f32.mrf.mxu2  ;;  %v11584_v34 = vpop.f32.mrf.mxu0  ;;  %v5111_v30 = vunpack.c.l.b16 %v5074_v60  ;;  %v4009_v22 = vadd.f32 %v3982_v49, %v11268_v36 }
 0x36e   : > { %v4261_v20 = vadd.f32 %v4231_v61, %v4007_v2  ;;  %v4796_v16 = vadd.f32 %v11455_v31, %v4778_v5  ;;  %8648 = vmatmul.msk.bf16.gmra.mxu3 %vm460_vm6, %v9257_v21  ;;  %v5448_v41 = vsel %vm9598_vm5, %v5446_v14, %v5447_v17 }
 0x370   : > { %v4511_v42 = vadd.f32 %v11503_v43, %v4261_v20  ;;  %v5374_v43 = vld [vmem:[%s9573_s16 + $0x9c] sm:$0xc]  ;;  %v4812_v2 = vmax.f32 %v4796_v16, 0.0 }
 0x371   : > { %v8656_v50 = vrot.slane %v5374_v43, 10  ;;  %v8561_v43 = vrot.slane %v5006_v40, 9 }
 0x372   : > { %v4761_v19 = vadd.f32 %v11519_v15, %v4511_v42  ;;  %8591 = vmatmul.msk.bf16.gmra.mxu2 %vm460_vm6, %v5121_v38  ;;  %v11603_v26 = vpop.f32.mrf.mxu3  ;;  %v5483_v38 = vunpack.c.l.b16 %v5448_v41  ;;  %v5112_v42 = vunpack.c.l.b16 %v5077_v51 }
 0x373   : > { %v5445_v39 = vsel %vm9598_vm5, %v8656_v50, %v5444_v0 }
 0x374   : > { %v4779_v44 = vmul.f32 %v11441_v24, %v4761_v19  ;;  %v5482_v20 = vunpack.c.l.b16 %v5445_v39  ;;  %v5122_v16 = vpack.c.b16 %v5112_v42, %v5111_v30 }
 0x375   : > { %v4234_v15 = vpop.f32.mrf.mxu2  ;;  %v11612_v5 = vpop.f32.mrf.mxu0 }
 0x376   : > { %v4262_v47 = vadd.f32 %v4234_v15, %v4008_v7  ;;  %v4797_v29 = vadd.f32 %v11455_v31, %v4779_v44  ;;  %v5493_v13 = vpack.c.b16 %v5483_v38, %v5482_v20  ;;  %v3987_v7 = vpop.f32.mrf.mxu1  ;;  %v5378_v15 = vld [vmem:[%s9573_s16 + $0xbc] sm:$0xf] }
 0x378   : > { %v4512_v8 = vadd.f32 %v11531_v56, %v4262_v47  ;;  %v4813_v61 = vmax.f32 %v4797_v29, 0.0  ;;  %v5007_v56 = vld [vmem:[%s9573_s16 + $0xb4] sm:$0xf]  ;;  %v5451_v29 = vrot.slane %v5378_v15, 6  ;;  %v5009_v15 = vld [vmem:[%s9573_s16 + $0xcc] sm:$0xe] }
 0x379   : > { %v5080_v0 = vrot.slane %v5007_v56, 5 }
 0x37a   : > { %v4825_v4 = vpack.c.bf16 %v4813_v61, %v4812_v2  ;;  %v4762_v19 = vadd.f32 %v11538_v11, %v4512_v8  ;;  %8688 = vmatmul.msk.bf16.gmra.mxu0 %vm460_vm6, %v5493_v13  ;;  %v5008_v11 = vld [vmem:[%s9573_s16 + $0xb8] sm:$0x1]  ;;  %v11622_v36 = vpop.f32.mrf.mxu3  ;;  %v5377_v2 = vld [vmem:[%s9573_s16 + $0xb8] sm:$0xc]  ;;  %v5453_v41 = vrot.slane %v5451_v29, 4 }
 0x37b   : > { %v5082_v17 = vrot.slane %v5080_v0, 4  ;;  %v5083_v47 = vrot.slane %v5008_v11, 5  ;;  %v8657_v39 = vrot.slane %v5377_v2, 10  ;;  %v5081_v38 = vsel %vm9569_vm2, %v8561_v43, %v5080_v0  ;;  %v9280_v11 = vld [vmem:[%s12333_s2 + $0x2a0] sm:$0xff]  ;;  %v5381_v2 = vld [vmem:[%s9573_s16 + $0xd8] sm:$0xf] }
 0x37c   : > { %4918 = vmatmul.bf16.gmra.mxu1 %v4825_v4  ;;  %v4780_v46 = vmul.f32 %v11441_v24, %v4762_v19 }
 0x37d   : > { %v4236_v21 = vpop.f32.mrf.mxu2  ;;  %v11629_v14 = vpop.f32.mrf.mxu0  ;;  %5729 = vmatpush.bf16.msra.mxu1 %v9280_v11 }
 0x37e   : > { %v4263_v53 = vadd.f32 %v4236_v21, %v4009_v22  ;;  %v4798_v50 = vadd.f32 %v11455_v31, %v4780_v46  ;;  %8649 = vmatmul.msk.bf16.gmra.mxu3 %vm460_vm6, %v9258_v57  ;;  %v3990_v56 = vpop.f32.mrf.mxu1 }
 0x380   : > { %v4513_v44 = vadd.f32 %v11551_v59, %v4263_v53  ;;  %v4010_v59 = vadd.f32 %v3985_v6, %v11290_v23  ;;  %v4814_v4 = vmax.f32 %v4798_v50, 0.0  ;;  %v5084_v23 = vsel %vm9569_vm2, %v5082_v17, %v5083_v47  ;;  %v5011_v47 = vld [vmem:[%s9573_s16 + $0xd4] sm:$0x1] }
 0x381   : > { %v5452_v6 = vsel %vm9598_vm5, %v8657_v39, %v5451_v29  ;;  %v5113_v53 = vunpack.c.l.b16 %v5081_v38  ;;  %v5090_v39 = vrot.slane %v5011_v47, 5  ;;  %v5382_v38 = vld [vmem:[%s9573_s16 + $0xdc] sm:$0x3] }
 0x382   : > { %v4763_v49 = vadd.f32 %v11559_v55, %v4513_v44  ;;  %8592 = vmatmul.msk.bf16.gmra.mxu2 %vm460_vm6, %v5122_v16  ;;  %v5379_v55 = vld [vmem:[%s9573_s16 + $0xc0] sm:$0x3]  ;;  %v5484_v19 = vunpack.c.l.b16 %v5452_v6  ;;  %v5114_v16 = vunpack.c.l.b16 %v5084_v23  ;;  %v11647_v0 = vpop.f32.mrf.mxu3  ;;  %v4011_v44 = vadd.f32 %v3987_v7, %v11313_v52 }
 0x383   : > { %v5454_v8 = vrot.slane %v5379_v55, 6 }
 0x384   : > { %v4781_v60 = vmul.f32 %v11441_v24, %v4763_v49  ;;  %v5010_v49 = vld [vmem:[%s9573_s16 + $0xd0] sm:$0xf]  ;;  %v5123_v52 = vpack.c.b16 %v5114_v16, %v5113_v53 }
 0x385   : > { %v4239_v51 = vpop.f32.mrf.mxu2  ;;  %v5455_v30 = vsel %vm9598_vm5, %v5453_v41, %v5454_v8  ;;  %v11658_v43 = vpop.f32.mrf.mxu0  ;;  %v5087_v50 = vrot.slane %v5010_v49, 5  ;;  %v5458_v41 = vrot.slane %v5381_v2, 6  ;;  %v4012_v8 = vadd.f32 %v3990_v56, %v11329_v27 }
 0x386   : > { %v4264_v61 = vadd.f32 %v4239_v51, %v4010_v59  ;;  %v4799_v20 = vadd.f32 %v11455_v31, %v4781_v60  ;;  %v5485_v22 = vunpack.c.l.b16 %v5455_v30  ;;  %v8562_v59 = vrot.slane %v5009_v15, 9  ;;  %v9259_v60 = vld [vmem:[%s9573_s16 + $0xc4] sm:$0xff]  ;;  %v9290_v15 = vld [vmem:[%s12333_s2 + $0x2f0] sm:$0xff] }
 0x387   : > { %v5089_v51 = vrot.slane %v5087_v50, 4  ;;  %v5460_v30 = vrot.slane %v5458_v41, 4 }
 0x388   : > { %v4514_v42 = vadd.f32 %v11581_v1, %v4264_v61  ;;  %v4815_v13 = vmax.f32 %v4799_v20, 0.0  ;;  %v5494_v46 = vpack.c.b16 %v5485_v22, %v5484_v19  ;;  %v9284_v1 = vld [vmem:[%s12333_s2 + $0x2c0] sm:$0xff]  ;;  %v3992_v61 = vpop.f32.mrf.mxu1  ;;  %v5088_v27 = vsel %vm9569_vm2, %v8562_v59, %v5087_v50 }
 0x389   : > { %5827 = vmatpush.bf16.msra.mxu2 %v9284_v1  ;;  %v5115_v49 = vunpack.c.l.b16 %v5088_v27 }
 0x38a   : > { %v4826_v21 = vpack.c.bf16 %v4815_v13, %v4814_v4  ;;  %v4764_v40 = vadd.f32 %v11584_v34, %v4514_v42  ;;  %8689 = vmatmul.msk.bf16.gmra.mxu0 %vm460_vm6, %v5494_v46  ;;  %v4499_v23 = vpop.f32.mrf.mxu3  ;;  %v5461_v42 = vrot.slane %v5382_v38, 6 }
 0x38c   : > { %4923 = vmatmul.bf16.gmra.mxu1 %v4826_v21  ;;  %v4782_v7 = vmul.f32 %v11441_v24, %v4764_v40  ;;  %v5091_v21 = vsel %vm9569_vm2, %v5089_v51, %v5090_v39  ;;  %v5462_v16 = vsel %vm9598_vm5, %v5460_v30, %v5461_v42 }
 0x38d   : > { %v4241_v34 = vpop.f32.mrf.mxu2  ;;  %v11680_v56 = vpop.f32.mrf.mxu0  ;;  %v5487_v1 = vunpack.c.l.b16 %v5462_v16 }
 0x38e   : > { %v4265_v57 = vadd.f32 %v4241_v34, %v4011_v44  ;;  %v4800_v55 = vadd.f32 %v11455_v31, %v4782_v7  ;;  %8650 = vmatmul.msk.bf16.gmra.mxu3 %vm460_vm6, %v9259_v60  ;;  %v5116_v34 = vunpack.c.l.b16 %v5091_v21  ;;  %v9302_v60 = vld [vmem:[%s12333_s2 + $0x310] sm:$0xff] }
 0x390   : > { %v4515_v17 = vadd.f32 %v11603_v26, %v4265_v57  ;;  %v5380_v26 = vld [vmem:[%s9573_s16 + $0xd4] sm:$0xc]  ;;  %v4816_v22 = vmax.f32 %v4800_v55, 0.0 }
 0x391   : > { %v8658_v6 = vrot.slane %v5380_v26, 10 }
 0x392   : > { %v4765_v29 = vadd.f32 %v11612_v5, %v4515_v17  ;;  %8593 = vmatmul.msk.bf16.gmra.mxu2 %vm460_vm6, %v5123_v52  ;;  %v9291_v5 = vld [vmem:[%s12333_s2 + $0x2f8] sm:$0xff]  ;;  %v4013_v52 = vadd.f32 %v3992_v61, %v11360_v18  ;;  %v5124_v18 = vpack.c.b16 %v5116_v34, %v5115_v49  ;;  %v4501_v59 = vpop.f32.mrf.mxu3 }
 0x393   : > { %6074 = vmatpush.bf16.msra.mxu3 %v9291_v5  ;;  %v5459_v53 = vsel %vm9598_vm5, %v8658_v6, %v5458_v41  ;;  %v9311_v17 = vld [vmem:[%s12333_s2 + $0x358] sm:$0xff]  ;;  %v9288_v41 = vld [vmem:[%s12333_s2 + $0x2e0] sm:$0xff]  ;;  %v8805_v6 = vld [vmem:[%s9573_s16 + $0x210] sm:$0x3] }
 0x394   : > { %v4783_v20 = vmul.f32 %v11441_v24, %v4765_v29  ;;  %v5486_v44 = vunpack.c.l.b16 %v5459_v53  ;;  %v3995_v29 = vpop.f32.mrf.mxu1  ;;  %6756 = vmatpush.bf16.msrb.mxu2 %v9311_v17 }
 0x395   : > { %v4244_v4 = vpop.f32.mrf.mxu2  ;;  %v4751_v51 = vpop.f32.mrf.mxu0 }
 0x396   : > { %v4266_v13 = vadd.f32 %v4244_v4, %v4012_v8  ;;  %v4801_v19 = vadd.f32 %v11455_v31, %v4783_v20  ;;  %v5495_v57 = vpack.c.b16 %v5487_v1, %v5486_v44  ;;  %v4014_v8 = vadd.f32 %v3995_v29, %v11390_v58  ;;  %v8803_v4 = vld [vmem:[%s9573_s16 + $0x208] sm:$0xc] }
 0x397   : > { %6075 = vmatpush.bf16.msra.mxu3 %v9290_v15  ;;  %v8827_v42 = vrot.slane %v8803_v4, 10  ;;  %v8807_v29 = vld [vmem:[%s9573_s16 + $0x228] sm:$0xf] }
 0x398   : > { %v4516_v46 = vadd.f32 %v11622_v36, %v4266_v13  ;;  %v4817_v40 = vmax.f32 %v4801_v19, 0.0  ;;  %v9303_v36 = vld [vmem:[%s12333_s2 + $0x318] sm:$0xff]  ;;  %v5938_v19 = vrot.slane %v8805_v6, 6 }
 0x399   : > { %6256 = vmatpush.bf16.msrb.mxu0 %v9303_v36 }
 0x39a   : > { %v4827_v11 = vpack.c.bf16 %v4817_v40, %v4816_v22  ;;  %v4766_v7 = vadd.f32 %v11629_v14, %v4516_v46  ;;  %8690 = vmatmul.msk.bf16.gmra.mxu0 %vm460_vm6, %v5495_v57  ;;  %v9289_v14 = vld [vmem:[%s12333_s2 + $0x2e8] sm:$0xff]  ;;  %v9307_v57 = vld [vmem:[%s12333_s2 + $0x338] sm:$0xff] }
 0x39b   : > { %6076 = vmatpush.bf16.msra.mxu3 %v9289_v14  ;;  %6506 = vmatpush.bf16.msrb.mxu1 %v9307_v57 }
 0x39c   : > { %4928 = vmatmul.bf16.gmra.mxu1 %v4827_v11  ;;  %v4784_v2 = vmul.f32 %v11441_v24, %v4766_v7  ;;  %v3997_v21 = vpop.f32.mrf.mxu1  ;;  %v9301_v11 = vld [vmem:[%s12333_s2 + $0x308] sm:$0xff] }
 0x39d   : > { %v4246_v50 = vpop.f32.mrf.mxu2  ;;  %6257 = vmatpush.bf16.msrb.mxu0 %v9302_v60  ;;  %v4015_v49 = vadd.f32 %v3997_v21, %v11412_v35  ;;  %v8810_v21 = vld [vmem:[%s9573_s16 + $0x244] sm:$0xf] }
 0x39e   : > { %v4267_v47 = vadd.f32 %v4246_v50, %v4013_v52  ;;  %v4802_v20 = vadd.f32 %v11455_v31, %v4784_v2  ;;  %v9300_v52 = vld [vmem:[%s12333_s2 + $0x300] sm:$0xff]  ;;  %v5942_v2 = vrot.slane %v8807_v29, 6 }
 0x39f   : > { %6077 = vmatpush.bf16.msra.mxu3 %v9288_v41  ;;  %v8808_v41 = vld [vmem:[%s9573_s16 + $0x22c] sm:$0x3] }
 0x3a0   : > { %v4517_v55 = vadd.f32 %v11647_v0, %v4267_v47  ;;  %v8804_v0 = vld [vmem:[%s9573_s16 + $0x20c] sm:$0xf]  ;;  %v4818_v22 = vmax.f32 %v4802_v20, 0.0  ;;  %v9292_v47 = vld [vmem:[%s9573_s16 + $0x3f0] sm:$0xff]  ;;  %v5945_v20 = vrot.slane %v8808_v41, 6 }
 0x3a1   : > { %v5935_v38 = vrot.slane %v8804_v0, 6  ;;  %v5319_v30 = vpop.f32.mrf.mxu3  ;;  %6258 = vmatpush.bf16.msrb.mxu0 %v9301_v11 }
 0x3a2   : > { %v4767_v39 = vadd.f32 %v11658_v43, %v4517_v55  ;;  %8594 = vmatmul.msk.bf16.gmra.mxu2 %vm460_vm6, %v5124_v18 }
 0x3a3   : > { %v5937_v13 = vrot.slane %v5935_v38, 4  ;;  %v5936_v16 = vsel %vm9598_vm5, %v8827_v42, %v5935_v38 }
 0x3a4   : > { %v4785_v61 = vmul.f32 %v11441_v24, %v4767_v39  ;;  %v5998_v44 = vunpack.c.l.b16 %v5936_v16  ;;  %v5949_v16 = vrot.slane %v8810_v21, 6 }
 0x3a5   : > { %v4249_v26 = vpop.f32.mrf.mxu2  ;;  %v5939_v46 = vsel %vm9598_vm5, %v5937_v13, %v5938_v19  ;;  %6259 = vmatpush.bf16.msrb.mxu0 %v9300_v52 }
 0x3a6   : > { %v4268_v5 = vadd.f32 %v4249_v26, %v4014_v8  ;;  %v4803_v43 = vadd.f32 %v11455_v31, %v4785_v61  ;;  %v5999_v1 = vunpack.c.l.b16 %v5939_v46  ;;  %v5944_v61 = vrot.slane %v5942_v2, 4 }
 0x3a7   : > { %v5553_v53 = vpop.f32.mrf.mxu0 }
 0x3a8   : > { %v4518_v27 = vadd.f32 %v4499_v23, %v4268_v5  ;;  %v4819_v58 = vmax.f32 %v4803_v43, 0.0  ;;  %v6014_v34 = vpack.c.b16 %v5999_v1, %v5998_v44  ;;  %v5946_v5 = vsel %vm9598_vm5, %v5944_v61, %v5945_v20  ;;  %v8811_v44 = vld [vmem:[%s9573_s16 + $0x248] sm:$0x3]  ;;  %v8812_v61 = vld [vmem:[%s9573_s16 + $0x25c] sm:$0xc] }
 0x3a9   : > { %v5321_v35 = vpop.f32.mrf.mxu3  ;;  %v6001_v4 = vunpack.c.l.b16 %v5946_v5  ;;  %v8814_v20 = vld [vmem:[%s9573_s16 + $0x264] sm:$0x3] }
 0x3aa   : > { %v4828_v40 = vpack.c.bf16 %v4819_v58, %v4818_v22  ;;  %v4768_v23 = vadd.f32 %v11680_v56, %v4518_v27  ;;  %8859 = vmatmul.msk.bf16.vlgmr.msra.gmra.mxu3 %vm460_vm6, %v6014_v34  ;;  %8941 = vmatmul.msk.bf16.vlgmr.msrb.gmra.mxu0 %vm460_vm6, %v9292_v47  ;;  %v9293_v22 = vld [vmem:[%s9573_s16 + $0x40c] sm:$0xff]  ;;  %v9272_v34 = vld [vmem:[%s9573_s16 + $0x1f8] sm:$0xff] }
 0x3ab   : > { %v9310_v58 = vld [vmem:[%s12333_s2 + $0x350] sm:$0xff] }
 0x3ac   : > { %4933 = vmatmul.bf16.gmra.mxu1 %v4828_v40  ;;  %v4786_v56 = vmul.f32 %v11441_v24, %v4768_v23  ;;  %6757 = vmatpush.bf16.msrb.mxu2 %v9310_v58  ;;  %v8809_v40 = vld [vmem:[%s9573_s16 + $0x240] sm:$0xc]  ;;  %v5952_v23 = vrot.slane %v8811_v44, 6  ;;  %v8816_v44 = vld [vmem:[%s9573_s16 + $0x27c] sm:$0xf] }
 0x3ad   : > { %v4251_v7 = vpop.f32.mrf.mxu2  ;;  %v8829_v11 = vrot.slane %v8809_v40, 10  ;;  %v9309_v40 = vld [vmem:[%s12333_s2 + $0x348] sm:$0xff] }
 0x3ae   : > { %v4269_v15 = vadd.f32 %v4251_v7, %v4015_v49  ;;  %v4804_v14 = vadd.f32 %v11455_v31, %v4786_v56  ;;  %v5951_v49 = vrot.slane %v5949_v16, 4 }
 0x3af   : > { %v5555_v50 = vpop.f32.mrf.mxu0 }
 0x3b0   : > { %v4519_v36 = vadd.f32 %v4501_v59, %v4269_v15  ;;  %v8806_v59 = vld [vmem:[%s9573_s16 + $0x224] sm:$0xc]  ;;  %v5950_v15 = vsel %vm9598_vm5, %v8829_v11, %v5949_v16  ;;  %6758 = vmatpush.bf16.msrb.mxu2 %v9309_v40  ;;  %v8815_v11 = vld [vmem:[%s9573_s16 + $0x278] sm:$0xc] }
 0x3b1   : > { %v5324_v8 = vpop.f32.mrf.mxu3 }
 0x3b2   : > { %v4769_v17 = vadd.f32 %v4751_v51, %v4519_v36  ;;  %8795 = vmatmul.msk.bf16.vlgmr.msra.gmra.mxu2 %vm460_vm6, %v9622_v54  ;;  %v8828_v51 = vrot.slane %v8806_v59, 10  ;;  %v4820_v54 = vmax.f32 %v4804_v14, 0.0  ;;  %v6002_v36 = vunpack.c.l.b16 %v5950_v15  ;;  %v8813_v59 = vld [vmem:[%s9573_s16 + $0x260] sm:$0xf] }
 0x3b3   : > { %v2656_v14 = vadd.f32 %v10571_v33, %v10731_v37  ;;  %v8830_v37 = vrot.slane %v8812_v61, 10 }
 0x3b4   : > { %v4787_v18 = vmul.f32 %v11441_v24, %v4769_v17  ;;  %v5943_v38 = vsel %vm9598_vm5, %v8828_v51, %v5942_v2 }
 0x3b5   : > { %v5182_v60 = vpop.f32.mrf.mxu2  ;;  %v6000_v43 = vunpack.c.l.b16 %v5943_v38  ;;  %v9273_v38 = vld [vmem:[%s9573_s16 + $0x214] sm:$0xff] }
 0x3b6   : > { %v4805_v55 = vadd.f32 %v11455_v31, %v4787_v18  ;;  %v5320_v39 = vadd.f32 %v5319_v30, %v5182_v60 }
 0x3b7   : > { %v5558_v24 = vpop.f32.mrf.mxu0  ;;  %v6015_v6 = vpack.c.b16 %v6001_v4, %v6000_v43 }
 0x3b8   : > { %v4821_v0 = vmax.f32 %v4805_v55, 0.0  ;;  %v11748_v26 = vadd.f32 %v5553_v53, %v5320_v39  ;;  %v9294_v39 = vld [vmem:[%s9573_s16 + $0x428] sm:$0xff] }
 0x3b9   : > { %v5326_v13 = vpop.f32.mrf.mxu3 }
 0x3ba   : > { %v4829_v31 = vpack.c.bf16 %v4821_v0, %v4820_v54  ;;  %8860 = vmatmul.msk.bf16.gmra.mxu3 %vm460_vm6, %v6015_v6  ;;  %8942 = vmatmul.msk.bf16.gmra.mxu0 %vm460_vm6, %v9293_v22  ;;  %v5959_v0 = vrot.slane %v8814_v20, 6  ;;  %v2661_v22 = vadd.f32 %v10615_v10, %v10769_v9  ;;  %v5963_v9 = vrot.slane %v8816_v44, 6 }
 0x3bc   : > { %4938 = vmatmul.bf16.gmra.mxu1 %v4829_v31 }
 0x3bd   : > { %v5184_v30 = vpop.f32.mrf.mxu2 }
 0x3be   : > { %v5322_v42 = vadd.f32 %v5321_v35, %v5184_v30  ;;  %v5953_v35 = vsel %vm9598_vm5, %v5951_v49, %v5952_v23  ;;  %v8817_v49 = vld [vmem:[%s9573_s16 + $0x280] sm:$0x3] }
 0x3bf   : > { %v5560_v27 = vpop.f32.mrf.mxu0 }
 0x3c0   : > { %v11755_v19 = vadd.f32 %v5555_v50, %v5322_v42  ;;  %v6003_v50 = vunpack.c.l.b16 %v5953_v35  ;;  %v9274_v35 = vld [vmem:[%s9573_s16 + $0x230] sm:$0xff] }
 0x3c1   : > { %v5329_v1 = vpop.f32.mrf.mxu3 }
 0x3c2   : > { %8796 = vmatmul.msk.bf16.gmra.mxu2 %vm460_vm6, %v9656_v28  ;;  %v2654_v28 = vadd.f32 %v10548_v48, %v10707_v25  ;;  %v6016_v48 = vpack.c.b16 %v6003_v50, %v6002_v36  ;;  %v9306_v25 = vld [vmem:[%s12333_s2 + $0x330] sm:$0xff] }
 0x3c3   : > { %6507 = vmatpush.bf16.msrb.mxu1 %v9306_v25 }
 0x3c5   : > { %v5187_v53 = vpop.f32.mrf.mxu2 }
 0x3c6   : > { %v5325_v46 = vadd.f32 %v5324_v8, %v5187_v53  ;;  %v5956_v8 = vrot.slane %v8813_v59, 6 }
 0x3c7   : > { %v5563_v7 = vpop.f32.mrf.mxu0 }
 0x3c8   : > { %v11770_v57 = vadd.f32 %v5558_v24, %v5325_v46  ;;  %v5958_v54 = vrot.slane %v5956_v8, 4  ;;  %v2659_v24 = vadd.f32 %v10599_v62, %v10748_v63  ;;  %v5957_v43 = vsel %vm9598_vm5, %v8830_v37, %v5956_v8  ;;  %v9295_v46 = vld [vmem:[%s9573_s16 + $0x444] sm:$0xff] }
 0x3c9   : > { %v4904_v52 = vpop.f32.mrf.mxu1  ;;  %v5331_v18 = vpop.f32.mrf.mxu3  ;;  %v6004_v30 = vunpack.c.l.b16 %v5957_v43  ;;  %v12377_v8 = vld [vmem:[#allocation14_spill] sm:$0xff] }
 0x3ca   : > { %v11776_v56 = vadd.f32 %v4904_v52, %v2654_v28  ;;  %8861 = vmatmul.msk.bf16.gmra.mxu3 %vm460_vm6, %v6016_v48  ;;  %8943 = vmatmul.msk.bf16.gmra.mxu0 %vm460_vm6, %v9294_v39  ;;  %v5960_v4 = vsel %vm9598_vm5, %v5958_v54, %v5959_v0  ;;  %v8831_v28 = vrot.slane %v8815_v11, 10  ;;  %v5966_v52 = vrot.slane %v8817_v49, 6  ;;  %v12379_v0 = vld [vmem:[#allocation2_spill] sm:$0xff] }
 0x3cb   : > { %v6005_v42 = vunpack.c.l.b16 %v5960_v4  ;;  %v8818_v4 = vld [vmem:[%s9573_s16 + $0x294] sm:$0xc] }
 0x3cc   : > { %8763 = vmatmul.msk.bf16.vlgmr.msra.gmra.mxu1 %vm460_vm6, %v9272_v34  ;;  %v5965_v34 = vrot.slane %v5963_v9, 4  ;;  %v5964_v25 = vsel %vm9598_vm5, %v8831_v28, %v5963_v9 }
 0x3cd   : > { %v5189_v17 = vpop.f32.mrf.mxu2  ;;  %v6017_v62 = vpack.c.b16 %v6005_v42, %v6004_v30  ;;  %v8820_v30 = vld [vmem:[%s9573_s16 + $0x29c] sm:$0x3]  ;;  %v8832_v42 = vrot.slane %v8818_v4, 10 }
 0x3ce   : > { %v5327_v47 = vadd.f32 %v5326_v13, %v5189_v17  ;;  %v5967_v17 = vsel %vm9598_vm5, %v5965_v34, %v5966_v52  ;;  %v12382_v52 = vld [vmem:[#allocation18_spill] sm:$0xff] }
 0x3cf   : > { %v5565_v2 = vpop.f32.mrf.mxu0 }
 0x3d0   : > { %v11785_v29 = vadd.f32 %v5560_v27, %v5327_v47 }
 0x3d1   : > { %v4906_v60 = vpop.f32.mrf.mxu1  ;;  %v5334_v33 = vpop.f32.mrf.mxu3 }
 0x3d2   : > { %v11787_v55 = vadd.f32 %v4906_v60, %v2656_v14  ;;  %8797 = vmatmul.msk.bf16.gmra.mxu2 %vm460_vm6, %v9685_v3  ;;  %v6007_v14 = vunpack.c.l.b16 %v5967_v17  ;;  %v9308_v17 = vld [vmem:[%s12333_s2 + $0x340] sm:$0xff] }
 0x3d3   : > { %6759 = vmatpush.bf16.msrb.mxu2 %v9308_v17 }
 0x3d5   : > { %v5192_v41 = vpop.f32.mrf.mxu2 }
 0x3d6   : > { %v5330_v51 = vadd.f32 %v5329_v1, %v5192_v41 }
 0x3d7   : > { %v5568_v31 = vpop.f32.mrf.mxu0 }
 0x3d8   : > { %v11799_v5 = vadd.f32 %v5563_v7, %v5330_v51  ;;  %v12376_v7 = vld [vmem:[#allocation6_spill] sm:$0xff]  ;;  %v12378_v51 = vld [vmem:[#allocation7_spill] sm:$0xff] }
 0x3d9   : > { %v4909_v3 = vpop.f32.mrf.mxu1  ;;  %v5336_v27 = vpop.f32.mrf.mxu3  ;;  %v2666_v61 = vadd.f32 %v12378_v51, %v12377_v8  ;;  %v8823_v8 = vld [vmem:[%s9573_s16 + $0x2b8] sm:$0x3] }
 0x3da   : > { %v11805_v6 = vadd.f32 %v4909_v3, %v2659_v24  ;;  %8862 = vmatmul.msk.bf16.gmra.mxu3 %vm460_vm6, %v6017_v62  ;;  %8944 = vmatmul.msk.bf16.gmra.mxu0 %vm460_vm6, %v9295_v46  ;;  %v9296_v24 = vld [vmem:[%s9573_s16 + $0x460] sm:$0xff] }
 0x3dc   : > { %8764 = vmatmul.msk.bf16.gmra.mxu1 %vm460_vm6, %v9273_v38  ;;  %v8819_v38 = vld [vmem:[%s9573_s16 + $0x298] sm:$0xf] }
 0x3dd   : > { %v5194_v63 = vpop.f32.mrf.mxu2 }
 0x3de   : > { %v5332_v13 = vadd.f32 %v5331_v18, %v5194_v63  ;;  %v6006_v18 = vunpack.c.l.b16 %v5964_v25  ;;  %v5973_v63 = vrot.slane %v8820_v30, 6  ;;  %v9297_v25 = vld [vmem:[%s9573_s16 + $0x47c] sm:$0xff] }
 0x3df   : > { %v5570_v53 = vpop.f32.mrf.mxu0 }
 0x3e0   : > { %v11811_v58 = vadd.f32 %v5565_v2, %v5332_v13  ;;  %v6018_v60 = vpack.c.b16 %v6007_v14, %v6006_v18  ;;  %v9305_v2 = vld [vmem:[%s12333_s2 + $0x328] sm:$0xff]  ;;  %v12380_v13 = vld [vmem:[#allocation16_spill] sm:$0xff] }
 0x3e1   : > { %v4911_v21 = vpop.f32.mrf.mxu1  ;;  %v5339_v23 = vpop.f32.mrf.mxu3  ;;  %6508 = vmatpush.bf16.msrb.mxu1 %v9305_v2  ;;  %v8822_v14 = vld [vmem:[%s9573_s16 + $0x2b4] sm:$0xf] }
 0x3e2   : > { %v11813_v16 = vadd.f32 %v4911_v21, %v2661_v22  ;;  %8798 = vmatmul.msk.bf16.gmra.mxu2 %vm460_vm6, %v9720_v45  ;;  %v12375_v45 = vld [vmem:[#allocation12_spill] sm:$0xff] }
 0x3e3   : > { %v2664_v15 = vadd.f32 %v12376_v7, %v12375_v45  ;;  %v9275_v21 = vld [vmem:[%s9573_s16 + $0x24c] sm:$0xff]  ;;  %v12383_v45 = vld [vmem:[#allocation9_spill] sm:$0xff] }
 0x3e4   : > { %v2671_v7 = vadd.f32 %v12383_v45, %v12382_v52 }
 0x3e5   : > { %v5197_v10 = vpop.f32.mrf.mxu2 }
 0x3e6   : > { %v5335_v1 = vadd.f32 %v5334_v33, %v5197_v10 }
 0x3e7   : > { %v5573_v48 = vpop.f32.mrf.mxu0 }
 0x3e8   : > { %v11828_v36 = vadd.f32 %v5568_v31, %v5335_v1  ;;  %v5970_v31 = vrot.slane %v8819_v38, 6  ;;  %v9276_v38 = vld [vmem:[%s9573_s16 + $0x268] sm:$0xff] }
 0x3e9   : > { %v4914_v50 = vpop.f32.mrf.mxu1  ;;  %v5341_v41 = vpop.f32.mrf.mxu3 }
 0x3ea   : > { %v11834_v47 = vadd.f32 %v4914_v50, %v2664_v15  ;;  %8863 = vmatmul.msk.bf16.gmra.mxu3 %vm460_vm6, %v6018_v60  ;;  %8945 = vmatmul.msk.bf16.gmra.mxu0 %vm460_vm6, %v9296_v24  ;;  %v5972_v62 = vrot.slane %v5970_v31, 4  ;;  %v5971_v44 = vsel %vm9598_vm5, %v8832_v42, %v5970_v31 }
 0x3eb   : > { %v6008_v1 = vunpack.c.l.b16 %v5971_v44  ;;  %v12388_v44 = vld [vmem:[#allocation11_spill] sm:$0xff] }
 0x3ec   : > { %8765 = vmatmul.msk.bf16.gmra.mxu1 %vm460_vm6, %v9274_v35  ;;  %v5974_v10 = vsel %vm9598_vm5, %v5972_v62, %v5973_v63 }
 0x3ed   : > { %v5199_v39 = vpop.f32.mrf.mxu2  ;;  %v6009_v11 = vunpack.c.l.b16 %v5974_v10 }
 0x3ee   : > { %v5337_v59 = vadd.f32 %v5336_v27, %v5199_v39  ;;  %v12381_v27 = vld [vmem:[#allocation8_spill] sm:$0xff]  ;;  %v5977_v39 = vrot.slane %v8822_v14, 6 }
 0x3ef   : > { %v5575_v37 = vpop.f32.mrf.mxu0  ;;  %v2669_v22 = vadd.f32 %v12381_v27, %v12380_v13  ;;  %v9304_v13 = vld [vmem:[%s12333_s2 + $0x320] sm:$0xff] }
 0x3f0   : > { %v11843_v20 = vadd.f32 %v5570_v53, %v5337_v59  ;;  %6509 = vmatpush.bf16.msrb.mxu1 %v9304_v13 }
 0x3f1   : > { %v4916_v33 = vpop.f32.mrf.mxu1  ;;  %v5344_v40 = vpop.f32.mrf.mxu3 }
 0x3f2   : > { %v11845_v54 = vadd.f32 %v4916_v33, %v2666_v61  ;;  %8799 = vmatmul.msk.bf16.gmra.mxu2 %vm460_vm6, %v12379_v0  ;;  %v5979_v61 = vrot.slane %v5977_v39, 4  ;;  %v5980_v33 = vrot.slane %v8823_v8, 6  ;;  %v12386_v0 = vld [vmem:[#allocation10_spill] sm:$0xff] }
 0x3f4   : > { %v5981_v4 = vsel %vm9598_vm5, %v5979_v61, %v5980_v33 }
 0x3f5   : > { %v5202_v3 = vpop.f32.mrf.mxu2  ;;  %v6011_v62 = vunpack.c.l.b16 %v5981_v4 }
 0x3f6   : > { %v5340_v43 = vadd.f32 %v5339_v23, %v5202_v3  ;;  %v6019_v23 = vpack.c.b16 %v6009_v11, %v6008_v1 }
 0x3f7   : > { %v5578_v49 = vpop.f32.mrf.mxu0 }
 0x3f8   : > { %v11857_v53 = vadd.f32 %v5573_v48, %v5340_v43  ;;  %v12384_v48 = vld [vmem:[#allocation3_spill] sm:$0xff] }
 0x3f9   : > { %v4919_v46 = vpop.f32.mrf.mxu1  ;;  %v5346_v18 = vpop.f32.mrf.mxu3 }
 0x3fa   : > { %v11863_v9 = vadd.f32 %v4919_v46, %v2669_v22  ;;  %8864 = vmatmul.msk.bf16.gmra.mxu3 %vm460_vm6, %v6019_v23  ;;  %8946 = vmatmul.msk.bf16.gmra.mxu0 %vm460_vm6, %v9297_v25  ;;  %v12389_v23 = vld [vmem:[#allocation4_spill] sm:$0xff] }
 0x3fc   : > { %8766 = vmatmul.msk.bf16.gmra.mxu1 %vm460_vm6, %v9275_v21 }
 0x3fd   : > { %v5204_v28 = vpop.f32.mrf.mxu2 }
 0x3fe   : > { %v5342_v34 = vadd.f32 %v5341_v41, %v5204_v28  ;;  %v8821_v41 = vld [vmem:[%s9573_s16 + $0x2b0] sm:$0xc]  ;;  %v9298_v28 = vld [vmem:[%s9573_s16 + $0x498] sm:$0xff] }
 0x3ff   : > { %v5580_v2 = vpop.f32.mrf.mxu0  ;;  %v8833_v51 = vrot.slane %v8821_v41, 10 }
 0x400   : > { %v11869_v15 = vadd.f32 %v5575_v37, %v5342_v34  ;;  %v12385_v37 = vld [vmem:[#allocation20_spill] sm:$0xff] }
 0x401   : > { %v4921_v35 = vpop.f32.mrf.mxu1  ;;  %v2674_v24 = vadd.f32 %v12386_v0, %v12385_v37  ;;  %v5978_v43 = vsel %vm9598_vm5, %v8833_v51, %v5977_v39  ;;  %v5349_v22 = vpop.f32.mrf.mxu3  ;;  %v8825_v34 = vld [vmem:[%s9573_s16 + $0x2d0] sm:$0xf] }
 0x402   : > { %v11871_v50 = vadd.f32 %v4921_v35, %v2671_v7  ;;  %8800 = vmatmul.msk.bf16.gmra.mxu2 %vm460_vm6, %v12384_v48  ;;  %v6010_v42 = vunpack.c.l.b16 %v5978_v43  ;;  %v5984_v45 = vrot.slane %v8825_v34, 6  ;;  %v8824_v35 = vld [vmem:[%s9573_s16 + $0x2cc] sm:$0xc]  ;;  %v8826_v48 = vld [vmem:[%s9573_s16 + $0x2d4] sm:$0x3] }
 0x403   : > { %v8834_v17 = vrot.slane %v8824_v35, 10  ;;  %v5987_v14 = vrot.slane %v8826_v48, 6 }
 0x404   : > { %v6020_v63 = vpack.c.b16 %v6011_v62, %v6010_v42  ;;  %v12392_v62 = vld [vmem:[#allocation24_spill] sm:$0xff] }
 0x405   : > { %v5207_v60 = vpop.f32.mrf.mxu2  ;;  %v5985_v61 = vsel %vm9598_vm5, %v8834_v17, %v5984_v45  ;;  %v12396_v17 = vld [vmem:[#allocation17_spill] sm:$0xff] }
 0x406   : > { %v5345_v59 = vadd.f32 %v5344_v40, %v5207_v60  ;;  %v12387_v40 = vld [vmem:[#allocation21_spill] sm:$0xff]  ;;  %v12390_v60 = vld [vmem:[#allocation23_spill] sm:$0xff]  ;;  %v6012_v0 = vunpack.c.l.b16 %v5985_v61  ;;  %v9017_v61 = vld [vmem:[%s9573_s16 + $0x420] sm:$0xf] }
 0x407   : > { %v5583_v46 = vpop.f32.mrf.mxu0  ;;  %v2676_v10 = vadd.f32 %v12388_v44, %v12387_v40 }
 0x408   : > { %v11886_v3 = vadd.f32 %v5578_v49, %v5345_v59  ;;  %v9277_v59 = vld [vmem:[%s9573_s16 + $0x284] sm:$0xff] }
 0x409   : > { %v4924_v31 = vpop.f32.mrf.mxu1  ;;  %v5351_v25 = vpop.f32.mrf.mxu3 }
 0x40a   : > { %v11892_v30 = vadd.f32 %v4924_v31, %v2674_v24  ;;  %8865 = vmatmul.msk.bf16.gmra.mxu3 %vm460_vm6, %v6020_v63  ;;  %8947 = vmatmul.msk.bf16.gmra.mxu0 %vm460_vm6, %v9298_v28  ;;  %v9014_v31 = vld [vmem:[%s9573_s16 + $0x404] sm:$0xf]  ;;  %v12393_v63 = vld [vmem:[#allocation15_spill] sm:$0xff] }
 0x40b   : > { %v6617_v42 = vrot.slane %v9014_v31, 6  ;;  %v2681_v13 = vadd.f32 %v12393_v63, %v12392_v62  ;;  %v6624_v31 = vrot.slane %v9017_v61, 6  ;;  %v9016_v63 = vld [vmem:[%s9573_s16 + $0x41c] sm:$0xc] }
 0x40c   : > { %8767 = vmatmul.msk.bf16.gmra.mxu1 %vm460_vm6, %v9276_v38 }
 0x40d   : > { %v5209_v27 = vpop.f32.mrf.mxu2  ;;  %v6619_v34 = vrot.slane %v6617_v42, 4 }
 0x40e   : > { %v5347_v21 = vadd.f32 %v5346_v18, %v5209_v27  ;;  %v5986_v18 = vrot.slane %v5984_v45, 4 }
 0x40f   : > { %v5585_v51 = vpop.f32.mrf.mxu0 }
 0x410   : > { %v11901_v1 = vadd.f32 %v5580_v2, %v5347_v21  ;;  %v12391_v2 = vld [vmem:[#allocation13_spill] sm:$0xff]  ;;  %v5988_v33 = vsel %vm9598_vm5, %v5986_v18, %v5987_v14  ;;  %v9015_v21 = vld [vmem:[%s9573_s16 + $0x408] sm:$0x3]  ;;  %v9278_v14 = vld [vmem:[%s9573_s16 + $0x2a0] sm:$0xff] }
 0x411   : > { %v4926_v11 = vpop.f32.mrf.mxu1  ;;  %v2679_v39 = vadd.f32 %v12391_v2, %v12390_v60  ;;  %v6013_v24 = vunpack.c.l.b16 %v5988_v33  ;;  %v5354_v40 = vpop.f32.mrf.mxu3 }
 0x412   : > { %v11903_v49 = vadd.f32 %v4926_v11, %v2676_v10  ;;  %8801 = vmatmul.msk.bf16.gmra.mxu2 %vm460_vm6, %v12389_v23  ;;  %v12394_v10 = vld [vmem:[#allocation5_spill] sm:$0xff] }
 0x413   : > { %v6021_v38 = vpack.c.b16 %v6013_v24, %v6012_v0  ;;  %v9299_v11 = vld [vmem:[%s9573_s16 + $0x4b4] sm:$0xff] }
 0x415   : > { %v5212_v52 = vpop.f32.mrf.mxu2 }
 0x416   : > { %v5350_v7 = vadd.f32 %v5349_v22, %v5212_v52  ;;  %v9013_v22 = vld [vmem:[%s9573_s16 + $0x400] sm:$0xc]  ;;  %v6620_v52 = vrot.slane %v9015_v21, 6 }
 0x417   : > { %v5588_v23 = vpop.f32.mrf.mxu0  ;;  %v9037_v28 = vrot.slane %v9013_v22, 10 }
 0x418   : > { %v11915_v41 = vadd.f32 %v5583_v46, %v5350_v7  ;;  %v6621_v48 = vsel %vm9598_vm5, %v6619_v34, %v6620_v52  ;;  %v12399_v52 = vld [vmem:[#allocation27_spill] sm:$0xff] }
 0x419   : > { %v4929_v8 = vpop.f32.mrf.mxu1  ;;  %v6618_v35 = vsel %vm9598_vm5, %v9037_v28, %v6617_v42 }
 0x41a   : > { %v11921_v37 = vadd.f32 %v4929_v8, %v2679_v39  ;;  %8866 = vmatmul.msk.bf16.gmra.mxu3 %vm460_vm6, %v6021_v38  ;;  %8948 = vmatmul.msk.bf16.gmra.mxu0 %vm460_vm6, %v9299_v11  ;;  %v6681_v8 = vunpack.c.l.b16 %v6621_v48 }
 0x41c   : > { %8768 = vmatmul.msk.bf16.gmra.mxu1 %vm460_vm6, %v9277_v59  ;;  %v6680_v59 = vunpack.c.l.b16 %v6618_v35  ;;  %v9279_v35 = vld [vmem:[%s9573_s16 + $0x2bc] sm:$0xff] }
 0x41d   : > { %v5214_v43 = vpop.f32.mrf.mxu2 }
 0x41e   : > { %v5352_v4 = vadd.f32 %v5351_v25, %v5214_v43  ;;  %v12395_v25 = vld [vmem:[#allocation25_spill] sm:$0xff]  ;;  %v6696_v38 = vpack.c.b16 %v6681_v8, %v6680_v59  ;;  %v12397_v43 = vld [vmem:[#allocation26_spill] sm:$0xff] }
 0x41f   : > { %v2684_v18 = vadd.f32 %v12396_v17, %v12395_v25  ;;  %v5590_v0 = vpop.f32.mrf.mxu0  ;;  %v9020_v8 = vld [vmem:[%s9573_s16 + $0x43c] sm:$0xf] }
 0x420   : > { %v11928_v27 = vadd.f32 %v5585_v51, %v5352_v4  ;;  %v5356_v51 = vpop.f32.mrf.mxu3  ;;  %v12398_v4 = vld [vmem:[#allocation19_spill] sm:$0xff] }
 0x421   : > { %v4931_v46 = vpop.f32.mrf.mxu1  ;;  %v2686_v42 = vadd.f32 %v12398_v4, %v12397_v43  ;;  %v9019_v43 = vld [vmem:[%s9573_s16 + $0x438] sm:$0xc]  ;;  %v9021_v4 = vld [vmem:[%s9573_s16 + $0x440] sm:$0x3] }
 0x422   : > { %v11932_v44 = vadd.f32 %v4931_v46, %v2681_v13  ;;  %8802 = vmatmul.msk.bf16.gmra.mxu2 %vm460_vm6, %v12394_v10  ;;  %v9018_v13 = vld [vmem:[%s9573_s16 + $0x424] sm:$0x3]  ;;  %v9038_v46 = vrot.slane %v9016_v63, 10 }
 0x423   : > { %v6627_v10 = vrot.slane %v9018_v13, 6 }
 0x424   : > { %v6625_v28 = vsel %vm9598_vm5, %v9038_v46, %v6624_v31 }
 0x425   : > { %v5217_v45 = vpop.f32.mrf.mxu2 }
 0x426   : > { %v5355_v7 = vadd.f32 %v5354_v40, %v5217_v45  ;;  %v6626_v40 = vrot.slane %v6624_v31, 4  ;;  %v12400_v45 = vld [vmem:[#allocation22_spill] sm:$0xff]  ;;  %v6631_v31 = vrot.slane %v9020_v8, 6 }
 0x428   : > { %v11945_v60 = vadd.f32 %v5588_v23, %v5355_v7  ;;  %v8950_v23 = vld [vmem:[%s9573_s16 + $0x3fc] sm:$0xf]  ;;  %v6628_v34 = vsel %vm9598_vm5, %v6626_v40, %v6627_v10  ;;  %v2689_v7 = vadd.f32 %v12400_v45, %v12399_v52  ;;  %v9039_v40 = vrot.slane %v9019_v43, 10  ;;  %v8953_v45 = vld [vmem:[%s9573_s16 + $0x418] sm:$0xf] }
 0x429   : > { %v4934_v2 = vpop.f32.mrf.mxu1  ;;  %v6367_v25 = vrot.slane %v8950_v23, 5  ;;  %v6683_v59 = vunpack.c.l.b16 %v6628_v34  ;;  %v6633_v10 = vrot.slane %v6631_v31, 4  ;;  %v6634_v23 = vrot.slane %v9021_v4, 6 }
 0x42a   : > { %v11947_v39 = vadd.f32 %v4934_v2, %v2684_v18  ;;  %v8949_v18 = vld [vmem:[%s9573_s16 + $0x3f8] sm:$0xe]  ;;  %v6682_v2 = vunpack.c.l.b16 %v6625_v28 }
 0x42b   : > { %v8973_v61 = vrot.slane %v8949_v18, 9  ;;  %v6374_v18 = vrot.slane %v8953_v45, 5 }
 0x42c   : > { %8769 = vmatmul.msk.bf16.gmra.mxu1 %vm460_vm6, %v9278_v14  ;;  %v8951_v14 = vld [vmem:[%s9573_s16 + $0x400] sm:$0x1] }
 0x42d   : > { %v5219_v33 = vpop.f32.mrf.mxu2  ;;  %v6368_v63 = vsel %vm9569_vm2, %v8973_v61, %v6367_v25 }
 0x42e   : > { %v5357_v24 = vadd.f32 %v5356_v51, %v5219_v33  ;;  %v6369_v33 = vrot.slane %v6367_v25, 4  ;;  %v6430_v28 = vunpack.c.l.b16 %v6368_v63  ;;  %v9022_v63 = vld [vmem:[%s9573_s16 + $0x454] sm:$0xc] }
 0x430   : > { %v11953_v62 = vadd.f32 %v5590_v0, %v5357_v24  ;;  %v6370_v0 = vrot.slane %v8951_v14, 5  ;;  %v6697_v24 = vpack.c.b16 %v6683_v59, %v6682_v2  ;;  %v8952_v2 = vld [vmem:[%s9573_s16 + $0x414] sm:$0xe]  ;;  %v8954_v59 = vld [vmem:[%s9573_s16 + $0x41c] sm:$0x1] }
 0x431   : > { %v4936_v22 = vpop.f32.mrf.mxu1  ;;  %v6377_v43 = vrot.slane %v8954_v59, 5 }
 0x432   : > { %v11957_v21 = vadd.f32 %v4936_v22, %v2686_v42  ;;  %9069 = vmatmul.msk.bf16.vlgmr.msrb.gmra.mxu2 %vm460_vm6, %v6696_v38  ;;  %v9319_v38 = vld [vmem:[%s12334_s3 + $0xf8] sm:$0xff]  ;;  %v6371_v13 = vsel %vm9569_vm2, %v6369_v33, %v6370_v0  ;;  %v12401_v22 = vld [vmem:[#allocation28_spill] sm:$0xff] }
 0x433   : > { %6942 = vmatpush.bf16.msrb.mxu3 %v9319_v38  ;;  %v6431_v34 = vunpack.c.l.b16 %v6371_v13  ;;  %v9023_v0 = vld [vmem:[%s9573_s16 + $0x458] sm:$0xf]  ;;  %v8974_v38 = vrot.slane %v8952_v2, 9  ;;  %v9024_v13 = vld [vmem:[%s9573_s16 + $0x45c] sm:$0x3] }
 0x435   : > { %v5829_v11 = vpop.f32.mrf.mxu2 }
 0x439   : > { %v4939_v48 = vpop.f32.mrf.mxu1 }
 0x43a   : > { %v11968_v17 = vadd.f32 %v4939_v48, %v2689_v7  ;;  %v6632_v7 = vsel %vm9598_vm5, %v9039_v40, %v6631_v31  ;;  %v6446_v48 = vpack.c.b16 %v6431_v34, %v6430_v28  ;;  %v6376_v31 = vrot.slane %v6374_v18, 4 }
 0x43b   : > { %v6684_v8 = vunpack.c.l.b16 %v6632_v7  ;;  %v6641_v34 = vrot.slane %v9024_v13, 6 }
 0x43c   : > { %8770 = vmatmul.msk.bf16.gmra.mxu1 %vm460_vm6, %v9279_v35  ;;  %v6635_v35 = vsel %vm9598_vm5, %v6633_v10, %v6634_v23  ;;  %v6378_v40 = vsel %vm9569_vm2, %v6376_v31, %v6377_v43  ;;  %v9040_v23 = vrot.slane %v9022_v63, 10  ;;  %v9026_v43 = vld [vmem:[%s9573_s16 + $0x474] sm:$0xf] }
 0x43d   : > { %v5831_v51 = vpop.f32.mrf.mxu2  ;;  %v6685_v61 = vunpack.c.l.b16 %v6635_v35  ;;  %v6433_v35 = vunpack.c.l.b16 %v6378_v40  ;;  %v9027_v40 = vld [vmem:[%s9573_s16 + $0x478] sm:$0x3] }
 0x43f   : > { %v6698_v4 = vpack.c.b16 %v6685_v61, %v6684_v8  ;;  %v8955_v61 = vld [vmem:[%s9573_s16 + $0x430] sm:$0xe] }
 0x441   : > { %v4941_v42 = vpop.f32.mrf.mxu1 }
 0x442   : > { %v11984_v46 = vadd.f32 %v4941_v42, %v12401_v22  ;;  %9070 = vmatmul.msk.bf16.gmra.mxu2 %vm460_vm6, %v6697_v24  ;;  %v6638_v42 = vrot.slane %v9023_v0, 6 }
 0x444   : > { %v6640_v28 = vrot.slane %v6638_v42, 4 }
 0x445   : > { %v5834_v52 = vpop.f32.mrf.mxu2 }
 0x449   : > { %v5731_v25 = vpop.f32.mrf.mxu1 }
 0x44a   : > { %v5771_v14 = vadd.f32 %v5731_v25, %v11748_v26  ;;  %v9318_v26 = vld [vmem:[%s12334_s3 + $0xf0] sm:$0xff] }
 0x44b   : > { %6943 = vmatpush.bf16.msrb.mxu3 %v9318_v26  ;;  %v8956_v25 = vld [vmem:[%s9573_s16 + $0x434] sm:$0xf]  ;;  %v8975_v26 = vrot.slane %v8955_v61, 9 }
 0x44c   : > { %9005 = vmatmul.msk.bf16.vlgmr.msrb.gmra.mxu1 %vm460_vm6, %v6446_v48  ;;  %v11996_v33 = vadd.f32 %v5829_v11, %v5771_v14  ;;  %v6375_v11 = vsel %vm9569_vm2, %v8974_v38, %v6374_v18  ;;  %v6639_v18 = vsel %vm9598_vm5, %v9040_v23, %v6638_v42  ;;  %v6381_v59 = vrot.slane %v8956_v25, 5 }
 0x44d   : > { %v5836_v24 = vpop.f32.mrf.mxu2  ;;  %v6432_v7 = vunpack.c.l.b16 %v6375_v11  ;;  %v6686_v0 = vunpack.c.l.b16 %v6639_v18  ;;  %v9025_v11 = vld [vmem:[%s9573_s16 + $0x470] sm:$0xc] }
 0x44e   : > { %v6383_v42 = vrot.slane %v6381_v59, 4 }
 0x44f   : > { %v6447_v14 = vpack.c.b16 %v6433_v35, %v6432_v7  ;;  %v6648_v35 = vrot.slane %v9027_v40, 6 }
 0x451   : > { %v5733_v22 = vpop.f32.mrf.mxu1 }
 0x452   : > { %v5772_v10 = vadd.f32 %v5733_v22, %v11755_v19  ;;  %9071 = vmatmul.msk.bf16.gmra.mxu2 %vm460_vm6, %v6698_v4  ;;  %v6642_v19 = vsel %vm9598_vm5, %v6640_v28, %v6641_v34  ;;  %v6645_v22 = vrot.slane %v9026_v43, 6  ;;  %v9041_v34 = vrot.slane %v9025_v11, 10 }
 0x453   : > { %v6687_v38 = vunpack.c.l.b16 %v6642_v19 }
 0x454   : > { %v12010_v45 = vadd.f32 %v5831_v51, %v5772_v10  ;;  %v8957_v51 = vld [vmem:[%s9573_s16 + $0x438] sm:$0x1]  ;;  %v6647_v7 = vrot.slane %v6645_v22, 4 }
 0x455   : > { %v5839_v48 = vpop.f32.mrf.mxu2  ;;  %v6384_v63 = vrot.slane %v8957_v51, 5  ;;  %v6699_v13 = vpack.c.b16 %v6687_v38, %v6686_v0  ;;  %v8958_v38 = vld [vmem:[%s9573_s16 + $0x44c] sm:$0xe] }
 0x457   : > { %v6385_v23 = vsel %vm9569_vm2, %v6383_v42, %v6384_v63  ;;  %v9029_v63 = vld [vmem:[%s9573_s16 + $0x490] sm:$0xf] }
 0x458   : > { %v6435_v19 = vunpack.c.l.b16 %v6385_v23  ;;  %v9030_v23 = vld [vmem:[%s9573_s16 + $0x494] sm:$0x3] }
 0x459   : > { %v5736_v2 = vpop.f32.mrf.mxu1 }
 0x45a   : > { %v5773_v8 = vadd.f32 %v5736_v2, %v11770_v57  ;;  %v9317_v57 = vld [vmem:[%s12334_s3 + $0xe8] sm:$0xff]  ;;  %v8959_v2 = vld [vmem:[%s9573_s16 + $0x450] sm:$0xf] }
 0x45b   : > { %6944 = vmatpush.bf16.msrb.mxu3 %v9317_v57  ;;  %v6388_v51 = vrot.slane %v8959_v2, 5  ;;  %v8976_v57 = vrot.slane %v8958_v38, 9 }
 0x45c   : > { %9006 = vmatmul.msk.bf16.gmra.mxu1 %vm460_vm6, %v6447_v14  ;;  %v12021_v31 = vadd.f32 %v5834_v52, %v5773_v8  ;;  %v6382_v52 = vsel %vm9569_vm2, %v8975_v26, %v6381_v59  ;;  %v6646_v59 = vsel %vm9598_vm5, %v9041_v34, %v6645_v22 }
 0x45d   : > { %v5841_v4 = vpop.f32.mrf.mxu2  ;;  %v6434_v18 = vunpack.c.l.b16 %v6382_v52  ;;  %v6688_v43 = vunpack.c.l.b16 %v6646_v59  ;;  %v6390_v22 = vrot.slane %v6388_v51, 4  ;;  %v9028_v52 = vld [vmem:[%s9573_s16 + $0x48c] sm:$0xc] }
 0x45f   : > { %v6448_v8 = vpack.c.b16 %v6435_v19, %v6434_v18  ;;  %v6655_v19 = vrot.slane %v9030_v23, 6 }
 0x461   : > { %v5738_v10 = vpop.f32.mrf.mxu1 }
 0x462   : > { %v5774_v28 = vadd.f32 %v5738_v10, %v11785_v29  ;;  %9072 = vmatmul.msk.bf16.gmra.mxu2 %vm460_vm6, %v6699_v13  ;;  %v6649_v29 = vsel %vm9598_vm5, %v6647_v7, %v6648_v35  ;;  %v6652_v10 = vrot.slane %v9029_v63, 6  ;;  %v9042_v35 = vrot.slane %v9028_v52, 10 }
 0x463   : > { %v6689_v26 = vunpack.c.l.b16 %v6649_v29 }
 0x464   : > { %v12035_v25 = vadd.f32 %v5836_v24, %v5774_v28  ;;  %v8960_v24 = vld [vmem:[%s9573_s16 + $0x454] sm:$0x1]  ;;  %v6654_v18 = vrot.slane %v6652_v10, 4 }
 0x465   : > { %v5844_v14 = vpop.f32.mrf.mxu2  ;;  %v6391_v11 = vrot.slane %v8960_v24, 5  ;;  %v6700_v40 = vpack.c.b16 %v6689_v26, %v6688_v43  ;;  %v8961_v26 = vld [vmem:[%s9573_s16 + $0x468] sm:$0xe] }
 0x467   : > { %v6392_v34 = vsel %vm9569_vm2, %v6390_v22, %v6391_v11  ;;  %v9032_v11 = vld [vmem:[%s9573_s16 + $0x4ac] sm:$0xf] }
 0x468   : > { %v6437_v29 = vunpack.c.l.b16 %v6392_v34  ;;  %v9033_v34 = vld [vmem:[%s9573_s16 + $0x4b0] sm:$0x3] }
 0x469   : > { %v5741_v61 = vpop.f32.mrf.mxu1 }
 0x46a   : > { %v5775_v0 = vadd.f32 %v5741_v61, %v11799_v5  ;;  %v9316_v5 = vld [vmem:[%s12334_s3 + $0xe0] sm:$0xff]  ;;  %v8962_v61 = vld [vmem:[%s9573_s16 + $0x46c] sm:$0xf] }
 0x46b   : > { %6945 = vmatpush.bf16.msrb.mxu3 %v9316_v5  ;;  %v6395_v24 = vrot.slane %v8962_v61, 5  ;;  %v8977_v5 = vrot.slane %v8961_v26, 9 }
 0x46c   : > { %9007 = vmatmul.msk.bf16.gmra.mxu1 %vm460_vm6, %v6448_v8  ;;  %v12046_v42 = vadd.f32 %v5839_v48, %v5775_v0  ;;  %v6389_v48 = vsel %vm9569_vm2, %v8976_v57, %v6388_v51  ;;  %v6653_v51 = vsel %vm9598_vm5, %v9042_v35, %v6652_v10 }
 0x46d   : > { %v5846_v13 = vpop.f32.mrf.mxu2  ;;  %v6436_v59 = vunpack.c.l.b16 %v6389_v48  ;;  %v6690_v63 = vunpack.c.l.b16 %v6653_v51  ;;  %v6397_v10 = vrot.slane %v6395_v24, 4  ;;  %v9031_v48 = vld [vmem:[%s9573_s16 + $0x4a8] sm:$0xc] }
 0x46f   : > { %v6449_v0 = vpack.c.b16 %v6437_v29, %v6436_v59  ;;  %v6662_v29 = vrot.slane %v9033_v34, 6 }
 0x471   : > { %v5743_v28 = vpop.f32.mrf.mxu1 }
 0x472   : > { %v5776_v7 = vadd.f32 %v5743_v28, %v11811_v58  ;;  %9073 = vmatmul.msk.bf16.gmra.mxu2 %vm460_vm6, %v6700_v40  ;;  %v6656_v58 = vsel %vm9598_vm5, %v6654_v18, %v6655_v19  ;;  %v6659_v28 = vrot.slane %v9032_v11, 6  ;;  %v9043_v19 = vrot.slane %v9031_v48, 10 }
 0x473   : > { %v6691_v57 = vunpack.c.l.b16 %v6656_v58 }
 0x474   : > { %v12060_v2 = vadd.f32 %v5841_v4, %v5776_v7  ;;  %v8963_v4 = vld [vmem:[%s9573_s16 + $0x470] sm:$0x1]  ;;  %v6661_v59 = vrot.slane %v6659_v28, 4 }
 0x475   : > { %v5849_v8 = vpop.f32.mrf.mxu2  ;;  %v6398_v52 = vrot.slane %v8963_v4, 5  ;;  %v6701_v23 = vpack.c.b16 %v6691_v57, %v6690_v63  ;;  %v8964_v57 = vld [vmem:[%s9573_s16 + $0x484] sm:$0xe] }
 0x477   : > { %v6399_v35 = vsel %vm9569_vm2, %v6397_v10, %v6398_v52  ;;  %v9035_v52 = vld [vmem:[%s9573_s16 + $0x4c8] sm:$0xf] }
 0x478   : > { %v6439_v58 = vunpack.c.l.b16 %v6399_v35  ;;  %v9036_v35 = vld [vmem:[%s9573_s16 + $0x4cc] sm:$0x3] }
 0x479   : > { %v5746_v38 = vpop.f32.mrf.mxu1 }
 0x47a   : > { %v5777_v43 = vadd.f32 %v5746_v38, %v11828_v36  ;;  %v9315_v36 = vld [vmem:[%s12334_s3 + $0xd8] sm:$0xff]  ;;  %v8965_v38 = vld [vmem:[%s9573_s16 + $0x488] sm:$0xf] }
 0x47b   : > { %6946 = vmatpush.bf16.msrb.mxu3 %v9315_v36  ;;  %v6402_v4 = vrot.slane %v8965_v38, 5  ;;  %v8978_v36 = vrot.slane %v8964_v57, 9 }
 0x47c   : > { %9008 = vmatmul.msk.bf16.gmra.mxu1 %vm460_vm6, %v6449_v0  ;;  %v12071_v22 = vadd.f32 %v5844_v14, %v5777_v43  ;;  %v6396_v14 = vsel %vm9569_vm2, %v8977_v5, %v6395_v24  ;;  %v6660_v24 = vsel %vm9598_vm5, %v9043_v19, %v6659_v28 }
 0x47d   : > { %v5851_v40 = vpop.f32.mrf.mxu2  ;;  %v6438_v51 = vunpack.c.l.b16 %v6396_v14  ;;  %v6692_v11 = vunpack.c.l.b16 %v6660_v24  ;;  %v6404_v28 = vrot.slane %v6402_v4, 4  ;;  %v9034_v14 = vld [vmem:[%s9573_s16 + $0x4c4] sm:$0xc] }
 0x47f   : > { %v6450_v43 = vpack.c.b16 %v6439_v58, %v6438_v51  ;;  %v6669_v58 = vrot.slane %v9036_v35, 6 }
 0x481   : > { %v5748_v7 = vpop.f32.mrf.mxu1 }
 0x482   : > { %v5778_v18 = vadd.f32 %v5748_v7, %v11843_v20  ;;  %9074 = vmatmul.msk.bf16.gmra.mxu2 %vm460_vm6, %v6701_v23  ;;  %v6663_v20 = vsel %vm9598_vm5, %v6661_v59, %v6662_v29  ;;  %v6666_v7 = vrot.slane %v9035_v52, 6  ;;  %v9044_v29 = vrot.slane %v9034_v14, 10  ;;  %v8969_v52 = vld [vmem:[%s9573_s16 + $0x4a8] sm:$0x1] }
 0x483   : > { %v6693_v5 = vunpack.c.l.b16 %v6663_v20  ;;  %v9313_v14 = vld [vmem:[%s12334_s3 + $0xc8] sm:$0xff] }
 0x484   : > { %v12085_v61 = vadd.f32 %v5846_v13, %v5778_v18  ;;  %v8966_v13 = vld [vmem:[%s9573_s16 + $0x48c] sm:$0x1]  ;;  %v6668_v51 = vrot.slane %v6666_v7, 4 }
 0x485   : > { %v5854_v0 = vpop.f32.mrf.mxu2  ;;  %v6405_v48 = vrot.slane %v8966_v13, 5  ;;  %v6702_v34 = vpack.c.b16 %v6693_v5, %v6692_v11  ;;  %v8967_v5 = vld [vmem:[%s9573_s16 + $0x4a0] sm:$0xe] }
 0x487   : > { %v6406_v19 = vsel %vm9569_vm2, %v6404_v28, %v6405_v48 }
 0x488   : > { %v6441_v20 = vunpack.c.l.b16 %v6406_v19 }
 0x489   : > { %v5751_v26 = vpop.f32.mrf.mxu1 }
 0x48a   : > { %v5779_v63 = vadd.f32 %v5751_v26, %v11857_v53  ;;  %v9314_v53 = vld [vmem:[%s12334_s3 + $0xd0] sm:$0xff]  ;;  %v8968_v26 = vld [vmem:[%s9573_s16 + $0x4a4] sm:$0xf] }
 0x48b   : > { %6947 = vmatpush.bf16.msrb.mxu3 %v9314_v53  ;;  %v6409_v13 = vrot.slane %v8968_v26, 5 }
 0x48c   : > { %9009 = vmatmul.msk.bf16.gmra.mxu1 %vm460_vm6, %v6450_v43  ;;  %v12096_v10 = vadd.f32 %v5849_v8, %v5779_v63  ;;  %v6403_v8 = vsel %vm9569_vm2, %v8978_v36, %v6402_v4  ;;  %v6667_v4 = vsel %vm9598_vm5, %v9044_v29, %v6666_v7  ;;  %v6670_v63 = vsel %vm9598_vm5, %v6668_v51, %v6669_v58  ;;  %v8971_v58 = vld [vmem:[%s9573_s16 + $0x4c0] sm:$0xf] }
 0x48d   : > { %v5856_v23 = vpop.f32.mrf.mxu2  ;;  %v6440_v24 = vunpack.c.l.b16 %v6403_v8  ;;  %v6694_v36 = vunpack.c.l.b16 %v6667_v4  ;;  %v6411_v53 = vrot.slane %v6409_v13, 4  ;;  %v6412_v7 = vrot.slane %v8969_v52, 5 }
 0x48e   : > { %v6416_v4 = vrot.slane %v8971_v58, 5 }
 0x48f   : > { %6948 = vmatpush.bf16.msrb.mxu3 %v9313_v14 }
 0x491   : > { %v5753_v18 = vpop.f32.mrf.mxu1 }
 0x492   : > { %v5780_v59 = vadd.f32 %v5753_v18, %v11869_v15  ;;  %9075 = vmatmul.msk.bf16.gmra.mxu2 %vm460_vm6, %v6702_v34  ;;  %v6451_v15 = vpack.c.b16 %v6441_v20, %v6440_v24  ;;  %v8979_v34 = vrot.slane %v8967_v5, 9  ;;  %v6079_v18 = vpop.f32.mrf.mxu3  ;;  %v6261_v24 = vpop.f32.mrf.mxu0  ;;  %v6418_v5 = vrot.slane %v6416_v4, 4 }
 0x494   : > { %v12110_v38 = vadd.f32 %v5851_v40, %v5780_v59  ;;  %v6695_v40 = vunpack.c.l.b16 %v6670_v63  ;;  %v6410_v35 = vsel %vm9569_vm2, %v8979_v34, %v6409_v13 }
 0x495   : > { %v5859_v43 = vpop.f32.mrf.mxu2  ;;  %v6442_v59 = vunpack.c.l.b16 %v6410_v35 }
 0x496   : > { %v6703_v32 = vpack.c.b16 %v6695_v40, %v6694_v36 }
 0x499   : > { %v5756_v57 = vpop.f32.mrf.mxu1 }
 0x49a   : > { %v5781_v11 = vadd.f32 %v5756_v57, %v11886_v3  ;;  %v8972_v57 = vld [vmem:[%s9573_s16 + $0x4c4] sm:$0x1]  ;;  %v6081_v13 = vpop.f32.mrf.mxu3  ;;  %v6263_v36 = vpop.f32.mrf.mxu0 }
 0x49b   : > { %v6419_v52 = vrot.slane %v8972_v57, 5 }
 0x49c   : > { %9010 = vmatmul.msk.bf16.gmra.mxu1 %vm460_vm6, %v6451_v15  ;;  %v12121_v28 = vadd.f32 %v5854_v0, %v5781_v11  ;;  %v6413_v0 = vsel %vm9569_vm2, %v6411_v53, %v6412_v7  ;;  %v8970_v15 = vld [vmem:[%s9573_s16 + $0x4bc] sm:$0xe]  ;;  %v9312_v7 = vld [vmem:[%s12334_s3 + $0xc0] sm:$0xff]  ;;  %s287_s16 = sadd.s32 %s7244_s18, %s7243_s17 }
 0x49d   : > { %v5861_v48 = vpop.f32.mrf.mxu2  ;;  %v6443_v29 = vunpack.c.l.b16 %v6413_v0  ;;  %v6420_v53 = vsel %vm9569_vm2, %v6418_v5, %v6419_v52  ;;  %6949 = vmatpush.bf16.msrb.mxu3 %v9312_v7  ;;  %v6120_v52 = vadd.f32 %v6081_v13, %v12010_v45  ;;  %v12173_v45 = vld [vmem:[%s12335_s4 + $0x7] ss:$0 sm:$0xff]  ;;  %s7245_s19 = sshll.u32 %s287_s16, 2 }
 0x49e   : > { %v6445_v14 = vunpack.c.l.b16 %v6420_v53  ;;  %s12251_s22 = scalar_lea.vmem %s12337_s6, %s7245_s19 }
 0x49f   : > { %v6452_v20 = vpack.c.b16 %v6443_v29, %v6442_v59 }
 0x4a1   : > { %v5758_v3 = vpop.f32.mrf.mxu1 }
 0x4a2   : > { %v5782_v8 = vadd.f32 %v5758_v3, %v11901_v1  ;;  %9076 = vmatmul.msk.bf16.gmra.mxu2 %vm460_vm6, %v6703_v32  ;;  %v6084_v35 = vpop.f32.mrf.mxu3  ;;  %v6266_v29 = vpop.f32.mrf.mxu0 }
 0x4a4   : > { %v12132_v19 = vadd.f32 %v5856_v23, %v5782_v8  ;;  %v8980_v23 = vrot.slane %v8970_v15, 9 }
 0x4a5   : > { %v5864_v51 = vpop.f32.mrf.mxu2 }
 0x4a6   : > { %v6417_v34 = vsel %vm9569_vm2, %v8980_v23, %v6416_v4 }
 0x4a7   : > { %v6444_v32 = vunpack.c.l.b16 %v6417_v34  ;;  %v12163_v34 = vld [vmem:[%s12335_s4 + $0x6] ss:$0 sm:$0xff] }
 0x4a9   : > { %v5761_v26 = vpop.f32.mrf.mxu1  ;;  %v6453_v0 = vpack.c.b16 %v6445_v14, %v6444_v32 }
 0x4aa   : > { %v5783_v63 = vadd.f32 %v5761_v26, %v11915_v41  ;;  %v6086_v58 = vpop.f32.mrf.mxu3  ;;  %v6119_v26 = vadd.f32 %v6079_v18, %v11996_v33  ;;  %v6302_v33 = vadd.f32 %v6263_v36, %v6120_v52 }
 0x4ac   : > { %9011 = vmatmul.msk.bf16.gmra.mxu1 %vm460_vm6, %v6452_v20  ;;  %v12139_v1 = vadd.f32 %v5859_v43, %v5783_v63  ;;  %v6268_v63 = vpop.f32.mrf.mxu0  ;;  %v6301_v57 = vadd.f32 %v6261_v24, %v6119_v26  ;;  %v6122_v26 = vadd.f32 %v6086_v58, %v12035_v25 }
 0x4ad   : > { %v5866_v11 = vpop.f32.mrf.mxu2 }
 0x4b1   : > { %v5763_v40 = vpop.f32.mrf.mxu1 }
 0x4b2   : > { %v5784_v41 = vadd.f32 %v5763_v40, %v11928_v27 }
 0x4b4   : > { %v12149_v43 = vadd.f32 %v5861_v48, %v5784_v41 }
 0x4b5   : > { %v6761_v3 = vpop.f32.mrf.mxu2 }
 0x4b9   : > { %v5766_v8 = vpop.f32.mrf.mxu1 }
 0x4ba   : > { %v5785_v59 = vadd.f32 %v5766_v8, %v11945_v60  ;;  %v6089_v60 = vpop.f32.mrf.mxu3 }
 0x4bc   : > { %9012 = vmatmul.msk.bf16.gmra.mxu1 %vm460_vm6, %v6453_v0  ;;  %v12153_v12 = vadd.f32 %v5864_v51, %v5785_v59 }
 0x4bd   : > { %v6763_v27 = vpop.f32.mrf.mxu2 }
 0x4c1   : > { %v5768_v20 = vpop.f32.mrf.mxu1 }
 0x4c2   : > { %v5786_v48 = vadd.f32 %v5768_v20, %v11953_v62  ;;  %v6271_v62 = vpop.f32.mrf.mxu0  ;;  %v6091_v53 = vpop.f32.mrf.mxu3 }
 0x4c4   : > { %v12157_v4 = vadd.f32 %v5866_v11, %v5786_v48  ;;  %v6121_v11 = vadd.f32 %v6084_v35, %v12021_v31 }
 0x4c5   : > { %v6766_v15 = vpop.f32.mrf.mxu2 }
 0x4c9   : > { %v6511_v23 = vpop.f32.mrf.mxu1 }
 0x4ca   : > { %v6551_v5 = vadd.f32 %v6511_v23, %v6301_v57  ;;  %v6273_v0 = vpop.f32.mrf.mxu0  ;;  %v6094_v23 = vpop.f32.mrf.mxu3 }
 0x4cc   : > { %v6801_v40 = vadd.f32 %v6761_v3, %v6551_v5  ;;  %v6303_v3 = vadd.f32 %v6266_v29, %v6121_v11 }
 0x4cd   : > { %v6768_v51 = vpop.f32.mrf.mxu2 }
 0x4ce   : > { %v6819_v24 = vmul.f32 %v12163_v34, %v6801_v40 }
 0x4d0   : > { %v6837_v32 = vadd.f32 %v12173_v45, %v6819_v24 }
 0x4d1   : > { %v6513_v18 = vpop.f32.mrf.mxu1 }
 0x4d2   : > { %v6552_v13 = vadd.f32 %v6513_v18, %v6302_v33  ;;  %v6853_v59 = vmax.f32 %v6837_v32, 0.0  ;;  %v6276_v29 = vpop.f32.mrf.mxu0  ;;  %v6123_v33 = vadd.f32 %v6089_v60, %v12046_v42  ;;  %v6096_v25 = vpop.f32.mrf.mxu3 }
 0x4d4   : > { %v6802_v41 = vadd.f32 %v6763_v27, %v6552_v13  ;;  %v6304_v27 = vadd.f32 %v6268_v63, %v6122_v26  ;;  %v6305_v11 = vadd.f32 %v6271_v62, %v6123_v33  ;;  %v6125_v26 = vadd.f32 %v6094_v23, %v12071_v22 }
 0x4d5   : > { %v6771_v7 = vpop.f32.mrf.mxu2  ;;  %v6126_v33 = vadd.f32 %v6096_v25, %v12085_v61 }
 0x4d6   : > { %v6820_v14 = vmul.f32 %v12163_v34, %v6802_v41 }
 0x4d8   : > { %v6838_v36 = vadd.f32 %v12173_v45, %v6820_v14 }
 0x4d9   : > { %v6516_v8 = vpop.f32.mrf.mxu1 }
 0x4da   : > { %v6854_v20 = vmax.f32 %v6838_v36, 0.0  ;;  %v6553_v48 = vadd.f32 %v6516_v8, %v6303_v3  ;;  %v6124_v3 = vadd.f32 %v6091_v53, %v12060_v2  ;;  %v6278_v8 = vpop.f32.mrf.mxu0  ;;  %v6307_v2 = vadd.f32 %v6276_v29, %v6125_v26 }
 0x4db   : > { %v6308_v22 = vadd.f32 %v6278_v8, %v6126_v33 }
 0x4dc   : > { %v6869_v57 = vpack.c.bf16 %v6854_v20, %v6853_v59  ;;  %v6803_v31 = vadd.f32 %v6766_v15, %v6553_v48  ;;  %v6306_v42 = vadd.f32 %v6273_v0, %v6124_v3 }
 0x4dd   : > { %v6773_v35 = vpop.f32.mrf.mxu2 }
 0x4de   : > { %6950 = vmatmul.bf16.vlgmr.msrb.gmra.mxu3 %v6869_v57  ;;  %v6821_v52 = vmul.f32 %v12163_v34, %v6803_v31 }
 0x4e0   : > { %v6839_v13 = vadd.f32 %v12173_v45, %v6821_v52 }
 0x4e1   : > { %v6518_v5 = vpop.f32.mrf.mxu1 }
 0x4e2   : > { %v6554_v40 = vadd.f32 %v6518_v5, %v6304_v27  ;;  %v6855_v63 = vmax.f32 %v6839_v13, 0.0  ;;  %v6281_v5 = vpop.f32.mrf.mxu0 }
 0x4e4   : > { %v6804_v18 = vadd.f32 %v6768_v51, %v6554_v40  ;;  %v6099_v51 = vpop.f32.mrf.mxu3 }
 0x4e5   : > { %v6776_v41 = vpop.f32.mrf.mxu2  ;;  %v6127_v29 = vadd.f32 %v6099_v51, %v12096_v10 }
 0x4e6   : > { %v6822_v24 = vmul.f32 %v12163_v34, %v6804_v18 }
 0x4e7   : > { %v6309_v25 = vadd.f32 %v6281_v5, %v6127_v29 }
 0x4e8   : > { %v6840_v58 = vadd.f32 %v12173_v45, %v6822_v24 }
 0x4e9   : > { %v6521_v15 = vpop.f32.mrf.mxu1 }
 0x4ea   : > { %v6555_v32 = vadd.f32 %v6521_v15, %v6305_v11  ;;  %v6856_v14 = vmax.f32 %v6840_v58, 0.0  ;;  %v6283_v23 = vpop.f32.mrf.mxu0 }
 0x4ec   : > { %v6870_v36 = vpack.c.bf16 %v6856_v14, %v6855_v63  ;;  %v6805_v59 = vadd.f32 %v6771_v7, %v6555_v32  ;;  %v6101_v18 = vpop.f32.mrf.mxu3 }
 0x4ed   : > { %v6778_v48 = vpop.f32.mrf.mxu2 }
 0x4ee   : > { %6955 = vmatmul.bf16.gmra.mxu3 %v6870_v36  ;;  %v6823_v20 = vmul.f32 %v12163_v34, %v6805_v59 }
 0x4f0   : > { %v6841_v27 = vadd.f32 %v12173_v45, %v6823_v20  ;;  %v6128_v20 = vadd.f32 %v6101_v18, %v12110_v38 }
 0x4f1   : > { %v6523_v60 = vpop.f32.mrf.mxu1 }
 0x4f2   : > { %v6556_v62 = vadd.f32 %v6523_v60, %v6306_v42  ;;  %v6857_v0 = vmax.f32 %v6841_v27, 0.0  ;;  %v6286_v60 = vpop.f32.mrf.mxu0  ;;  %v6310_v10 = vadd.f32 %v6283_v23, %v6128_v20 }
 0x4f4   : > { %v6806_v57 = vadd.f32 %v6773_v35, %v6556_v62  ;;  %v6104_v63 = vpop.f32.mrf.mxu3 }
 0x4f5   : > { %v6781_v13 = vpop.f32.mrf.mxu2  ;;  %v6129_v5 = vadd.f32 %v6104_v63, %v12121_v28 }
 0x4f6   : > { %v6824_v31 = vmul.f32 %v12163_v34, %v6806_v57 }
 0x4f8   : > { %v6842_v53 = vadd.f32 %v12173_v45, %v6824_v31 }
 0x4f9   : > { %v6526_v7 = vpop.f32.mrf.mxu1 }
 0x4fa   : > { %v6557_v52 = vadd.f32 %v6526_v7, %v6307_v2  ;;  %v6858_v40 = vmax.f32 %v6842_v53, 0.0  ;;  %v6288_v53 = vpop.f32.mrf.mxu0 }
 0x4fc   : > { %v6871_v24 = vpack.c.bf16 %v6858_v40, %v6857_v0  ;;  %v6807_v11 = vadd.f32 %v6776_v41, %v6557_v52  ;;  %v6106_v51 = vpop.f32.mrf.mxu3  ;;  %v6311_v0 = vadd.f32 %v6286_v60, %v6129_v5 }
 0x4fd   : > { %v6783_v61 = vpop.f32.mrf.mxu2 }
 0x4fe   : > { %6960 = vmatmul.bf16.gmra.mxu3 %v6871_v24  ;;  %v6825_v58 = vmul.f32 %v12163_v34, %v6807_v11 }
 0x500   : > { %v6843_v3 = vadd.f32 %v12173_v45, %v6825_v58 }
 0x501   : > { %v6528_v35 = vpop.f32.mrf.mxu1 }
 0x502   : > { %v6558_v15 = vadd.f32 %v6528_v35, %v6308_v22  ;;  %v6859_v8 = vmax.f32 %v6843_v3, 0.0  ;;  %v6130_v22 = vadd.f32 %v6106_v51, %v12132_v19  ;;  %v6291_v28 = vpop.f32.mrf.mxu0 }
 0x504   : > { %v6808_v32 = vadd.f32 %v6778_v48, %v6558_v15  ;;  %v6109_v33 = vpop.f32.mrf.mxu3  ;;  %v6312_v58 = vadd.f32 %v6288_v53, %v6130_v22 }
 0x505   : > { %v6786_v57 = vpop.f32.mrf.mxu2  ;;  %v6131_v63 = vadd.f32 %v6109_v33, %v12139_v1 }
 0x506   : > { %v6826_v14 = vmul.f32 %v12163_v34, %v6808_v32 }
 0x508   : > { %v6844_v36 = vadd.f32 %v12173_v45, %v6826_v14 }
 0x509   : > { %v6531_v41 = vpop.f32.mrf.mxu1 }
 0x50a   : > { %v6559_v59 = vadd.f32 %v6531_v41, %v6309_v25  ;;  %v6860_v42 = vmax.f32 %v6844_v36, 0.0  ;;  %v6313_v41 = vadd.f32 %v6291_v28, %v6131_v63 }
 0x50c   : > { %v6872_v62 = vpack.c.bf16 %v6860_v42, %v6859_v8  ;;  %v6809_v26 = vadd.f32 %v6781_v13, %v6559_v59  ;;  %v6111_v14 = vpop.f32.mrf.mxu3  ;;  %v6293_v59 = vpop.f32.mrf.mxu0 }
 0x50d   : > { %v6788_v11 = vpop.f32.mrf.mxu2 }
 0x50e   : > { %6965 = vmatmul.bf16.gmra.mxu3 %v6872_v62  ;;  %v6827_v31 = vmul.f32 %v12163_v34, %v6809_v26  ;;  %v6132_v62 = vadd.f32 %v6111_v14, %v12149_v43 }
 0x510   : > { %v6845_v52 = vadd.f32 %v12173_v45, %v6827_v31 }
 0x511   : > { %v6533_v48 = vpop.f32.mrf.mxu1 }
 0x512   : > { %v6560_v27 = vadd.f32 %v6533_v48, %v6310_v10  ;;  %v6861_v24 = vmax.f32 %v6845_v52, 0.0  ;;  %v6314_v48 = vadd.f32 %v6293_v59, %v6132_v62 }
 0x514   : > { %v6810_v2 = vadd.f32 %v6783_v61, %v6560_v27  ;;  %v6114_v10 = vpop.f32.mrf.mxu3  ;;  %v6296_v5 = vpop.f32.mrf.mxu0 }
 0x515   : > { %v6791_v61 = vpop.f32.mrf.mxu2 }
 0x516   : > { %v6828_v7 = vmul.f32 %v12163_v34, %v6810_v2  ;;  %v6133_v2 = vadd.f32 %v6114_v10, %v12153_v12 }
 0x518   : > { %v6846_v38 = vadd.f32 %v12173_v45, %v6828_v7 }
 0x519   : > { %v6536_v40 = vpop.f32.mrf.mxu1 }
 0x51a   : > { %v6561_v18 = vadd.f32 %v6536_v40, %v6311_v0  ;;  %v6862_v13 = vmax.f32 %v6846_v38, 0.0  ;;  %v6315_v0 = vadd.f32 %v6296_v5, %v6133_v2 }
 0x51c   : > { %v6873_v23 = vpack.c.bf16 %v6862_v13, %v6861_v24  ;;  %v6811_v35 = vadd.f32 %v6786_v57, %v6561_v18  ;;  %v6116_v43 = vpop.f32.mrf.mxu3 }
 0x51d   : > { %v6793_v51 = vpop.f32.mrf.mxu2 }
 0x51e   : > { %6970 = vmatmul.bf16.gmra.mxu3 %v6873_v23  ;;  %v6829_v29 = vmul.f32 %v12163_v34, %v6811_v35  ;;  %v6298_v23 = vpop.f32.mrf.mxu0 }
 0x520   : > { %v6847_v36 = vadd.f32 %v12173_v45, %v6829_v29 }
 0x521   : > { %v6538_v15 = vpop.f32.mrf.mxu1 }
 0x522   : > { %v6562_v32 = vadd.f32 %v6538_v15, %v6312_v58  ;;  %v6863_v60 = vmax.f32 %v6847_v36, 0.0 }
 0x524   : > { %v6812_v3 = vadd.f32 %v6788_v11, %v6562_v32  ;;  %v6134_v11 = vadd.f32 %v6116_v43, %v12157_v4 }
 0x525   : > { %v6796_v40 = vpop.f32.mrf.mxu2 }
 0x526   : > { %v6830_v25 = vmul.f32 %v12163_v34, %v6812_v3  ;;  %v6316_v35 = vadd.f32 %v6298_v23, %v6134_v11 }
 0x528   : > { %v6848_v19 = vadd.f32 %v12173_v45, %v6830_v25 }
 0x529   : > { %v6541_v8 = vpop.f32.mrf.mxu1 }
 0x52a   : > { %v6563_v42 = vadd.f32 %v6541_v8, %v6313_v41  ;;  %v6864_v20 = vmax.f32 %v6848_v19, 0.0  ;;  %v12227_v19 = vld [vmem:[%s279_s7] ss:$0 sm:$0xff] }
 0x52c   : > { %v6874_v26 = vpack.c.bf16 %v6864_v20, %v6863_v60  ;;  %v6813_v1 = vadd.f32 %v6791_v61, %v6563_v42 }
 0x52d   : > { %v6798_v29 = vpop.f32.mrf.mxu2 }
 0x52e   : > { %6975 = vmatmul.bf16.gmra.mxu3 %v6874_v26  ;;  %v6831_v31 = vmul.f32 %v12163_v34, %v6813_v1 }
 0x530   : > { %v6849_v52 = vadd.f32 %v12173_v45, %v6831_v31 }
 0x531   : > { %v6543_v57 = vpop.f32.mrf.mxu1 }
 0x532   : > { %v6564_v27 = vadd.f32 %v6543_v57, %v6314_v48  ;;  %v6865_v24 = vmax.f32 %v6849_v52, 0.0 }
 0x534   : > { %v6814_v53 = vadd.f32 %v6793_v51, %v6564_v27 }
 0x536   : > { %v6832_v7 = vmul.f32 %v12163_v34, %v6814_v53 }
 0x538   : > { %v6850_v38 = vadd.f32 %v12173_v45, %v6832_v7 }
 0x539   : > { %v6546_v33 = vpop.f32.mrf.mxu1 }
 0x53a   : > { %v6565_v18 = vadd.f32 %v6546_v33, %v6315_v0  ;;  %v6866_v13 = vmax.f32 %v6850_v38, 0.0 }
 0x53c   : > { %v6875_v22 = vpack.c.bf16 %v6866_v13, %v6865_v24  ;;  %v6815_v12 = vadd.f32 %v6796_v40, %v6565_v18 }
 0x53e   : > { %6980 = vmatmul.bf16.gmra.mxu3 %v6875_v22  ;;  %v6833_v58 = vmul.f32 %v12163_v34, %v6815_v12 }
 0x540   : > { %v6851_v14 = vadd.f32 %v12173_v45, %v6833_v58 }
 0x541   : > { %v6548_v28 = vpop.f32.mrf.mxu1 }
 0x542   : > { %v6566_v15 = vadd.f32 %v6548_v28, %v6316_v35  ;;  %v6867_v4 = vmax.f32 %v6851_v14, 0.0 }
 0x544   : > { %v6816_v32 = vadd.f32 %v6798_v29, %v6566_v15 }
 0x546   : > { %v6834_v63 = vmul.f32 %v12163_v34, %v6816_v32 }
 0x548   : > { %v6852_v3 = vadd.f32 %v12173_v45, %v6834_v63  ;;  %v12233_v45 = vld [vmem:[%s12335_s4 + $0x8] ss:$0 sm:$0xff] }
 0x54a   : > { %v6868_v61 = vmax.f32 %v6852_v3, 0.0 }
 0x54c   : > { %v6876_v25 = vpack.c.bf16 %v6868_v61, %v6867_v4 }
 0x54e   : > { %6985 = vmatmul.bf16.gmra.mxu3 %v6876_v25 }
 0x561   : > { %v6951_v36 = vpop.f32.mrf.mxu3 }
 0x562   : > { %v6991_v41 = vadd.f32 %v6951_v36, %v11776_v56  ;;  %v12239_v56 = vld [vmem:[%s12335_s4 + $0x9] ss:$0 sm:$0xff] }
 0x564   : > { %v7011_v34 = vadd.f32 %v12227_v19, %v6991_v41 }
 0x566   : > { %v7029_v8 = vmul.f32 %v12233_v45, %v7011_v34 }
 0x568   : > { %v7047_v20 = vadd.f32 %v12239_v56, %v7029_v8 }
 0x569   : > { %v6953_v59 = vpop.f32.mrf.mxu3 }
 0x56a   : > { %v6992_v42 = vadd.f32 %v6953_v59, %v11787_v55  ;;  %v7063_v1 = vmax.f32 %v7047_v20, 0.0 }
 0x56c   : > { %v7012_v60 = vadd.f32 %v12227_v19, %v6992_v42 }
 0x56e   : > { %v7030_v62 = vmul.f32 %v12233_v45, %v7012_v60 }
 0x570   : > { %v7048_v26 = vadd.f32 %v12239_v56, %v7030_v62 }
 0x571   : > { %v6956_v10 = vpop.f32.mrf.mxu3 }
 0x572   : > { %v7064_v51 = vmax.f32 %v7048_v26, 0.0  ;;  %v6993_v48 = vadd.f32 %v6956_v10, %v11805_v6 }
 0x574   : > { %v9323_v55 = vpack.c.bf16 %v7064_v51, %v7063_v1  ;;  %v7013_v57 = vadd.f32 %v12227_v19, %v6993_v48 }
 0x576   : > { %9324 = vst [vmem:[%s12251_s22] sm:$0xff] %v9323_v55   ;;  %v7031_v27 = vmul.f32 %v12233_v45, %v7013_v57 }
 0x578   : > { %v7049_v6 = vadd.f32 %v12239_v56, %v7031_v27 }
 0x579   : > { %v6958_v31 = vpop.f32.mrf.mxu3 }
 0x57a   : > { %v6994_v5 = vadd.f32 %v6958_v31, %v11813_v16  ;;  %v7065_v0 = vmax.f32 %v7049_v6, 0.0 }
 0x57c   : > { %v7014_v2 = vadd.f32 %v12227_v19, %v6994_v5 }
 0x57e   : > { %v7032_v53 = vmul.f32 %v12233_v45, %v7014_v2 }
 0x580   : > { %v7050_v7 = vadd.f32 %v12239_v56, %v7032_v53 }
 0x581   : > { %v6961_v52 = vpop.f32.mrf.mxu3 }
 0x582   : > { %v7066_v43 = vmax.f32 %v7050_v7, 0.0  ;;  %v6995_v38 = vadd.f32 %v6961_v52, %v11834_v47 }
 0x584   : > { %v9328_v40 = vpack.c.bf16 %v7066_v43, %v7065_v0  ;;  %v7015_v33 = vadd.f32 %v12227_v19, %v6995_v38 }
 0x586   : > { %9360 = vst [vmem:[%s12251_s22 + $0x8] sm:$0xff] %v9328_v40   ;;  %v7033_v16 = vmul.f32 %v12233_v45, %v7015_v33 }
 0x588   : > { %v7051_v11 = vadd.f32 %v12239_v56, %v7033_v16 }
 0x589   : > { %v6963_v18 = vpop.f32.mrf.mxu3 }
 0x58a   : > { %v6996_v24 = vadd.f32 %v6963_v18, %v11845_v54  ;;  %v7067_v47 = vmax.f32 %v7051_v11, 0.0 }
 0x58c   : > { %v7016_v13 = vadd.f32 %v12227_v19, %v6996_v24 }
 0x58e   : > { %v7034_v22 = vmul.f32 %v12233_v45, %v7016_v13 }
 0x590   : > { %v7052_v23 = vadd.f32 %v12239_v56, %v7034_v22 }
 0x591   : > { %v6966_v12 = vpop.f32.mrf.mxu3 }
 0x592   : > { %v7068_v35 = vmax.f32 %v7052_v23, 0.0  ;;  %v6997_v28 = vadd.f32 %v6966_v12, %v11863_v9 }
 0x594   : > { %v9333_v58 = vpack.c.bf16 %v7068_v35, %v7067_v47  ;;  %v7017_v15 = vadd.f32 %v12227_v19, %v6997_v28 }
 0x596   : > { %9361 = vst [vmem:[%s12251_s22 + $0x10] sm:$0xff] %v9333_v58   ;;  %v7035_v54 = vmul.f32 %v12233_v45, %v7017_v15 }
 0x598   : > { %v7053_v14 = vadd.f32 %v12239_v56, %v7035_v54 }
 0x599   : > { %v6968_v29 = vpop.f32.mrf.mxu3 }
 0x59a   : > { %v6998_v32 = vadd.f32 %v6968_v29, %v11871_v50  ;;  %v7069_v9 = vmax.f32 %v7053_v14, 0.0 }
 0x59c   : > { %v7018_v63 = vadd.f32 %v12227_v19, %v6998_v32 }
 0x59e   : > { %v7036_v3 = vmul.f32 %v12233_v45, %v7018_v63 }
 0x5a0   : > { %v7054_v4 = vadd.f32 %v12239_v56, %v7036_v3 }
 0x5a1   : > { %v6971_v61 = vpop.f32.mrf.mxu3 }
 0x5a2   : > { %v7070_v25 = vmax.f32 %v7054_v4, 0.0  ;;  %v6999_v36 = vadd.f32 %v6971_v61, %v11892_v30 }
 0x5a4   : > { %v9338_v41 = vpack.c.bf16 %v7070_v25, %v7069_v9  ;;  %v7019_v34 = vadd.f32 %v12227_v19, %v6999_v36 }
 0x5a6   : > { %9362 = vst [vmem:[%s12251_s22 + $0x18] sm:$0xff] %v9338_v41   ;;  %v7037_v50 = vmul.f32 %v12233_v45, %v7019_v34 }
 0x5a8   : > { %v7055_v60 = vadd.f32 %v12239_v56, %v7037_v50 }
 0x5a9   : > { %v6973_v59 = vpop.f32.mrf.mxu3 }
 0x5aa   : > { %v7000_v8 = vadd.f32 %v6973_v59, %v11903_v49  ;;  %v7071_v30 = vmax.f32 %v7055_v60, 0.0 }
 0x5ac   : > { %v7020_v42 = vadd.f32 %v12227_v19, %v7000_v8 }
 0x5ae   : > { %v7038_v20 = vmul.f32 %v12233_v45, %v7020_v42 }
 0x5b0   : > { %v7056_v62 = vadd.f32 %v12239_v56, %v7038_v20 }
 0x5b1   : > { %v6976_v26 = vpop.f32.mrf.mxu3 }
 0x5b2   : > { %v7072_v10 = vmax.f32 %v7056_v62, 0.0  ;;  %v7001_v1 = vadd.f32 %v6976_v26, %v11921_v37 }
 0x5b4   : > { %v9343_v51 = vpack.c.bf16 %v7072_v10, %v7071_v30  ;;  %v7021_v48 = vadd.f32 %v12227_v19, %v7001_v1 }
 0x5b6   : > { %9363 = vst [vmem:[%s12251_s22 + $0x20] sm:$0xff] %v9343_v51   ;;  %v7039_v49 = vmul.f32 %v12233_v45, %v7021_v48 }
 0x5b8   : > { %v7057_v27 = vadd.f32 %v12239_v56, %v7039_v49 }
 0x5b9   : > { %v6978_v55 = vpop.f32.mrf.mxu3 }
 0x5ba   : > { %v7002_v57 = vadd.f32 %v6978_v55, %v11932_v44  ;;  %v7073_v37 = vmax.f32 %v7057_v27, 0.0 }
 0x5bc   : > { %v7022_v31 = vadd.f32 %v12227_v19, %v7002_v57 }
 0x5be   : > { %v7040_v5 = vmul.f32 %v12233_v45, %v7022_v31 }
 0x5c0   : > { %v7058_v2 = vadd.f32 %v12239_v56, %v7040_v5 }
 0x5c1   : > { %v6981_v6 = vpop.f32.mrf.mxu3 }
 0x5c2   : > { %v7074_v53 = vmax.f32 %v7058_v2, 0.0  ;;  %v7003_v7 = vadd.f32 %v6981_v6, %v11947_v39 }
 0x5c4   : > { %v9348_v52 = vpack.c.bf16 %v7074_v53, %v7073_v37  ;;  %v7023_v0 = vadd.f32 %v12227_v19, %v7003_v7 }
 0x5c6   : > { %9364 = vst [vmem:[%s12251_s22 + $0x28] sm:$0xff] %v9348_v52   ;;  %v7041_v44 = vmul.f32 %v12233_v45, %v7023_v0 }
 0x5c8   : > { %v7059_v33 = vadd.f32 %v12239_v56, %v7041_v44 }
 0x5c9   : > { %v6983_v43 = vpop.f32.mrf.mxu3 }
 0x5ca   : > { %v7004_v38 = vadd.f32 %v6983_v43, %v11957_v21  ;;  %v7075_v39 = vmax.f32 %v7059_v33, 0.0 }
 0x5cc   : > { %v7024_v40 = vadd.f32 %v12227_v19, %v7004_v38 }
 0x5ce   : > { %v7042_v18 = vmul.f32 %v12233_v45, %v7024_v40 }
 0x5d0   : > { %v7060_v16 = vadd.f32 %v12239_v56, %v7042_v18 }
 0x5d1   : > { %v6986_v24 = vpop.f32.mrf.mxu3 }
 0x5d2   : > { %v7076_v13 = vmax.f32 %v7060_v16, 0.0  ;;  %v7005_v11 = vadd.f32 %v6986_v24, %v11968_v17 }
 0x5d4   : > { %v9353_v22 = vpack.c.bf16 %v7076_v13, %v7075_v39  ;;  %v7025_v23 = vadd.f32 %v12227_v19, %v7005_v11 }
 0x5d6   : > { %9365 = vst [vmem:[%s12251_s22 + $0x30] sm:$0xff] %v9353_v22   ;;  %v7043_v21 = vmul.f32 %v12233_v45, %v7025_v23 }
 0x5d8   : > { %v7061_v28 = vadd.f32 %v12239_v56, %v7043_v21 }
 0x5d9   : > { %v6988_v12 = vpop.f32.mrf.mxu3 }
 0x5da   : > { %v7006_v47 = vadd.f32 %v6988_v12, %v11984_v46  ;;  %v7077_v29 = vmax.f32 %v7061_v28, 0.0 }
 0x5dc   : > { %v7026_v35 = vadd.f32 %v12227_v19, %v7006_v47 }
 0x5de   : > { %v7044_v58 = vmul.f32 %v12233_v45, %v7026_v35 }
 0x5e0   : > { %v7062_v15 = vadd.f32 %v12239_v56, %v7044_v58 }
 0x5e2   : > { %v7078_v54 = vmax.f32 %v7062_v15, 0.0 }
 0x5e4   : > { %v9358_v17 = vpack.c.bf16 %v7078_v54, %v7077_v29 }
 0x5e6   : > { %9366 = vst [vmem:[%s12251_s22 + $0x38] sm:$0xff] %v9358_v17  }
 0x5e7 PF: > { %s16_s25 = sadd.s32 1, %s9457_s25   ;;  %s12402_s21 = smov %s9449_s23 }
 0x5e8   : > { %p13_p7 = scmp.ge.s32.totalorder %s16_s25, 6   ;;  %s12403_s22 = smov %s9453_s24 }
 0x5e9   : > { %s12404_s23 = smov %s12407_s26  ;;  %s12405_s24 = smov %s12411_s27 }
 0x5ea   :  { %15 = sbr.rel (!%p13_p7) target bundleno = 3 (0x3), region = 113 }

</bundles_post_ra>
